<compile_context>
chip_gen: v7x
topology: tpu7x:2x2x1
jax: 0.10.0
libtpu: 0.0.40
codegen_flags: <defaults>
</compile_context>

<pallas_src>
import jax
import jax.numpy as jnp
from jax import lax
from jax.experimental import pallas as pl
from jax.experimental.pallas import tpu as pltpu

# ---------------------------------------------------------------------------
# Geometry
# ---------------------------------------------------------------------------
H1, W1 = 24, 32          # conv1 output spatial (== input spatial, pad=1)
H2, W2 = 12, 16          # conv2 output spatial
H3, W3 = 6, 8            # conv3 output spatial
HO, WO = 3, 4            # pooled conv3 spatial (fc1 expects 128*3*4)

C1, C2, C3 = 32, 64, 128
FC_H = 512

B_TILE = 8               # images processed per grid step

L1 = H1 * W1             # 768 conv1 output rows per image (row = h*32 + w)

WP2 = W2 + 2             # 18   conv2 padded-flat row stride
L2 = H2 * WP2            # 216  conv2 acc rows (w>=W2 columns are junk, never read back)
S2 = 256                 # conv2 input scratch rows (>= 14*18 + tap margin, mult of 8)

WP3 = W3 + 2             # 10
L3P = 64                 # conv3 acc rows (>= 6*10, mult of 8; extra rows are junk)
S3 = 88                  # conv3 input scratch rows (>= 8*10 + tap margin, mult of 8)

NPIX = HO * WO           # 12 pooled conv3 pixels per image


# ---------------------------------------------------------------------------
# Fully fused kernel: one batch tile per grid step.
# ---------------------------------------------------------------------------
def _cnn_kernel(x9_ref, w1_ref, b1_ref, w2_ref, b2_ref, w3_ref, b3_ref,
                wf1_ref, bf1_ref, wf2_ref, bf2_ref, out_ref,
                y1, x2, y2, x3, y3, featp):
    f32 = jnp.float32

    # Zero the padded-flat conv2/conv3 input scratches once per step; the pooling
    # stores below always rewrite the same interior rows, the rest stays zero.
    x2[...] = jnp.zeros_like(x2)
    x3[...] = jnp.zeros_like(x3)

    def per_image(b, carry):
        # -------- conv1: single MXU matmul on the 9-tap im2col block ---------
        t1 = x9_ref[b]                                           # (768, 9) bf16
        a1 = jnp.dot(t1, w1_ref[...], preferred_element_type=f32)
        y1[...] = jnp.maximum(a1 + b1_ref[...], 0.0)             # (768, 32) f32

        # -------- maxpool 2x2/2 -> conv2 padded-flat input (bf16, cast once) --
        for ho in range(H2):
            taps = []
            for dh in range(2):
                for dw in range(2):
                    taps.append(y1[pl.ds((2 * ho + dh) * W1 + dw, W2, 2), :])
            blk = jnp.maximum(jnp.maximum(taps[0], taps[1]),
                              jnp.maximum(taps[2], taps[3]))     # (16, 32) f32
            x2[pl.ds((ho + 1) * WP2 + 1, W2), :] = blk.astype(x2.dtype)

        # -------- conv2: 9 shifted MXU matmuls, acc stays in vregs ------------
        acc2 = jnp.zeros((L2, C2), f32)
        for dh in range(3):
            for dw in range(3):
                xs = x2[pl.ds(dh * WP2 + dw, L2), :]             # (216, 32) bf16
                acc2 = acc2 + jnp.dot(xs, w2_ref[dh * 3 + dw],
                                      preferred_element_type=f32)
        y2[...] = jnp.maximum(acc2 + b2_ref[...], 0.0)           # (216, 64) f32

        # -------- maxpool -> conv3 padded-flat input ---------------------------
        for ho in range(H3):
            taps = []
            for dh in range(2):
                for dw in range(2):
                    taps.append(y2[pl.ds((2 * ho + dh) * WP2 + dw, W3, 2), :])
            blk = jnp.maximum(jnp.maximum(taps[0], taps[1]),
                              jnp.maximum(taps[2], taps[3]))     # (8, 64) f32
            x3[pl.ds((ho + 1) * WP3 + 1, W3), :] = blk.astype(x3.dtype)

        # -------- conv3 --------------------------------------------------------
        acc3 = jnp.zeros((L3P, C3), f32)
        for dh in range(3):
            for dw in range(3):
                xs = x3[pl.ds(dh * WP3 + dw, L3P), :]            # (64, 64) bf16
                acc3 = acc3 + jnp.dot(xs, w3_ref[dh * 3 + dw],
                                      preferred_element_type=f32)
        y3[...] = jnp.maximum(acc3 + b3_ref[...], 0.0)           # (64, 128) f32

        # -------- maxpool -> feature rows (row = p*B_TILE + b, HWC order) ------
        for p in range(NPIX):
            ho, wo = p // WO, p % WO
            r00 = 2 * ho * WP3 + 2 * wo
            v = jnp.maximum(
                jnp.maximum(y3[r00, :], y3[r00 + 1, :]),
                jnp.maximum(y3[r00 + WP3, :], y3[r00 + WP3 + 1, :]))
            featp[p * B_TILE + b, :] = v
        return carry

    lax.fori_loop(0, B_TILE, per_image, 0)

    # -------- fc1 + ReLU + fc2 + sigmoid for the whole batch tile --------------
    h = jnp.zeros((B_TILE, FC_H), jnp.float32)
    for p in range(NPIX):
        fa = featp[pl.ds(p * B_TILE, B_TILE), :].astype(jnp.bfloat16)   # (8, 128)
        h = h + jnp.dot(fa, wf1_ref[pl.ds(p * C3, C3), :],
                        preferred_element_type=jnp.float32)
    h = jnp.maximum(h + bf1_ref[...], 0.0)
    z = jnp.dot(h.astype(jnp.bfloat16), wf2_ref[...],
                preferred_element_type=jnp.float32) + bf2_ref[...]
    out_ref[...] = 1.0 / (1.0 + jnp.exp(-z))


def _resident(arr):
    """BlockSpec for a weight that stays resident across the whole grid."""
    if arr.ndim == 2:
        return pl.BlockSpec(arr.shape, lambda i: (0, 0))
    if arr.ndim == 3:
        return pl.BlockSpec(arr.shape, lambda i: (0, 0, 0))
    raise ValueError(arr.shape)


def cnn_pallas(x9, kp):
    n_pad = x9.shape[0]
    return pl.pallas_call(
        _cnn_kernel,
        out_shape=jax.ShapeDtypeStruct((n_pad, 1), jnp.float32),
        grid=(n_pad // B_TILE,),
        in_specs=[
            pl.BlockSpec((B_TILE, L1, 9), lambda i: (i, 0, 0)),
            _resident(kp["w1"]), _resident(kp["b1"]),
            _resident(kp["w2"]), _resident(kp["b2"]),
            _resident(kp["w3"]), _resident(kp["b3"]),
            _resident(kp["wf1"]), _resident(kp["bf1"]),
            _resident(kp["wf2"]), _resident(kp["bf2"]),
        ],
        out_specs=pl.BlockSpec((B_TILE, 1), lambda i: (i, 0)),
        scratch_shapes=[
            pltpu.VMEM((L1, C1), jnp.float32),                # y1
            pltpu.VMEM((S2, C1), jnp.bfloat16),               # x2 (padded-flat)
            pltpu.VMEM((L2, C2), jnp.float32),                # y2
            pltpu.VMEM((S3, C2), jnp.bfloat16),               # x3 (padded-flat)
            pltpu.VMEM((L3P, C3), jnp.float32),               # y3
            pltpu.VMEM((NPIX * B_TILE, C3), jnp.float32),     # pooled features
        ],
        compiler_params=pltpu.CompilerParams(
            dimension_semantics=("parallel",),
            vmem_limit_bytes=32 * 1024 * 1024,
        ),
    )(x9, kp["w1"], kp["b1"], kp["w2"], kp["b2"], kp["w3"], kp["b3"],
      kp["wf1"], kp["bf1"], kp["wf2"], kp["bf2"])


# ---------------------------------------------------------------------------
# Parameters (PyTorch layouts) and one-time conversion to kernel layouts.
# ---------------------------------------------------------------------------
def init_params(key):
    ks = jax.random.split(key, 10)

    def nrm(k, shape, scale):
        return (scale * jax.random.normal(k, shape)).astype(jnp.float32)

    return {
        "conv1_w": nrm(ks[0], (32, 1, 3, 3), 0.30), "conv1_b": nrm(ks[1], (32,), 0.05),
        "conv2_w": nrm(ks[2], (64, 32, 3, 3), 0.06), "conv2_b": nrm(ks[3], (64,), 0.05),
        "conv3_w": nrm(ks[4], (128, 64, 3, 3), 0.04), "conv3_b": nrm(ks[5], (128,), 0.05),
        "fc1_w": nrm(ks[6], (512, 128 * 3 * 4), 0.02), "fc1_b": nrm(ks[7], (512,), 0.02),
        "fc2_w": nrm(ks[8], (1, 512), 0.04), "fc2_b": nrm(ks[9], (1,), 0.0),
    }


def prepare_params(p):
    """PyTorch layouts -> kernel layouts (done once, outside jit)."""
    def conv_taps(w):
        c_out, c_in = w.shape[0], w.shape[1]
        # (C_out, C_in, kh, kw) -> (kh, kw, C_in, C_out) -> (9, C_in, C_out)
        return jnp.transpose(w, (2, 3, 1, 0)).reshape(9, c_in, c_out).astype(jnp.bfloat16)

    # fc1 rows in PyTorch are CHW order; permute once to HWC so the pooled
    # (p = ho*4 + wo, c) feature rows flatten with no per-forward transpose.
    wf1 = p["fc1_w"].reshape(512, 128, 3, 4)
    wf1 = jnp.transpose(wf1, (2, 3, 1, 0)).reshape(128 * 3 * 4, 512)

    return {
        "w1": conv_taps(p["conv1_w"]).reshape(9, C1),           # (9, 32) bf16
        "b1": p["conv1_b"].reshape(1, -1).astype(jnp.float32),
        "w2": conv_taps(p["conv2_w"]),                          # (9, 32, 64)
        "b2": p["conv2_b"].reshape(1, -1).astype(jnp.float32),
        "w3": conv_taps(p["conv3_w"]),                          # (9, 64, 128)
        "b3": p["conv3_b"].reshape(1, -1).astype(jnp.float32),
        "wf1": wf1.astype(jnp.bfloat16),                        # (1536, 512)
        "bf1": p["fc1_b"].reshape(1, -1).astype(jnp.float32),
        "wf2": jnp.transpose(p["fc2_w"]).astype(jnp.bfloat16),  # (512, 1)
        "bf2": p["fc2_b"].reshape(1, 1).astype(jnp.float32),
    }


# ---------------------------------------------------------------------------
# Forward pass: tiny XLA-side im2col for conv1 (9 taps in lanes), then one
# fused pallas_call for the whole network.
# ---------------------------------------------------------------------------
@jax.jit
def cnn_forward(kp, x_nchw):
    assert x_nchw.shape[1:] == (1, H1, W1), x_nchw.shape
    N = x_nchw.shape[0]
    n_pad = ((N + B_TILE - 1) // B_TILE) * B_TILE

    x = x_nchw.reshape(N, H1, W1).astype(jnp.float32)
    x = jnp.pad(x, ((0, n_pad - N), (1, 1), (1, 1)))            # (n_pad, 26, 34)
    taps = [x[:, dh:dh + H1, dw:dw + W1] for dh in range(3) for dw in range(3)]
    x9 = jnp.stack(taps, axis=-1).reshape(n_pad, L1, 9).astype(jnp.bfloat16)

    out = cnn_pallas(x9, kp)                                    # (n_pad, 1)
    return out[:N]


# ---------------------------------------------------------------------------
# Pure-JAX (XLA) reference with the original PyTorch-layout parameters.
# ---------------------------------------------------------------------------
def reference_forward(p, x):
    def conv(x, w, b):
        y = lax.conv_general_dilated(
            x, w, window_strides=(1, 1), padding=((1, 1), (1, 1)),
            dimension_numbers=("NCHW", "OIHW", "NCHW"))
        return jnp.maximum(y + b.reshape(1, -1, 1, 1), 0.0)

    def pool(x):
        return lax.reduce_window(x, -jnp.inf, lax.max,
                                 (1, 1, 2, 2), (1, 1, 2, 2), "VALID")

    x = pool(conv(x, p["conv1_w"], p["conv1_b"]))
    x = pool(conv(x, p["conv2_w"], p["conv2_b"]))
    x = pool(conv(x, p["conv3_w"], p["conv3_b"]))
    x = x.reshape(x.shape[0], -1)                      # PyTorch NCHW flatten
    x = jnp.maximum(x @ p["fc1_w"].T + p["fc1_b"], 0.0)
    z = x @ p["fc2_w"].T + p["fc2_b"]
    return 1.0 / (1.0 + jnp.exp(-z))


if __name__ == "__main__":
    key = jax.random.PRNGKey(0)
    k_param, k_x = jax.random.split(key)
    params_pt = init_params(k_param)         # PyTorch-layout parameters
    params = prepare_params(params_pt)       # kernel-layout parameters (one-time)

    # 16 grayscale 24x32 images -> 2 grid steps of 8 (keeps both v7x cores busy).
    x = jax.random.normal(k_x, (16, 1, 24, 32), dtype=jnp.float32)

    out = cnn_forward(params, x)
    jax.block_until_ready(out)
    assert out.shape == (16, 1), out.shape
    assert bool(jnp.all(jnp.isfinite(out)))
    assert bool(jnp.all((out >= 0.0) & (out <= 1.0)))

    # Cross-check against the f32 XLA reference (loose tol: bf16 MXU operands).
    ref = reference_forward(params_pt, x)
    err = float(jnp.max(jnp.abs(out - ref)))
    assert err < 5e-2, f"max |kernel - reference| = {err}"

    print("KERNEL_OK")
</pallas_src>

<mosaic_0001>
module attributes {stable_mosaic.version = 11 : i64} {
  func.func @_cnn_kernel(%arg0: i32, %arg1: memref<8x768x9xbf16, #tpu.memory_space<vmem>>, %arg2: memref<9x32xbf16, #tpu.memory_space<vmem>>, %arg3: memref<1x32xf32, #tpu.memory_space<vmem>>, %arg4: memref<9x32x64xbf16, #tpu.memory_space<vmem>>, %arg5: memref<1x64xf32, #tpu.memory_space<vmem>>, %arg6: memref<9x64x128xbf16, #tpu.memory_space<vmem>>, %arg7: memref<1x128xf32, #tpu.memory_space<vmem>>, %arg8: memref<1536x512xbf16, #tpu.memory_space<vmem>>, %arg9: memref<1x512xf32, #tpu.memory_space<vmem>>, %arg10: memref<512x1xbf16, #tpu.memory_space<vmem>>, %arg11: memref<1x1xf32, #tpu.memory_space<vmem>>, %arg12: memref<8x1xf32, #tpu.memory_space<vmem>>, %arg13: memref<768x32xf32, #tpu.memory_space<vmem>>, %arg14: memref<256x32xbf16, #tpu.memory_space<vmem>>, %arg15: memref<216x64xf32, #tpu.memory_space<vmem>>, %arg16: memref<88x64xbf16, #tpu.memory_space<vmem>>, %arg17: memref<64x128xf32, #tpu.memory_space<vmem>>, %arg18: memref<96x128xf32, #tpu.memory_space<vmem>>) attributes {dimension_semantics = [#tpu.dimension_semantics<parallel>], iteration_bounds = array<i64: 2>, scalar_prefetch = 0 : i64, scratch_operands = 6 : i64, tpu.core_type = #tpu.core_type<tc>, window_params = [{transform_indices = @transform_0, window_bounds = array<i64: 8, 768, 9>}, {pipeline_mode = #tpu.pipeline_mode<synchronous>, transform_indices = @transform_1, window_bounds = array<i64: 9, 32>}, {pipeline_mode = #tpu.pipeline_mode<synchronous>, transform_indices = @transform_2, window_bounds = array<i64: 1, 32>}, {pipeline_mode = #tpu.pipeline_mode<synchronous>, transform_indices = @transform_3, window_bounds = array<i64: 9, 32, 64>}, {pipeline_mode = #tpu.pipeline_mode<synchronous>, transform_indices = @transform_4, window_bounds = array<i64: 1, 64>}, {pipeline_mode = #tpu.pipeline_mode<synchronous>, transform_indices = @transform_5, window_bounds = array<i64: 9, 64, 128>}, {pipeline_mode = #tpu.pipeline_mode<synchronous>, transform_indices = @transform_6, window_bounds = array<i64: 1, 128>}, {pipeline_mode = #tpu.pipeline_mode<synchronous>, transform_indices = @transform_7, window_bounds = array<i64: 1536, 512>}, {pipeline_mode = #tpu.pipeline_mode<synchronous>, transform_indices = @transform_8, window_bounds = array<i64: 1, 512>}, {pipeline_mode = #tpu.pipeline_mode<synchronous>, transform_indices = @transform_9, window_bounds = array<i64: 512, 1>}, {pipeline_mode = #tpu.pipeline_mode<synchronous>, transform_indices = @transform_10, window_bounds = array<i64: 1, 1>}, {transform_indices = @transform_11, window_bounds = array<i64: 8, 1>}]} {
    %cst = arith.constant 0.000000e+00 : bf16
    %0 = vector.broadcast %cst : bf16 to vector<256x32xbf16>
    %c0 = arith.constant 0 : index
    %c0_0 = arith.constant 0 : index
    %1 = vector.load %arg14[%c0, %c0_0] : memref<256x32xbf16, #tpu.memory_space<vmem>>, vector<256x32xbf16>
    tpu.vector_store %arg14[%c0, %c0_0], %0 {strides = array<i32>} : memref<256x32xbf16, #tpu.memory_space<vmem>>, vector<256x32xbf16>,
    %cst_1 = arith.constant 0.000000e+00 : bf16
    %2 = vector.broadcast %cst_1 : bf16 to vector<88x64xbf16>
    %c0_2 = arith.constant 0 : index
    %c0_3 = arith.constant 0 : index
    %3 = vector.load %arg16[%c0_2, %c0_3] : memref<88x64xbf16, #tpu.memory_space<vmem>>, vector<88x64xbf16>
    tpu.vector_store %arg16[%c0_2, %c0_3], %2 {strides = array<i32>} : memref<88x64xbf16, #tpu.memory_space<vmem>>, vector<88x64xbf16>,
    %c0_i32 = arith.constant 0 : i32
    %c8_i32 = arith.constant 8 : i32
    %4 = arith.addi %c0_i32, %c8_i32 : i32
    %c1_i32 = arith.constant 1 : i32
    scf.for %arg19 = %c0_i32 to %4 step %c1_i32  : i32 {
      %85 = arith.index_cast %arg19 : i32 to index
      %c0_57 = arith.constant 0 : index
      %c0_58 = arith.constant 0 : index
      %86 = vector.load %arg1[%85, %c0_57, %c0_58] : memref<8x768x9xbf16, #tpu.memory_space<vmem>>, vector<1x768x9xbf16>
      %87 = vector.shape_cast %86 : vector<1x768x9xbf16> to vector<768x9xbf16>
      %c0_59 = arith.constant 0 : index
      %c0_60 = arith.constant 0 : index
      %88 = vector.load %arg2[%c0_59, %c0_60] : memref<9x32xbf16, #tpu.memory_space<vmem>>, vector<9x32xbf16>
      %cst_61 = arith.constant dense<0.000000e+00> : vector<768x32xf32>
      %89 = tpu.matmul %87, %88, %cst_61 {dimension_numbers = #tpu.dot_dimension_numbers<[1], [0], [0], [1], [0, 0, 1, 1], [], []>} : vector<768x9xbf16>, vector<9x32xbf16>, vector<768x32xf32> -> vector<768x32xf32>
      %c0_62 = arith.constant 0 : index
      %c0_63 = arith.constant 0 : index
      %90 = vector.load %arg3[%c0_62, %c0_63] : memref<1x32xf32, #tpu.memory_space<vmem>>, vector<1x32xf32>
      %91 = vector.broadcast %90 : vector<1x32xf32> to vector<768x32xf32>
      %92 = arith.addf %89, %91 : vector<768x32xf32>
      %cst_64 = arith.constant 0.000000e+00 : f32
      %93 = vector.broadcast %cst_64 : f32 to vector<768x32xf32>
      %94 = arith.maximumf %92, %93 : vector<768x32xf32>
      %c0_65 = arith.constant 0 : index
      %c0_66 = arith.constant 0 : index
      %95 = vector.load %arg13[%c0_65, %c0_66] : memref<768x32xf32, #tpu.memory_space<vmem>>, vector<768x32xf32>
      tpu.vector_store %arg13[%c0_65, %c0_66], %94 {strides = array<i32>} : memref<768x32xf32, #tpu.memory_space<vmem>>, vector<768x32xf32>,
      %c0_67 = arith.constant 0 : index
      %c0_68 = arith.constant 0 : index
      %96 = tpu.strided_load %arg13[%c0_67, %c0_68] {strides = array<i32: 2, 1>} : memref<768x32xf32, #tpu.memory_space<vmem>>, vector<16x32xf32>
      %c1 = arith.constant 1 : index
      %c0_69 = arith.constant 0 : index
      %97 = tpu.strided_load %arg13[%c1, %c0_69] {strides = array<i32: 2, 1>} : memref<768x32xf32, #tpu.memory_space<vmem>>, vector<16x32xf32>
      %c32_70 = arith.constant 32 : index
      %c0_71 = arith.constant 0 : index
      %98 = tpu.strided_load %arg13[%c32_70, %c0_71] {strides = array<i32: 2, 1>} : memref<768x32xf32, #tpu.memory_space<vmem>>, vector<16x32xf32>
      %c33 = arith.constant 33 : index
      %c0_72 = arith.constant 0 : index
      %99 = tpu.strided_load %arg13[%c33, %c0_72] {strides = array<i32: 2, 1>} : memref<768x32xf32, #tpu.memory_space<vmem>>, vector<16x32xf32>
      %100 = arith.maximumf %96, %97 : vector<16x32xf32>
      %101 = arith.maximumf %98, %99 : vector<16x32xf32>
      %102 = arith.maximumf %100, %101 : vector<16x32xf32>
      %103 = arith.truncf %102 : vector<16x32xf32> to vector<16x32xbf16>
      %c19 = arith.constant 19 : index
      %c0_73 = arith.constant 0 : index
      %104 = vector.load %arg14[%c19, %c0_73] : memref<256x32xbf16, #tpu.memory_space<vmem>>, vector<16x32xbf16>
      tpu.vector_store %arg14[%c19, %c0_73], %103 {strides = array<i32>} : memref<256x32xbf16, #tpu.memory_space<vmem>>, vector<16x32xbf16>,
      %c64_74 = arith.constant 64 : index
      %c0_75 = arith.constant 0 : index
      %105 = tpu.strided_load %arg13[%c64_74, %c0_75] {strides = array<i32: 2, 1>} : memref<768x32xf32, #tpu.memory_space<vmem>>, vector<16x32xf32>
      %c65 = arith.constant 65 : index
      %c0_76 = arith.constant 0 : index
      %106 = tpu.strided_load %arg13[%c65, %c0_76] {strides = array<i32: 2, 1>} : memref<768x32xf32, #tpu.memory_space<vmem>>, vector<16x32xf32>
      %c96 = arith.constant 96 : index
      %c0_77 = arith.constant 0 : index
      %107 = tpu.strided_load %arg13[%c96, %c0_77] {strides = array<i32: 2, 1>} : memref<768x32xf32, #tpu.memory_space<vmem>>, vector<16x32xf32>
      %c97 = arith.constant 97 : index
      %c0_78 = arith.constant 0 : index
      %108 = tpu.strided_load %arg13[%c97, %c0_78] {strides = array<i32: 2, 1>} : memref<768x32xf32, #tpu.memory_space<vmem>>, vector<16x32xf32>
      %109 = arith.maximumf %105, %106 : vector<16x32xf32>
      %110 = arith.maximumf %107, %108 : vector<16x32xf32>
      %111 = arith.maximumf %109, %110 : vector<16x32xf32>
      %112 = arith.truncf %111 : vector<16x32xf32> to vector<16x32xbf16>
      %c37 = arith.constant 37 : index
      %c0_79 = arith.constant 0 : index
      %113 = vector.load %arg14[%c37, %c0_79] : memref<256x32xbf16, #tpu.memory_space<vmem>>, vector<16x32xbf16>
      tpu.vector_store %arg14[%c37, %c0_79], %112 {strides = array<i32>} : memref<256x32xbf16, #tpu.memory_space<vmem>>, vector<16x32xbf16>,
      %c128_80 = arith.constant 128 : index
      %c0_81 = arith.constant 0 : index
      %114 = tpu.strided_load %arg13[%c128_80, %c0_81] {strides = array<i32: 2, 1>} : memref<768x32xf32, #tpu.memory_space<vmem>>, vector<16x32xf32>
      %c129 = arith.constant 129 : index
      %c0_82 = arith.constant 0 : index
      %115 = tpu.strided_load %arg13[%c129, %c0_82] {strides = array<i32: 2, 1>} : memref<768x32xf32, #tpu.memory_space<vmem>>, vector<16x32xf32>
      %c160 = arith.constant 160 : index
      %c0_83 = arith.constant 0 : index
      %116 = tpu.strided_load %arg13[%c160, %c0_83] {strides = array<i32: 2, 1>} : memref<768x32xf32, #tpu.memory_space<vmem>>, vector<16x32xf32>
      %c161 = arith.constant 161 : index
      %c0_84 = arith.constant 0 : index
      %117 = tpu.strided_load %arg13[%c161, %c0_84] {strides = array<i32: 2, 1>} : memref<768x32xf32, #tpu.memory_space<vmem>>, vector<16x32xf32>
      %118 = arith.maximumf %114, %115 : vector<16x32xf32>
      %119 = arith.maximumf %116, %117 : vector<16x32xf32>
      %120 = arith.maximumf %118, %119 : vector<16x32xf32>
      %121 = arith.truncf %120 : vector<16x32xf32> to vector<16x32xbf16>
      %c55 = arith.constant 55 : index
      %c0_85 = arith.constant 0 : index
      %122 = vector.load %arg14[%c55, %c0_85] : memref<256x32xbf16, #tpu.memory_space<vmem>>, vector<16x32xbf16>
      tpu.vector_store %arg14[%c55, %c0_85], %121 {strides = array<i32>} : memref<256x32xbf16, #tpu.memory_space<vmem>>, vector<16x32xbf16>,
      %c192 = arith.constant 192 : index
      %c0_86 = arith.constant 0 : index
      %123 = tpu.strided_load %arg13[%c192, %c0_86] {strides = array<i32: 2, 1>} : memref<768x32xf32, #tpu.memory_space<vmem>>, vector<16x32xf32>
      %c193 = arith.constant 193 : index
      %c0_87 = arith.constant 0 : index
      %124 = tpu.strided_load %arg13[%c193, %c0_87] {strides = array<i32: 2, 1>} : memref<768x32xf32, #tpu.memory_space<vmem>>, vector<16x32xf32>
      %c224 = arith.constant 224 : index
      %c0_88 = arith.constant 0 : index
      %125 = tpu.strided_load %arg13[%c224, %c0_88] {strides = array<i32: 2, 1>} : memref<768x32xf32, #tpu.memory_space<vmem>>, vector<16x32xf32>
      %c225 = arith.constant 225 : index
      %c0_89 = arith.constant 0 : index
      %126 = tpu.strided_load %arg13[%c225, %c0_89] {strides = array<i32: 2, 1>} : memref<768x32xf32, #tpu.memory_space<vmem>>, vector<16x32xf32>
      %127 = arith.maximumf %123, %124 : vector<16x32xf32>
      %128 = arith.maximumf %125, %126 : vector<16x32xf32>
      %129 = arith.maximumf %127, %128 : vector<16x32xf32>
      %130 = arith.truncf %129 : vector<16x32xf32> to vector<16x32xbf16>
      %c73 = arith.constant 73 : index
      %c0_90 = arith.constant 0 : index
      %131 = vector.load %arg14[%c73, %c0_90] : memref<256x32xbf16, #tpu.memory_space<vmem>>, vector<16x32xbf16>
      tpu.vector_store %arg14[%c73, %c0_90], %130 {strides = array<i32>} : memref<256x32xbf16, #tpu.memory_space<vmem>>, vector<16x32xbf16>,
      %c256_91 = arith.constant 256 : index
      %c0_92 = arith.constant 0 : index
      %132 = tpu.strided_load %arg13[%c256_91, %c0_92] {strides = array<i32: 2, 1>} : memref<768x32xf32, #tpu.memory_space<vmem>>, vector<16x32xf32>
      %c257 = arith.constant 257 : index
      %c0_93 = arith.constant 0 : index
      %133 = tpu.strided_load %arg13[%c257, %c0_93] {strides = array<i32: 2, 1>} : memref<768x32xf32, #tpu.memory_space<vmem>>, vector<16x32xf32>
      %c288 = arith.constant 288 : index
      %c0_94 = arith.constant 0 : index
      %134 = tpu.strided_load %arg13[%c288, %c0_94] {strides = array<i32: 2, 1>} : memref<768x32xf32, #tpu.memory_space<vmem>>, vector<16x32xf32>
      %c289 = arith.constant 289 : index
      %c0_95 = arith.constant 0 : index
      %135 = tpu.strided_load %arg13[%c289, %c0_95] {strides = array<i32: 2, 1>} : memref<768x32xf32, #tpu.memory_space<vmem>>, vector<16x32xf32>
      %136 = arith.maximumf %132, %133 : vector<16x32xf32>
      %137 = arith.maximumf %134, %135 : vector<16x32xf32>
      %138 = arith.maximumf %136, %137 : vector<16x32xf32>
      %139 = arith.truncf %138 : vector<16x32xf32> to vector<16x32xbf16>
      %c91 = arith.constant 91 : index
      %c0_96 = arith.constant 0 : index
      %140 = vector.load %arg14[%c91, %c0_96] : memref<256x32xbf16, #tpu.memory_space<vmem>>, vector<16x32xbf16>
      tpu.vector_store %arg14[%c91, %c0_96], %139 {strides = array<i32>} : memref<256x32xbf16, #tpu.memory_space<vmem>>, vector<16x32xbf16>,
      %c320 = arith.constant 320 : index
      %c0_97 = arith.constant 0 : index
      %141 = tpu.strided_load %arg13[%c320, %c0_97] {strides = array<i32: 2, 1>} : memref<768x32xf32, #tpu.memory_space<vmem>>, vector<16x32xf32>
      %c321 = arith.constant 321 : index
      %c0_98 = arith.constant 0 : index
      %142 = tpu.strided_load %arg13[%c321, %c0_98] {strides = array<i32: 2, 1>} : memref<768x32xf32, #tpu.memory_space<vmem>>, vector<16x32xf32>
      %c352 = arith.constant 352 : index
      %c0_99 = arith.constant 0 : index
      %143 = tpu.strided_load %arg13[%c352, %c0_99] {strides = array<i32: 2, 1>} : memref<768x32xf32, #tpu.memory_space<vmem>>, vector<16x32xf32>
      %c353 = arith.constant 353 : index
      %c0_100 = arith.constant 0 : index
      %144 = tpu.strided_load %arg13[%c353, %c0_100] {strides = array<i32: 2, 1>} : memref<768x32xf32, #tpu.memory_space<vmem>>, vector<16x32xf32>
      %145 = arith.maximumf %141, %142 : vector<16x32xf32>
      %146 = arith.maximumf %143, %144 : vector<16x32xf32>
      %147 = arith.maximumf %145, %146 : vector<16x32xf32>
      %148 = arith.truncf %147 : vector<16x32xf32> to vector<16x32xbf16>
      %c109 = arith.constant 109 : index
      %c0_101 = arith.constant 0 : index
      %149 = vector.load %arg14[%c109, %c0_101] : memref<256x32xbf16, #tpu.memory_space<vmem>>, vector<16x32xbf16>
      tpu.vector_store %arg14[%c109, %c0_101], %148 {strides = array<i32>} : memref<256x32xbf16, #tpu.memory_space<vmem>>, vector<16x32xbf16>,
      %c384_102 = arith.constant 384 : index
      %c0_103 = arith.constant 0 : index
      %150 = tpu.strided_load %arg13[%c384_102, %c0_103] {strides = array<i32: 2, 1>} : memref<768x32xf32, #tpu.memory_space<vmem>>, vector<16x32xf32>
      %c385 = arith.constant 385 : index
      %c0_104 = arith.constant 0 : index
      %151 = tpu.strided_load %arg13[%c385, %c0_104] {strides = array<i32: 2, 1>} : memref<768x32xf32, #tpu.memory_space<vmem>>, vector<16x32xf32>
      %c416 = arith.constant 416 : index
      %c0_105 = arith.constant 0 : index
      %152 = tpu.strided_load %arg13[%c416, %c0_105] {strides = array<i32: 2, 1>} : memref<768x32xf32, #tpu.memory_space<vmem>>, vector<16x32xf32>
      %c417 = arith.constant 417 : index
      %c0_106 = arith.constant 0 : index
      %153 = tpu.strided_load %arg13[%c417, %c0_106] {strides = array<i32: 2, 1>} : memref<768x32xf32, #tpu.memory_space<vmem>>, vector<16x32xf32>
      %154 = arith.maximumf %150, %151 : vector<16x32xf32>
      %155 = arith.maximumf %152, %153 : vector<16x32xf32>
      %156 = arith.maximumf %154, %155 : vector<16x32xf32>
      %157 = arith.truncf %156 : vector<16x32xf32> to vector<16x32xbf16>
      %c127 = arith.constant 127 : index
      %c0_107 = arith.constant 0 : index
      %158 = vector.load %arg14[%c127, %c0_107] : memref<256x32xbf16, #tpu.memory_space<vmem>>, vector<16x32xbf16>
      tpu.vector_store %arg14[%c127, %c0_107], %157 {strides = array<i32>} : memref<256x32xbf16, #tpu.memory_space<vmem>>, vector<16x32xbf16>,
      %c448 = arith.constant 448 : index
      %c0_108 = arith.constant 0 : index
      %159 = tpu.strided_load %arg13[%c448, %c0_108] {strides = array<i32: 2, 1>} : memref<768x32xf32, #tpu.memory_space<vmem>>, vector<16x32xf32>
      %c449 = arith.constant 449 : index
      %c0_109 = arith.constant 0 : index
      %160 = tpu.strided_load %arg13[%c449, %c0_109] {strides = array<i32: 2, 1>} : memref<768x32xf32, #tpu.memory_space<vmem>>, vector<16x32xf32>
      %c480 = arith.constant 480 : index
      %c0_110 = arith.constant 0 : index
      %161 = tpu.strided_load %arg13[%c480, %c0_110] {strides = array<i32: 2, 1>} : memref<768x32xf32, #tpu.memory_space<vmem>>, vector<16x32xf32>
      %c481 = arith.constant 481 : index
      %c0_111 = arith.constant 0 : index
      %162 = tpu.strided_load %arg13[%c481, %c0_111] {strides = array<i32: 2, 1>} : memref<768x32xf32, #tpu.memory_space<vmem>>, vector<16x32xf32>
      %163 = arith.maximumf %159, %160 : vector<16x32xf32>
      %164 = arith.maximumf %161, %162 : vector<16x32xf32>
      %165 = arith.maximumf %163, %164 : vector<16x32xf32>
      %166 = arith.truncf %165 : vector<16x32xf32> to vector<16x32xbf16>
      %c145 = arith.constant 145 : index
      %c0_112 = arith.constant 0 : index
      %167 = vector.load %arg14[%c145, %c0_112] : memref<256x32xbf16, #tpu.memory_space<vmem>>, vector<16x32xbf16>
      tpu.vector_store %arg14[%c145, %c0_112], %166 {strides = array<i32>} : memref<256x32xbf16, #tpu.memory_space<vmem>>, vector<16x32xbf16>,
      %c512_113 = arith.constant 512 : index
      %c0_114 = arith.constant 0 : index
      %168 = tpu.strided_load %arg13[%c512_113, %c0_114] {strides = array<i32: 2, 1>} : memref<768x32xf32, #tpu.memory_space<vmem>>, vector<16x32xf32>
      %c513 = arith.constant 513 : index
      %c0_115 = arith.constant 0 : index
      %169 = tpu.strided_load %arg13[%c513, %c0_115] {strides = array<i32: 2, 1>} : memref<768x32xf32, #tpu.memory_space<vmem>>, vector<16x32xf32>
      %c544 = arith.constant 544 : index
      %c0_116 = arith.constant 0 : index
      %170 = tpu.strided_load %arg13[%c544, %c0_116] {strides = array<i32: 2, 1>} : memref<768x32xf32, #tpu.memory_space<vmem>>, vector<16x32xf32>
      %c545 = arith.constant 545 : index
      %c0_117 = arith.constant 0 : index
      %171 = tpu.strided_load %arg13[%c545, %c0_117] {strides = array<i32: 2, 1>} : memref<768x32xf32, #tpu.memory_space<vmem>>, vector<16x32xf32>
      %172 = arith.maximumf %168, %169 : vector<16x32xf32>
      %173 = arith.maximumf %170, %171 : vector<16x32xf32>
      %174 = arith.maximumf %172, %173 : vector<16x32xf32>
      %175 = arith.truncf %174 : vector<16x32xf32> to vector<16x32xbf16>
      %c163 = arith.constant 163 : index
      %c0_118 = arith.constant 0 : index
      %176 = vector.load %arg14[%c163, %c0_118] : memref<256x32xbf16, #tpu.memory_space<vmem>>, vector<16x32xbf16>
      tpu.vector_store %arg14[%c163, %c0_118], %175 {strides = array<i32>} : memref<256x32xbf16, #tpu.memory_space<vmem>>, vector<16x32xbf16>,
      %c576 = arith.constant 576 : index
      %c0_119 = arith.constant 0 : index
      %177 = tpu.strided_load %arg13[%c576, %c0_119] {strides = array<i32: 2, 1>} : memref<768x32xf32, #tpu.memory_space<vmem>>, vector<16x32xf32>
      %c577 = arith.constant 577 : index
      %c0_120 = arith.constant 0 : index
      %178 = tpu.strided_load %arg13[%c577, %c0_120] {strides = array<i32: 2, 1>} : memref<768x32xf32, #tpu.memory_space<vmem>>, vector<16x32xf32>
      %c608 = arith.constant 608 : index
      %c0_121 = arith.constant 0 : index
      %179 = tpu.strided_load %arg13[%c608, %c0_121] {strides = array<i32: 2, 1>} : memref<768x32xf32, #tpu.memory_space<vmem>>, vector<16x32xf32>
      %c609 = arith.constant 609 : index
      %c0_122 = arith.constant 0 : index
      %180 = tpu.strided_load %arg13[%c609, %c0_122] {strides = array<i32: 2, 1>} : memref<768x32xf32, #tpu.memory_space<vmem>>, vector<16x32xf32>
      %181 = arith.maximumf %177, %178 : vector<16x32xf32>
      %182 = arith.maximumf %179, %180 : vector<16x32xf32>
      %183 = arith.maximumf %181, %182 : vector<16x32xf32>
      %184 = arith.truncf %183 : vector<16x32xf32> to vector<16x32xbf16>
      %c181 = arith.constant 181 : index
      %c0_123 = arith.constant 0 : index
      %185 = vector.load %arg14[%c181, %c0_123] : memref<256x32xbf16, #tpu.memory_space<vmem>>, vector<16x32xbf16>
      tpu.vector_store %arg14[%c181, %c0_123], %184 {strides = array<i32>} : memref<256x32xbf16, #tpu.memory_space<vmem>>, vector<16x32xbf16>,
      %c640_124 = arith.constant 640 : index
      %c0_125 = arith.constant 0 : index
      %186 = tpu.strided_load %arg13[%c640_124, %c0_125] {strides = array<i32: 2, 1>} : memref<768x32xf32, #tpu.memory_space<vmem>>, vector<16x32xf32>
      %c641 = arith.constant 641 : index
      %c0_126 = arith.constant 0 : index
      %187 = tpu.strided_load %arg13[%c641, %c0_126] {strides = array<i32: 2, 1>} : memref<768x32xf32, #tpu.memory_space<vmem>>, vector<16x32xf32>
      %c672 = arith.constant 672 : index
      %c0_127 = arith.constant 0 : index
      %188 = tpu.strided_load %arg13[%c672, %c0_127] {strides = array<i32: 2, 1>} : memref<768x32xf32, #tpu.memory_space<vmem>>, vector<16x32xf32>
      %c673 = arith.constant 673 : index
      %c0_128 = arith.constant 0 : index
      %189 = tpu.strided_load %arg13[%c673, %c0_128] {strides = array<i32: 2, 1>} : memref<768x32xf32, #tpu.memory_space<vmem>>, vector<16x32xf32>
      %190 = arith.maximumf %186, %187 : vector<16x32xf32>
      %191 = arith.maximumf %188, %189 : vector<16x32xf32>
      %192 = arith.maximumf %190, %191 : vector<16x32xf32>
      %193 = arith.truncf %192 : vector<16x32xf32> to vector<16x32xbf16>
      %c199 = arith.constant 199 : index
      %c0_129 = arith.constant 0 : index
      %194 = vector.load %arg14[%c199, %c0_129] : memref<256x32xbf16, #tpu.memory_space<vmem>>, vector<16x32xbf16>
      tpu.vector_store %arg14[%c199, %c0_129], %193 {strides = array<i32>} : memref<256x32xbf16, #tpu.memory_space<vmem>>, vector<16x32xbf16>,
      %c704 = arith.constant 704 : index
      %c0_130 = arith.constant 0 : index
      %195 = tpu.strided_load %arg13[%c704, %c0_130] {strides = array<i32: 2, 1>} : memref<768x32xf32, #tpu.memory_space<vmem>>, vector<16x32xf32>
      %c705 = arith.constant 705 : index
      %c0_131 = arith.constant 0 : index
      %196 = tpu.strided_load %arg13[%c705, %c0_131] {strides = array<i32: 2, 1>} : memref<768x32xf32, #tpu.memory_space<vmem>>, vector<16x32xf32>
      %c736 = arith.constant 736 : index
      %c0_132 = arith.constant 0 : index
      %197 = tpu.strided_load %arg13[%c736, %c0_132] {strides = array<i32: 2, 1>} : memref<768x32xf32, #tpu.memory_space<vmem>>, vector<16x32xf32>
      %c737 = arith.constant 737 : index
      %c0_133 = arith.constant 0 : index
      %198 = tpu.strided_load %arg13[%c737, %c0_133] {strides = array<i32: 2, 1>} : memref<768x32xf32, #tpu.memory_space<vmem>>, vector<16x32xf32>
      %199 = arith.maximumf %195, %196 : vector<16x32xf32>
      %200 = arith.maximumf %197, %198 : vector<16x32xf32>
      %201 = arith.maximumf %199, %200 : vector<16x32xf32>
      %202 = arith.truncf %201 : vector<16x32xf32> to vector<16x32xbf16>
      %c217 = arith.constant 217 : index
      %c0_134 = arith.constant 0 : index
      %203 = vector.load %arg14[%c217, %c0_134] : memref<256x32xbf16, #tpu.memory_space<vmem>>, vector<16x32xbf16>
      tpu.vector_store %arg14[%c217, %c0_134], %202 {strides = array<i32>} : memref<256x32xbf16, #tpu.memory_space<vmem>>, vector<16x32xbf16>,
      %cst_135 = arith.constant 0.000000e+00 : f32
      %204 = vector.broadcast %cst_135 : f32 to vector<216x64xf32>
      %c0_136 = arith.constant 0 : index
      %c0_137 = arith.constant 0 : index
      %205 = vector.load %arg14[%c0_136, %c0_137] : memref<256x32xbf16, #tpu.memory_space<vmem>>, vector<216x32xbf16>
      %c0_138 = arith.constant 0 : index
      %c0_139 = arith.constant 0 : index
      %c0_140 = arith.constant 0 : index
      %206 = vector.load %arg4[%c0_138, %c0_139, %c0_140] : memref<9x32x64xbf16, #tpu.memory_space<vmem>>, vector<1x32x64xbf16>
      %207 = vector.shape_cast %206 : vector<1x32x64xbf16> to vector<32x64xbf16>
      %cst_141 = arith.constant dense<0.000000e+00> : vector<216x64xf32>
      %208 = tpu.matmul %205, %207, %cst_141 {dimension_numbers = #tpu.dot_dimension_numbers<[1], [0], [0], [1], [0, 0, 1, 1], [], []>} : vector<216x32xbf16>, vector<32x64xbf16>, vector<216x64xf32> -> vector<216x64xf32>
      %209 = arith.addf %204, %208 : vector<216x64xf32>
      %c1_142 = arith.constant 1 : index
      %c0_143 = arith.constant 0 : index
      %210 = vector.load %arg14[%c1_142, %c0_143] : memref<256x32xbf16, #tpu.memory_space<vmem>>, vector<216x32xbf16>
      %c1_144 = arith.constant 1 : index
      %c0_145 = arith.constant 0 : index
      %c0_146 = arith.constant 0 : index
      %211 = vector.load %arg4[%c1_144, %c0_145, %c0_146] : memref<9x32x64xbf16, #tpu.memory_space<vmem>>, vector<1x32x64xbf16>
      %212 = vector.shape_cast %211 : vector<1x32x64xbf16> to vector<32x64xbf16>
      %cst_147 = arith.constant dense<0.000000e+00> : vector<216x64xf32>
      %213 = tpu.matmul %210, %212, %cst_147 {dimension_numbers = #tpu.dot_dimension_numbers<[1], [0], [0], [1], [0, 0, 1, 1], [], []>} : vector<216x32xbf16>, vector<32x64xbf16>, vector<216x64xf32> -> vector<216x64xf32>
      %214 = arith.addf %209, %213 : vector<216x64xf32>
      %c2 = arith.constant 2 : index
      %c0_148 = arith.constant 0 : index
      %215 = vector.load %arg14[%c2, %c0_148] : memref<256x32xbf16, #tpu.memory_space<vmem>>, vector<216x32xbf16>
      %c2_149 = arith.constant 2 : index
      %c0_150 = arith.constant 0 : index
      %c0_151 = arith.constant 0 : index
      %216 = vector.load %arg4[%c2_149, %c0_150, %c0_151] : memref<9x32x64xbf16, #tpu.memory_space<vmem>>, vector<1x32x64xbf16>
      %217 = vector.shape_cast %216 : vector<1x32x64xbf16> to vector<32x64xbf16>
      %cst_152 = arith.constant dense<0.000000e+00> : vector<216x64xf32>
      %218 = tpu.matmul %215, %217, %cst_152 {dimension_numbers = #tpu.dot_dimension_numbers<[1], [0], [0], [1], [0, 0, 1, 1], [], []>} : vector<216x32xbf16>, vector<32x64xbf16>, vector<216x64xf32> -> vector<216x64xf32>
      %219 = arith.addf %214, %218 : vector<216x64xf32>
      %c18 = arith.constant 18 : index
      %c0_153 = arith.constant 0 : index
      %220 = vector.load %arg14[%c18, %c0_153] : memref<256x32xbf16, #tpu.memory_space<vmem>>, vector<216x32xbf16>
      %c3 = arith.constant 3 : index
      %c0_154 = arith.constant 0 : index
      %c0_155 = arith.constant 0 : index
      %221 = vector.load %arg4[%c3, %c0_154, %c0_155] : memref<9x32x64xbf16, #tpu.memory_space<vmem>>, vector<1x32x64xbf16>
      %222 = vector.shape_cast %221 : vector<1x32x64xbf16> to vector<32x64xbf16>
      %cst_156 = arith.constant dense<0.000000e+00> : vector<216x64xf32>
      %223 = tpu.matmul %220, %222, %cst_156 {dimension_numbers = #tpu.dot_dimension_numbers<[1], [0], [0], [1], [0, 0, 1, 1], [], []>} : vector<216x32xbf16>, vector<32x64xbf16>, vector<216x64xf32> -> vector<216x64xf32>
      %224 = arith.addf %219, %223 : vector<216x64xf32>
      %c19_157 = arith.constant 19 : index
      %c0_158 = arith.constant 0 : index
      %225 = vector.load %arg14[%c19_157, %c0_158] : memref<256x32xbf16, #tpu.memory_space<vmem>>, vector<216x32xbf16>
      %c4 = arith.constant 4 : index
      %c0_159 = arith.constant 0 : index
      %c0_160 = arith.constant 0 : index
      %226 = vector.load %arg4[%c4, %c0_159, %c0_160] : memref<9x32x64xbf16, #tpu.memory_space<vmem>>, vector<1x32x64xbf16>
      %227 = vector.shape_cast %226 : vector<1x32x64xbf16> to vector<32x64xbf16>
      %cst_161 = arith.constant dense<0.000000e+00> : vector<216x64xf32>
      %228 = tpu.matmul %225, %227, %cst_161 {dimension_numbers = #tpu.dot_dimension_numbers<[1], [0], [0], [1], [0, 0, 1, 1], [], []>} : vector<216x32xbf16>, vector<32x64xbf16>, vector<216x64xf32> -> vector<216x64xf32>
      %229 = arith.addf %224, %228 : vector<216x64xf32>
      %c20 = arith.constant 20 : index
      %c0_162 = arith.constant 0 : index
      %230 = vector.load %arg14[%c20, %c0_162] : memref<256x32xbf16, #tpu.memory_space<vmem>>, vector<216x32xbf16>
      %c5 = arith.constant 5 : index
      %c0_163 = arith.constant 0 : index
      %c0_164 = arith.constant 0 : index
      %231 = vector.load %arg4[%c5, %c0_163, %c0_164] : memref<9x32x64xbf16, #tpu.memory_space<vmem>>, vector<1x32x64xbf16>
      %232 = vector.shape_cast %231 : vector<1x32x64xbf16> to vector<32x64xbf16>
      %cst_165 = arith.constant dense<0.000000e+00> : vector<216x64xf32>
      %233 = tpu.matmul %230, %232, %cst_165 {dimension_numbers = #tpu.dot_dimension_numbers<[1], [0], [0], [1], [0, 0, 1, 1], [], []>} : vector<216x32xbf16>, vector<32x64xbf16>, vector<216x64xf32> -> vector<216x64xf32>
      %234 = arith.addf %229, %233 : vector<216x64xf32>
      %c36 = arith.constant 36 : index
      %c0_166 = arith.constant 0 : index
      %235 = vector.load %arg14[%c36, %c0_166] : memref<256x32xbf16, #tpu.memory_space<vmem>>, vector<216x32xbf16>
      %c6 = arith.constant 6 : index
      %c0_167 = arith.constant 0 : index
      %c0_168 = arith.constant 0 : index
      %236 = vector.load %arg4[%c6, %c0_167, %c0_168] : memref<9x32x64xbf16, #tpu.memory_space<vmem>>, vector<1x32x64xbf16>
      %237 = vector.shape_cast %236 : vector<1x32x64xbf16> to vector<32x64xbf16>
      %cst_169 = arith.constant dense<0.000000e+00> : vector<216x64xf32>
      %238 = tpu.matmul %235, %237, %cst_169 {dimension_numbers = #tpu.dot_dimension_numbers<[1], [0], [0], [1], [0, 0, 1, 1], [], []>} : vector<216x32xbf16>, vector<32x64xbf16>, vector<216x64xf32> -> vector<216x64xf32>
      %239 = arith.addf %234, %238 : vector<216x64xf32>
      %c37_170 = arith.constant 37 : index
      %c0_171 = arith.constant 0 : index
      %240 = vector.load %arg14[%c37_170, %c0_171] : memref<256x32xbf16, #tpu.memory_space<vmem>>, vector<216x32xbf16>
      %c7 = arith.constant 7 : index
      %c0_172 = arith.constant 0 : index
      %c0_173 = arith.constant 0 : index
      %241 = vector.load %arg4[%c7, %c0_172, %c0_173] : memref<9x32x64xbf16, #tpu.memory_space<vmem>>, vector<1x32x64xbf16>
      %242 = vector.shape_cast %241 : vector<1x32x64xbf16> to vector<32x64xbf16>
      %cst_174 = arith.constant dense<0.000000e+00> : vector<216x64xf32>
      %243 = tpu.matmul %240, %242, %cst_174 {dimension_numbers = #tpu.dot_dimension_numbers<[1], [0], [0], [1], [0, 0, 1, 1], [], []>} : vector<216x32xbf16>, vector<32x64xbf16>, vector<216x64xf32> -> vector<216x64xf32>
      %244 = arith.addf %239, %243 : vector<216x64xf32>
      %c38 = arith.constant 38 : index
      %c0_175 = arith.constant 0 : index
      %245 = vector.load %arg14[%c38, %c0_175] : memref<256x32xbf16, #tpu.memory_space<vmem>>, vector<216x32xbf16>
      %c8_176 = arith.constant 8 : index
      %c0_177 = arith.constant 0 : index
      %c0_178 = arith.constant 0 : index
      %246 = vector.load %arg4[%c8_176, %c0_177, %c0_178] : memref<9x32x64xbf16, #tpu.memory_space<vmem>>, vector<1x32x64xbf16>
      %247 = vector.shape_cast %246 : vector<1x32x64xbf16> to vector<32x64xbf16>
      %cst_179 = arith.constant dense<0.000000e+00> : vector<216x64xf32>
      %248 = tpu.matmul %245, %247, %cst_179 {dimension_numbers = #tpu.dot_dimension_numbers<[1], [0], [0], [1], [0, 0, 1, 1], [], []>} : vector<216x32xbf16>, vector<32x64xbf16>, vector<216x64xf32> -> vector<216x64xf32>
      %249 = arith.addf %244, %248 : vector<216x64xf32>
      %c0_180 = arith.constant 0 : index
      %c0_181 = arith.constant 0 : index
      %250 = vector.load %arg5[%c0_180, %c0_181] : memref<1x64xf32, #tpu.memory_space<vmem>>, vector<1x64xf32>
      %251 = vector.broadcast %250 : vector<1x64xf32> to vector<216x64xf32>
      %252 = arith.addf %249, %251 : vector<216x64xf32>
      %cst_182 = arith.constant 0.000000e+00 : f32
      %253 = vector.broadcast %cst_182 : f32 to vector<216x64xf32>
      %254 = arith.maximumf %252, %253 : vector<216x64xf32>
      %c0_183 = arith.constant 0 : index
      %c0_184 = arith.constant 0 : index
      %255 = vector.load %arg15[%c0_183, %c0_184] : memref<216x64xf32, #tpu.memory_space<vmem>>, vector<216x64xf32>
      tpu.vector_store %arg15[%c0_183, %c0_184], %254 {strides = array<i32>} : memref<216x64xf32, #tpu.memory_space<vmem>>, vector<216x64xf32>,
      %c0_185 = arith.constant 0 : index
      %c0_186 = arith.constant 0 : index
      %256 = tpu.strided_load %arg15[%c0_185, %c0_186] {strides = array<i32: 2, 1>} : memref<216x64xf32, #tpu.memory_space<vmem>>, vector<8x64xf32>
      %c1_187 = arith.constant 1 : index
      %c0_188 = arith.constant 0 : index
      %257 = tpu.strided_load %arg15[%c1_187, %c0_188] {strides = array<i32: 2, 1>} : memref<216x64xf32, #tpu.memory_space<vmem>>, vector<8x64xf32>
      %c18_189 = arith.constant 18 : index
      %c0_190 = arith.constant 0 : index
      %258 = tpu.strided_load %arg15[%c18_189, %c0_190] {strides = array<i32: 2, 1>} : memref<216x64xf32, #tpu.memory_space<vmem>>, vector<8x64xf32>
      %c19_191 = arith.constant 19 : index
      %c0_192 = arith.constant 0 : index
      %259 = tpu.strided_load %arg15[%c19_191, %c0_192] {strides = array<i32: 2, 1>} : memref<216x64xf32, #tpu.memory_space<vmem>>, vector<8x64xf32>
      %260 = arith.maximumf %256, %257 : vector<8x64xf32>
      %261 = arith.maximumf %258, %259 : vector<8x64xf32>
      %262 = arith.maximumf %260, %261 : vector<8x64xf32>
      %263 = arith.truncf %262 : vector<8x64xf32> to vector<8x64xbf16>
      %c11 = arith.constant 11 : index
      %c0_193 = arith.constant 0 : index
      %264 = vector.load %arg16[%c11, %c0_193] : memref<88x64xbf16, #tpu.memory_space<vmem>>, vector<8x64xbf16>
      tpu.vector_store %arg16[%c11, %c0_193], %263 {strides = array<i32>} : memref<88x64xbf16, #tpu.memory_space<vmem>>, vector<8x64xbf16>,
      %c36_194 = arith.constant 36 : index
      %c0_195 = arith.constant 0 : index
      %265 = tpu.strided_load %arg15[%c36_194, %c0_195] {strides = array<i32: 2, 1>} : memref<216x64xf32, #tpu.memory_space<vmem>>, vector<8x64xf32>
      %c37_196 = arith.constant 37 : index
      %c0_197 = arith.constant 0 : index
      %266 = tpu.strided_load %arg15[%c37_196, %c0_197] {strides = array<i32: 2, 1>} : memref<216x64xf32, #tpu.memory_space<vmem>>, vector<8x64xf32>
      %c54 = arith.constant 54 : index
      %c0_198 = arith.constant 0 : index
      %267 = tpu.strided_load %arg15[%c54, %c0_198] {strides = array<i32: 2, 1>} : memref<216x64xf32, #tpu.memory_space<vmem>>, vector<8x64xf32>
      %c55_199 = arith.constant 55 : index
      %c0_200 = arith.constant 0 : index
      %268 = tpu.strided_load %arg15[%c55_199, %c0_200] {strides = array<i32: 2, 1>} : memref<216x64xf32, #tpu.memory_space<vmem>>, vector<8x64xf32>
      %269 = arith.maximumf %265, %266 : vector<8x64xf32>
      %270 = arith.maximumf %267, %268 : vector<8x64xf32>
      %271 = arith.maximumf %269, %270 : vector<8x64xf32>
      %272 = arith.truncf %271 : vector<8x64xf32> to vector<8x64xbf16>
      %c21 = arith.constant 21 : index
      %c0_201 = arith.constant 0 : index
      %273 = vector.load %arg16[%c21, %c0_201] : memref<88x64xbf16, #tpu.memory_space<vmem>>, vector<8x64xbf16>
      tpu.vector_store %arg16[%c21, %c0_201], %272 {strides = array<i32>} : memref<88x64xbf16, #tpu.memory_space<vmem>>, vector<8x64xbf16>,
      %c72_202 = arith.constant 72 : index
      %c0_203 = arith.constant 0 : index
      %274 = tpu.strided_load %arg15[%c72_202, %c0_203] {strides = array<i32: 2, 1>} : memref<216x64xf32, #tpu.memory_space<vmem>>, vector<8x64xf32>
      %c73_204 = arith.constant 73 : index
      %c0_205 = arith.constant 0 : index
      %275 = tpu.strided_load %arg15[%c73_204, %c0_205] {strides = array<i32: 2, 1>} : memref<216x64xf32, #tpu.memory_space<vmem>>, vector<8x64xf32>
      %c90 = arith.constant 90 : index
      %c0_206 = arith.constant 0 : index
      %276 = tpu.strided_load %arg15[%c90, %c0_206] {strides = array<i32: 2, 1>} : memref<216x64xf32, #tpu.memory_space<vmem>>, vector<8x64xf32>
      %c91_207 = arith.constant 91 : index
      %c0_208 = arith.constant 0 : index
      %277 = tpu.strided_load %arg15[%c91_207, %c0_208] {strides = array<i32: 2, 1>} : memref<216x64xf32, #tpu.memory_space<vmem>>, vector<8x64xf32>
      %278 = arith.maximumf %274, %275 : vector<8x64xf32>
      %279 = arith.maximumf %276, %277 : vector<8x64xf32>
      %280 = arith.maximumf %278, %279 : vector<8x64xf32>
      %281 = arith.truncf %280 : vector<8x64xf32> to vector<8x64xbf16>
      %c31 = arith.constant 31 : index
      %c0_209 = arith.constant 0 : index
      %282 = vector.load %arg16[%c31, %c0_209] : memref<88x64xbf16, #tpu.memory_space<vmem>>, vector<8x64xbf16>
      tpu.vector_store %arg16[%c31, %c0_209], %281 {strides = array<i32>} : memref<88x64xbf16, #tpu.memory_space<vmem>>, vector<8x64xbf16>,
      %c108 = arith.constant 108 : index
      %c0_210 = arith.constant 0 : index
      %283 = tpu.strided_load %arg15[%c108, %c0_210] {strides = array<i32: 2, 1>} : memref<216x64xf32, #tpu.memory_space<vmem>>, vector<8x64xf32>
      %c109_211 = arith.constant 109 : index
      %c0_212 = arith.constant 0 : index
      %284 = tpu.strided_load %arg15[%c109_211, %c0_212] {strides = array<i32: 2, 1>} : memref<216x64xf32, #tpu.memory_space<vmem>>, vector<8x64xf32>
      %c126 = arith.constant 126 : index
      %c0_213 = arith.constant 0 : index
      %285 = tpu.strided_load %arg15[%c126, %c0_213] {strides = array<i32: 2, 1>} : memref<216x64xf32, #tpu.memory_space<vmem>>, vector<8x64xf32>
      %c127_214 = arith.constant 127 : index
      %c0_215 = arith.constant 0 : index
      %286 = tpu.strided_load %arg15[%c127_214, %c0_215] {strides = array<i32: 2, 1>} : memref<216x64xf32, #tpu.memory_space<vmem>>, vector<8x64xf32>
      %287 = arith.maximumf %283, %284 : vector<8x64xf32>
      %288 = arith.maximumf %285, %286 : vector<8x64xf32>
      %289 = arith.maximumf %287, %288 : vector<8x64xf32>
      %290 = arith.truncf %289 : vector<8x64xf32> to vector<8x64xbf16>
      %c41 = arith.constant 41 : index
      %c0_216 = arith.constant 0 : index
      %291 = vector.load %arg16[%c41, %c0_216] : memref<88x64xbf16, #tpu.memory_space<vmem>>, vector<8x64xbf16>
      tpu.vector_store %arg16[%c41, %c0_216], %290 {strides = array<i32>} : memref<88x64xbf16, #tpu.memory_space<vmem>>, vector<8x64xbf16>,
      %c144 = arith.constant 144 : index
      %c0_217 = arith.constant 0 : index
      %292 = tpu.strided_load %arg15[%c144, %c0_217] {strides = array<i32: 2, 1>} : memref<216x64xf32, #tpu.memory_space<vmem>>, vector<8x64xf32>
      %c145_218 = arith.constant 145 : index
      %c0_219 = arith.constant 0 : index
      %293 = tpu.strided_load %arg15[%c145_218, %c0_219] {strides = array<i32: 2, 1>} : memref<216x64xf32, #tpu.memory_space<vmem>>, vector<8x64xf32>
      %c162 = arith.constant 162 : index
      %c0_220 = arith.constant 0 : index
      %294 = tpu.strided_load %arg15[%c162, %c0_220] {strides = array<i32: 2, 1>} : memref<216x64xf32, #tpu.memory_space<vmem>>, vector<8x64xf32>
      %c163_221 = arith.constant 163 : index
      %c0_222 = arith.constant 0 : index
      %295 = tpu.strided_load %arg15[%c163_221, %c0_222] {strides = array<i32: 2, 1>} : memref<216x64xf32, #tpu.memory_space<vmem>>, vector<8x64xf32>
      %296 = arith.maximumf %292, %293 : vector<8x64xf32>
      %297 = arith.maximumf %294, %295 : vector<8x64xf32>
      %298 = arith.maximumf %296, %297 : vector<8x64xf32>
      %299 = arith.truncf %298 : vector<8x64xf32> to vector<8x64xbf16>
      %c51 = arith.constant 51 : index
      %c0_223 = arith.constant 0 : index
      %300 = vector.load %arg16[%c51, %c0_223] : memref<88x64xbf16, #tpu.memory_space<vmem>>, vector<8x64xbf16>
      tpu.vector_store %arg16[%c51, %c0_223], %299 {strides = array<i32>} : memref<88x64xbf16, #tpu.memory_space<vmem>>, vector<8x64xbf16>,
      %c180 = arith.constant 180 : index
      %c0_224 = arith.constant 0 : index
      %301 = tpu.strided_load %arg15[%c180, %c0_224] {strides = array<i32: 2, 1>} : memref<216x64xf32, #tpu.memory_space<vmem>>, vector<8x64xf32>
      %c181_225 = arith.constant 181 : index
      %c0_226 = arith.constant 0 : index
      %302 = tpu.strided_load %arg15[%c181_225, %c0_226] {strides = array<i32: 2, 1>} : memref<216x64xf32, #tpu.memory_space<vmem>>, vector<8x64xf32>
      %c198 = arith.constant 198 : index
      %c0_227 = arith.constant 0 : index
      %303 = tpu.strided_load %arg15[%c198, %c0_227] {strides = array<i32: 2, 1>} : memref<216x64xf32, #tpu.memory_space<vmem>>, vector<8x64xf32>
      %c199_228 = arith.constant 199 : index
      %c0_229 = arith.constant 0 : index
      %304 = tpu.strided_load %arg15[%c199_228, %c0_229] {strides = array<i32: 2, 1>} : memref<216x64xf32, #tpu.memory_space<vmem>>, vector<8x64xf32>
      %305 = arith.maximumf %301, %302 : vector<8x64xf32>
      %306 = arith.maximumf %303, %304 : vector<8x64xf32>
      %307 = arith.maximumf %305, %306 : vector<8x64xf32>
      %308 = arith.truncf %307 : vector<8x64xf32> to vector<8x64xbf16>
      %c61 = arith.constant 61 : index
      %c0_230 = arith.constant 0 : index
      %309 = vector.load %arg16[%c61, %c0_230] : memref<88x64xbf16, #tpu.memory_space<vmem>>, vector<8x64xbf16>
      tpu.vector_store %arg16[%c61, %c0_230], %308 {strides = array<i32>} : memref<88x64xbf16, #tpu.memory_space<vmem>>, vector<8x64xbf16>,
      %cst_231 = arith.constant 0.000000e+00 : f32
      %310 = vector.broadcast %cst_231 : f32 to vector<64x128xf32>
      %c0_232 = arith.constant 0 : index
      %c0_233 = arith.constant 0 : index
      %311 = vector.load %arg16[%c0_232, %c0_233] : memref<88x64xbf16, #tpu.memory_space<vmem>>, vector<64x64xbf16>
      %c0_234 = arith.constant 0 : index
      %c0_235 = arith.constant 0 : index
      %c0_236 = arith.constant 0 : index
      %312 = vector.load %arg6[%c0_234, %c0_235, %c0_236] : memref<9x64x128xbf16, #tpu.memory_space<vmem>>, vector<1x64x128xbf16>
      %313 = vector.shape_cast %312 : vector<1x64x128xbf16> to vector<64x128xbf16>
      %cst_237 = arith.constant dense<0.000000e+00> : vector<64x128xf32>
      %314 = tpu.matmul %311, %313, %cst_237 {dimension_numbers = #tpu.dot_dimension_numbers<[1], [0], [0], [1], [0, 0, 1, 1], [], []>} : vector<64x64xbf16>, vector<64x128xbf16>, vector<64x128xf32> -> vector<64x128xf32>
      %315 = arith.addf %310, %314 : vector<64x128xf32>
      %c1_238 = arith.constant 1 : index
      %c0_239 = arith.constant 0 : index
      %316 = vector.load %arg16[%c1_238, %c0_239] : memref<88x64xbf16, #tpu.memory_space<vmem>>, vector<64x64xbf16>
      %c1_240 = arith.constant 1 : index
      %c0_241 = arith.constant 0 : index
      %c0_242 = arith.constant 0 : index
      %317 = vector.load %arg6[%c1_240, %c0_241, %c0_242] : memref<9x64x128xbf16, #tpu.memory_space<vmem>>, vector<1x64x128xbf16>
      %318 = vector.shape_cast %317 : vector<1x64x128xbf16> to vector<64x128xbf16>
      %cst_243 = arith.constant dense<0.000000e+00> : vector<64x128xf32>
      %319 = tpu.matmul %316, %318, %cst_243 {dimension_numbers = #tpu.dot_dimension_numbers<[1], [0], [0], [1], [0, 0, 1, 1], [], []>} : vector<64x64xbf16>, vector<64x128xbf16>, vector<64x128xf32> -> vector<64x128xf32>
      %320 = arith.addf %315, %319 : vector<64x128xf32>
      %c2_244 = arith.constant 2 : index
      %c0_245 = arith.constant 0 : index
      %321 = vector.load %arg16[%c2_244, %c0_245] : memref<88x64xbf16, #tpu.memory_space<vmem>>, vector<64x64xbf16>
      %c2_246 = arith.constant 2 : index
      %c0_247 = arith.constant 0 : index
      %c0_248 = arith.constant 0 : index
      %322 = vector.load %arg6[%c2_246, %c0_247, %c0_248] : memref<9x64x128xbf16, #tpu.memory_space<vmem>>, vector<1x64x128xbf16>
      %323 = vector.shape_cast %322 : vector<1x64x128xbf16> to vector<64x128xbf16>
      %cst_249 = arith.constant dense<0.000000e+00> : vector<64x128xf32>
      %324 = tpu.matmul %321, %323, %cst_249 {dimension_numbers = #tpu.dot_dimension_numbers<[1], [0], [0], [1], [0, 0, 1, 1], [], []>} : vector<64x64xbf16>, vector<64x128xbf16>, vector<64x128xf32> -> vector<64x128xf32>
      %325 = arith.addf %320, %324 : vector<64x128xf32>
      %c10 = arith.constant 10 : index
      %c0_250 = arith.constant 0 : index
      %326 = vector.load %arg16[%c10, %c0_250] : memref<88x64xbf16, #tpu.memory_space<vmem>>, vector<64x64xbf16>
      %c3_251 = arith.constant 3 : index
      %c0_252 = arith.constant 0 : index
      %c0_253 = arith.constant 0 : index
      %327 = vector.load %arg6[%c3_251, %c0_252, %c0_253] : memref<9x64x128xbf16, #tpu.memory_space<vmem>>, vector<1x64x128xbf16>
      %328 = vector.shape_cast %327 : vector<1x64x128xbf16> to vector<64x128xbf16>
      %cst_254 = arith.constant dense<0.000000e+00> : vector<64x128xf32>
      %329 = tpu.matmul %326, %328, %cst_254 {dimension_numbers = #tpu.dot_dimension_numbers<[1], [0], [0], [1], [0, 0, 1, 1], [], []>} : vector<64x64xbf16>, vector<64x128xbf16>, vector<64x128xf32> -> vector<64x128xf32>
      %330 = arith.addf %325, %329 : vector<64x128xf32>
      %c11_255 = arith.constant 11 : index
      %c0_256 = arith.constant 0 : index
      %331 = vector.load %arg16[%c11_255, %c0_256] : memref<88x64xbf16, #tpu.memory_space<vmem>>, vector<64x64xbf16>
      %c4_257 = arith.constant 4 : index
      %c0_258 = arith.constant 0 : index
      %c0_259 = arith.constant 0 : index
      %332 = vector.load %arg6[%c4_257, %c0_258, %c0_259] : memref<9x64x128xbf16, #tpu.memory_space<vmem>>, vector<1x64x128xbf16>
      %333 = vector.shape_cast %332 : vector<1x64x128xbf16> to vector<64x128xbf16>
      %cst_260 = arith.constant dense<0.000000e+00> : vector<64x128xf32>
      %334 = tpu.matmul %331, %333, %cst_260 {dimension_numbers = #tpu.dot_dimension_numbers<[1], [0], [0], [1], [0, 0, 1, 1], [], []>} : vector<64x64xbf16>, vector<64x128xbf16>, vector<64x128xf32> -> vector<64x128xf32>
      %335 = arith.addf %330, %334 : vector<64x128xf32>
      %c12 = arith.constant 12 : index
      %c0_261 = arith.constant 0 : index
      %336 = vector.load %arg16[%c12, %c0_261] : memref<88x64xbf16, #tpu.memory_space<vmem>>, vector<64x64xbf16>
      %c5_262 = arith.constant 5 : index
      %c0_263 = arith.constant 0 : index
      %c0_264 = arith.constant 0 : index
      %337 = vector.load %arg6[%c5_262, %c0_263, %c0_264] : memref<9x64x128xbf16, #tpu.memory_space<vmem>>, vector<1x64x128xbf16>
      %338 = vector.shape_cast %337 : vector<1x64x128xbf16> to vector<64x128xbf16>
      %cst_265 = arith.constant dense<0.000000e+00> : vector<64x128xf32>
      %339 = tpu.matmul %336, %338, %cst_265 {dimension_numbers = #tpu.dot_dimension_numbers<[1], [0], [0], [1], [0, 0, 1, 1], [], []>} : vector<64x64xbf16>, vector<64x128xbf16>, vector<64x128xf32> -> vector<64x128xf32>
      %340 = arith.addf %335, %339 : vector<64x128xf32>
      %c20_266 = arith.constant 20 : index
      %c0_267 = arith.constant 0 : index
      %341 = vector.load %arg16[%c20_266, %c0_267] : memref<88x64xbf16, #tpu.memory_space<vmem>>, vector<64x64xbf16>
      %c6_268 = arith.constant 6 : index
      %c0_269 = arith.constant 0 : index
      %c0_270 = arith.constant 0 : index
      %342 = vector.load %arg6[%c6_268, %c0_269, %c0_270] : memref<9x64x128xbf16, #tpu.memory_space<vmem>>, vector<1x64x128xbf16>
      %343 = vector.shape_cast %342 : vector<1x64x128xbf16> to vector<64x128xbf16>
      %cst_271 = arith.constant dense<0.000000e+00> : vector<64x128xf32>
      %344 = tpu.matmul %341, %343, %cst_271 {dimension_numbers = #tpu.dot_dimension_numbers<[1], [0], [0], [1], [0, 0, 1, 1], [], []>} : vector<64x64xbf16>, vector<64x128xbf16>, vector<64x128xf32> -> vector<64x128xf32>
      %345 = arith.addf %340, %344 : vector<64x128xf32>
      %c21_272 = arith.constant 21 : index
      %c0_273 = arith.constant 0 : index
      %346 = vector.load %arg16[%c21_272, %c0_273] : memref<88x64xbf16, #tpu.memory_space<vmem>>, vector<64x64xbf16>
      %c7_274 = arith.constant 7 : index
      %c0_275 = arith.constant 0 : index
      %c0_276 = arith.constant 0 : index
      %347 = vector.load %arg6[%c7_274, %c0_275, %c0_276] : memref<9x64x128xbf16, #tpu.memory_space<vmem>>, vector<1x64x128xbf16>
      %348 = vector.shape_cast %347 : vector<1x64x128xbf16> to vector<64x128xbf16>
      %cst_277 = arith.constant dense<0.000000e+00> : vector<64x128xf32>
      %349 = tpu.matmul %346, %348, %cst_277 {dimension_numbers = #tpu.dot_dimension_numbers<[1], [0], [0], [1], [0, 0, 1, 1], [], []>} : vector<64x64xbf16>, vector<64x128xbf16>, vector<64x128xf32> -> vector<64x128xf32>
      %350 = arith.addf %345, %349 : vector<64x128xf32>
      %c22 = arith.constant 22 : index
      %c0_278 = arith.constant 0 : index
      %351 = vector.load %arg16[%c22, %c0_278] : memref<88x64xbf16, #tpu.memory_space<vmem>>, vector<64x64xbf16>
      %c8_279 = arith.constant 8 : index
      %c0_280 = arith.constant 0 : index
      %c0_281 = arith.constant 0 : index
      %352 = vector.load %arg6[%c8_279, %c0_280, %c0_281] : memref<9x64x128xbf16, #tpu.memory_space<vmem>>, vector<1x64x128xbf16>
      %353 = vector.shape_cast %352 : vector<1x64x128xbf16> to vector<64x128xbf16>
      %cst_282 = arith.constant dense<0.000000e+00> : vector<64x128xf32>
      %354 = tpu.matmul %351, %353, %cst_282 {dimension_numbers = #tpu.dot_dimension_numbers<[1], [0], [0], [1], [0, 0, 1, 1], [], []>} : vector<64x64xbf16>, vector<64x128xbf16>, vector<64x128xf32> -> vector<64x128xf32>
      %355 = arith.addf %350, %354 : vector<64x128xf32>
      %c0_283 = arith.constant 0 : index
      %c0_284 = arith.constant 0 : index
      %356 = vector.load %arg7[%c0_283, %c0_284] : memref<1x128xf32, #tpu.memory_space<vmem>>, vector<1x128xf32>
      %357 = vector.broadcast %356 : vector<1x128xf32> to vector<64x128xf32>
      %358 = arith.addf %355, %357 : vector<64x128xf32>
      %cst_285 = arith.constant 0.000000e+00 : f32
      %359 = vector.broadcast %cst_285 : f32 to vector<64x128xf32>
      %360 = arith.maximumf %358, %359 : vector<64x128xf32>
      %c0_286 = arith.constant 0 : index
      %c0_287 = arith.constant 0 : index
      %361 = vector.load %arg17[%c0_286, %c0_287] : memref<64x128xf32, #tpu.memory_space<vmem>>, vector<64x128xf32>
      tpu.vector_store %arg17[%c0_286, %c0_287], %360 {strides = array<i32>} : memref<64x128xf32, #tpu.memory_space<vmem>>, vector<64x128xf32>,
      %c0_288 = arith.constant 0 : index
      %c0_289 = arith.constant 0 : index
      %362 = vector.load %arg17[%c0_288, %c0_289] : memref<64x128xf32, #tpu.memory_space<vmem>>, vector<1x128xf32>
      %363 = vector.shape_cast %362 : vector<1x128xf32> to vector<128xf32>
      %c1_290 = arith.constant 1 : index
      %c0_291 = arith.constant 0 : index
      %364 = vector.load %arg17[%c1_290, %c0_291] : memref<64x128xf32, #tpu.memory_space<vmem>>, vector<1x128xf32>
      %365 = vector.shape_cast %364 : vector<1x128xf32> to vector<128xf32>
      %366 = arith.maximumf %363, %365 : vector<128xf32>
      %c10_292 = arith.constant 10 : index
      %c0_293 = arith.constant 0 : index
      %367 = vector.load %arg17[%c10_292, %c0_293] : memref<64x128xf32, #tpu.memory_space<vmem>>, vector<1x128xf32>
      %368 = vector.shape_cast %367 : vector<1x128xf32> to vector<128xf32>
      %c11_294 = arith.constant 11 : index
      %c0_295 = arith.constant 0 : index
      %369 = vector.load %arg17[%c11_294, %c0_295] : memref<64x128xf32, #tpu.memory_space<vmem>>, vector<1x128xf32>
      %370 = vector.shape_cast %369 : vector<1x128xf32> to vector<128xf32>
      %371 = arith.maximumf %368, %370 : vector<128xf32>
      %372 = arith.maximumf %366, %371 : vector<128xf32>
      %c0_i32_296 = arith.constant 0 : i32
      %373 = arith.addi %c0_i32_296, %arg19 : i32
      %374 = arith.index_cast %373 : i32 to index
      %c0_297 = arith.constant 0 : index
      %375 = vector.load %arg18[%374, %c0_297] : memref<96x128xf32, #tpu.memory_space<vmem>>, vector<1x128xf32>
      %376 = vector.shape_cast %375 : vector<1x128xf32> to vector<128xf32>
      %377 = vector.shape_cast %372 : vector<128xf32> to vector<1x128xf32>
      tpu.vector_store %arg18[%374, %c0_297], %377 {strides = array<i32>} : memref<96x128xf32, #tpu.memory_space<vmem>>, vector<1x128xf32>,
      %c2_298 = arith.constant 2 : index
      %c0_299 = arith.constant 0 : index
      %378 = vector.load %arg17[%c2_298, %c0_299] : memref<64x128xf32, #tpu.memory_space<vmem>>, vector<1x128xf32>
      %379 = vector.shape_cast %378 : vector<1x128xf32> to vector<128xf32>
      %c3_300 = arith.constant 3 : index
      %c0_301 = arith.constant 0 : index
      %380 = vector.load %arg17[%c3_300, %c0_301] : memref<64x128xf32, #tpu.memory_space<vmem>>, vector<1x128xf32>
      %381 = vector.shape_cast %380 : vector<1x128xf32> to vector<128xf32>
      %382 = arith.maximumf %379, %381 : vector<128xf32>
      %c12_302 = arith.constant 12 : index
      %c0_303 = arith.constant 0 : index
      %383 = vector.load %arg17[%c12_302, %c0_303] : memref<64x128xf32, #tpu.memory_space<vmem>>, vector<1x128xf32>
      %384 = vector.shape_cast %383 : vector<1x128xf32> to vector<128xf32>
      %c13 = arith.constant 13 : index
      %c0_304 = arith.constant 0 : index
      %385 = vector.load %arg17[%c13, %c0_304] : memref<64x128xf32, #tpu.memory_space<vmem>>, vector<1x128xf32>
      %386 = vector.shape_cast %385 : vector<1x128xf32> to vector<128xf32>
      %387 = arith.maximumf %384, %386 : vector<128xf32>
      %388 = arith.maximumf %382, %387 : vector<128xf32>
      %c8_i32_305 = arith.constant 8 : i32
      %389 = arith.addi %c8_i32_305, %arg19 : i32
      %390 = arith.index_cast %389 : i32 to index
      %c0_306 = arith.constant 0 : index
      %391 = vector.load %arg18[%390, %c0_306] : memref<96x128xf32, #tpu.memory_space<vmem>>, vector<1x128xf32>
      %392 = vector.shape_cast %391 : vector<1x128xf32> to vector<128xf32>
      %393 = vector.shape_cast %388 : vector<128xf32> to vector<1x128xf32>
      tpu.vector_store %arg18[%390, %c0_306], %393 {strides = array<i32>} : memref<96x128xf32, #tpu.memory_space<vmem>>, vector<1x128xf32>,
      %c4_307 = arith.constant 4 : index
      %c0_308 = arith.constant 0 : index
      %394 = vector.load %arg17[%c4_307, %c0_308] : memref<64x128xf32, #tpu.memory_space<vmem>>, vector<1x128xf32>
      %395 = vector.shape_cast %394 : vector<1x128xf32> to vector<128xf32>
      %c5_309 = arith.constant 5 : index
      %c0_310 = arith.constant 0 : index
      %396 = vector.load %arg17[%c5_309, %c0_310] : memref<64x128xf32, #tpu.memory_space<vmem>>, vector<1x128xf32>
      %397 = vector.shape_cast %396 : vector<1x128xf32> to vector<128xf32>
      %398 = arith.maximumf %395, %397 : vector<128xf32>
      %c14 = arith.constant 14 : index
      %c0_311 = arith.constant 0 : index
      %399 = vector.load %arg17[%c14, %c0_311] : memref<64x128xf32, #tpu.memory_space<vmem>>, vector<1x128xf32>
      %400 = vector.shape_cast %399 : vector<1x128xf32> to vector<128xf32>
      %c15 = arith.constant 15 : index
      %c0_312 = arith.constant 0 : index
      %401 = vector.load %arg17[%c15, %c0_312] : memref<64x128xf32, #tpu.memory_space<vmem>>, vector<1x128xf32>
      %402 = vector.shape_cast %401 : vector<1x128xf32> to vector<128xf32>
      %403 = arith.maximumf %400, %402 : vector<128xf32>
      %404 = arith.maximumf %398, %403 : vector<128xf32>
      %c16_i32 = arith.constant 16 : i32
      %405 = arith.addi %c16_i32, %arg19 : i32
      %406 = arith.index_cast %405 : i32 to index
      %c0_313 = arith.constant 0 : index
      %407 = vector.load %arg18[%406, %c0_313] : memref<96x128xf32, #tpu.memory_space<vmem>>, vector<1x128xf32>
      %408 = vector.shape_cast %407 : vector<1x128xf32> to vector<128xf32>
      %409 = vector.shape_cast %404 : vector<128xf32> to vector<1x128xf32>
      tpu.vector_store %arg18[%406, %c0_313], %409 {strides = array<i32>} : memref<96x128xf32, #tpu.memory_space<vmem>>, vector<1x128xf32>,
      %c6_314 = arith.constant 6 : index
      %c0_315 = arith.constant 0 : index
      %410 = vector.load %arg17[%c6_314, %c0_315] : memref<64x128xf32, #tpu.memory_space<vmem>>, vector<1x128xf32>
      %411 = vector.shape_cast %410 : vector<1x128xf32> to vector<128xf32>
      %c7_316 = arith.constant 7 : index
      %c0_317 = arith.constant 0 : index
      %412 = vector.load %arg17[%c7_316, %c0_317] : memref<64x128xf32, #tpu.memory_space<vmem>>, vector<1x128xf32>
      %413 = vector.shape_cast %412 : vector<1x128xf32> to vector<128xf32>
      %414 = arith.maximumf %411, %413 : vector<128xf32>
      %c16_318 = arith.constant 16 : index
      %c0_319 = arith.constant 0 : index
      %415 = vector.load %arg17[%c16_318, %c0_319] : memref<64x128xf32, #tpu.memory_space<vmem>>, vector<1x128xf32>
      %416 = vector.shape_cast %415 : vector<1x128xf32> to vector<128xf32>
      %c17 = arith.constant 17 : index
      %c0_320 = arith.constant 0 : index
      %417 = vector.load %arg17[%c17, %c0_320] : memref<64x128xf32, #tpu.memory_space<vmem>>, vector<1x128xf32>
      %418 = vector.shape_cast %417 : vector<1x128xf32> to vector<128xf32>
      %419 = arith.maximumf %416, %418 : vector<128xf32>
      %420 = arith.maximumf %414, %419 : vector<128xf32>
      %c24_i32 = arith.constant 24 : i32
      %421 = arith.addi %c24_i32, %arg19 : i32
      %422 = arith.index_cast %421 : i32 to index
      %c0_321 = arith.constant 0 : index
      %423 = vector.load %arg18[%422, %c0_321] : memref<96x128xf32, #tpu.memory_space<vmem>>, vector<1x128xf32>
      %424 = vector.shape_cast %423 : vector<1x128xf32> to vector<128xf32>
      %425 = vector.shape_cast %420 : vector<128xf32> to vector<1x128xf32>
      tpu.vector_store %arg18[%422, %c0_321], %425 {strides = array<i32>} : memref<96x128xf32, #tpu.memory_space<vmem>>, vector<1x128xf32>,
      %c20_322 = arith.constant 20 : index
      %c0_323 = arith.constant 0 : index
      %426 = vector.load %arg17[%c20_322, %c0_323] : memref<64x128xf32, #tpu.memory_space<vmem>>, vector<1x128xf32>
      %427 = vector.shape_cast %426 : vector<1x128xf32> to vector<128xf32>
      %c21_324 = arith.constant 21 : index
      %c0_325 = arith.constant 0 : index
      %428 = vector.load %arg17[%c21_324, %c0_325] : memref<64x128xf32, #tpu.memory_space<vmem>>, vector<1x128xf32>
      %429 = vector.shape_cast %428 : vector<1x128xf32> to vector<128xf32>
      %430 = arith.maximumf %427, %429 : vector<128xf32>
      %c30 = arith.constant 30 : index
      %c0_326 = arith.constant 0 : index
      %431 = vector.load %arg17[%c30, %c0_326] : memref<64x128xf32, #tpu.memory_space<vmem>>, vector<1x128xf32>
      %432 = vector.shape_cast %431 : vector<1x128xf32> to vector<128xf32>
      %c31_327 = arith.constant 31 : index
      %c0_328 = arith.constant 0 : index
      %433 = vector.load %arg17[%c31_327, %c0_328] : memref<64x128xf32, #tpu.memory_space<vmem>>, vector<1x128xf32>
      %434 = vector.shape_cast %433 : vector<1x128xf32> to vector<128xf32>
      %435 = arith.maximumf %432, %434 : vector<128xf32>
      %436 = arith.maximumf %430, %435 : vector<128xf32>
      %c32_i32 = arith.constant 32 : i32
      %437 = arith.addi %c32_i32, %arg19 : i32
      %438 = arith.index_cast %437 : i32 to index
      %c0_329 = arith.constant 0 : index
      %439 = vector.load %arg18[%438, %c0_329] : memref<96x128xf32, #tpu.memory_space<vmem>>, vector<1x128xf32>
      %440 = vector.shape_cast %439 : vector<1x128xf32> to vector<128xf32>
      %441 = vector.shape_cast %436 : vector<128xf32> to vector<1x128xf32>
      tpu.vector_store %arg18[%438, %c0_329], %441 {strides = array<i32>} : memref<96x128xf32, #tpu.memory_space<vmem>>, vector<1x128xf32>,
      %c22_330 = arith.constant 22 : index
      %c0_331 = arith.constant 0 : index
      %442 = vector.load %arg17[%c22_330, %c0_331] : memref<64x128xf32, #tpu.memory_space<vmem>>, vector<1x128xf32>
      %443 = vector.shape_cast %442 : vector<1x128xf32> to vector<128xf32>
      %c23 = arith.constant 23 : index
      %c0_332 = arith.constant 0 : index
      %444 = vector.load %arg17[%c23, %c0_332] : memref<64x128xf32, #tpu.memory_space<vmem>>, vector<1x128xf32>
      %445 = vector.shape_cast %444 : vector<1x128xf32> to vector<128xf32>
      %446 = arith.maximumf %443, %445 : vector<128xf32>
      %c32_333 = arith.constant 32 : index
      %c0_334 = arith.constant 0 : index
      %447 = vector.load %arg17[%c32_333, %c0_334] : memref<64x128xf32, #tpu.memory_space<vmem>>, vector<1x128xf32>
      %448 = vector.shape_cast %447 : vector<1x128xf32> to vector<128xf32>
      %c33_335 = arith.constant 33 : index
      %c0_336 = arith.constant 0 : index
      %449 = vector.load %arg17[%c33_335, %c0_336] : memref<64x128xf32, #tpu.memory_space<vmem>>, vector<1x128xf32>
      %450 = vector.shape_cast %449 : vector<1x128xf32> to vector<128xf32>
      %451 = arith.maximumf %448, %450 : vector<128xf32>
      %452 = arith.maximumf %446, %451 : vector<128xf32>
      %c40_i32 = arith.constant 40 : i32
      %453 = arith.addi %c40_i32, %arg19 : i32
      %454 = arith.index_cast %453 : i32 to index
      %c0_337 = arith.constant 0 : index
      %455 = vector.load %arg18[%454, %c0_337] : memref<96x128xf32, #tpu.memory_space<vmem>>, vector<1x128xf32>
      %456 = vector.shape_cast %455 : vector<1x128xf32> to vector<128xf32>
      %457 = vector.shape_cast %452 : vector<128xf32> to vector<1x128xf32>
      tpu.vector_store %arg18[%454, %c0_337], %457 {strides = array<i32>} : memref<96x128xf32, #tpu.memory_space<vmem>>, vector<1x128xf32>,
      %c24_338 = arith.constant 24 : index
      %c0_339 = arith.constant 0 : index
      %458 = vector.load %arg17[%c24_338, %c0_339] : memref<64x128xf32, #tpu.memory_space<vmem>>, vector<1x128xf32>
      %459 = vector.shape_cast %458 : vector<1x128xf32> to vector<128xf32>
      %c25 = arith.constant 25 : index
      %c0_340 = arith.constant 0 : index
      %460 = vector.load %arg17[%c25, %c0_340] : memref<64x128xf32, #tpu.memory_space<vmem>>, vector<1x128xf32>
      %461 = vector.shape_cast %460 : vector<1x128xf32> to vector<128xf32>
      %462 = arith.maximumf %459, %461 : vector<128xf32>
      %c34 = arith.constant 34 : index
      %c0_341 = arith.constant 0 : index
      %463 = vector.load %arg17[%c34, %c0_341] : memref<64x128xf32, #tpu.memory_space<vmem>>, vector<1x128xf32>
      %464 = vector.shape_cast %463 : vector<1x128xf32> to vector<128xf32>
      %c35 = arith.constant 35 : index
      %c0_342 = arith.constant 0 : index
      %465 = vector.load %arg17[%c35, %c0_342] : memref<64x128xf32, #tpu.memory_space<vmem>>, vector<1x128xf32>
      %466 = vector.shape_cast %465 : vector<1x128xf32> to vector<128xf32>
      %467 = arith.maximumf %464, %466 : vector<128xf32>
      %468 = arith.maximumf %462, %467 : vector<128xf32>
      %c48_i32 = arith.constant 48 : i32
      %469 = arith.addi %c48_i32, %arg19 : i32
      %470 = arith.index_cast %469 : i32 to index
      %c0_343 = arith.constant 0 : index
      %471 = vector.load %arg18[%470, %c0_343] : memref<96x128xf32, #tpu.memory_space<vmem>>, vector<1x128xf32>
      %472 = vector.shape_cast %471 : vector<1x128xf32> to vector<128xf32>
      %473 = vector.shape_cast %468 : vector<128xf32> to vector<1x128xf32>
      tpu.vector_store %arg18[%470, %c0_343], %473 {strides = array<i32>} : memref<96x128xf32, #tpu.memory_space<vmem>>, vector<1x128xf32>,
      %c26 = arith.constant 26 : index
      %c0_344 = arith.constant 0 : index
      %474 = vector.load %arg17[%c26, %c0_344] : memref<64x128xf32, #tpu.memory_space<vmem>>, vector<1x128xf32>
      %475 = vector.shape_cast %474 : vector<1x128xf32> to vector<128xf32>
      %c27 = arith.constant 27 : index
      %c0_345 = arith.constant 0 : index
      %476 = vector.load %arg17[%c27, %c0_345] : memref<64x128xf32, #tpu.memory_space<vmem>>, vector<1x128xf32>
      %477 = vector.shape_cast %476 : vector<1x128xf32> to vector<128xf32>
      %478 = arith.maximumf %475, %477 : vector<128xf32>
      %c36_346 = arith.constant 36 : index
      %c0_347 = arith.constant 0 : index
      %479 = vector.load %arg17[%c36_346, %c0_347] : memref<64x128xf32, #tpu.memory_space<vmem>>, vector<1x128xf32>
      %480 = vector.shape_cast %479 : vector<1x128xf32> to vector<128xf32>
      %c37_348 = arith.constant 37 : index
      %c0_349 = arith.constant 0 : index
      %481 = vector.load %arg17[%c37_348, %c0_349] : memref<64x128xf32, #tpu.memory_space<vmem>>, vector<1x128xf32>
      %482 = vector.shape_cast %481 : vector<1x128xf32> to vector<128xf32>
      %483 = arith.maximumf %480, %482 : vector<128xf32>
      %484 = arith.maximumf %478, %483 : vector<128xf32>
      %c56_i32 = arith.constant 56 : i32
      %485 = arith.addi %c56_i32, %arg19 : i32
      %486 = arith.index_cast %485 : i32 to index
      %c0_350 = arith.constant 0 : index
      %487 = vector.load %arg18[%486, %c0_350] : memref<96x128xf32, #tpu.memory_space<vmem>>, vector<1x128xf32>
      %488 = vector.shape_cast %487 : vector<1x128xf32> to vector<128xf32>
      %489 = vector.shape_cast %484 : vector<128xf32> to vector<1x128xf32>
      tpu.vector_store %arg18[%486, %c0_350], %489 {strides = array<i32>} : memref<96x128xf32, #tpu.memory_space<vmem>>, vector<1x128xf32>,
      %c40_351 = arith.constant 40 : index
      %c0_352 = arith.constant 0 : index
      %490 = vector.load %arg17[%c40_351, %c0_352] : memref<64x128xf32, #tpu.memory_space<vmem>>, vector<1x128xf32>
      %491 = vector.shape_cast %490 : vector<1x128xf32> to vector<128xf32>
      %c41_353 = arith.constant 41 : index
      %c0_354 = arith.constant 0 : index
      %492 = vector.load %arg17[%c41_353, %c0_354] : memref<64x128xf32, #tpu.memory_space<vmem>>, vector<1x128xf32>
      %493 = vector.shape_cast %492 : vector<1x128xf32> to vector<128xf32>
      %494 = arith.maximumf %491, %493 : vector<128xf32>
      %c50 = arith.constant 50 : index
      %c0_355 = arith.constant 0 : index
      %495 = vector.load %arg17[%c50, %c0_355] : memref<64x128xf32, #tpu.memory_space<vmem>>, vector<1x128xf32>
      %496 = vector.shape_cast %495 : vector<1x128xf32> to vector<128xf32>
      %c51_356 = arith.constant 51 : index
      %c0_357 = arith.constant 0 : index
      %497 = vector.load %arg17[%c51_356, %c0_357] : memref<64x128xf32, #tpu.memory_space<vmem>>, vector<1x128xf32>
      %498 = vector.shape_cast %497 : vector<1x128xf32> to vector<128xf32>
      %499 = arith.maximumf %496, %498 : vector<128xf32>
      %500 = arith.maximumf %494, %499 : vector<128xf32>
      %c64_i32 = arith.constant 64 : i32
      %501 = arith.addi %c64_i32, %arg19 : i32
      %502 = arith.index_cast %501 : i32 to index
      %c0_358 = arith.constant 0 : index
      %503 = vector.load %arg18[%502, %c0_358] : memref<96x128xf32, #tpu.memory_space<vmem>>, vector<1x128xf32>
      %504 = vector.shape_cast %503 : vector<1x128xf32> to vector<128xf32>
      %505 = vector.shape_cast %500 : vector<128xf32> to vector<1x128xf32>
      tpu.vector_store %arg18[%502, %c0_358], %505 {strides = array<i32>} : memref<96x128xf32, #tpu.memory_space<vmem>>, vector<1x128xf32>,
      %c42 = arith.constant 42 : index
      %c0_359 = arith.constant 0 : index
      %506 = vector.load %arg17[%c42, %c0_359] : memref<64x128xf32, #tpu.memory_space<vmem>>, vector<1x128xf32>
      %507 = vector.shape_cast %506 : vector<1x128xf32> to vector<128xf32>
      %c43 = arith.constant 43 : index
      %c0_360 = arith.constant 0 : index
      %508 = vector.load %arg17[%c43, %c0_360] : memref<64x128xf32, #tpu.memory_space<vmem>>, vector<1x128xf32>
      %509 = vector.shape_cast %508 : vector<1x128xf32> to vector<128xf32>
      %510 = arith.maximumf %507, %509 : vector<128xf32>
      %c52 = arith.constant 52 : index
      %c0_361 = arith.constant 0 : index
      %511 = vector.load %arg17[%c52, %c0_361] : memref<64x128xf32, #tpu.memory_space<vmem>>, vector<1x128xf32>
      %512 = vector.shape_cast %511 : vector<1x128xf32> to vector<128xf32>
      %c53 = arith.constant 53 : index
      %c0_362 = arith.constant 0 : index
      %513 = vector.load %arg17[%c53, %c0_362] : memref<64x128xf32, #tpu.memory_space<vmem>>, vector<1x128xf32>
      %514 = vector.shape_cast %513 : vector<1x128xf32> to vector<128xf32>
      %515 = arith.maximumf %512, %514 : vector<128xf32>
      %516 = arith.maximumf %510, %515 : vector<128xf32>
      %c72_i32 = arith.constant 72 : i32
      %517 = arith.addi %c72_i32, %arg19 : i32
      %518 = arith.index_cast %517 : i32 to index
      %c0_363 = arith.constant 0 : index
      %519 = vector.load %arg18[%518, %c0_363] : memref<96x128xf32, #tpu.memory_space<vmem>>, vector<1x128xf32>
      %520 = vector.shape_cast %519 : vector<1x128xf32> to vector<128xf32>
      %521 = vector.shape_cast %516 : vector<128xf32> to vector<1x128xf32>
      tpu.vector_store %arg18[%518, %c0_363], %521 {strides = array<i32>} : memref<96x128xf32, #tpu.memory_space<vmem>>, vector<1x128xf32>,
      %c44 = arith.constant 44 : index
      %c0_364 = arith.constant 0 : index
      %522 = vector.load %arg17[%c44, %c0_364] : memref<64x128xf32, #tpu.memory_space<vmem>>, vector<1x128xf32>
      %523 = vector.shape_cast %522 : vector<1x128xf32> to vector<128xf32>
      %c45 = arith.constant 45 : index
      %c0_365 = arith.constant 0 : index
      %524 = vector.load %arg17[%c45, %c0_365] : memref<64x128xf32, #tpu.memory_space<vmem>>, vector<1x128xf32>
      %525 = vector.shape_cast %524 : vector<1x128xf32> to vector<128xf32>
      %526 = arith.maximumf %523, %525 : vector<128xf32>
      %c54_366 = arith.constant 54 : index
      %c0_367 = arith.constant 0 : index
      %527 = vector.load %arg17[%c54_366, %c0_367] : memref<64x128xf32, #tpu.memory_space<vmem>>, vector<1x128xf32>
      %528 = vector.shape_cast %527 : vector<1x128xf32> to vector<128xf32>
      %c55_368 = arith.constant 55 : index
      %c0_369 = arith.constant 0 : index
      %529 = vector.load %arg17[%c55_368, %c0_369] : memref<64x128xf32, #tpu.memory_space<vmem>>, vector<1x128xf32>
      %530 = vector.shape_cast %529 : vector<1x128xf32> to vector<128xf32>
      %531 = arith.maximumf %528, %530 : vector<128xf32>
      %532 = arith.maximumf %526, %531 : vector<128xf32>
      %c80_i32 = arith.constant 80 : i32
      %533 = arith.addi %c80_i32, %arg19 : i32
      %534 = arith.index_cast %533 : i32 to index
      %c0_370 = arith.constant 0 : index
      %535 = vector.load %arg18[%534, %c0_370] : memref<96x128xf32, #tpu.memory_space<vmem>>, vector<1x128xf32>
      %536 = vector.shape_cast %535 : vector<1x128xf32> to vector<128xf32>
      %537 = vector.shape_cast %532 : vector<128xf32> to vector<1x128xf32>
      tpu.vector_store %arg18[%534, %c0_370], %537 {strides = array<i32>} : memref<96x128xf32, #tpu.memory_space<vmem>>, vector<1x128xf32>,
      %c46 = arith.constant 46 : index
      %c0_371 = arith.constant 0 : index
      %538 = vector.load %arg17[%c46, %c0_371] : memref<64x128xf32, #tpu.memory_space<vmem>>, vector<1x128xf32>
      %539 = vector.shape_cast %538 : vector<1x128xf32> to vector<128xf32>
      %c47 = arith.constant 47 : index
      %c0_372 = arith.constant 0 : index
      %540 = vector.load %arg17[%c47, %c0_372] : memref<64x128xf32, #tpu.memory_space<vmem>>, vector<1x128xf32>
      %541 = vector.shape_cast %540 : vector<1x128xf32> to vector<128xf32>
      %542 = arith.maximumf %539, %541 : vector<128xf32>
      %c56_373 = arith.constant 56 : index
      %c0_374 = arith.constant 0 : index
      %543 = vector.load %arg17[%c56_373, %c0_374] : memref<64x128xf32, #tpu.memory_space<vmem>>, vector<1x128xf32>
      %544 = vector.shape_cast %543 : vector<1x128xf32> to vector<128xf32>
      %c57 = arith.constant 57 : index
      %c0_375 = arith.constant 0 : index
      %545 = vector.load %arg17[%c57, %c0_375] : memref<64x128xf32, #tpu.memory_space<vmem>>, vector<1x128xf32>
      %546 = vector.shape_cast %545 : vector<1x128xf32> to vector<128xf32>
      %547 = arith.maximumf %544, %546 : vector<128xf32>
      %548 = arith.maximumf %542, %547 : vector<128xf32>
      %c88_i32 = arith.constant 88 : i32
      %549 = arith.addi %c88_i32, %arg19 : i32
      %550 = arith.index_cast %549 : i32 to index
      %c0_376 = arith.constant 0 : index
      %551 = vector.load %arg18[%550, %c0_376] : memref<96x128xf32, #tpu.memory_space<vmem>>, vector<1x128xf32>
      %552 = vector.shape_cast %551 : vector<1x128xf32> to vector<128xf32>
      %553 = vector.shape_cast %548 : vector<128xf32> to vector<1x128xf32>
      tpu.vector_store %arg18[%550, %c0_376], %553 {strides = array<i32>} : memref<96x128xf32, #tpu.memory_space<vmem>>, vector<1x128xf32>,
    }
    %c8_i32_4 = arith.constant 8 : i32
    %cst_5 = arith.constant 0.000000e+00 : f32
    %5 = vector.broadcast %cst_5 : f32 to vector<8x512xf32>
    %c0_6 = arith.constant 0 : index
    %c0_7 = arith.constant 0 : index
    %6 = vector.load %arg18[%c0_6, %c0_7] : memref<96x128xf32, #tpu.memory_space<vmem>>, vector<8x128xf32>
    %7 = arith.truncf %6 : vector<8x128xf32> to vector<8x128xbf16>
    %c0_8 = arith.constant 0 : index
    %c0_9 = arith.constant 0 : index
    %8 = vector.load %arg8[%c0_8, %c0_9] : memref<1536x512xbf16, #tpu.memory_space<vmem>>, vector<128x512xbf16>
    %cst_10 = arith.constant dense<0.000000e+00> : vector<8x512xf32>
    %9 = tpu.matmul %7, %8, %cst_10 {dimension_numbers = #tpu.dot_dimension_numbers<[1], [0], [0], [1], [0, 0, 1, 1], [], []>} : vector<8x128xbf16>, vector<128x512xbf16>, vector<8x512xf32> -> vector<8x512xf32>
    %10 = arith.addf %5, %9 : vector<8x512xf32>
    %c8 = arith.constant 8 : index
    %c0_11 = arith.constant 0 : index
    %11 = vector.load %arg18[%c8, %c0_11] : memref<96x128xf32, #tpu.memory_space<vmem>>, vector<8x128xf32>
    %12 = arith.truncf %11 : vector<8x128xf32> to vector<8x128xbf16>
    %c128 = arith.constant 128 : index
    %c0_12 = arith.constant 0 : index
    %13 = vector.load %arg8[%c128, %c0_12] : memref<1536x512xbf16, #tpu.memory_space<vmem>>, vector<128x512xbf16>
    %cst_13 = arith.constant dense<0.000000e+00> : vector<8x512xf32>
    %14 = tpu.matmul %12, %13, %cst_13 {dimension_numbers = #tpu.dot_dimension_numbers<[1], [0], [0], [1], [0, 0, 1, 1], [], []>} : vector<8x128xbf16>, vector<128x512xbf16>, vector<8x512xf32> -> vector<8x512xf32>
    %15 = arith.addf %10, %14 : vector<8x512xf32>
    %c16 = arith.constant 16 : index
    %c0_14 = arith.constant 0 : index
    %16 = vector.load %arg18[%c16, %c0_14] : memref<96x128xf32, #tpu.memory_space<vmem>>, vector<8x128xf32>
    %17 = arith.truncf %16 : vector<8x128xf32> to vector<8x128xbf16>
    %c256 = arith.constant 256 : index
    %c0_15 = arith.constant 0 : index
    %18 = vector.load %arg8[%c256, %c0_15] : memref<1536x512xbf16, #tpu.memory_space<vmem>>, vector<128x512xbf16>
    %cst_16 = arith.constant dense<0.000000e+00> : vector<8x512xf32>
    %19 = tpu.matmul %17, %18, %cst_16 {dimension_numbers = #tpu.dot_dimension_numbers<[1], [0], [0], [1], [0, 0, 1, 1], [], []>} : vector<8x128xbf16>, vector<128x512xbf16>, vector<8x512xf32> -> vector<8x512xf32>
    %20 = arith.addf %15, %19 : vector<8x512xf32>
    %c24 = arith.constant 24 : index
    %c0_17 = arith.constant 0 : index
    %21 = vector.load %arg18[%c24, %c0_17] : memref<96x128xf32, #tpu.memory_space<vmem>>, vector<8x128xf32>
    %22 = arith.truncf %21 : vector<8x128xf32> to vector<8x128xbf16>
    %c384 = arith.constant 384 : index
    %c0_18 = arith.constant 0 : index
    %23 = vector.load %arg8[%c384, %c0_18] : memref<1536x512xbf16, #tpu.memory_space<vmem>>, vector<128x512xbf16>
    %cst_19 = arith.constant dense<0.000000e+00> : vector<8x512xf32>
    %24 = tpu.matmul %22, %23, %cst_19 {dimension_numbers = #tpu.dot_dimension_numbers<[1], [0], [0], [1], [0, 0, 1, 1], [], []>} : vector<8x128xbf16>, vector<128x512xbf16>, vector<8x512xf32> -> vector<8x512xf32>
    %25 = arith.addf %20, %24 : vector<8x512xf32>
    %c32 = arith.constant 32 : index
    %c0_20 = arith.constant 0 : index
    %26 = vector.load %arg18[%c32, %c0_20] : memref<96x128xf32, #tpu.memory_space<vmem>>, vector<8x128xf32>
    %27 = arith.truncf %26 : vector<8x128xf32> to vector<8x128xbf16>
    %c512 = arith.constant 512 : index
    %c0_21 = arith.constant 0 : index
    %28 = vector.load %arg8[%c512, %c0_21] : memref<1536x512xbf16, #tpu.memory_space<vmem>>, vector<128x512xbf16>
    %cst_22 = arith.constant dense<0.000000e+00> : vector<8x512xf32>
    %29 = tpu.matmul %27, %28, %cst_22 {dimension_numbers = #tpu.dot_dimension_numbers<[1], [0], [0], [1], [0, 0, 1, 1], [], []>} : vector<8x128xbf16>, vector<128x512xbf16>, vector<8x512xf32> -> vector<8x512xf32>
    %30 = arith.addf %25, %29 : vector<8x512xf32>
    %c40 = arith.constant 40 : index
    %c0_23 = arith.constant 0 : index
    %31 = vector.load %arg18[%c40, %c0_23] : memref<96x128xf32, #tpu.memory_space<vmem>>, vector<8x128xf32>
    %32 = arith.truncf %31 : vector<8x128xf32> to vector<8x128xbf16>
    %c640 = arith.constant 640 : index
    %c0_24 = arith.constant 0 : index
    %33 = vector.load %arg8[%c640, %c0_24] : memref<1536x512xbf16, #tpu.memory_space<vmem>>, vector<128x512xbf16>
    %cst_25 = arith.constant dense<0.000000e+00> : vector<8x512xf32>
    %34 = tpu.matmul %32, %33, %cst_25 {dimension_numbers = #tpu.dot_dimension_numbers<[1], [0], [0], [1], [0, 0, 1, 1], [], []>} : vector<8x128xbf16>, vector<128x512xbf16>, vector<8x512xf32> -> vector<8x512xf32>
    %35 = arith.addf %30, %34 : vector<8x512xf32>
    %c48 = arith.constant 48 : index
    %c0_26 = arith.constant 0 : index
    %36 = vector.load %arg18[%c48, %c0_26] : memref<96x128xf32, #tpu.memory_space<vmem>>, vector<8x128xf32>
    %37 = arith.truncf %36 : vector<8x128xf32> to vector<8x128xbf16>
    %c768 = arith.constant 768 : index
    %c0_27 = arith.constant 0 : index
    %38 = vector.load %arg8[%c768, %c0_27] : memref<1536x512xbf16, #tpu.memory_space<vmem>>, vector<128x512xbf16>
    %cst_28 = arith.constant dense<0.000000e+00> : vector<8x512xf32>
    %39 = tpu.matmul %37, %38, %cst_28 {dimension_numbers = #tpu.dot_dimension_numbers<[1], [0], [0], [1], [0, 0, 1, 1], [], []>} : vector<8x128xbf16>, vector<128x512xbf16>, vector<8x512xf32> -> vector<8x512xf32>
    %40 = arith.addf %35, %39 : vector<8x512xf32>
    %c56 = arith.constant 56 : index
    %c0_29 = arith.constant 0 : index
    %41 = vector.load %arg18[%c56, %c0_29] : memref<96x128xf32, #tpu.memory_space<vmem>>, vector<8x128xf32>
    %42 = arith.truncf %41 : vector<8x128xf32> to vector<8x128xbf16>
    %c896 = arith.constant 896 : index
    %c0_30 = arith.constant 0 : index
    %43 = vector.load %arg8[%c896, %c0_30] : memref<1536x512xbf16, #tpu.memory_space<vmem>>, vector<128x512xbf16>
    %cst_31 = arith.constant dense<0.000000e+00> : vector<8x512xf32>
    %44 = tpu.matmul %42, %43, %cst_31 {dimension_numbers = #tpu.dot_dimension_numbers<[1], [0], [0], [1], [0, 0, 1, 1], [], []>} : vector<8x128xbf16>, vector<128x512xbf16>, vector<8x512xf32> -> vector<8x512xf32>
    %45 = arith.addf %40, %44 : vector<8x512xf32>
    %c64 = arith.constant 64 : index
    %c0_32 = arith.constant 0 : index
    %46 = vector.load %arg18[%c64, %c0_32] : memref<96x128xf32, #tpu.memory_space<vmem>>, vector<8x128xf32>
    %47 = arith.truncf %46 : vector<8x128xf32> to vector<8x128xbf16>
    %c1024 = arith.constant 1024 : index
    %c0_33 = arith.constant 0 : index
    %48 = vector.load %arg8[%c1024, %c0_33] : memref<1536x512xbf16, #tpu.memory_space<vmem>>, vector<128x512xbf16>
    %cst_34 = arith.constant dense<0.000000e+00> : vector<8x512xf32>
    %49 = tpu.matmul %47, %48, %cst_34 {dimension_numbers = #tpu.dot_dimension_numbers<[1], [0], [0], [1], [0, 0, 1, 1], [], []>} : vector<8x128xbf16>, vector<128x512xbf16>, vector<8x512xf32> -> vector<8x512xf32>
    %50 = arith.addf %45, %49 : vector<8x512xf32>
    %c72 = arith.constant 72 : index
    %c0_35 = arith.constant 0 : index
    %51 = vector.load %arg18[%c72, %c0_35] : memref<96x128xf32, #tpu.memory_space<vmem>>, vector<8x128xf32>
    %52 = arith.truncf %51 : vector<8x128xf32> to vector<8x128xbf16>
    %c1152 = arith.constant 1152 : index
    %c0_36 = arith.constant 0 : index
    %53 = vector.load %arg8[%c1152, %c0_36] : memref<1536x512xbf16, #tpu.memory_space<vmem>>, vector<128x512xbf16>
    %cst_37 = arith.constant dense<0.000000e+00> : vector<8x512xf32>
    %54 = tpu.matmul %52, %53, %cst_37 {dimension_numbers = #tpu.dot_dimension_numbers<[1], [0], [0], [1], [0, 0, 1, 1], [], []>} : vector<8x128xbf16>, vector<128x512xbf16>, vector<8x512xf32> -> vector<8x512xf32>
    %55 = arith.addf %50, %54 : vector<8x512xf32>
    %c80 = arith.constant 80 : index
    %c0_38 = arith.constant 0 : index
    %56 = vector.load %arg18[%c80, %c0_38] : memref<96x128xf32, #tpu.memory_space<vmem>>, vector<8x128xf32>
    %57 = arith.truncf %56 : vector<8x128xf32> to vector<8x128xbf16>
    %c1280 = arith.constant 1280 : index
    %c0_39 = arith.constant 0 : index
    %58 = vector.load %arg8[%c1280, %c0_39] : memref<1536x512xbf16, #tpu.memory_space<vmem>>, vector<128x512xbf16>
    %cst_40 = arith.constant dense<0.000000e+00> : vector<8x512xf32>
    %59 = tpu.matmul %57, %58, %cst_40 {dimension_numbers = #tpu.dot_dimension_numbers<[1], [0], [0], [1], [0, 0, 1, 1], [], []>} : vector<8x128xbf16>, vector<128x512xbf16>, vector<8x512xf32> -> vector<8x512xf32>
    %60 = arith.addf %55, %59 : vector<8x512xf32>
    %c88 = arith.constant 88 : index
    %c0_41 = arith.constant 0 : index
    %61 = vector.load %arg18[%c88, %c0_41] : memref<96x128xf32, #tpu.memory_space<vmem>>, vector<8x128xf32>
    %62 = arith.truncf %61 : vector<8x128xf32> to vector<8x128xbf16>
    %c1408 = arith.constant 1408 : index
    %c0_42 = arith.constant 0 : index
    %63 = vector.load %arg8[%c1408, %c0_42] : memref<1536x512xbf16, #tpu.memory_space<vmem>>, vector<128x512xbf16>
    %cst_43 = arith.constant dense<0.000000e+00> : vector<8x512xf32>
    %64 = tpu.matmul %62, %63, %cst_43 {dimension_numbers = #tpu.dot_dimension_numbers<[1], [0], [0], [1], [0, 0, 1, 1], [], []>} : vector<8x128xbf16>, vector<128x512xbf16>, vector<8x512xf32> -> vector<8x512xf32>
    %65 = arith.addf %60, %64 : vector<8x512xf32>
    %c0_44 = arith.constant 0 : index
    %c0_45 = arith.constant 0 : index
    %66 = vector.load %arg9[%c0_44, %c0_45] : memref<1x512xf32, #tpu.memory_space<vmem>>, vector<1x512xf32>
    %67 = vector.broadcast %66 : vector<1x512xf32> to vector<8x512xf32>
    %68 = arith.addf %65, %67 : vector<8x512xf32>
    %cst_46 = arith.constant 0.000000e+00 : f32
    %69 = vector.broadcast %cst_46 : f32 to vector<8x512xf32>
    %70 = arith.maximumf %68, %69 : vector<8x512xf32>
    %71 = arith.truncf %70 : vector<8x512xf32> to vector<8x512xbf16>
    %c0_47 = arith.constant 0 : index
    %c0_48 = arith.constant 0 : index
    %72 = vector.load %arg10[%c0_47, %c0_48] : memref<512x1xbf16, #tpu.memory_space<vmem>>, vector<512x1xbf16>
    %cst_49 = arith.constant dense<0.000000e+00> : vector<8x1xf32>
    %73 = tpu.matmul %71, %72, %cst_49 {dimension_numbers = #tpu.dot_dimension_numbers<[1], [0], [0], [1], [0, 0, 1, 1], [], []>} : vector<8x512xbf16>, vector<512x1xbf16>, vector<8x1xf32> -> vector<8x1xf32>
    %c0_50 = arith.constant 0 : index
    %c0_51 = arith.constant 0 : index
    %74 = vector.load %arg11[%c0_50, %c0_51] : memref<1x1xf32, #tpu.memory_space<vmem>>, vector<1x1xf32>
    %75 = vector.broadcast %74 : vector<1x1xf32> to vector<8x1xf32>
    %76 = arith.addf %73, %75 : vector<8x1xf32>
    %cst_52 = arith.constant 0.000000e+00 : f32
    %77 = vector.broadcast %cst_52 : f32 to vector<8x1xf32>
    %78 = arith.subf %77, %76 : vector<8x1xf32>
    %79 = math.exp %78 : vector<8x1xf32>
    %cst_53 = arith.constant 1.000000e+00 : f32
    %80 = vector.broadcast %cst_53 : f32 to vector<8x1xf32>
    %81 = arith.addf %80, %79 : vector<8x1xf32>
    %cst_54 = arith.constant 1.000000e+00 : f32
    %82 = vector.broadcast %cst_54 : f32 to vector<8x1xf32>
    %83 = arith.divf %82, %81 : vector<8x1xf32>
    %c0_55 = arith.constant 0 : index
    %c0_56 = arith.constant 0 : index
    %84 = vector.load %arg12[%c0_55, %c0_56] : memref<8x1xf32, #tpu.memory_space<vmem>>, vector<8x1xf32>
    tpu.vector_store %arg12[%c0_55, %c0_56], %83 {strides = array<i32>} : memref<8x1xf32, #tpu.memory_space<vmem>>, vector<8x1xf32>,
    return
  }
  func.func @transform_0(%arg0: i32) -> (i32, i32, i32) {
    %c0_i32 = arith.constant 0 : i32
    %c0_i32_0 = arith.constant 0 : i32
    %c0_i32_1 = arith.constant 0 : i32
    return %arg0, %c0_i32, %c0_i32_0 : i32, i32, i32
  }
  func.func @transform_1(%arg0: i32) -> (i32, i32) {
    %c0_i32 = arith.constant 0 : i32
    %c0_i32_0 = arith.constant 0 : i32
    %c0_i32_1 = arith.constant 0 : i32
    return %c0_i32, %c0_i32_0 : i32, i32
  }
  func.func @transform_2(%arg0: i32) -> (i32, i32) {
    %c0_i32 = arith.constant 0 : i32
    %c0_i32_0 = arith.constant 0 : i32
    %c0_i32_1 = arith.constant 0 : i32
    return %c0_i32, %c0_i32_0 : i32, i32
  }
  func.func @transform_3(%arg0: i32) -> (i32, i32, i32) {
    %c0_i32 = arith.constant 0 : i32
    %c0_i32_0 = arith.constant 0 : i32
    %c0_i32_1 = arith.constant 0 : i32
    %c0_i32_2 = arith.constant 0 : i32
    return %c0_i32, %c0_i32_0, %c0_i32_1 : i32, i32, i32
  }
  func.func @transform_4(%arg0: i32) -> (i32, i32) {
    %c0_i32 = arith.constant 0 : i32
    %c0_i32_0 = arith.constant 0 : i32
    %c0_i32_1 = arith.constant 0 : i32
    return %c0_i32, %c0_i32_0 : i32, i32
  }
  func.func @transform_5(%arg0: i32) -> (i32, i32, i32) {
    %c0_i32 = arith.constant 0 : i32
    %c0_i32_0 = arith.constant 0 : i32
    %c0_i32_1 = arith.constant 0 : i32
    %c0_i32_2 = arith.constant 0 : i32
    return %c0_i32, %c0_i32_0, %c0_i32_1 : i32, i32, i32
  }
  func.func @transform_6(%arg0: i32) -> (i32, i32) {
    %c0_i32 = arith.constant 0 : i32
    %c0_i32_0 = arith.constant 0 : i32
    %c0_i32_1 = arith.constant 0 : i32
    return %c0_i32, %c0_i32_0 : i32, i32
  }
  func.func @transform_7(%arg0: i32) -> (i32, i32) {
    %c0_i32 = arith.constant 0 : i32
    %c0_i32_0 = arith.constant 0 : i32
    %c0_i32_1 = arith.constant 0 : i32
    return %c0_i32, %c0_i32_0 : i32, i32
  }
  func.func @transform_8(%arg0: i32) -> (i32, i32) {
    %c0_i32 = arith.constant 0 : i32
    %c0_i32_0 = arith.constant 0 : i32
    %c0_i32_1 = arith.constant 0 : i32
    return %c0_i32, %c0_i32_0 : i32, i32
  }
  func.func @transform_9(%arg0: i32) -> (i32, i32) {
    %c0_i32 = arith.constant 0 : i32
    %c0_i32_0 = arith.constant 0 : i32
    %c0_i32_1 = arith.constant 0 : i32
    return %c0_i32, %c0_i32_0 : i32, i32
  }
  func.func @transform_10(%arg0: i32) -> (i32, i32) {
    %c0_i32 = arith.constant 0 : i32
    %c0_i32_0 = arith.constant 0 : i32
    %c0_i32_1 = arith.constant 0 : i32
    return %c0_i32, %c0_i32_0 : i32, i32
  }
  func.func @transform_11(%arg0: i32) -> (i32, i32) {
    %c0_i32 = arith.constant 0 : i32
    %c0_i32_0 = arith.constant 0 : i32
    return %arg0, %c0_i32 : i32, i32
  }
}

</mosaic_0001>

<bundles_post_ra>
// kernel: cnn_forward.1
= control target key start
LH: loop header
LB: loop body
LE: loop exit
PB: predicated region body
PF: predicated region fallthrough
CT: control target
= control target key end

     0   :  { %s13058_s19 = smov 0   ;;  %s16174_s0 = inlined_call_operand.vmem [shape: bf16[16,768,9], index: 0, kind: input, shape index: {}]   ;;  %s16175_s1 = inlined_call_operand.vmem [shape: bf16[9,32], index: 1, kind: input, shape index: {}]   ;;  %s16176_s2 = inlined_call_operand.vmem [shape: f32[1,32], index: 2, kind: input, shape index: {}]   ;;  %s16177_s3 = inlined_call_operand.vmem [shape: bf16[9,32,64], index: 3, kind: input, shape index: {}]   ;;  %s16178_s4 = inlined_call_operand.vmem [shape: f32[1,64], index: 4, kind: input, shape index: {}]   ;;  %s16179_s5 = inlined_call_operand.vmem [shape: bf16[9,64,128], index: 5, kind: input, shape index: {}]   ;;  %s16180_s6 = inlined_call_operand.vmem [shape: f32[1,128], index: 6, kind: input, shape index: {}]   ;;  %s16181_s7 = inlined_call_operand.vmem [shape: bf16[1536,512], index: 7, kind: input, shape index: {}]   ;;  %s16182_s8 = inlined_call_operand.vmem [shape: f32[1,512], index: 8, kind: input, shape index: {}]   ;;  %s16183_s9 = inlined_call_operand.vmem [shape: bf16[512,1], index: 9, kind: input, shape index: {}]   ;;  %s16184_s10 = inlined_call_operand.<no memory space> [shape: f32[1,1], index: 10, kind: input, shape index: {}]   ;;  %s16185_s11 = inlined_call_operand.vmem [shape: f32[16,1], index: 11, kind: output, shape index: {}]  }
   0x1   :  { %v16_v0 = vstv %s16184_s10 }
   0x2   :  { %17 = vst [vmem:[#allocation8] sm:$0x1] %v16_v0 }
   0x3 LB: > { %s13064_s20 = sadd.s32 4294967295, %s12987_s19   ;;  %p10233_p0 = scmp.ge.s32.totalorder %s12987_s19, 1  ;;  %s12987_s19 = sphi %s13058_s19, %s23_s19  }
   0x4   : > { %p341_p1 = scmp.lt.s32.totalorder %s12987_s19, 3 }
   0x6   : > { %p342_p2 = pnand %p10233_p0, %p341_p1 }
   0x7   : > { %s10234_s10 = sshll.u32 (!%p342_p2), %s13064_s20, 3  ;;  %p388_p3 = scmp.lt.s32.totalorder (!%p342_p2), %s13064_s20, 1  ;;  %vm393_vm0 = vcmask (!%p342_p2), 261120   ;;  %vm16186_vm1 = vcmask (!%p342_p2), 519168   ;;  %v16196_v1 = vmov (!%p342_p2), 0  }
   0x8   : > { %345 = sbr.rel (%p342_p2) target bundleno = 2316 (0x90c), region = 64  ;;  %p13072_p4 = scmp.lt.s32.totalorder (!%p342_p2), %s10234_s10, 15  ;;  %394 = vst.msk [vmem:[#allocation3] sm:$0xff] (!%p342_p2), %vm393_vm0, %v16196_v1  ;;  %395 = vst.msk [vmem:[#allocation3 + $0x8] sm:$0xff] (!%p342_p2), %vm393_vm0, %v16196_v1 }
   0x9   : > { %396 = vst.msk [vmem:[#allocation3 + $0x10] sm:$0xff] (!%p342_p2), %vm393_vm0, %v16196_v1  ;;  %397 = vst.msk [vmem:[#allocation3 + $0x18] sm:$0xff] (!%p342_p2), %vm393_vm0, %v16196_v1  ;;  %s13147_s12 = smov (!%p342_p2), 0  }
   0xa   : > { %398 = vst.msk [vmem:[#allocation3 + $0x20] sm:$0xff] (!%p342_p2), %vm393_vm0, %v16196_v1  ;;  %399 = vst.msk [vmem:[#allocation3 + $0x28] sm:$0xff] (!%p342_p2), %vm393_vm0, %v16196_v1 }
   0xb   : > { %400 = vst.msk [vmem:[#allocation3 + $0x30] sm:$0xff] (!%p342_p2), %vm393_vm0, %v16196_v1  ;;  %401 = vst.msk [vmem:[#allocation3 + $0x38] sm:$0xff] (!%p342_p2), %vm393_vm0, %v16196_v1 }
   0xc   : > { %402 = vst.msk [vmem:[#allocation3 + $0x40] sm:$0xff] (!%p342_p2), %vm393_vm0, %v16196_v1  ;;  %403 = vst.msk [vmem:[#allocation3 + $0x48] sm:$0xff] (!%p342_p2), %vm393_vm0, %v16196_v1 }
   0xd   : > { %404 = vst.msk [vmem:[#allocation3 + $0x50] sm:$0xff] (!%p342_p2), %vm393_vm0, %v16196_v1  ;;  %405 = vst.msk [vmem:[#allocation3 + $0x58] sm:$0xff] (!%p342_p2), %vm393_vm0, %v16196_v1 }
   0xe   : > { %406 = vst.msk [vmem:[#allocation3 + $0x60] sm:$0xff] (!%p342_p2), %vm393_vm0, %v16196_v1  ;;  %407 = vst.msk [vmem:[#allocation3 + $0x68] sm:$0xff] (!%p342_p2), %vm393_vm0, %v16196_v1 }
   0xf   : > { %408 = vst.msk [vmem:[#allocation3 + $0x70] sm:$0xff] %vm393_vm0, %v16196_v1  ;;  %409 = vst.msk [vmem:[#allocation3 + $0x78] sm:$0xff] %vm393_vm0, %v16196_v1  ;;  %s389_s22 = scalar_select %p388_p3, %s13064_s20, 1 }
  0x10   : > { %411 = vst.msk [vmem:[#allocation5] sm:$0xf] %vm16186_vm1, %v16196_v1  ;;  %412 = vst.msk [vmem:[#allocation5 + $0x4] sm:$0xf] %vm16186_vm1, %v16196_v1  ;;  %s16369_s10 = smov (!%p13072_p4, %s10234_s10), 15 }
  0x11   : > { %413 = vst.msk [vmem:[#allocation5 + $0x8] sm:$0xf] %vm16186_vm1, %v16196_v1  ;;  %414 = vst.msk [vmem:[#allocation5 + $0xc] sm:$0xf] %vm16186_vm1, %v16196_v1  ;;  %s10236_s23 = sshll.u32 %s389_s22, 3  ;;  %s12212_s24 = smul.u32 384, %s16369_s10 }
  0x12   : > { %415 = vst.msk [vmem:[#allocation5 + $0x10] sm:$0xf] %vm16186_vm1, %v16196_v1  ;;  %416 = vst.msk [vmem:[#allocation5 + $0x14] sm:$0xf] %vm16186_vm1, %v16196_v1  ;;  %s13140_s27 = scalar_lea.vmem %s16185_s11, %s10236_s23 }
  0x13   : > { %417 = vst.msk [vmem:[#allocation5 + $0x18] sm:$0xf] %vm16186_vm1, %v16196_v1  ;;  %418 = vst.msk [vmem:[#allocation5 + $0x1c] sm:$0xf] %vm16186_vm1, %v16196_v1  ;;  %s13145_s30 = scalar_lea.vmem %s16174_s0, %s12212_s24 }
  0x14   : > { %419 = vst.msk [vmem:[#allocation5 + $0x20] sm:$0xf] %vm16186_vm1, %v16196_v1  ;;  %420 = vst.msk [vmem:[#allocation5 + $0x24] sm:$0xf] %vm16186_vm1, %v16196_v1 }
  0x15   : > { %421 = vst.msk [vmem:[#allocation5 + $0x28] sm:$0xf] %vm16186_vm1, %v16196_v1 }
  0x16 LB: >> { %v12231_v2 = vld [vmem:[%s16175_s1] sm:$0x1f]   ;;  %vm926_vm2 = vcmask 1043456   ;;  %vm16193_vm3 = vcmask 1044480   ;;  %v12994_v3 = vmov 65535   ;;  %s11106_s15 = smul.u32 384, %s12991_s12  ;;  %s12991_s12 = sphi %s13147_s12, %s427_s12  }
  0x17   : >> { %v928_v4 = vsel %vm926_vm2, 4294967295, %v12994_v3  ;;  %vm781_vm4 = vcmask 72704   ;;  %v12280_v45 = vld [vmem:[%s16177_s3 + $0x10] sm:$0xff]   ;;  %v12281_v47 = vld [vmem:[%s16177_s3 + $0x18] sm:$0xff]   ;;  %v13265_v57 = vld [vmem:[%s16176_s2] ss:$0 sm:$0xff] }
  0x18   : >> { %v929_v5 = vsel %vm16193_vm3, %v928_v4, 0  ;;  %s13158_s16 = scalar_lea.vmem %s13145_s30, %s11106_s15  ;;  %vm1579_vm5 = vcmask 254976   ;;  %vm16191_vm6 = vsmask.f32 1280  ;;  %vm1573_vm7 = vcmask 261121   ;;  %s14830_s21 = scalar_lea.vmem [#allocation7], %s12991_s12 }
  0x19   : >> { %v931_v6 = vand.u32 %v12231_v2, %v929_v5  ;;  %v12232_v7 = vld [vmem:[%s13158_s16] sm:$0xff]   ;;  %v12233_v8 = vld [vmem:[%s13158_s16 + $0x8] sm:$0xff]   ;;  %v12234_v9 = vld [vmem:[%s13158_s16 + $0x10] sm:$0xff]   ;;  %vm16192_vm8 = vsmask.f32 7942  ;;  %vm1617_vm11 = vcmask 261122  }
  0x1a   : >> { %11424 = vmatprep.mubr.msk.bf16.mxu0 %vm781_vm4, %v12232_v7  ;;  %v12235_v10 = vld [vmem:[%s13158_s16 + $0x18] sm:$0xff]   ;;  %v12236_v11 = vld [vmem:[%s13158_s16 + $0x20] sm:$0xff]   ;;  %v12237_v12 = vld [vmem:[%s13158_s16 + $0x28] sm:$0xff]   ;;  %vm16190_vm12 = vsmask.f32 7946  ;;  %vm1623_vm14 = vcmask 256000  }
  0x1b   : >> { %11422 = vmatprep.subr.bf16.mxu0 %v931_v6  ;;  %v12238_v13 = vld [vmem:[%s13158_s16 + $0x30] sm:$0xff]   ;;  %v12239_v14 = vld [vmem:[%s13158_s16 + $0x38] sm:$0xff]   ;;  %v12240_v15 = vld [vmem:[%s13158_s16 + $0x40] sm:$0xff]   ;;  %vm1844_vm13 = vsmask.f32 7424  ;;  %s427_s12 = sadd.s32 1, %s12991_s12  }
  0x1c   : >> { %11423 = vmatpush3.bf16.msra.mxu0 %v931_v6  ;;  %v12241_v16 = vld [vmem:[%s13158_s16 + $0x48] sm:$0xff]   ;;  %v12242_v17 = vld [vmem:[%s13158_s16 + $0x50] sm:$0xff]   ;;  %v12243_v18 = vld [vmem:[%s13158_s16 + $0x58] sm:$0xff]   ;;  %vm16189_vm15 = vsmask.f32 2304  ;;  %p424_p5 = scmp.ge.s32.totalorder %s427_s12, 8  }
  0x1d   : >> { %v12244_v19 = vld [vmem:[%s13158_s16 + $0x60] sm:$0xff]   ;;  %v12245_v20 = vld [vmem:[%s13158_s16 + $0x68] sm:$0xff]   ;;  %v12246_v21 = vld [vmem:[%s13158_s16 + $0x70] sm:$0xff]   ;;  %11520 = vmatprep.subr.bf16.mxu0 %v12280_v45  ;;  %vm16195_vm3 = vsmask.f32 5376 }
  0x1e   : >> { %v12247_v22 = vld [vmem:[%s13158_s16 + $0x78] sm:$0xff]   ;;  %v12248_v23 = vld [vmem:[%s13158_s16 + $0x80] sm:$0xff]   ;;  %v12249_v24 = vld [vmem:[%s13158_s16 + $0x88] sm:$0xff]  }
  0x1f   : >> { %11425 = vmatmul.mubr.msk.bf16.vlgmr.msra.gmra.mrb[0].mxu0 %vm781_vm4, %v12233_v8  ;;  %v12250_v25 = vld [vmem:[%s13158_s16 + $0x90] sm:$0xff]   ;;  %v12251_v26 = vld [vmem:[%s13158_s16 + $0x98] sm:$0xff]   ;;  %v12252_v27 = vld [vmem:[%s13158_s16 + $0xa0] sm:$0xff]  }
  0x20   : >> { %11428 = vmatprep.mubr.msk.bf16.mxu0 %vm781_vm4, %v12234_v9  ;;  %v12253_v28 = vld [vmem:[%s13158_s16 + $0xa8] sm:$0xff]   ;;  %v12254_v29 = vld [vmem:[%s13158_s16 + $0xb0] sm:$0xff]   ;;  %v12255_v30 = vld [vmem:[%s13158_s16 + $0xb8] sm:$0xff]   ;;  %11521 = vmatpush3.bf16.msra.mxu0 %v12280_v45 }
  0x21   : >> { %v12256_v31 = vld [vmem:[%s13158_s16 + $0xc0] sm:$0xff]   ;;  %v12257_v32 = vld [vmem:[%s13158_s16 + $0xc8] sm:$0xff]   ;;  %v12258_v33 = vld [vmem:[%s13158_s16 + $0xd0] sm:$0xff]   ;;  %11522 = vmatprep.subr.bf16.mxu0 %v12281_v47 }
  0x22   : >> { %v12259_v34 = vld [vmem:[%s13158_s16 + $0xd8] sm:$0xff]   ;;  %v12260_v35 = vld [vmem:[%s13158_s16 + $0xe0] sm:$0xff]   ;;  %v12261_v36 = vld [vmem:[%s13158_s16 + $0xe8] sm:$0xff]  }
  0x23   : >> { %v12262_v37 = vld [vmem:[%s13158_s16 + $0xf0] sm:$0xff]   ;;  %v12263_v38 = vld [vmem:[%s13158_s16 + $0xf8] sm:$0xff]   ;;  %v12264_v39 = vld [vmem:[%s13158_s16 + $0x100] sm:$0xff]  }
  0x24   : >> { %v12265_v40 = vld [vmem:[%s13158_s16 + $0x108] sm:$0xff]   ;;  %v12266_v41 = vld [vmem:[%s13158_s16 + $0x110] sm:$0xff]   ;;  %v12267_v42 = vld [vmem:[%s13158_s16 + $0x118] sm:$0xff]   ;;  %11523 = vmatpush3.bf16.msra.mxu0 %v12281_v47 }
  0x25   : >> { %v12268_v43 = vld [vmem:[%s13158_s16 + $0x120] sm:$0xff]   ;;  %v12269_v44 = vld [vmem:[%s13158_s16 + $0x128] sm:$0xff]   ;;  %v12270_v46 = vld [vmem:[%s13158_s16 + $0x130] sm:$0xff]  }
  0x26   : >> { %v12271_v48 = vld [vmem:[%s13158_s16 + $0x138] sm:$0xff]   ;;  %v12272_v49 = vld [vmem:[%s13158_s16 + $0x140] sm:$0xff]   ;;  %v12273_v50 = vld [vmem:[%s13158_s16 + $0x148] sm:$0xff]  }
  0x27   : >> { %11429 = vmatmul.mubr.msk.bf16.gmra.mrb[4].mxu0 %vm781_vm4, %v12235_v10  ;;  %v12274_v51 = vld [vmem:[%s13158_s16 + $0x150] sm:$0xff]   ;;  %v12275_v52 = vld [vmem:[%s13158_s16 + $0x158] sm:$0xff]   ;;  %v12276_v53 = vld [vmem:[%s13158_s16 + $0x160] sm:$0xff]  }
  0x28   : >> { %11432 = vmatprep.mubr.msk.bf16.mxu0 %vm781_vm4, %v12236_v11  ;;  %v12277_v54 = vld [vmem:[%s13158_s16 + $0x168] sm:$0xff]   ;;  %v12278_v55 = vld [vmem:[%s13158_s16 + $0x170] sm:$0xff]   ;;  %v12279_v56 = vld [vmem:[%s13158_s16 + $0x178] sm:$0xff]  }
  0x29   : >> { %v13274_v5 = vld [vmem:[%s16177_s3] sm:$0xff]   ;;  %v13286_v9 = vld [vmem:[%s16177_s3 + $0x8] sm:$0xff]   ;;  %vm13314_vm9 = vmand %vm1579_vm5, %vm16191_vm6  ;;  %vm1661_vm5 = vcmask 261123  }
  0x2a   : >> { %11952 = vmatprep.subr.bf16.mxu1 %v13274_v5  ;;  %11552 = vmatprep.subr.bf16.mxu0 %v13274_v5  ;;  %vm13321_vm10 = vmand %vm1573_vm7, %vm16192_vm8  ;;  %vm16188_vm7 = vsmask.f32 7950 }
  0x2b   : >> { %11954 = vmatpush3.bf16.msra.mxu1 %v13274_v5  ;;  %vm13351_vm2 = vmand %vm1617_vm11, %vm16190_vm12  ;;  %vm1667_vm11 = vcmask 257024  }
  0x2c   : >> { %11953 = vmatprep.subr.bf16.mxu1 %v13286_v9  ;;  %vm13387_vm1 = vmand %vm1661_vm5, %vm16188_vm7  ;;  %vm1711_vm7 = vcmask 258048  }
  0x2f   : >> { %11433 = vmatmul.mubr.msk.bf16.gmra.mrb[8].mxu0 %vm781_vm4, %v12237_v12  ;;  %11955 = vmatpush3.bf16.msra.mxu1 %v13286_v9 }
  0x30   : >> { %11436 = vmatprep.mubr.msk.bf16.mxu0 %vm781_vm4, %v12238_v13 }
  0x37   : >> { %11437 = vmatmul.mubr.msk.bf16.gmra.mrb[12].mxu0 %vm781_vm4, %v12239_v14 }
  0x38   : >> { %11440 = vmatprep.mubr.msk.bf16.mxu0 %vm781_vm4, %v12240_v15 }
  0x3f   : >> { %11441 = vmatmul.mubr.msk.bf16.gmra.mrb[16].mxu0 %vm781_vm4, %v12241_v16 }
  0x40   : >> { %11444 = vmatprep.mubr.msk.bf16.mxu0 %vm781_vm4, %v12242_v17 }
  0x47   : >> { %11445 = vmatmul.mubr.msk.bf16.gmra.mrb[20].mxu0 %vm781_vm4, %v12243_v18 }
  0x48   : >> { %11448 = vmatprep.mubr.msk.bf16.mxu0 %vm781_vm4, %v12244_v19 }
  0x4f   : >> { %11449 = vmatmul.mubr.msk.bf16.gmra.mrb[24].mxu0 %vm781_vm4, %v12245_v20 }
  0x50   : >> { %11452 = vmatprep.mubr.msk.bf16.mxu0 %vm781_vm4, %v12246_v21 }
  0x57   : >> { %11453 = vmatmul.mubr.msk.bf16.gmra.mrb[28].mxu0 %vm781_vm4, %v12247_v22 }
  0x58   : >> { %11456 = vmatprep.mubr.msk.bf16.mxu0 %vm781_vm4, %v12248_v23 }
  0x5f   : >> { %11457 = vmatmul.mubr.msk.bf16.gmra.mrb[32].mxu0 %vm781_vm4, %v12249_v24 }
  0x60   : >> { %11460 = vmatprep.mubr.msk.bf16.mxu0 %vm781_vm4, %v12250_v25 }
  0x67   : >> { %11461 = vmatmul.mubr.msk.bf16.gmra.mrb[36].mxu0 %vm781_vm4, %v12251_v26 }
  0x68   : >> { %11464 = vmatprep.mubr.msk.bf16.mxu0 %vm781_vm4, %v12252_v27 }
  0x6f   : >> { %11465 = vmatmul.mubr.msk.bf16.gmra.mrb[40].mxu0 %vm781_vm4, %v12253_v28 }
  0x70   : >> { %11468 = vmatprep.mubr.msk.bf16.mxu0 %vm781_vm4, %v12254_v29 }
  0x77   : >> { %11469 = vmatmul.mubr.msk.bf16.gmra.mrb[44].mxu0 %vm781_vm4, %v12255_v30 }
  0x78   : >> { %11472 = vmatprep.mubr.msk.bf16.mxu0 %vm781_vm4, %v12256_v31 }
  0x7f   : >> { %11473 = vmatmul.mubr.msk.bf16.gmra.mrb[48].mxu0 %vm781_vm4, %v12257_v32 }
  0x80   : >> { %11476 = vmatprep.mubr.msk.bf16.mxu0 %vm781_vm4, %v12258_v33 }
  0x87   : >> { %11477 = vmatmul.mubr.msk.bf16.gmra.mrb[52].mxu0 %vm781_vm4, %v12259_v34 }
  0x88   : >> { %11480 = vmatprep.mubr.msk.bf16.mxu0 %vm781_vm4, %v12260_v35 }
  0x8f   : >> { %11481 = vmatmul.mubr.msk.bf16.gmra.mrb[56].mxu0 %vm781_vm4, %v12261_v36 }
  0x90   : >> { %11484 = vmatprep.mubr.msk.bf16.mxu0 %vm781_vm4, %v12262_v37 }
  0x97   : >> { %11485 = vmatmul.mubr.msk.bf16.gmra.mrb[60].mxu0 %vm781_vm4, %v12263_v38 }
  0x98   : >> { %11488 = vmatprep.mubr.msk.bf16.mxu0 %vm781_vm4, %v12264_v39 }
  0x9f   : >> { %11489 = vmatmul.mubr.msk.bf16.gmra.mrb[64].mxu0 %vm781_vm4, %v12265_v40 }
  0xa0   : >> { %11492 = vmatprep.mubr.msk.bf16.mxu0 %vm781_vm4, %v12266_v41 }
  0xa7   : >> { %11493 = vmatmul.mubr.msk.bf16.gmra.mrb[68].mxu0 %vm781_vm4, %v12267_v42 }
  0xa8   : >> { %11496 = vmatprep.mubr.msk.bf16.mxu0 %vm781_vm4, %v12268_v43 }
  0xaf   : >> { %11497 = vmatmul.mubr.msk.bf16.gmra.mrb[72].mxu0 %vm781_vm4, %v12269_v44 }
  0xb0   : >> { %11500 = vmatprep.mubr.msk.bf16.mxu0 %vm781_vm4, %v12270_v46 }
  0xb7   : >> { %11501 = vmatmul.mubr.msk.bf16.gmra.mrb[76].mxu0 %vm781_vm4, %v12271_v48 }
  0xb8   : >> { %11504 = vmatprep.mubr.msk.bf16.mxu0 %vm781_vm4, %v12272_v49 }
  0xbf   : >> { %11505 = vmatmul.mubr.msk.bf16.gmra.mrb[80].mxu0 %vm781_vm4, %v12273_v50 }
  0xc0   : >> { %11508 = vmatprep.mubr.msk.bf16.mxu0 %vm781_vm4, %v12274_v51 }
  0xc7   : >> { %11509 = vmatmul.mubr.msk.bf16.gmra.mrb[84].mxu0 %vm781_vm4, %v12275_v52 }
  0xc8   : >> { %11512 = vmatprep.mubr.msk.bf16.mxu0 %vm781_vm4, %v12276_v53 }
  0xcf   : >> { %11513 = vmatmul.mubr.msk.bf16.gmra.mrb[88].mxu0 %vm781_vm4, %v12277_v54 }
  0xd0   : >> { %11516 = vmatprep.mubr.msk.bf16.mxu0 %vm781_vm4, %v12278_v55 }
  0xd7   : >> { %11517 = vmatmul.mubr.msk.bf16.gmra.mrb[92].mxu0 %vm781_vm4, %v12279_v56  ;;  %vm13360_vm4 = vmand %vm1623_vm14, %vm16189_vm15  ;;  %vm16187_vm14 = vsmask.f32 3328  ;;  %vm1712_vm15 = vsmask.f32 4352 }
  0xd8   : >> { %vm13403_vm5 = vmand %vm1667_vm11, %vm16187_vm14  ;;  %vm1705_vm11 = vcmask 261124   ;;  %vm1706_vm14 = vsmask.f32 7954 }
  0xd9   : >> { %vm13447_vm12 = vmand %vm1705_vm11, %vm1706_vm14  ;;  %vm1750_vm14 = vsmask.f32 7958  ;;  %vm1755_vm11 = vcmask 259072  }
  0xda   : >> { %vm13456_vm6 = vmand %vm1711_vm7, %vm1712_vm15  ;;  %vm16194_vm15 = vcmask 1045504   ;;  %vm1749_vm7 = vcmask 261125  }
  0xdb   : >> { %vm13502_vm8 = vmand %vm1749_vm7, %vm1750_vm14  ;;  %vm1793_vm7 = vcmask 261126   ;;  %vm1794_vm14 = vsmask.f32 7962 }
  0xf2   : >> { %v11426_v58 = vpop.f32.mrb[0].mxu0 }
  0xf3   : >> { %v976_v59 = vadd.f32 %v11426_v58, %v13265_v57  ;;  %v967_v60 = vpop.f32.mrb[1].mxu0 }
  0xf4   : >> { %v968_v61 = vadd.f32 %v13265_v57, %v967_v60  ;;  %v11427_v62 = vpop.f32.mrb[2].mxu0 }
  0xf5   : >> { %v1352_v63 = vmax.f32 %v976_v59, 0.0  ;;  %v979_v0 = vadd.f32 %v11427_v62, %v13265_v57  ;;  %v970_v2 = vpop.f32.mrb[3].mxu0 }
  0xf6   : >> { %v1350_v3 = vmax.f32 %v968_v61, 0.0  ;;  %v971_v4 = vadd.f32 %v13265_v57, %v970_v2 }
  0xf7   : >> { %1448 = vst.msk [vmem:[#allocation2 + $0x10] sm:$0xff] %vm393_vm0, %v1352_v63  ;;  %v1353_v6 = vmax.f32 %v979_v0, 0.0 }
  0xf8   : >> { %1446 = vst.msk [vmem:[#allocation2] sm:$0xff] %vm393_vm0, %v1350_v3  ;;  %v1351_v7 = vmax.f32 %v971_v4, 0.0  ;;  %v2044_v4 = vld [vmem:[#allocation3] sm:$0xff] }
  0xf9   : >> { %1449 = vst.msk [vmem:[#allocation2 + $0x18] sm:$0xff] %vm393_vm0, %v1353_v6  ;;  %v1582_v6 = vld [vmem:[#allocation3 + $0x10] sm:$0x3] }
  0xfa   : >> { %1447 = vst.msk [vmem:[#allocation2 + $0x8] sm:$0xff] %vm393_vm0, %v1351_v7  ;;  %v11430_v8 = vpop.f32.mrb[4].mxu0 }
  0xfb   : >> { %v992_v10 = vadd.f32 %v11430_v8, %v13265_v57  ;;  %v983_v11 = vpop.f32.mrb[5].mxu0 }
  0xfc   : >> { %v984_v12 = vadd.f32 %v13265_v57, %v983_v11  ;;  %v11431_v13 = vpop.f32.mrb[6].mxu0  ;;  %v1576_v11 = vld [vmem:[#allocation3 + $0x8] sm:$0xfe] }
  0xfd   : >> { %v1356_v14 = vmax.f32 %v992_v10, 0.0  ;;  %v995_v15 = vadd.f32 %v11431_v13, %v13265_v57  ;;  %v986_v16 = vpop.f32.mrb[7].mxu0 }
  0xfe   : >> { %v1354_v17 = vmax.f32 %v984_v12, 0.0  ;;  %v987_v18 = vadd.f32 %v13265_v57, %v986_v16 }
  0xff   : >> { %1452 = vst.msk [vmem:[#allocation2 + $0x30] sm:$0xff] %vm393_vm0, %v1356_v14  ;;  %v1357_v19 = vmax.f32 %v995_v15, 0.0 }
 0x100   : >> { %1450 = vst.msk [vmem:[#allocation2 + $0x20] sm:$0xff] %vm393_vm0, %v1354_v17  ;;  %v1355_v20 = vmax.f32 %v987_v18, 0.0  ;;  %v1544_v29 = vld [vmem:[#allocation2 + $0x10] ss:$2 sm:$0xff]  ;;  %v1548_v30 = vld [vmem:[#allocation2 + $0x11] ss:$2 sm:$0xff] }
 0x101   : >> { %1453 = vst.msk [vmem:[#allocation2 + $0x38] sm:$0xff] %vm393_vm0, %v1357_v19  ;;  %v1542_v33 = vld [vmem:[#allocation2] ss:$2 sm:$0xff]  ;;  %v1546_v34 = vld [vmem:[#allocation2 + $0x1] ss:$2 sm:$0xff]  ;;  %v1558_v39 = vmax.f32 %v1544_v29, %v1548_v30  ;;  %v2071_v18 = vshll.u32 %v2044_v4, 16 }
 0x102   : >> { %1451 = vst.msk [vmem:[#allocation2 + $0x28] sm:$0xff] %vm393_vm0, %v1355_v20  ;;  %v11434_v21 = vpop.f32.mrb[8].mxu0  ;;  %v1557_v43 = vmax.f32 %v1542_v33, %v1546_v34  ;;  %v2069_v33 = vshrl.u32 %v2044_v4, 16 }
 0x103   : >> { %v1008_v22 = vadd.f32 %v11434_v21, %v13265_v57  ;;  %v999_v23 = vpop.f32.mrb[9].mxu0 }
 0x104   : >> { %v1000_v24 = vadd.f32 %v13265_v57, %v999_v23  ;;  %v11435_v25 = vpop.f32.mrb[10].mxu0 }
 0x105   : >> { %v1360_v26 = vmax.f32 %v1008_v22, 0.0  ;;  %v1011_v27 = vadd.f32 %v11435_v25, %v13265_v57  ;;  %v1002_v28 = vpop.f32.mrb[11].mxu0 }
 0x106   : >> { %v1358_v31 = vmax.f32 %v1000_v24, 0.0  ;;  %v1003_v32 = vadd.f32 %v13265_v57, %v1002_v28 }
 0x107   : >> { %1456 = vst.msk [vmem:[#allocation2 + $0x50] sm:$0xff] %vm393_vm0, %v1360_v26  ;;  %v1361_v35 = vmax.f32 %v1011_v27, 0.0 }
 0x108   : >> { %v1552_v36 = vld [vmem:[#allocation2 + $0x30] ss:$2 sm:$0xff]  ;;  %v1556_v37 = vld [vmem:[#allocation2 + $0x31] ss:$2 sm:$0xff]  ;;  %1454 = vst.msk [vmem:[#allocation2 + $0x40] sm:$0xff] %vm393_vm0, %v1358_v31  ;;  %v1359_v38 = vmax.f32 %v1003_v32, 0.0 }
 0x109   : >> { %v1560_v40 = vmax.f32 %v1552_v36, %v1556_v37  ;;  %v1550_v41 = vld [vmem:[#allocation2 + $0x20] ss:$2 sm:$0xff]  ;;  %v1554_v42 = vld [vmem:[#allocation2 + $0x21] ss:$2 sm:$0xff]  ;;  %1457 = vst.msk [vmem:[#allocation2 + $0x58] sm:$0xff] %vm393_vm0, %v1361_v35  ;;  %v2073_v37 = vrot.slane %v2071_v18, 1 }
 0x10a   : >> { %v1559_v44 = vmax.f32 %v1550_v41, %v1554_v42  ;;  %1455 = vst.msk [vmem:[#allocation2 + $0x48] sm:$0xff] %vm393_vm0, %v1359_v38  ;;  %v11438_v45 = vpop.f32.mrb[12].mxu0 }
 0x10b   : >> { %v1562_v46 = vmax.f32 %v1558_v39, %v1560_v40  ;;  %v1024_v47 = vadd.f32 %v11438_v45, %v13265_v57  ;;  %v1015_v48 = vpop.f32.mrb[13].mxu0 }
 0x10c   : >> { %v1561_v49 = vmax.f32 %v1557_v43, %v1559_v44  ;;  %v1016_v50 = vadd.f32 %v13265_v57, %v1015_v48  ;;  %v11439_v51 = vpop.f32.mrb[14].mxu0 }
 0x10d   : >> { %v1364_v52 = vmax.f32 %v1024_v47, 0.0  ;;  %v1027_v53 = vadd.f32 %v11439_v51, %v13265_v57  ;;  %v1018_v54 = vpop.f32.mrb[15].mxu0 }
 0x10e   : >> { %v1563_v55 = vpack.c.bf16 %v1562_v46, %v1561_v49  ;;  %v1362_v56 = vmax.f32 %v1016_v50, 0.0  ;;  %v1019_v58 = vadd.f32 %v13265_v57, %v1018_v54  ;;  %v2074_v54 = vor.u32 %v2073_v37, %v2069_v33 }
 0x10f   : >> { %1460 = vst.msk [vmem:[#allocation2 + $0x70] sm:$0xff] %vm393_vm0, %v1364_v52  ;;  %v1365_v59 = vmax.f32 %v1027_v53, 0.0 }
 0x110   : >> { %v1565_v60 = vshrl.u32 %v1563_v55, 16  ;;  %v1568_v61 = vshll.u32 %v1563_v55, 16  ;;  %1458 = vst.msk [vmem:[#allocation2 + $0x60] sm:$0xff] %vm393_vm0, %v1362_v56  ;;  %v1363_v62 = vmax.f32 %v1019_v58, 0.0  ;;  %v1588_v20 = vld [vmem:[#allocation2 + $0x50] ss:$2 sm:$0xff] }
 0x111   : >> { %1461 = vst.msk [vmem:[#allocation2 + $0x78] sm:$0xff] %vm393_vm0, %v1365_v59  ;;  %v1592_v21 = vld [vmem:[#allocation2 + $0x51] ss:$2 sm:$0xff]  ;;  %v1586_v25 = vld [vmem:[#allocation2 + $0x40] ss:$2 sm:$0xff] }
 0x112   : >> { %v1567_v63 = vrot.slane %v1565_v60, 6  ;;  %v1570_v0 = vrot.slane %v1568_v61, 7  ;;  %v11442_v3 = vpop.f32.mrb[16].mxu0  ;;  %1459 = vst.msk [vmem:[#allocation2 + $0x68] sm:$0xff] %vm393_vm0, %v1363_v62  ;;  %v1590_v26 = vld [vmem:[#allocation2 + $0x41] ss:$2 sm:$0xff]  ;;  %v1602_v31 = vmax.f32 %v1588_v20, %v1592_v21 }
 0x113   : >> { %v1040_v7 = vadd.f32 %v11442_v3, %v13265_v57  ;;  %v1031_v8 = vpop.f32.mrb[17].mxu0  ;;  %v1601_v38 = vmax.f32 %v1586_v25, %v1590_v26 }
 0x114   : >> { %v1571_v12 = vor.u32 %v1570_v0, %v1567_v63  ;;  %v1032_v13 = vadd.f32 %v13265_v57, %v1031_v8  ;;  %v11443_v14 = vpop.f32.mrb[18].mxu0 }
 0x115   : >> { %v1368_v15 = vmax.f32 %v1040_v7, 0.0  ;;  %v1043_v16 = vadd.f32 %v11443_v14, %v13265_v57  ;;  %v1034_v17 = vpop.f32.mrb[19].mxu0 }
 0x116   : >> { %v1583_v19 = vsel %vm13314_vm9, %v1571_v12, %v1582_v6  ;;  %v1366_v22 = vmax.f32 %v1032_v13, 0.0  ;;  %v1035_v23 = vadd.f32 %v13265_v57, %v1034_v17  ;;  %v1577_v24 = vsel %vm13321_vm10, %v1571_v12, %v1576_v11  ;;  %v1620_v6 = vld [vmem:[#allocation3 + $0x10] sm:$0xfc]  ;;  %v1626_v13 = vld [vmem:[#allocation3 + $0x18] sm:$0x7] }
 0x117   : >> { %1584 = vst [vmem:[#allocation3 + $0x10] sm:$0x3] %v1583_v19  ;;  %1464 = vst.msk [vmem:[#allocation2 + $0x90] sm:$0xff] %vm393_vm0, %v1368_v15  ;;  %v1369_v27 = vmax.f32 %v1043_v16, 0.0 }
 0x118   : >> { %1578 = vst [vmem:[#allocation3 + $0x8] sm:$0xfe] %v1577_v24  ;;  %v1596_v28 = vld [vmem:[#allocation2 + $0x70] ss:$2 sm:$0xff]  ;;  %v1600_v29 = vld [vmem:[#allocation2 + $0x71] ss:$2 sm:$0xff] }
 0x119   : >> { %1462 = vst.msk [vmem:[#allocation2 + $0x80] sm:$0xff] %vm393_vm0, %v1366_v22  ;;  %v1367_v30 = vmax.f32 %v1035_v23, 0.0  ;;  %v1604_v32 = vmax.f32 %v1596_v28, %v1600_v29  ;;  %1465 = vst.msk [vmem:[#allocation2 + $0x98] sm:$0xff] %vm393_vm0, %v1369_v27  ;;  %v1594_v34 = vld [vmem:[#allocation2 + $0x60] ss:$2 sm:$0xff] }
 0x11a   : >> { %v1598_v35 = vld [vmem:[#allocation2 + $0x61] ss:$2 sm:$0xff]  ;;  %v11446_v36 = vpop.f32.mrb[20].mxu0 }
 0x11b   : >> { %1463 = vst.msk [vmem:[#allocation2 + $0x88] sm:$0xff] %vm393_vm0, %v1367_v30  ;;  %v1606_v39 = vmax.f32 %v1602_v31, %v1604_v32  ;;  %v1603_v40 = vmax.f32 %v1594_v34, %v1598_v35  ;;  %v1056_v41 = vadd.f32 %v11446_v36, %v13265_v57  ;;  %v1047_v42 = vpop.f32.mrb[21].mxu0 }
 0x11c   : >> { %v1048_v43 = vadd.f32 %v13265_v57, %v1047_v42  ;;  %v11447_v44 = vpop.f32.mrb[22].mxu0 }
 0x11d   : >> { %v1605_v45 = vmax.f32 %v1601_v38, %v1603_v40  ;;  %v1372_v46 = vmax.f32 %v1056_v41, 0.0  ;;  %v1059_v47 = vadd.f32 %v11447_v44, %v13265_v57  ;;  %v1050_v48 = vpop.f32.mrb[23].mxu0 }
 0x11e   : >> { %v1370_v49 = vmax.f32 %v1048_v43, 0.0  ;;  %v1051_v50 = vadd.f32 %v13265_v57, %v1050_v48 }
 0x11f   : >> { %v13340_v51 = vld [vmem:[#allocation3 + $0x8] sm:$0xff]  ;;  %v1607_v52 = vpack.c.bf16 %v1606_v39, %v1605_v45  ;;  %1468 = vst.msk [vmem:[#allocation2 + $0xb0] sm:$0xff] %vm393_vm0, %v1372_v46  ;;  %v1373_v53 = vmax.f32 %v1059_v47, 0.0 }
 0x120   : >> { %v2076_v55 = vshll.u32 %v13340_v51, 16  ;;  %1466 = vst.msk [vmem:[#allocation2 + $0xa0] sm:$0xff] %vm393_vm0, %v1370_v49  ;;  %v1371_v56 = vmax.f32 %v1051_v50, 0.0  ;;  %v1632_v18 = vld [vmem:[#allocation2 + $0x90] ss:$2 sm:$0xff] }
 0x121   : >> { %v1609_v58 = vshrl.u32 %v1607_v52, 16  ;;  %v1612_v59 = vshll.u32 %v1607_v52, 16  ;;  %1469 = vst.msk [vmem:[#allocation2 + $0xb8] sm:$0xff] %vm393_vm0, %v1373_v53  ;;  %v1636_v19 = vld [vmem:[#allocation2 + $0x91] ss:$2 sm:$0xff] }
 0x122   : >> { %1467 = vst.msk [vmem:[#allocation2 + $0xa8] sm:$0xff] %vm393_vm0, %v1371_v56  ;;  %v11450_v60 = vpop.f32.mrb[24].mxu0  ;;  %v13347_v61 = vrot.slane %v2076_v55, 1  ;;  %v1630_v23 = vld [vmem:[#allocation2 + $0x80] ss:$2 sm:$0xff]  ;;  %v1646_v30 = vmax.f32 %v1632_v18, %v1636_v19 }
 0x123   : >> { %v1611_v62 = vrot.slane %v1609_v58, 5  ;;  %v1614_v63 = vrot.slane %v1612_v59, 6  ;;  %v1072_v3 = vadd.f32 %v11450_v60, %v13265_v57  ;;  %v1063_v4 = vpop.f32.mrb[25].mxu0  ;;  %v1634_v24 = vld [vmem:[#allocation2 + $0x81] ss:$2 sm:$0xff] }
 0x124   : >> { %v1064_v7 = vadd.f32 %v13265_v57, %v1063_v4  ;;  %v11451_v8 = vpop.f32.mrb[26].mxu0  ;;  %v2079_v11 = vsel %vm1844_vm13, %v2074_v54, %v13347_v61  ;;  %v1645_v34 = vmax.f32 %v1630_v23, %v1634_v24  ;;  %v2080_v54 = vshrl.u32 %v13340_v51, 16 }
 0x125   : >> { %v1615_v14 = vor.u32 %v1614_v63, %v1611_v62  ;;  %v1376_v15 = vmax.f32 %v1072_v3, 0.0  ;;  %v1075_v16 = vadd.f32 %v11451_v8, %v13265_v57  ;;  %11524 = vmatprep.mubr.msk.bf16.mxu0 %vm393_vm0, %v2079_v11  ;;  %v1066_v17 = vpop.f32.mrb[27].mxu0  ;;  %v13394_v63 = vld [vmem:[%s16177_s3 + $0x20] sm:$0xff]  }
 0x126   : >> { %v1374_v20 = vmax.f32 %v1064_v7, 0.0  ;;  %v1067_v21 = vadd.f32 %v13265_v57, %v1066_v17  ;;  %v2082_v51 = vor.u32 %v2080_v54, %v13347_v61  ;;  %v1664_v7 = vld [vmem:[#allocation3 + $0x18] sm:$0xf8]  ;;  %v1670_v11 = vld [vmem:[#allocation3 + $0x20] sm:$0xf]  ;;  %11584 = vmatprep.subr.bf16.mxu1 %v13394_v63 }
 0x127   : >> { %v1621_v22 = vsel %vm13351_vm2, %v1615_v14, %v1620_v6  ;;  %1472 = vst.msk [vmem:[#allocation2 + $0xd0] sm:$0xff] %vm393_vm0, %v1376_v15  ;;  %v1377_v25 = vmax.f32 %v1075_v16, 0.0  ;;  %v1627_v26 = vsel %vm13360_vm4, %v1615_v14, %v1626_v13 }
 0x128   : >> { %1622 = vst [vmem:[#allocation3 + $0x10] sm:$0xfc] %v1621_v22  ;;  %v1640_v27 = vld [vmem:[#allocation2 + $0xb0] ss:$2 sm:$0xff]  ;;  %v1644_v28 = vld [vmem:[#allocation2 + $0xb1] ss:$2 sm:$0xff] }
 0x129   : >> { %1470 = vst.msk [vmem:[#allocation2 + $0xc0] sm:$0xff] %vm393_vm0, %v1374_v20  ;;  %v1375_v29 = vmax.f32 %v1067_v21, 0.0  ;;  %1628 = vst [vmem:[#allocation3 + $0x18] sm:$0x7] %v1627_v26  ;;  %v1648_v31 = vmax.f32 %v1640_v27, %v1644_v28  ;;  %v1638_v32 = vld [vmem:[#allocation2 + $0xa0] ss:$2 sm:$0xff] }
 0x12a   : >> { %v1642_v33 = vld [vmem:[#allocation2 + $0xa1] ss:$2 sm:$0xff]  ;;  %1473 = vst.msk [vmem:[#allocation2 + $0xd8] sm:$0xff] %vm393_vm0, %v1377_v25  ;;  %v11454_v36 = vpop.f32.mrb[28].mxu0 }
 0x12b   : >> { %v1647_v35 = vmax.f32 %v1638_v32, %v1642_v33  ;;  %1471 = vst.msk [vmem:[#allocation2 + $0xc8] sm:$0xff] %vm393_vm0, %v1375_v29  ;;  %v1650_v37 = vmax.f32 %v1646_v30, %v1648_v31  ;;  %v1088_v38 = vadd.f32 %v11454_v36, %v13265_v57  ;;  %v1079_v39 = vpop.f32.mrb[29].mxu0 }
 0x12c   : >> { %v1080_v41 = vadd.f32 %v13265_v57, %v1079_v39  ;;  %v11455_v42 = vpop.f32.mrb[30].mxu0 }
 0x12d   : >> { %v1649_v40 = vmax.f32 %v1645_v34, %v1647_v35  ;;  %v1380_v43 = vmax.f32 %v1088_v38, 0.0  ;;  %v1091_v44 = vadd.f32 %v11455_v42, %v13265_v57  ;;  %v1082_v45 = vpop.f32.mrb[31].mxu0 }
 0x12e   : >> { %v1378_v47 = vmax.f32 %v1080_v41, 0.0  ;;  %v1083_v48 = vadd.f32 %v13265_v57, %v1082_v45 }
 0x12f   : >> { %v1651_v46 = vpack.c.bf16 %v1650_v37, %v1649_v40  ;;  %1476 = vst.msk [vmem:[#allocation2 + $0xf0] sm:$0xff] %vm393_vm0, %v1380_v43  ;;  %v1381_v49 = vmax.f32 %v1091_v44, 0.0  ;;  %v13380_v50 = vld [vmem:[#allocation3 + $0x10] sm:$0xff] }
 0x130   : >> { %1474 = vst.msk [vmem:[#allocation2 + $0xe0] sm:$0xff] %vm393_vm0, %v1378_v47  ;;  %v1379_v55 = vmax.f32 %v1083_v48, 0.0  ;;  %v2084_v56 = vshll.u32 %v13380_v50, 16  ;;  %v2088_v54 = vshrl.u32 %v13380_v50, 16 }
 0x131   : >> { %v1653_v52 = vshrl.u32 %v1651_v46, 16  ;;  %v1656_v53 = vshll.u32 %v1651_v46, 16  ;;  %1477 = vst.msk [vmem:[#allocation2 + $0xf8] sm:$0xff] %vm393_vm0, %v1381_v49  ;;  %v1676_v19 = vld [vmem:[#allocation2 + $0xd0] ss:$2 sm:$0xff] }
 0x132   : >> { %v11458_v60 = vpop.f32.mrb[32].mxu0  ;;  %1475 = vst.msk [vmem:[#allocation2 + $0xe8] sm:$0xff] %vm393_vm0, %v1379_v55  ;;  %v13399_v6 = vrot.slane %v2084_v56, 1  ;;  %v1680_v20 = vld [vmem:[#allocation2 + $0xd1] ss:$2 sm:$0xff] }
 0x133   : >> { %v1655_v58 = vrot.slane %v1653_v52, 4  ;;  %v1658_v59 = vrot.slane %v1656_v53, 5  ;;  %v1104_v3 = vadd.f32 %v11458_v60, %v13265_v57  ;;  %v1095_v4 = vpop.f32.mrb[33].mxu0  ;;  %v1674_v25 = vld [vmem:[#allocation2 + $0xc0] ss:$2 sm:$0xff]  ;;  %v1690_v31 = vmax.f32 %v1676_v19, %v1680_v20 }
 0x134   : >> { %v1096_v14 = vadd.f32 %v13265_v57, %v1095_v4  ;;  %v11459_v15 = vpop.f32.mrb[34].mxu0  ;;  %v2087_v17 = vsel %vm1844_vm13, %v2082_v51, %v13399_v6  ;;  %v1678_v26 = vld [vmem:[#allocation2 + $0xc1] ss:$2 sm:$0xff]  ;;  %v2090_v60 = vor.u32 %v2088_v54, %v13399_v6 }
 0x135   : >> { %v1659_v13 = vor.u32 %v1658_v59, %v1655_v58  ;;  %v1384_v61 = vmax.f32 %v1104_v3, 0.0  ;;  %v1107_v16 = vadd.f32 %v11459_v15, %v13265_v57  ;;  %v1098_v18 = vpop.f32.mrb[35].mxu0  ;;  %11525 = vmatmul.mubr.msk.bf16.vlgmr.msra.gmra.mrb[96].mxu0 %vm393_vm0, %v2087_v17  ;;  %v1689_v36 = vmax.f32 %v1674_v25, %v1678_v26  ;;  %v13436_v58 = vld [vmem:[#allocation3 + $0x10] sm:$0xff]  ;;  %v1714_v17 = vld [vmem:[#allocation3 + $0x28] sm:$0x1f] }
 0x136   : >> { %v1382_v21 = vmax.f32 %v1096_v14, 0.0  ;;  %v1099_v22 = vadd.f32 %v13265_v57, %v1098_v18  ;;  %11553 = vmatpush3.bf16.msra.mxu0 %v13274_v5  ;;  %v16199_v18 = vrot.slane %v13436_v58, 2 }
 0x137   : >> { %v1665_v23 = vsel %vm13387_vm1, %v1659_v13, %v1664_v7  ;;  %v1671_v24 = vsel %vm13403_vm5, %v1659_v13, %v1670_v11  ;;  %1480 = vst.msk [vmem:[#allocation2 + $0x110] sm:$0xff] %vm393_vm0, %v1384_v61  ;;  %v1385_v27 = vmax.f32 %v1107_v16, 0.0  ;;  %11554 = vmatprep.subr.bf16.mxu0 %v13286_v9  ;;  %v1708_v61 = vld [vmem:[#allocation3 + $0x20] sm:$0xf0] }
 0x138   : >> { %1666 = vst [vmem:[#allocation3 + $0x18] sm:$0xf8] %v1665_v23  ;;  %1672 = vst [vmem:[#allocation3 + $0x20] sm:$0xf] %v1671_v24  ;;  %v1684_v28 = vld [vmem:[#allocation2 + $0xf0] ss:$2 sm:$0xff] }
 0x139   : >> { %v1688_v29 = vld [vmem:[#allocation2 + $0xf1] ss:$2 sm:$0xff]  ;;  %1478 = vst.msk [vmem:[#allocation2 + $0x100] sm:$0xff] %vm393_vm0, %v1382_v21  ;;  %v1383_v30 = vmax.f32 %v1099_v22, 0.0  ;;  %1481 = vst.msk [vmem:[#allocation2 + $0x118] sm:$0xff] %vm393_vm0, %v1385_v27  ;;  %v14024_v13 = vld [vmem:[%s16177_s3 + $0x40] sm:$0xff]  }
 0x13a   : >> { %v1692_v32 = vmax.f32 %v1684_v28, %v1688_v29  ;;  %v1682_v33 = vld [vmem:[#allocation2 + $0xe0] ss:$2 sm:$0xff]  ;;  %v1686_v34 = vld [vmem:[#allocation2 + $0xe1] ss:$2 sm:$0xff]  ;;  %v11462_v35 = vpop.f32.mrb[36].mxu0  ;;  %11555 = vmatpush3.bf16.msra.mxu0 %v13286_v9 }
 0x13b   : >> { %1479 = vst.msk [vmem:[#allocation2 + $0x108] sm:$0xff] %vm393_vm0, %v1383_v30  ;;  %v1691_v38 = vmax.f32 %v1682_v33, %v1686_v34  ;;  %v1120_v5 = vadd.f32 %v11462_v35, %v13265_v57  ;;  %v1111_v39 = vpop.f32.mrb[37].mxu0 }
 0x13c   : >> { %v1694_v37 = vmax.f32 %v1690_v31, %v1692_v32  ;;  %v1112_v40 = vadd.f32 %v13265_v57, %v1111_v39  ;;  %v11463_v41 = vpop.f32.mrb[38].mxu0 }
 0x13d   : >> { %v1693_v42 = vmax.f32 %v1689_v36, %v1691_v38  ;;  %v1388_v43 = vmax.f32 %v1120_v5, 0.0  ;;  %v1123_v44 = vadd.f32 %v11463_v41, %v13265_v57  ;;  %v1114_v45 = vpop.f32.mrb[39].mxu0 }
 0x13e   : >> { %v1386_v46 = vmax.f32 %v1112_v40, 0.0  ;;  %v1115_v47 = vadd.f32 %v13265_v57, %v1114_v45 }
 0x13f   : >> { %v13429_v48 = vld [vmem:[#allocation3 + $0x18] sm:$0xff]  ;;  %v1695_v49 = vpack.c.bf16 %v1694_v37, %v1693_v42  ;;  %1484 = vst.msk [vmem:[#allocation2 + $0x130] sm:$0xff] %vm393_vm0, %v1388_v43  ;;  %v1389_v52 = vmax.f32 %v1123_v44, 0.0 }
 0x140   : >> { %v2092_v53 = vshll.u32 %v13429_v48, 16  ;;  %1482 = vst.msk [vmem:[#allocation2 + $0x120] sm:$0xff] %vm393_vm0, %v1386_v46  ;;  %v1387_v9 = vmax.f32 %v1115_v47, 0.0  ;;  %v13442_v3 = vld [vmem:[#allocation3 + $0x18] sm:$0xff] }
 0x141   : >> { %v1697_v55 = vshrl.u32 %v1695_v49, 16  ;;  %v1700_v56 = vshll.u32 %v1695_v49, 16  ;;  %1485 = vst.msk [vmem:[#allocation2 + $0x138] sm:$0xff] %vm393_vm0, %v1389_v52  ;;  %v1720_v20 = vld [vmem:[#allocation2 + $0x110] ss:$2 sm:$0xff]  ;;  %v16205_v24 = vshrl.u32 %v13442_v3, 16 }
 0x142   : >> { %1483 = vst.msk [vmem:[#allocation2 + $0x128] sm:$0xff] %vm393_vm0, %v1387_v9  ;;  %v11466_v59 = vpop.f32.mrb[40].mxu0  ;;  %v13440_v51 = vrot.slane %v2092_v53, 1  ;;  %v1724_v25 = vld [vmem:[#allocation2 + $0x111] ss:$2 sm:$0xff]  ;;  %v16204_v28 = vshll.u32 %v13442_v3, 16 }
 0x143   : >> { %v1699_v50 = vrot.slane %v1697_v55, 3  ;;  %v1702_v4 = vrot.slane %v1700_v56, 4  ;;  %v1136_v7 = vadd.f32 %v11466_v59, %v13265_v57  ;;  %v1127_v11 = vpop.f32.mrb[41].mxu0  ;;  %v13467_v29 = vrot.slane %v13442_v3, 2  ;;  %v1718_v30 = vld [vmem:[#allocation2 + $0x100] ss:$2 sm:$0xff] }
 0x144   : >> { %v1128_v14 = vadd.f32 %v13265_v57, %v1127_v11  ;;  %v11467_v15 = vpop.f32.mrb[42].mxu0  ;;  %v2095_v6 = vsel %vm1844_vm13, %v2090_v60, %v13440_v51  ;;  %v1722_v31 = vld [vmem:[#allocation2 + $0x101] ss:$2 sm:$0xff]  ;;  %v1734_v5 = vmax.f32 %v1720_v20, %v1724_v25  ;;  %v4039_v42 = vrot.slane %v16205_v24, 2 }
 0x145   : >> { %v1703_v19 = vor.u32 %v1702_v4, %v1699_v50  ;;  %v1392_v21 = vmax.f32 %v1136_v7, 0.0  ;;  %v1139_v22 = vadd.f32 %v11467_v15, %v13265_v57  ;;  %11528 = vmatprep.mubr.msk.bf16.mxu0 %vm393_vm0, %v2095_v6  ;;  %v1130_v23 = vpop.f32.mrb[43].mxu0  ;;  %v13479_v38 = vsel %vm16194_vm15, %v16199_v18, %v13467_v29  ;;  %vm13513_vm15 = vmand %vm1755_vm11, %vm16195_vm3 }
 0x146   : >> { %v1390_v26 = vmax.f32 %v1128_v14, 0.0  ;;  %v1131_v27 = vadd.f32 %v13265_v57, %v1130_v23  ;;  %v4042_v43 = vrot.slane %v16204_v28, 3  ;;  %v1733_v44 = vmax.f32 %v1718_v30, %v1722_v31  ;;  %v1752_v31 = vld [vmem:[#allocation3 + $0x28] sm:$0xe0] }
 0x147   : >> { %1488 = vst.msk [vmem:[#allocation2 + $0x150] sm:$0xff] %vm393_vm0, %v1392_v21  ;;  %v1393_v32 = vmax.f32 %v1139_v22, 0.0  ;;  %v1709_v33 = vsel %vm13447_vm12, %v1703_v19, %v1708_v61  ;;  %v1715_v34 = vsel %vm13456_vm6, %v1703_v19, %v1714_v17  ;;  %v2096_v17 = vshrl.u32 %v13429_v48, 16 }
 0x148   : >> { %v1728_v35 = vld [vmem:[#allocation2 + $0x130] ss:$2 sm:$0xff]  ;;  %v1732_v36 = vld [vmem:[#allocation2 + $0x131] ss:$2 sm:$0xff]  ;;  %1486 = vst.msk [vmem:[#allocation2 + $0x140] sm:$0xff] %vm393_vm0, %v1390_v26  ;;  %v1391_v37 = vmax.f32 %v1131_v27, 0.0  ;;  %v13488_v53 = vor.u32 %v4042_v43, %v4039_v42 }
 0x149   : >> { %1710 = vst [vmem:[#allocation3 + $0x20] sm:$0xf0] %v1709_v33  ;;  %1716 = vst [vmem:[#allocation3 + $0x28] sm:$0x1f] %v1715_v34  ;;  %v1736_v39 = vmax.f32 %v1728_v35, %v1732_v36  ;;  %v1726_v40 = vld [vmem:[#allocation2 + $0x120] ss:$2 sm:$0xff]  ;;  %v2098_v30 = vor.u32 %v2096_v17, %v13440_v51 }
 0x14a   : >> { %v1730_v41 = vld [vmem:[#allocation2 + $0x121] ss:$2 sm:$0xff]  ;;  %1489 = vst.msk [vmem:[#allocation2 + $0x158] sm:$0xff] %vm393_vm0, %v1393_v32  ;;  %1487 = vst.msk [vmem:[#allocation2 + $0x148] sm:$0xff] %vm393_vm0, %v1391_v37  ;;  %v11470_v46 = vpop.f32.mrb[44].mxu0  ;;  %vm1799_vm11 = vcmask 260096  }
 0x14b   : >> { %v1735_v45 = vmax.f32 %v1726_v40, %v1730_v41  ;;  %v1738_v47 = vmax.f32 %v1734_v5, %v1736_v39  ;;  %v1152_v49 = vadd.f32 %v11470_v46, %v13265_v57  ;;  %v1143_v52 = vpop.f32.mrb[45].mxu0  ;;  %16230 = vst [vmem:[#allocation9_spill] sm:$0xff] %v13488_v53  ;;  %v1758_v33 = vld [vmem:[#allocation3 + $0x30] sm:$0x3f] }
 0x14c   : >> { %v1144_v54 = vadd.f32 %v13265_v57, %v1143_v52  ;;  %v11471_v55 = vpop.f32.mrb[46].mxu0 }
 0x14d   : >> { %v1737_v9 = vmax.f32 %v1733_v44, %v1735_v45  ;;  %v1396_v56 = vmax.f32 %v1152_v49, 0.0  ;;  %v1155_v59 = vadd.f32 %v11471_v55, %v13265_v57  ;;  %v1146_v60 = vpop.f32.mrb[47].mxu0 }
 0x14e   : >> { %v1394_v4 = vmax.f32 %v1144_v54, 0.0  ;;  %v1147_v7 = vadd.f32 %v13265_v57, %v1146_v60  ;;  %v16198_v60 = vrot.slane %v13442_v3, 3 }
 0x14f   : >> { %v1739_v50 = vpack.c.bf16 %v1738_v47, %v1737_v9  ;;  %1492 = vst.msk [vmem:[#allocation2 + $0x170] sm:$0xff] %vm393_vm0, %v1396_v56  ;;  %v1397_v11 = vmax.f32 %v1155_v59, 0.0 }
 0x150   : >> { %v13494_v14 = vld [vmem:[#allocation3 + $0x20] sm:$0xff]  ;;  %1490 = vst.msk [vmem:[#allocation2 + $0x160] sm:$0xff] %vm393_vm0, %v1394_v4  ;;  %v1395_v61 = vmax.f32 %v1147_v7, 0.0 }
 0x151   : >> { %v1741_v15 = vshrl.u32 %v1739_v50, 16  ;;  %v1744_v6 = vshll.u32 %v1739_v50, 16  ;;  %1493 = vst.msk [vmem:[#allocation2 + $0x178] sm:$0xff] %vm393_vm0, %v1397_v11  ;;  %v2100_v19 = vshll.u32 %v13494_v14, 16  ;;  %v13500_v20 = vld [vmem:[#allocation3 + $0x20] sm:$0xff] }
 0x152   : >> { %v11474_v23 = vpop.f32.mrb[48].mxu0  ;;  %1491 = vst.msk [vmem:[#allocation2 + $0x168] sm:$0xff] %vm393_vm0, %v1395_v61  ;;  %v1764_v35 = vld [vmem:[#allocation2 + $0x150] ss:$2 sm:$0xff]  ;;  %v16203_v5 = vshrl.u32 %v13500_v20, 16  ;;  %v16200_v43 = vshll.u32 %v13500_v20, 16 }
 0x153   : >> { %v1743_v21 = vrot.slane %v1741_v15, 2  ;;  %v1746_v22 = vrot.slane %v1744_v6, 3  ;;  %v1168_v26 = vadd.f32 %v11474_v23, %v13265_v57  ;;  %v1159_v27 = vpop.f32.mrb[49].mxu0  ;;  %v13509_v48 = vrot.slane %v2100_v19, 1  ;;  %v1768_v39 = vld [vmem:[#allocation2 + $0x151] ss:$2 sm:$0xff] }
 0x154   : >> { %v1160_v36 = vadd.f32 %v13265_v57, %v1159_v27  ;;  %v11475_v37 = vpop.f32.mrb[50].mxu0  ;;  %v1762_v49 = vld [vmem:[#allocation2 + $0x140] ss:$2 sm:$0xff]  ;;  %v1766_v52 = vld [vmem:[#allocation2 + $0x141] ss:$2 sm:$0xff]  ;;  %v1778_v54 = vmax.f32 %v1764_v35, %v1768_v39  ;;  %v13534_v4 = vrot.slane %v13500_v20, 2 }
 0x155   : >> { %v1747_v34 = vor.u32 %v1746_v22, %v1743_v21  ;;  %v1400_v40 = vmax.f32 %v1168_v26, 0.0  ;;  %v1171_v51 = vadd.f32 %v11475_v37, %v13265_v57  ;;  %v2103_v41 = vsel %vm1844_vm13, %v2098_v30, %v13509_v48  ;;  %v1162_v42 = vpop.f32.mrb[51].mxu0  ;;  %v12358_v16 = vld [vmem:[#allocation3 + $0x20] sm:$0xff] }
 0x156   : >> { %v1398_v44 = vmax.f32 %v1160_v36, 0.0  ;;  %11529 = vmatmul.mubr.msk.bf16.gmra.mrb[100].mxu0 %vm393_vm0, %v2103_v41  ;;  %v1163_v45 = vadd.f32 %v13265_v57, %v1162_v42  ;;  %v4048_v7 = vrot.slane %v16203_v5, 2  ;;  %v4051_v11 = vrot.slane %v16200_v43, 3 }
 0x157   : >> { %v1753_v46 = vsel %vm13502_vm8, %v1747_v34, %v1752_v31  ;;  %v1759_v47 = vsel %vm13513_vm15, %v1747_v34, %v1758_v33  ;;  %1496 = vst.msk [vmem:[#allocation2 + $0x190] sm:$0xff] %vm393_vm0, %v1400_v40  ;;  %v1401_v9 = vmax.f32 %v1171_v51, 0.0  ;;  %v1777_v15 = vmax.f32 %v1762_v49, %v1766_v52 }
 0x158   : >> { %1754 = vst [vmem:[#allocation3 + $0x28] sm:$0xe0] %v1753_v46  ;;  %1760 = vst [vmem:[#allocation3 + $0x30] sm:$0x3f] %v1759_v47  ;;  %v1772_v55 = vld [vmem:[#allocation2 + $0x170] ss:$2 sm:$0xff]  ;;  %v13549_v31 = vor.u32 %v4051_v11, %v4048_v7 }
 0x159   : >> { %v1776_v56 = vld [vmem:[#allocation2 + $0x171] ss:$2 sm:$0xff]  ;;  %1494 = vst.msk [vmem:[#allocation2 + $0x180] sm:$0xff] %vm393_vm0, %v1398_v44  ;;  %v1399_v59 = vmax.f32 %v1163_v45, 0.0  ;;  %1497 = vst.msk [vmem:[#allocation2 + $0x198] sm:$0xff] %vm393_vm0, %v1401_v9  ;;  %v4390_v19 = vrot.slane %v13500_v20, 3 }
 0x15a   : >> { %v1780_v50 = vmax.f32 %v1772_v55, %v1776_v56  ;;  %v1770_v6 = vld [vmem:[#allocation2 + $0x160] ss:$2 sm:$0xff]  ;;  %v1774_v61 = vld [vmem:[#allocation2 + $0x161] ss:$2 sm:$0xff]  ;;  %v11478_v17 = vpop.f32.mrb[52].mxu0  ;;  %vm16235_vm8 = vcmask 1045504   ;;  %v13565_v51 = vsel %vm16195_vm3, %v13488_v53, %v13549_v31 }
 0x15b   : >> { %1495 = vst.msk [vmem:[#allocation2 + $0x188] sm:$0xff] %vm393_vm0, %v1399_v59  ;;  %v1779_v22 = vmax.f32 %v1770_v6, %v1774_v61  ;;  %v1184_v23 = vadd.f32 %v11478_v17, %v13265_v57  ;;  %v1175_v25 = vpop.f32.mrb[53].mxu0  ;;  %v13546_v26 = vsel %vm16235_vm8, %v13467_v29, %v13534_v4  ;;  %16236 = vst [vmem:[#allocation10_spill] sm:$0xff] %v13549_v31  ;;  %vm16237_vm15 = vcmask 1044480   ;;  %v1802_v61 = vld [vmem:[#allocation3 + $0x38] sm:$0x7f] }
 0x15c   : >> { %v1782_v21 = vmax.f32 %v1778_v54, %v1780_v50  ;;  %v1176_v27 = vadd.f32 %v13265_v57, %v1175_v25  ;;  %v11479_v30 = vpop.f32.mrb[54].mxu0  ;;  %v13556_v32 = vsel %vm16237_vm15, %v16198_v60, %v4390_v19  ;;  %16239 = vst [vmem:[#allocation12_spill] sm:$0xff] %v13565_v51  ;;  %v2104_v46 = vshrl.u32 %v13494_v14, 16  ;;  %vm13579_vm8 = vmand %vm1793_vm7, %vm1794_vm14  ;;  %v13609_v50 = vld [vmem:[%s16176_s2] ss:$0 sm:$0xff] }
 0x15d   : >> { %16238 = vst [vmem:[#allocation11_spill] sm:$0xff] %v13556_v32  ;;  %v1781_v33 = vmax.f32 %v1777_v15, %v1779_v22  ;;  %v1404_v34 = vmax.f32 %v1184_v23, 0.0  ;;  %v1187_v35 = vadd.f32 %v11479_v30, %v13265_v57  ;;  %v1178_v36 = vpop.f32.mrb[55].mxu0  ;;  %vm1800_vm15 = vsmask.f32 6400 }
 0x15e   : >> { %v1402_v37 = vmax.f32 %v1176_v27, 0.0  ;;  %v1179_v39 = vadd.f32 %v13265_v57, %v1178_v36  ;;  %v2106_v9 = vor.u32 %v2104_v46, %v13509_v48  ;;  %v1796_v15 = vld [vmem:[#allocation3 + $0x30] sm:$0xc0]  ;;  %vm13588_vm3 = vmand %vm1799_vm11, %vm1800_vm15  ;;  %vm1837_vm7 = vcmask 261127  }
 0x15f   : >> { %v13560_v40 = vld [vmem:[#allocation3 + $0x28] sm:$0xff]  ;;  %v1783_v41 = vpack.c.bf16 %v1782_v21, %v1781_v33  ;;  %1500 = vst.msk [vmem:[#allocation2 + $0x1b0] sm:$0xff] %vm393_vm0, %v1404_v34  ;;  %v1405_v42 = vmax.f32 %v1187_v35, 0.0  ;;  %vm1838_vm14 = vsmask.f32 7966 }
 0x160   : >> { %v2108_v44 = vshll.u32 %v13560_v40, 16  ;;  %1498 = vst.msk [vmem:[#allocation2 + $0x1a0] sm:$0xff] %vm393_vm0, %v1402_v37  ;;  %v1403_v45 = vmax.f32 %v1179_v39, 0.0  ;;  %v1808_v25 = vld [vmem:[#allocation2 + $0x190] ss:$2 sm:$0xff]  ;;  %v13595_v34 = vld [vmem:[#allocation3 + $0x28] sm:$0xff]  ;;  %vm13630_vm11 = vmand %vm1837_vm7, %vm1838_vm14 }
 0x161   : >> { %v1785_v47 = vshrl.u32 %v1783_v41, 16  ;;  %v1788_v49 = vshll.u32 %v1783_v41, 16  ;;  %1501 = vst.msk [vmem:[#allocation2 + $0x1b8] sm:$0xff] %vm393_vm0, %v1405_v42  ;;  %v1812_v27 = vld [vmem:[#allocation2 + $0x191] ss:$2 sm:$0xff]  ;;  %vm2582_vm14 = vcmask 1046528  }
 0x162   : >> { %1499 = vst.msk [vmem:[#allocation2 + $0x1a8] sm:$0xff] %vm393_vm0, %v1403_v45  ;;  %v11482_v52 = vpop.f32.mrb[56].mxu0  ;;  %v13576_v54 = vrot.slane %v2108_v44, 1  ;;  %v1806_v35 = vld [vmem:[#allocation2 + $0x180] ss:$2 sm:$0xff] }
 0x163   : >> { %v1787_v55 = vrot.slane %v1785_v47, 1  ;;  %v1790_v56 = vrot.slane %v1788_v49, 2  ;;  %v1200_v14 = vadd.f32 %v11482_v52, %v13265_v57  ;;  %v1191_v59 = vpop.f32.mrb[57].mxu0  ;;  %v1810_v36 = vld [vmem:[#allocation2 + $0x181] ss:$2 sm:$0xff] }
 0x164   : >> { %v1192_v7 = vadd.f32 %v13265_v57, %v1191_v59  ;;  %v11483_v11 = vpop.f32.mrb[58].mxu0  ;;  %v2111_v48 = vsel %vm1844_vm13, %v2106_v9, %v13576_v54  ;;  %v4392_v9 = vrot.slane %v13595_v34, 3  ;;  %vm16201_vm7 = vsmask.f32 256 }
 0x165   : >> { %v1408_v17 = vmax.f32 %v1200_v14, 0.0  ;;  %v1203_v21 = vadd.f32 %v11483_v11, %v13265_v57  ;;  %11532 = vmatprep.mubr.msk.bf16.mxu0 %vm393_vm0, %v2111_v48  ;;  %v1194_v22 = vpop.f32.mrb[59].mxu0  ;;  %v1791_v23 = vor.u32 %v1790_v56, %v1787_v55  ;;  %v1821_v55 = vmax.f32 %v1806_v35, %v1810_v36 }
 0x166   : >> { %v1406_v30 = vmax.f32 %v1192_v7, 0.0  ;;  %v1195_v33 = vadd.f32 %v13265_v57, %v1194_v22  ;;  %v1822_v57 = vmax.f32 %v1808_v25, %v1812_v27 }
 0x167   : >> { %1504 = vst.msk [vmem:[#allocation2 + $0x1d0] sm:$0xff] %vm393_vm0, %v1408_v17  ;;  %v1409_v37 = vmax.f32 %v1203_v21, 0.0  ;;  %v1797_v39 = vsel %vm13579_vm8, %v1791_v23, %v1796_v15  ;;  %v1803_v41 = vsel %vm13588_vm3, %v1791_v23, %v1802_v61  ;;  %vm16244_vm3 = vcmask 1044480   ;;  %vm13640_vm8 = vmand %vm393_vm0, %vm1844_vm13 }
 0x168   : >> { %v1816_v42 = vld [vmem:[#allocation2 + $0x1b0] ss:$2 sm:$0xff]  ;;  %v1820_v45 = vld [vmem:[#allocation2 + $0x1b1] ss:$2 sm:$0xff]  ;;  %1502 = vst.msk [vmem:[#allocation2 + $0x1c0] sm:$0xff] %vm393_vm0, %v1406_v30  ;;  %v1407_v46 = vmax.f32 %v1195_v33, 0.0  ;;  %v13617_v48 = vsel %vm16244_vm3, %v4390_v19, %v4392_v9 }
 0x169   : >> { %1798 = vst [vmem:[#allocation3 + $0x30] sm:$0xc0] %v1797_v39  ;;  %1804 = vst [vmem:[#allocation3 + $0x38] sm:$0x7f] %v1803_v41  ;;  %v1824_v47 = vmax.f32 %v1816_v42, %v1820_v45  ;;  %v1814_v49 = vld [vmem:[#allocation2 + $0x1a0] ss:$2 sm:$0xff] }
 0x16a   : >> { %v1818_v52 = vld [vmem:[#allocation2 + $0x1a1] ss:$2 sm:$0xff]  ;;  %1505 = vst.msk [vmem:[#allocation2 + $0x1d8] sm:$0xff] %vm393_vm0, %v1409_v37  ;;  %1503 = vst.msk [vmem:[#allocation2 + $0x1c8] sm:$0xff] %vm393_vm0, %v1407_v46  ;;  %v11486_v14 = vpop.f32.mrb[60].mxu0  ;;  %v2112_v30 = vshrl.u32 %v13560_v40, 16 }
 0x16b   : >> { %v1823_v56 = vmax.f32 %v1814_v49, %v1818_v52  ;;  %v1826_v59 = vmax.f32 %v1822_v57, %v1824_v47  ;;  %v1216_v7 = vadd.f32 %v13609_v50, %v11486_v14  ;;  %v1207_v11 = vpop.f32.mrb[61].mxu0  ;;  %16245 = vst [vmem:[#allocation13_spill] sm:$0xff] %v13617_v48  ;;  %v1840_v39 = vld [vmem:[#allocation3 + $0x38] sm:$0x80]  ;;  %v3167_v14 = vrot.slane %v2108_v44, 2 }
 0x16c   : >> { %v1208_v6 = vadd.f32 %v13609_v50, %v1207_v11  ;;  %v11487_v61 = vpop.f32.mrb[62].mxu0  ;;  %v3164_v57 = vrot.slane %v2112_v30, 1  ;;  %v2114_v52 = vor.u32 %v2112_v30, %v13576_v54  ;;  %vm1886_vm3 = vcmask 253952  }
 0x16d   : >> { %v1825_v15 = vmax.f32 %v1821_v55, %v1823_v56  ;;  %v1412_v17 = vmax.f32 %v1216_v7, 0.0  ;;  %v1219_v21 = vadd.f32 %v13609_v50, %v11487_v61  ;;  %v1210_v22 = vpop.f32.mrb[63].mxu0  ;;  %v1846_v56 = vld [vmem:[#allocation3 + $0x40] sm:$0xff] }
 0x16e   : >> { %v1410_v25 = vmax.f32 %v1208_v6, 0.0  ;;  %v1211_v27 = vadd.f32 %v13609_v50, %v1210_v22 }
 0x16f   : >> { %v1827_v23 = vpack.c.bf16 %v1826_v59, %v1825_v15  ;;  %1508 = vst.msk [vmem:[#allocation2 + $0x1f0] sm:$0xff] %vm393_vm0, %v1412_v17  ;;  %v1413_v19 = vmax.f32 %v1219_v21, 0.0 }
 0x170   : >> { %v13624_v33 = vld [vmem:[#allocation3 + $0x30] sm:$0xff]  ;;  %1506 = vst.msk [vmem:[#allocation2 + $0x1e0] sm:$0xff] %vm393_vm0, %v1410_v25  ;;  %v1411_v36 = vmax.f32 %v1211_v27, 0.0 }
 0x171   : >> { %v1829_v35 = vshll.u32 %v1827_v23, 16  ;;  %11568 = vmatprep.mubr.msk.bf16.mxu1 %vm393_vm0, %v13624_v33  ;;  %1509 = vst.msk [vmem:[#allocation2 + $0x1f8] sm:$0xff] %vm393_vm0, %v1413_v19  ;;  %v1832_v41 = vshrl.u32 %v1827_v23, 16  ;;  %v2116_v45 = vshll.u32 %v13624_v33, 16  ;;  %v3171_v59 = vshrl.u32 %v13624_v33, 16 }
 0x172   : >> { %v11490_v42 = vpop.f32.mrb[64].mxu0  ;;  %1507 = vst.msk [vmem:[#allocation2 + $0x1e8] sm:$0xff] %vm393_vm0, %v1411_v36  ;;  %v1852_v61 = vld [vmem:[#allocation2 + $0x1d0] ss:$2 sm:$0xff]  ;;  %v1856_v17 = vld [vmem:[#allocation2 + $0x1d1] ss:$2 sm:$0xff] }
 0x173   : >> { %v1831_v46 = vrot.slane %v1829_v35, 1  ;;  %v1232_v47 = vadd.f32 %v13609_v50, %v11490_v42  ;;  %v1223_v49 = vpop.f32.mrb[65].mxu0  ;;  %v2118_v15 = vrot.slane %v2116_v45, 1  ;;  %v1850_v25 = vld [vmem:[#allocation2 + $0x1c0] ss:$2 sm:$0xff]  ;;  %v3176_v55 = vrot.slane %v2116_v45, 2 }
 0x174   : >> { %v1224_v7 = vadd.f32 %v13609_v50, %v1223_v49  ;;  %v11491_v11 = vpop.f32.mrb[66].mxu0  ;;  %v1854_v19 = vld [vmem:[#allocation2 + $0x1c1] ss:$2 sm:$0xff] }
 0x175   : >> { %v1841_v6 = vsel %vm13630_vm11, %v1831_v46, %v1840_v39  ;;  %v1834_v54 = vor.u32 %v1832_v41, %v1831_v46  ;;  %v1416_v21 = vmax.f32 %v1232_v47, 0.0  ;;  %v1235_v22 = vadd.f32 %v13609_v50, %v11491_v11  ;;  %v1226_v23 = vpop.f32.mrb[67].mxu0 }
 0x176   : >> { %1842 = vst [vmem:[#allocation3 + $0x38] sm:$0x80] %v1841_v6  ;;  %v1414_v40 = vmax.f32 %v1224_v7, 0.0  ;;  %v2119_v44 = vsel %vm1844_vm13, %v2114_v52, %v2118_v15  ;;  %v1227_v27 = vadd.f32 %v13609_v50, %v1226_v23  ;;  %v1866_v39 = vmax.f32 %v1852_v61, %v1856_v17 }
 0x177   : >> { %v13655_v30 = vsel %vm13640_vm8, %v1834_v54, %v1846_v56  ;;  %1512 = vst.msk [vmem:[#allocation2 + $0x210] sm:$0xff] %vm393_vm0, %v1416_v21  ;;  %v1417_v35 = vmax.f32 %v1235_v22, 0.0  ;;  %11533 = vmatmul.mubr.msk.bf16.gmra.mrb[104].mxu0 %vm393_vm0, %v2119_v44  ;;  %v3173_v47 = vrot.slane %v3171_v59, 1  ;;  %v16207_v52 = vrot.slane %v13624_v33, 1  ;;  %vm13724_vm8 = vmand %vm1886_vm3, %vm16201_vm7 }
 0x178   : >> { %1848 = vst [vmem:[#allocation3 + $0x40] sm:$0xff] %v13655_v30  ;;  %v2136_v36 = vshrl.u32 %v13655_v30, 16  ;;  %v2132_v37 = vshll.u32 %v13655_v30, 16  ;;  %v1860_v41 = vld [vmem:[#allocation2 + $0x1f0] ss:$2 sm:$0xff]  ;;  %1510 = vst.msk [vmem:[#allocation2 + $0x200] sm:$0xff] %vm393_vm0, %v1414_v40  ;;  %v1865_v7 = vmax.f32 %v1850_v25, %v1854_v19  ;;  %v13668_v61 = vor.u32 %v3167_v14, %v3164_v57 }
 0x179   : >> { %v1864_v42 = vld [vmem:[#allocation2 + $0x1f1] ss:$2 sm:$0xff]  ;;  %v1415_v46 = vmax.f32 %v1227_v27, 0.0  ;;  %1513 = vst.msk [vmem:[#allocation2 + $0x218] sm:$0xff] %vm393_vm0, %v1417_v35  ;;  %v1858_v11 = vld [vmem:[#allocation2 + $0x1e0] ss:$2 sm:$0xff]  ;;  %v2122_v45 = vor.u32 %v3171_v59, %v2118_v15  ;;  %v13680_v14 = vor.u32 %v3176_v55, %v3173_v47 }
 0x17a   : >> { %v1868_v49 = vmax.f32 %v1860_v41, %v1864_v42  ;;  %v3191_v56 = vrot.slane %v2136_v36, 1  ;;  %v1862_v6 = vld [vmem:[#allocation2 + $0x1e1] ss:$2 sm:$0xff]  ;;  %v11494_v54 = vpop.f32.mrb[68].mxu0  ;;  %v3194_v17 = vrot.slane %v2132_v37, 2  ;;  %v2598_v57 = vrot.slane %v13655_v30, 1 }
 0x17b   : >> { %1511 = vst.msk [vmem:[#allocation2 + $0x208] sm:$0xff] %vm393_vm0, %v1415_v46  ;;  %v1867_v22 = vmax.f32 %v1858_v11, %v1862_v6  ;;  %v1248_v23 = vadd.f32 %v13609_v50, %v11494_v54  ;;  %v1239_v40 = vpop.f32.mrb[69].mxu0  ;;  %v12285_v25 = vld [vmem:[%s16177_s3 + $0x28] sm:$0xff]   ;;  %v13698_v11 = vld [vmem:[%s16177_s3 + $0x30] sm:$0xff]   ;;  %v13703_v6 = vsel %vm1800_vm15, %v13668_v61, %v13680_v14  ;;  %vm1881_vm11 = vsmask.f32 7938 }
 0x17c   : >> { %v1870_v21 = vmax.f32 %v1866_v39, %v1868_v49  ;;  %v1240_v44 = vadd.f32 %v13609_v50, %v1239_v40  ;;  %v11495_v27 = vpop.f32.mrb[70].mxu0  ;;  %v13682_v35 = vor.u32 %v3194_v17, %v3191_v56  ;;  %v16202_v40 = vrot.slane %v13624_v33, 2  ;;  %vm13736_vm3 = vmand %vm393_vm0, %vm1881_vm11 }
 0x17d   : >> { %v13677_v19 = vld [vmem:[#allocation3 + $0x38] sm:$0xff]  ;;  %v1869_v39 = vmax.f32 %v1865_v7, %v1867_v22  ;;  %v1420_v41 = vmax.f32 %v1248_v23, 0.0  ;;  %v1251_v42 = vadd.f32 %v13609_v50, %v11495_v27  ;;  %v1242_v59 = vpop.f32.mrb[71].mxu0 }
 0x17e   : >> { %v2128_v15 = vshrl.u32 %v13677_v19, 16  ;;  %11569 = vmatmul.mubr.msk.bf16.vlgmr.msra.gmra.mrb[0].mxu1 %vm393_vm0, %v13677_v19  ;;  %v1418_v46 = vmax.f32 %v1240_v44, 0.0  ;;  %v1243_v49 = vadd.f32 %v13609_v50, %v1242_v59  ;;  %v2124_v47 = vshll.u32 %v13677_v19, 16  ;;  %v1889_v59 = vld [vmem:[#allocation3 + $0x50] sm:$0x1] }
 0x17f   : >> { %11572 = vmatprep.mubr.msk.bf16.mxu1 %vm393_vm0, %v13655_v30  ;;  %11585 = vmatpush3.bf16.msra.mxu1 %v13394_v63  ;;  %v2596_v55 = vrot.slane %v13677_v19, 1  ;;  %v1871_v56 = vpack.c.bf16 %v1870_v21, %v1869_v39  ;;  %1516 = vst.msk [vmem:[#allocation2 + $0x230] sm:$0xff] %vm393_vm0, %v1420_v41  ;;  %v1421_v7 = vmax.f32 %v1251_v42, 0.0  ;;  %v2134_v41 = vrot.slane %v2132_v37, 1 }
 0x180   : >> { %11586 = vmatprep.subr.bf16.mxu1 %v12285_v25  ;;  %v3182_v54 = vrot.slane %v2128_v15, 1  ;;  %1514 = vst.msk [vmem:[#allocation2 + $0x220] sm:$0xff] %vm393_vm0, %v1418_v46  ;;  %v1419_v63 = vmax.f32 %v1243_v49, 0.0  ;;  %v2126_v17 = vrot.slane %v2124_v47, 1  ;;  %v3185_v46 = vrot.slane %v2124_v47, 2  ;;  %v1883_v47 = vld [vmem:[#allocation3 + $0x48] sm:$0xff] }
 0x181   : >> { %v13709_v21 = vsel %vm2582_vm14, %v16207_v52, %v2596_v55  ;;  %v13714_v22 = vsel %vm2582_vm14, %v2596_v55, %v2598_v57  ;;  %v1873_v23 = vshrl.u32 %v1871_v56, 16  ;;  %1517 = vst.msk [vmem:[#allocation2 + $0x238] sm:$0xff] %vm393_vm0, %v1421_v7  ;;  %v1876_v55 = vshll.u32 %v1871_v56, 16  ;;  %v1895_v1 = vld [vmem:[#allocation2 + $0x210] ss:$2 sm:$0xff] }
 0x182   : >> { %1515 = vst.msk [vmem:[#allocation2 + $0x228] sm:$0xff] %vm393_vm0, %v1419_v63  ;;  %v11498_v44 = vpop.f32.mrb[72].mxu0  ;;  %v2127_v27 = vsel %vm1844_vm13, %v2122_v45, %v2126_v17  ;;  %v2130_v39 = vor.u32 %v2128_v15, %v2126_v17  ;;  %v3496_v37 = vrot.slane %v13677_v19, 2  ;;  %v3186_v56 = vor.u32 %v3185_v46, %v3182_v54  ;;  %v1899_v60 = vld [vmem:[#allocation2 + $0x211] ss:$2 sm:$0xff] }
 0x183   : >> { %11587 = vmatpush3.bf16.msra.mxu1 %v12285_v25  ;;  %v1875_v49 = vrot.slane %v1873_v23, 7  ;;  %v1264_v7 = vadd.f32 %v13609_v50, %v11498_v44  ;;  %11536 = vmatprep.mubr.msk.bf16.mxu0 %vm393_vm0, %v2127_v27  ;;  %v1255_v45 = vpop.f32.mrb[73].mxu0  ;;  %v3498_v23 = vrot.slane %v13655_v30, 2  ;;  %v2138_v25 = vor.u32 %v2136_v36, %v2134_v41  ;;  %v13876_v52 = vld [vmem:[#allocation3 + $0x30] sm:$0xff] }
 0x184   : >> { %11616 = vmatprep.subr.bf16.mxu1 %v13698_v11  ;;  %v1256_v15 = vadd.f32 %v13609_v50, %v1255_v45  ;;  %v11499_v63 = vpop.f32.mrb[74].mxu0  ;;  %v2135_v17 = vsel %vm1844_vm13, %v2130_v39, %v2134_v41  ;;  %v13748_v54 = vsel %vm1800_vm15, %v13680_v14, %v3186_v56  ;;  %v13752_v46 = vsel %vm1800_vm15, %v3186_v56, %v13682_v35 }
 0x185   : >> { %v1424_v44 = vmax.f32 %v1264_v7, 0.0  ;;  %v1267_v27 = vadd.f32 %v13609_v50, %v11499_v63  ;;  %11537 = vmatmul.mubr.msk.bf16.gmra.mrb[108].mxu0 %vm393_vm0, %v2135_v17  ;;  %v1258_v19 = vpop.f32.mrb[75].mxu0  ;;  %v1878_v45 = vor.u32 %v1876_v55, %v1875_v49  ;;  %v1890_v39 = vsel %vm13724_vm8, %v1875_v49, %v1889_v59  ;;  %v1893_v7 = vld [vmem:[#allocation2 + $0x200] ss:$2 sm:$0xff]  ;;  %v1897_v63 = vld [vmem:[#allocation2 + $0x201] ss:$2 sm:$0xff] }
 0x186   : >> { %v1422_v18 = vmax.f32 %v1256_v15, 0.0  ;;  %v1259_v43 = vadd.f32 %v13609_v50, %v1258_v19  ;;  %1891 = vst [vmem:[#allocation3 + $0x50] sm:$0x1] %v1890_v39  ;;  %vm16254_vm8 = vcmask 1045504  }
 0x187   : >> { %1520 = vst.msk [vmem:[#allocation2 + $0x250] sm:$0xff] %vm393_vm0, %v1424_v44  ;;  %v1425_v42 = vmax.f32 %v1267_v27, 0.0  ;;  %v13757_v59 = vsel %vm13736_vm3, %v1878_v45, %v1883_v47  ;;  %v13762_v49 = vsel %vm16254_vm8, %v16202_v40, %v3496_v37  ;;  %vm16255_vm7 = vmmov %vm16254_vm8  ;;  %v1909_v47 = vmax.f32 %v1895_v1, %v1899_v60 }
 0x188   : >> { %v13765_v14 = vsel %vm16255_vm7, %v3496_v37, %v3498_v23  ;;  %v1903_v55 = vld [vmem:[#allocation2 + $0x230] ss:$2 sm:$0xff]  ;;  %v1907_v15 = vld [vmem:[#allocation2 + $0x231] ss:$2 sm:$0xff]  ;;  %1518 = vst.msk [vmem:[#allocation2 + $0x240] sm:$0xff] %vm393_vm0, %v1422_v18  ;;  %v1423_v17 = vmax.f32 %v1259_v43, 0.0  ;;  %11573 = vmatmul.mubr.msk.bf16.gmra.mrb[4].mxu1 %vm393_vm0, %v13757_v59  ;;  %v1908_v43 = vmax.f32 %v1893_v7, %v1897_v63 }
 0x189   : >> { %1885 = vst [vmem:[#allocation3 + $0x48] sm:$0xff] %v13757_v59  ;;  %v2144_v56 = vshrl.u32 %v13757_v59, 16  ;;  %v1911_v44 = vmax.f32 %v1903_v55, %v1907_v15  ;;  %v1901_v27 = vld [vmem:[#allocation2 + $0x220] ss:$2 sm:$0xff]  ;;  %v1905_v37 = vld [vmem:[#allocation2 + $0x221] ss:$2 sm:$0xff] }
 0x18a   : >> { %1521 = vst.msk [vmem:[#allocation2 + $0x258] sm:$0xff] %vm393_vm0, %v1425_v42  ;;  %v2140_v19 = vshll.u32 %v13757_v59, 16  ;;  %v2600_v18 = vrot.slane %v13757_v59, 1  ;;  %v1910_v45 = vmax.f32 %v1901_v27, %v1905_v37  ;;  %1519 = vst.msk [vmem:[#allocation2 + $0x248] sm:$0xff] %vm393_vm0, %v1423_v17  ;;  %v11502_v39 = vpop.f32.mrb[76].mxu0  ;;  %v3500_v36 = vrot.slane %v13757_v59, 2 }
 0x18b   : >> { %v3200_v40 = vrot.slane %v2144_v56, 1  ;;  %v1913_v1 = vmax.f32 %v1909_v47, %v1911_v44  ;;  %v1280_v60 = vadd.f32 %v13609_v50, %v11502_v39  ;;  %v1271_v41 = vpop.f32.mrb[77].mxu0 }
 0x18c   : >> { %v13782_v55 = vrot.slane %v2140_v19, 1  ;;  %v13789_v7 = vsel %vm2582_vm14, %v2598_v57, %v2600_v18  ;;  %v1912_v63 = vmax.f32 %v1908_v43, %v1910_v45  ;;  %v1272_v42 = vadd.f32 %v13609_v50, %v1271_v41  ;;  %v11503_v15 = vpop.f32.mrb[78].mxu0 }
 0x18d   : >> { %v3203_v17 = vrot.slane %v2140_v19, 2  ;;  %v13795_v47 = vsel %vm16255_vm7, %v3498_v23, %v3500_v36  ;;  %v1428_v44 = vmax.f32 %v1280_v60, 0.0  ;;  %v1283_v27 = vadd.f32 %v13609_v50, %v11503_v15  ;;  %v1274_v37 = vpop.f32.mrb[79].mxu0 }
 0x18e   : >> { %v2143_v30 = vsel %vm1844_vm13, %v2138_v25, %v13782_v55  ;;  %v1914_v39 = vpack.c.bf16 %v1913_v1, %v1912_v63  ;;  %v1426_v57 = vmax.f32 %v1272_v42, 0.0  ;;  %v1275_v43 = vadd.f32 %v13609_v50, %v1274_v37 }
 0x18f   : >> { %11540 = vmatprep.mubr.msk.bf16.mxu0 %vm393_vm0, %v2143_v30  ;;  %v13802_v45 = vor.u32 %v3203_v17, %v3200_v40  ;;  %1524 = vst.msk [vmem:[#allocation2 + $0x270] sm:$0xff] %vm393_vm0, %v1428_v44  ;;  %v1429_v19 = vmax.f32 %v1283_v27, 0.0  ;;  %v1924_v17 = vld [vmem:[#allocation3 + $0x50] sm:$0xfe]  ;;  %v1927_v44 = vld [vmem:[#allocation3 + $0x58] sm:$0x3] }
 0x190   : >> { %v1916_v23 = vshrl.u32 %v1914_v39, 16  ;;  %v1919_v41 = vshll.u32 %v1914_v39, 16  ;;  %1522 = vst.msk [vmem:[#allocation2 + $0x260] sm:$0xff] %vm393_vm0, %v1426_v57  ;;  %v1427_v25 = vmax.f32 %v1275_v43, 0.0 }
 0x191   : >> { %v13809_v60 = vsel %vm1800_vm15, %v13682_v35, %v13802_v45  ;;  %1525 = vst.msk [vmem:[#allocation2 + $0x278] sm:$0xff] %vm393_vm0, %v1429_v19  ;;  %v1933_v19 = vld [vmem:[#allocation2 + $0x250] ss:$2 sm:$0xff]  ;;  %v1937_v43 = vld [vmem:[#allocation2 + $0x251] ss:$2 sm:$0xff] }
 0x192   : >> { %v1918_v1 = vrot.slane %v1916_v23, 6  ;;  %v1921_v63 = vrot.slane %v1919_v41, 7  ;;  %v11506_v42 = vpop.f32.mrb[80].mxu0  ;;  %1523 = vst.msk [vmem:[#allocation2 + $0x268] sm:$0xff] %vm393_vm0, %v1427_v25  ;;  %v1931_v5 = vld [vmem:[#allocation2 + $0x240] ss:$2 sm:$0xff] }
 0x193   : >> { %v1296_v40 = vadd.f32 %v13609_v50, %v11506_v42  ;;  %v1287_v15 = vpop.f32.mrb[81].mxu0  ;;  %v1935_v28 = vld [vmem:[#allocation2 + $0x241] ss:$2 sm:$0xff] }
 0x194   : >> { %v1288_v27 = vadd.f32 %v13609_v50, %v1287_v15  ;;  %v11507_v37 = vpop.f32.mrb[82].mxu0  ;;  %v1922_v30 = vor.u32 %v1921_v63, %v1918_v1 }
 0x195   : >> { %v1432_v39 = vmax.f32 %v1296_v40, 0.0  ;;  %v1299_v35 = vadd.f32 %v13609_v50, %v11507_v37  ;;  %v1290_v57 = vpop.f32.mrb[83].mxu0 }
 0x196   : >> { %v1430_v23 = vmax.f32 %v1288_v27, 0.0  ;;  %v1291_v41 = vadd.f32 %v13609_v50, %v1290_v57  ;;  %v1925_v25 = vsel %vm13321_vm10, %v1922_v30, %v1924_v17  ;;  %v1928_v42 = vsel %vm13314_vm9, %v1922_v30, %v1927_v44  ;;  %vm16257_vm9 = vmmov %vm16255_vm7 }
 0x197   : >> { %1528 = vst.msk [vmem:[#allocation2 + $0x290] sm:$0xff] %vm393_vm0, %v1432_v39  ;;  %v1433_v1 = vmax.f32 %v1299_v35, 0.0  ;;  %1926 = vst [vmem:[#allocation3 + $0x50] sm:$0xfe] %v1925_v25  ;;  %v1947_v27 = vmax.f32 %v1933_v19, %v1937_v43  ;;  %v1946_v44 = vmax.f32 %v1931_v5, %v1935_v28  ;;  %vm16258_vm10 = vcmask 1044480  }
 0x198   : >> { %1929 = vst [vmem:[#allocation3 + $0x58] sm:$0x3] %v1928_v42  ;;  %v1941_v63 = vld [vmem:[#allocation2 + $0x270] ss:$2 sm:$0xff]  ;;  %v1945_v40 = vld [vmem:[#allocation2 + $0x271] ss:$2 sm:$0xff] }
 0x199   : >> { %1526 = vst.msk [vmem:[#allocation2 + $0x280] sm:$0xff] %vm393_vm0, %v1430_v23  ;;  %v1431_v15 = vmax.f32 %v1291_v41, 0.0  ;;  %v1949_v37 = vmax.f32 %v1941_v63, %v1945_v40  ;;  %1529 = vst.msk [vmem:[#allocation2 + $0x298] sm:$0xff] %vm393_vm0, %v1433_v1  ;;  %v1939_v10 = vld [vmem:[#allocation2 + $0x260] ss:$2 sm:$0xff] }
 0x19a   : >> { %v1943_v17 = vld [vmem:[#allocation2 + $0x261] ss:$2 sm:$0xff]  ;;  %v11510_v2 = vpop.f32.mrb[84].mxu0 }
 0x19b   : >> { %1527 = vst.msk [vmem:[#allocation2 + $0x288] sm:$0xff] %vm393_vm0, %v1431_v15  ;;  %v1951_v30 = vmax.f32 %v1947_v27, %v1949_v37  ;;  %v1948_v39 = vmax.f32 %v1939_v10, %v1943_v17  ;;  %v1312_v35 = vadd.f32 %v13609_v50, %v11510_v2  ;;  %v1303_v57 = vpop.f32.mrb[85].mxu0 }
 0x19c   : >> { %v1304_v25 = vadd.f32 %v13609_v50, %v1303_v57  ;;  %v11511_v42 = vpop.f32.mrb[86].mxu0 }
 0x19d   : >> { %v1950_v23 = vmax.f32 %v1946_v44, %v1948_v39  ;;  %v1436_v41 = vmax.f32 %v1312_v35, 0.0  ;;  %v1315_v19 = vadd.f32 %v13609_v50, %v11511_v42  ;;  %v1306_v43 = vpop.f32.mrb[87].mxu0  ;;  %v2146_v44 = vor.u32 %v2144_v56, %v13782_v55 }
 0x19e   : >> { %v1434_v1 = vmax.f32 %v1304_v25, 0.0  ;;  %v1307_v63 = vadd.f32 %v13609_v50, %v1306_v43  ;;  %v13829_v40 = vld [vmem:[#allocation3 + $0x50] sm:$0xff] }
 0x19f   : >> { %v1952_v15 = vpack.c.bf16 %v1951_v30, %v1950_v23  ;;  %1532 = vst.msk [vmem:[#allocation2 + $0x2b0] sm:$0xff] %vm393_vm0, %v1436_v41  ;;  %v1437_v28 = vmax.f32 %v1315_v19, 0.0  ;;  %v13833_v5 = vshrl.u32 %v13829_v40, 16  ;;  %11576 = vmatprep.mubr.msk.bf16.mxu1 %vm393_vm0, %v13829_v40  ;;  %v13838_v27 = vshll.u32 %v13829_v40, 16 }
 0x1a0   : >> { %1530 = vst.msk [vmem:[#allocation2 + $0x2a0] sm:$0xff] %vm393_vm0, %v1434_v1  ;;  %v1435_v37 = vmax.f32 %v1307_v63, 0.0  ;;  %v16206_v10 = vrot.slane %v13829_v40, 1  ;;  %v1962_v1 = vld [vmem:[#allocation3 + $0x58] sm:$0xfc] }
 0x1a1   : >> { %v1954_v17 = vshrl.u32 %v1952_v15, 16  ;;  %v1957_v2 = vshll.u32 %v1952_v15, 16  ;;  %1533 = vst.msk [vmem:[#allocation2 + $0x2b8] sm:$0xff] %vm393_vm0, %v1437_v28  ;;  %v2150_v30 = vrot.slane %v13838_v27, 1  ;;  %v3209_v57 = vrot.slane %v13833_v5, 1 }
 0x1a2   : >> { %1531 = vst.msk [vmem:[#allocation2 + $0x2a8] sm:$0xff] %vm393_vm0, %v1435_v37  ;;  %v11514_v39 = vpop.f32.mrb[88].mxu0  ;;  %v13853_v35 = vsel %vm2582_vm14, %v2600_v18, %v16206_v10  ;;  %v3212_v19 = vrot.slane %v13838_v27, 2  ;;  %v1965_v63 = vld [vmem:[#allocation3 + $0x60] sm:$0x7]  ;;  %v13863_v18 = vrot.slane %v13829_v40, 2 }
 0x1a3   : >> { %v1956_v25 = vrot.slane %v1954_v17, 5  ;;  %v1959_v42 = vrot.slane %v1957_v2, 6  ;;  %v1328_v23 = vadd.f32 %v13609_v50, %v11514_v39  ;;  %v1319_v41 = vpop.f32.mrb[89].mxu0  ;;  %v2151_v56 = vsel %vm1844_vm13, %v2146_v44, %v2150_v30  ;;  %v1971_v39 = vld [vmem:[#allocation2 + $0x290] ss:$2 sm:$0xff] }
 0x1a4   : >> { %v1320_v55 = vadd.f32 %v13609_v50, %v1319_v41  ;;  %v11515_v43 = vpop.f32.mrb[90].mxu0  ;;  %16256 = vst [vmem:[#allocation14_spill] sm:$0xff] %v13863_v18  ;;  %11541 = vmatmul.mubr.msk.bf16.gmra.mrb[112].mxu0 %vm393_vm0, %v2151_v56  ;;  %v13867_v2 = vor.u32 %v3212_v19, %v3209_v57  ;;  %v1975_v24 = vld [vmem:[#allocation2 + $0x291] ss:$2 sm:$0xff]  ;;  %v13874_v10 = vsel %vm16257_vm9, %v3500_v36, %v13863_v18  ;;  %v1973_v56 = vld [vmem:[#allocation2 + $0x281] ss:$2 sm:$0xff] }
 0x1a5   : >> { %v1440_v15 = vmax.f32 %v1328_v23, 0.0  ;;  %v1331_v28 = vadd.f32 %v13609_v50, %v11515_v43  ;;  %v1322_v37 = vpop.f32.mrb[91].mxu0  ;;  %v1960_v17 = vor.u32 %v1959_v42, %v1956_v25  ;;  %v1969_v23 = vld [vmem:[#allocation2 + $0x280] ss:$2 sm:$0xff]  ;;  %v13888_v36 = vld [vmem:[#allocation3 + $0x38] sm:$0xff] }
 0x1a6   : >> { %v1438_v44 = vmax.f32 %v1320_v55, 0.0  ;;  %v1323_v41 = vadd.f32 %v13609_v50, %v1322_v37  ;;  %v13886_v59 = vsel %vm1800_vm15, %v13802_v45, %v13867_v2  ;;  %v1984_v12 = vmax.f32 %v1969_v23, %v1973_v56  ;;  %v13893_v37 = vld [vmem:[#allocation3 + $0x40] sm:$0xff] }
 0x1a7   : >> { %1536 = vst.msk [vmem:[#allocation2 + $0x2d0] sm:$0xff] %vm393_vm0, %v1440_v15  ;;  %v1441_v25 = vmax.f32 %v1331_v28, 0.0  ;;  %v1963_v57 = vsel %vm13351_vm2, %v1960_v17, %v1962_v1  ;;  %v1966_v42 = vsel %vm13360_vm4, %v1960_v17, %v1965_v63  ;;  %v1985_v15 = vmax.f32 %v1971_v39, %v1975_v24  ;;  %v13898_v39 = vld [vmem:[#allocation3 + $0x48] sm:$0xff]  ;;  %vm16260_vm2 = vmmov %vm16258_vm10 }
 0x1a8   : >> { %v1979_v19 = vld [vmem:[#allocation2 + $0x2b0] ss:$2 sm:$0xff]  ;;  %v1983_v55 = vld [vmem:[#allocation2 + $0x2b1] ss:$2 sm:$0xff]  ;;  %1534 = vst.msk [vmem:[#allocation2 + $0x2c0] sm:$0xff] %vm393_vm0, %v1438_v44  ;;  %v1439_v43 = vmax.f32 %v1323_v41, 0.0  ;;  %vm16262_vm4 = vmmov %vm16260_vm2 }
 0x1a9   : >> { %1964 = vst [vmem:[#allocation3 + $0x58] sm:$0xfc] %v1963_v57  ;;  %1967 = vst [vmem:[#allocation3 + $0x60] sm:$0x7] %v1966_v42  ;;  %v1987_v0 = vmax.f32 %v1979_v19, %v1983_v55  ;;  %v1977_v1 = vld [vmem:[#allocation2 + $0x2a0] ss:$2 sm:$0xff] }
 0x1aa   : >> { %v1981_v28 = vld [vmem:[#allocation2 + $0x2a1] ss:$2 sm:$0xff]  ;;  %1537 = vst.msk [vmem:[#allocation2 + $0x2d8] sm:$0xff] %vm393_vm0, %v1441_v25  ;;  %1535 = vst.msk [vmem:[#allocation2 + $0x2c8] sm:$0xff] %vm393_vm0, %v1439_v43  ;;  %v11518_v45 = vpop.f32.mrb[92].mxu0  ;;  %v4394_v17 = vrot.slane %v13876_v52, 3 }
 0x1ab   : >> { %v1986_v63 = vmax.f32 %v1977_v1, %v1981_v28  ;;  %v4396_v44 = vrot.slane %v13888_v36, 3  ;;  %v1989_v41 = vmax.f32 %v1985_v15, %v1987_v0  ;;  %v1344_v57 = vadd.f32 %v13609_v50, %v11518_v45  ;;  %v1335_v24 = vpop.f32.mrb[93].mxu0  ;;  %vm16264_vm3 = vmmov %vm16260_vm2 }
 0x1ac   : >> { %v1336_v25 = vadd.f32 %v13609_v50, %v1335_v24  ;;  %v11519_v23 = vpop.f32.mrb[94].mxu0  ;;  %v13904_v56 = vsel %vm16258_vm10, %v4392_v9, %v4394_v17  ;;  %v4398_v0 = vrot.slane %v13893_v37, 3  ;;  %vm16266_vm8 = vmmov %vm16260_vm2 }
 0x1ad   : >> { %v1988_v42 = vmax.f32 %v1984_v12, %v1986_v63  ;;  %16259 = vst [vmem:[#allocation15_spill] sm:$0xff] %v13904_v56  ;;  %v13907_v19 = vsel %vm16260_vm2, %v4394_v17, %v4396_v44  ;;  %v1444_v55 = vmax.f32 %v1344_v57, 0.0  ;;  %v1347_v43 = vadd.f32 %v13609_v50, %v11519_v23  ;;  %v1338_v15 = vpop.f32.mrb[95].mxu0  ;;  %vm16268_vm9 = vmmov %vm16260_vm2 }
 0x1ae   : >> { %16261 = vst [vmem:[#allocation16_spill] sm:$0xff] %v13907_v19  ;;  %v1442_v28 = vmax.f32 %v1336_v25, 0.0  ;;  %v1339_v12 = vadd.f32 %v13609_v50, %v1338_v15  ;;  %v4400_v63 = vrot.slane %v13898_v39, 3  ;;  %v13917_v45 = vsel %vm16262_vm4, %v4396_v44, %v4398_v0  ;;  %v2000_v44 = vld [vmem:[#allocation3 + $0x60] sm:$0xf8]  ;;  %vm16274_vm10 = vmmov %vm16260_vm2 }
 0x1af   : >> { %v1990_v1 = vpack.c.bf16 %v1989_v41, %v1988_v42  ;;  %1540 = vst.msk [vmem:[#allocation2 + $0x2f0] sm:$0xff] %vm393_vm0, %v1444_v55  ;;  %v1445_v34 = vmax.f32 %v1347_v43, 0.0  ;;  %16263 = vst [vmem:[#allocation17_spill] sm:$0xff] %v13917_v45  ;;  %v4402_v17 = vrot.slane %v13829_v40, 3  ;;  %v4102_v25 = vrot.slane %v13833_v5, 2 }
 0x1b0   : >> { %v13914_v9 = vld [vmem:[#allocation3 + $0x58] sm:$0xff]  ;;  %1538 = vst.msk [vmem:[#allocation2 + $0x2e0] sm:$0xff] %vm393_vm0, %v1442_v28  ;;  %v13924_v50 = vsel %vm16264_vm3, %v4398_v0, %v4400_v63  ;;  %v1443_v41 = vmax.f32 %v1339_v12, 0.0  ;;  %v4105_v0 = vrot.slane %v13838_v27, 3  ;;  %v2154_v12 = vor.u32 %v13833_v5, %v2150_v30  ;;  %vm16281_vm4 = vmmov %vm16264_vm3 }
 0x1b1   : >> { %v1992_v57 = vshrl.u32 %v1990_v1, 16  ;;  %v1995_v24 = vshll.u32 %v1990_v1, 16  ;;  %11577 = vmatmul.mubr.msk.bf16.gmra.mrb[8].mxu1 %vm393_vm0, %v13914_v9  ;;  %16265 = vst [vmem:[#allocation18_spill] sm:$0xff] %v13924_v50  ;;  %1541 = vst.msk [vmem:[#allocation2 + $0x2f8] sm:$0xff] %vm393_vm0, %v1445_v34  ;;  %v13928_v42 = vshrl.u32 %v13914_v9, 16  ;;  %v13932_v23 = vsel %vm16266_vm8, %v4400_v63, %v4402_v17 }
 0x1b2   : >> { %16267 = vst [vmem:[#allocation19_spill] sm:$0xff] %v13932_v23  ;;  %v2156_v15 = vshll.u32 %v13914_v9, 16  ;;  %v2003_v1 = vld [vmem:[#allocation3 + $0x68] sm:$0xf]  ;;  %v2009_v28 = vld [vmem:[#allocation2 + $0x2d0] ss:$2 sm:$0xff]  ;;  %v13953_v31 = vor.u32 %v4105_v0, %v4102_v25 }
 0x1b3   : >> { %v1994_v55 = vrot.slane %v1992_v57, 4  ;;  %v1997_v43 = vrot.slane %v1995_v24, 5  ;;  %1539 = vst.msk [vmem:[#allocation2 + $0x2e8] sm:$0xff] %vm393_vm0, %v1443_v41  ;;  %v3218_v34 = vrot.slane %v13928_v42, 1  ;;  %v3504_v50 = vrot.slane %v13914_v9, 2 }
 0x1b4   : >> { %v4111_v63 = vrot.slane %v13928_v42, 2  ;;  %v2013_v57 = vld [vmem:[#allocation2 + $0x2d1] ss:$2 sm:$0xff]  ;;  %v2158_v24 = vrot.slane %v2156_v15, 1  ;;  %v3221_v45 = vrot.slane %v2156_v15, 2  ;;  %v4114_v19 = vrot.slane %v2156_v15, 3 }
 0x1b5   : >> { %v1998_v23 = vor.u32 %v1997_v43, %v1994_v55  ;;  %v13945_v56 = vsel %vm16255_vm7, %v13863_v18, %v3504_v50  ;;  %v4404_v41 = vrot.slane %v13914_v9, 3  ;;  %v2007_v27 = vld [vmem:[#allocation2 + $0x2c0] ss:$2 sm:$0xff]  ;;  %v2011_v48 = vld [vmem:[#allocation2 + $0x2c1] ss:$2 sm:$0xff]  ;;  %v2023_v55 = vmax.f32 %v2009_v28, %v2013_v57 }
 0x1b6   : >> { %v2159_v5 = vsel %vm1844_vm13, %v2154_v12, %v2158_v24  ;;  %v3222_v43 = vor.u32 %v3221_v45, %v3218_v34  ;;  %v4115_v15 = vor.u32 %v4114_v19, %v4111_v63  ;;  %v2022_v18 = vmax.f32 %v2007_v27, %v2011_v48 }
 0x1b7   : >> { %v2001_v30 = vsel %vm13387_vm1, %v1998_v23, %v2000_v44  ;;  %v2004_v32 = vsel %vm13403_vm5, %v1998_v23, %v2003_v1  ;;  %11544 = vmatprep.mubr.msk.bf16.mxu0 %vm393_vm0, %v2159_v5  ;;  %v13957_v51 = vsel %vm16268_vm9, %v4402_v17, %v4404_v41  ;;  %v2562_v44 = vld [vmem:[#allocation3] sm:$0xfe]  ;;  %vm16270_vm1 = vsmask.f32 5376  ;;  %v13967_v17 = vld [vmem:[#allocation3 + $0x8] sm:$0xff]  ;;  %vm16272_vm5 = vmmov %vm16255_vm7 }
 0x1b8   : >> { %2002 = vst [vmem:[#allocation3 + $0x60] sm:$0xf8] %v2001_v30  ;;  %2005 = vst [vmem:[#allocation3 + $0x68] sm:$0xf] %v2004_v32  ;;  %v2017_v53 = vld [vmem:[#allocation2 + $0x2f0] ss:$2 sm:$0xff]  ;;  %v13961_v8 = vsel %vm1800_vm15, %v13867_v2, %v3222_v43  ;;  %v13965_v25 = vsel %vm16270_vm1, %v13953_v31, %v4115_v15 }
 0x1b9   : >> { %16269 = vst [vmem:[#allocation20_spill] sm:$0xff] %v13957_v51  ;;  %v2021_v12 = vld [vmem:[#allocation2 + $0x2f1] ss:$2 sm:$0xff]  ;;  %16271 = vst [vmem:[#allocation21_spill] sm:$0xff] %v13965_v25  ;;  %v2583_v1 = vrot.slane %v2562_v44, 1  ;;  %v2584_v0 = vrot.slane %v13967_v17, 1 }
 0x1ba   : >> { %v2025_v62 = vmax.f32 %v2017_v53, %v2021_v12  ;;  %v2015_v23 = vld [vmem:[#allocation2 + $0x2e0] ss:$2 sm:$0xff]  ;;  %v2019_v32 = vld [vmem:[#allocation2 + $0x2e1] ss:$2 sm:$0xff]  ;;  %vm16275_vm2 = vmmov %vm16270_vm1 }
 0x1bb   : >> { %v2024_v19 = vmax.f32 %v2015_v23, %v2019_v32  ;;  %v2585_v57 = vsel %vm2582_vm14, %v2583_v1, %v2584_v0  ;;  %vm16288_vm8 = vmmov %vm16272_vm5 }
 0x1bc   : >> { %v2027_v45 = vmax.f32 %v2023_v55, %v2025_v62  ;;  %v2162_v55 = vor.u32 %v13928_v42, %v2158_v24  ;;  %v13992_v42 = vld [vmem:[#allocation3 + $0x18] sm:$0xff]  ;;  %vm16289_vm7 = vmmov %vm16272_vm5 }
 0x1bd   : >> { %v2026_v48 = vmax.f32 %v2022_v18, %v2024_v19  ;;  %v2588_v24 = vrot.slane %v13992_v42, 1  ;;  %vm16291_vm9 = vmmov %vm16272_vm5 }
 0x1bf   : >> { %v13970_v53 = vld [vmem:[#allocation3 + $0x60] sm:$0xff]  ;;  %v2057_v28 = vld [vmem:[#allocation3 + $0x68] sm:$0xf]  ;;  %v2028_v34 = vpack.c.bf16 %v2027_v45, %v2026_v48  ;;  %v13988_v48 = vld [vmem:[#allocation3 + $0x10] sm:$0xff] }
 0x1c0   : >> { %v2168_v2 = vshrl.u32 %v13970_v53, 16  ;;  %11580 = vmatprep.mubr.msk.bf16.mxu1 %vm393_vm0, %v13970_v53  ;;  %v2164_v63 = vshll.u32 %v13970_v53, 16  ;;  %v16211_v27 = vrot.slane %v13970_v53, 2 }
 0x1c1   : >> { %11581 = vmatmul.mubr.msk.bf16.gmra.mrb[12].mxu1 %vm393_vm0, %v2057_v28  ;;  %v2030_v18 = vshrl.u32 %v2028_v34, 16  ;;  %v2033_v30 = vshll.u32 %v2028_v34, 16  ;;  %v2586_v28 = vrot.slane %v13988_v48, 1  ;;  %v2038_v34 = vld [vmem:[#allocation3 + $0x68] sm:$0xf0] }
 0x1c2   : >> { %11588 = vmatprep.mubr.msk.bf16.mxu1 %vm393_vm0, %v2585_v57  ;;  %v2166_v12 = vrot.slane %v2164_v63, 1  ;;  %v3227_v62 = vrot.slane %v2168_v2, 1  ;;  %v3230_v44 = vrot.slane %v2164_v63, 2  ;;  %v13985_v23 = vsel %vm16272_vm5, %v3504_v50, %v16211_v27  ;;  %v2041_v57 = vld [vmem:[#allocation3 + $0x70] sm:$0x1f]  ;;  %v12287_v27 = vld [vmem:[%s16177_s3 + $0x38] sm:$0xff]  }
 0x1c3   : >> { %v4120_v32 = vrot.slane %v2168_v2, 2  ;;  %v2032_v45 = vrot.slane %v2030_v18, 3  ;;  %v2035_v19 = vrot.slane %v2033_v30, 4  ;;  %v4123_v50 = vrot.slane %v2164_v63, 3 }
 0x1c4   : >> { %v2167_v1 = vsel %vm1844_vm13, %v2162_v55, %v2166_v12  ;;  %v13995_v5 = vor.u32 %v3230_v44, %v3227_v62  ;;  %v16273_v18 = vrot.slane %v13970_v53, 3  ;;  %v2587_v25 = vsel %vm2582_vm14, %v2584_v0, %v2586_v28 }
 0x1c5   : >> { %11545 = vmatmul.mubr.msk.bf16.gmra.mrb[116].mxu0 %vm393_vm0, %v2167_v1  ;;  %v2036_v55 = vor.u32 %v2035_v19, %v2032_v45  ;;  %v4124_v51 = vor.u32 %v4123_v50, %v4120_v32 }
 0x1c6   : >> { %v14000_v30 = vsel %vm16274_vm10, %v4404_v41, %v16273_v18  ;;  %v14007_v1 = vsel %vm1800_vm15, %v3222_v43, %v13995_v5  ;;  %v2589_v41 = vsel %vm2582_vm14, %v2586_v28, %v2588_v24  ;;  %v2590_v43 = vrot.slane %v12358_v16, 1 }
 0x1c7   : >> { %v2039_v63 = vsel %vm13447_vm12, %v2036_v55, %v2038_v34  ;;  %v2042_v62 = vsel %vm13456_vm6, %v2036_v55, %v2041_v57  ;;  %v14017_v44 = vsel %vm16275_vm2, %v4115_v15, %v4124_v51  ;;  %v2170_v34 = vor.u32 %v2168_v2, %v2166_v12  ;;  %vm16277_vm6 = vmmov %vm16272_vm5 }
 0x1c8   : >> { %2040 = vst [vmem:[#allocation3 + $0x68] sm:$0xf0] %v2039_v63  ;;  %2043 = vst [vmem:[#allocation3 + $0x70] sm:$0x1f] %v2042_v62  ;;  %v16276_v2 = vrot.slane %v13970_v53, 2 }
 0x1c9   : >> { %11589 = vmatmul.mubr.msk.bf16.vlgmr.msra.gmra.mrb[16].mxu1 %vm393_vm0, %v2587_v25  ;;  %v14026_v25 = vld [vmem:[#allocation3 + $0x28] sm:$0xff]  ;;  %vm16279_vm12 = vmmov %vm16270_vm1 }
 0x1ca   : >> { %11617 = vmatpush3.bf16.msra.mxu1 %v13698_v11  ;;  %11592 = vmatprep.mubr.msk.bf16.mxu1 %vm393_vm0, %v2589_v41  ;;  %v14029_v0 = vrot.slane %v14026_v25, 1  ;;  %v2591_v11 = vsel %vm2582_vm14, %v2588_v24, %v2590_v43  ;;  %vm16292_vm1 = vmmov %vm16272_vm5 }
 0x1cb   : >> { %11618 = vmatprep.subr.bf16.mxu1 %v12287_v27  ;;  %vm16293_vm5 = vmmov %vm16292_vm1 }
 0x1cc   : >> { %v2593_v45 = vsel %vm2582_vm14, %v2590_v43, %v14029_v0  ;;  %v16278_v43 = vrot.slane %v13624_v33, 1  ;;  %vm16294_vm10 = vmmov %vm16292_vm1 }
 0x1cd   : >> { %vm16295_vm2 = vmmov %vm16292_vm1 }
 0x1ce   : >> { %11619 = vmatpush3.bf16.msra.mxu1 %v12287_v27 }
 0x1cf   : >> { %11648 = vmatprep.subr.bf16.mxu1 %v14024_v13  ;;  %v2062_v15 = vld [vmem:[#allocation3 + $0x68] sm:$0x1f]  ;;  %v14055_v62 = vld [vmem:[#allocation3 + $0x70] sm:$0xff] }
 0x1d0   : >> { %v14033_v32 = vld [vmem:[#allocation3 + $0x68] sm:$0xff]  ;;  %v2172_v19 = vshll.u32 %v2062_v15, 16  ;;  %v2176_v27 = vshrl.u32 %v2062_v15, 16 }
 0x1d1   : >> { %11593 = vmatmul.mubr.msk.bf16.gmra.mrb[20].mxu1 %vm393_vm0, %v2591_v11  ;;  %v3234_v28 = vshrl.u32 %v14033_v32, 16  ;;  %v3237_v50 = vshll.u32 %v14033_v32, 16  ;;  %v14043_v55 = vrot.slane %v14033_v32, 2  ;;  %v2595_v11 = vsel %vm2582_vm14, %v14029_v0, %v16278_v43 }
 0x1d2   : >> { %11596 = vmatprep.mubr.msk.bf16.mxu1 %vm393_vm0, %v2593_v45  ;;  %v2174_v57 = vrot.slane %v2172_v19, 1  ;;  %v12360_v45 = vld [vmem:[#allocation3] sm:$0xff] }
 0x1d3   : >> { %v4129_v63 = vrot.slane %v3234_v28, 2  ;;  %v14053_v12 = vsel %vm16277_vm6, %v16276_v2, %v14043_v55  ;;  %v4132_v41 = vrot.slane %v3237_v50, 3  ;;  %v2606_v2 = vrot.slane %v13970_v53, 1  ;;  %vm16296_vm6 = vmmov %vm16292_vm1 }
 0x1d4   : >> { %v2175_v24 = vsel %vm1844_vm13, %v2170_v34, %v2174_v57  ;;  %v2178_v18 = vor.u32 %v2176_v27, %v2174_v57  ;;  %v4408_v34 = vrot.slane %v14033_v32, 3  ;;  %v16212_v57 = vrot.slane %v14055_v62, 3 }
 0x1d5   : >> { %11548 = vmatprep.mubr.msk.bf16.mxu0 %vm393_vm0, %v2175_v24  ;;  %v14065_v19 = vor.u32 %v4132_v41, %v4129_v63  ;;  %v16280_v24 = vrot.slane %v13970_v53, 3  ;;  %v2608_v41 = vrot.slane %v2062_v15, 1  ;;  %v12362_v15 = vld [vmem:[#allocation3 + $0x18] sm:$0xff] }
 0x1d6   : >> { %11549 = vmatmul.mubr.msk.bf16.gmra.mrb[120].mxu0 %vm393_vm0, %v2178_v18  ;;  %v14083_v63 = vsel %vm16264_vm3, %v4408_v34, %v16212_v57  ;;  %vm16300_vm3 = vmmov %vm16292_vm1 }
 0x1d7   : >> { %11556 = vmatprep.mubr.msk.bf16.mxu0 %vm393_vm0, %v12360_v45  ;;  %v14073_v27 = vsel %vm16279_vm12, %v4124_v51, %v14065_v19  ;;  %v14078_v18 = vsel %vm16281_vm4, %v16280_v24, %v4408_v34  ;;  %v2604_v51 = vrot.slane %v13914_v9, 1  ;;  %v2871_v34 = vrot.slane %v12362_v15, 1  ;;  %v12363_v24 = vld [vmem:[#allocation3 + $0x20] sm:$0xff]  ;;  %vm16297_vm12 = vmmov %vm16292_vm1 }
 0x1d8   : >> { %vm16298_vm4 = vmmov %vm16292_vm1 }
 0x1d9   : >> { %11597 = vmatmul.mubr.msk.bf16.gmra.mrb[24].mxu1 %vm393_vm0, %v2595_v11  ;;  %v2607_v9 = vsel %vm2582_vm14, %v2604_v51, %v2606_v2 }
 0x1da   : >> { %11600 = vmatprep.mubr.msk.bf16.mxu1 %vm393_vm0, %v13709_v21 }
 0x1de   : >> { %11557 = vmatmul.mubr.msk.bf16.vlgmr.msra.gmra.mrb[96].mxu0 %vm393_vm0, %v13967_v17  ;;  %v16282_v17 = vrot.slane %v13829_v40, 1  ;;  %v12361_v40 = vld [vmem:[#allocation3 + $0x10] sm:$0xff] }
 0x1df   : >> { %11560 = vmatprep.mubr.msk.bf16.mxu0 %vm393_vm0, %v13988_v48  ;;  %v2869_v43 = vrot.slane %v12361_v40, 1 }
 0x1e0   : >> { %v2605_v48 = vsel %vm2582_vm14, %v16282_v17, %v2604_v51  ;;  %v2873_v51 = vrot.slane %v12363_v24, 1  ;;  %v12289_v17 = vld [vmem:[%s16177_s3 + $0x48] sm:$0xff]  }
 0x1e1   : >> { %11601 = vmatmul.mubr.msk.bf16.gmra.mrb[0].mxu1 %vm393_vm0, %v13714_v22 }
 0x1e2   : >> { %11604 = vmatprep.mubr.msk.bf16.mxu1 %vm393_vm0, %v13789_v7  ;;  %v2874_v57 = vsel %vm2582_vm14, %v2871_v34, %v2873_v51 }
 0x1e6   : >> { %11561 = vmatmul.mubr.msk.bf16.gmra.mrb[100].mxu0 %vm393_vm0, %v13992_v42  ;;  %v2609_v42 = vsel %vm2582_vm14, %v2606_v2, %v2608_v41 }
 0x1e7   : >> { %11564 = vmatprep.mubr.msk.bf16.mxu0 %vm393_vm0, %v12358_v16  ;;  %v2835_v16 = vld [vmem:[#allocation3 + $0x8] sm:$0xfe] }
 0x1e8   : >> { %v2868_v45 = vrot.slane %v2835_v16, 1 }
 0x1e9   : >> { %11605 = vmatmul.mubr.msk.bf16.gmra.mrb[4].mxu1 %vm393_vm0, %v13853_v35 }
 0x1ea   : >> { %11608 = vmatprep.mubr.msk.bf16.mxu1 %vm393_vm0, %v2605_v48  ;;  %v2870_v53 = vsel %vm2582_vm14, %v2868_v45, %v2869_v43  ;;  %v2876_v45 = vsel %vm2582_vm14, %v2873_v51, %v14029_v0  ;;  %v2891_v0 = vrot.slane %v14033_v32, 1  ;;  %v16283_v51 = vshrl.u32 %v13442_v3, 16 }
 0x1ee   : >> { %11565 = vmatmul.mubr.msk.bf16.gmra.mrb[104].mxu0 %vm393_vm0, %v14026_v25 }
 0x1f1   : >> { %11609 = vmatmul.mubr.msk.bf16.gmra.mrb[8].mxu1 %vm393_vm0, %v2607_v9 }
 0x1f2   : >> { %11612 = vmatprep.mubr.msk.bf16.mxu1 %vm393_vm0, %v2609_v42  ;;  %v2872_v42 = vsel %vm2582_vm14, %v2869_v43, %v2871_v34  ;;  %v3138_v43 = vshll.u32 %v12361_v40, 16 }
 0x1f9   : >> { %11613 = vmatmul.mubr.msk.bf16.gmra.mrb[28].mxu1 %vm393_vm0, %v2608_v41  ;;  %v12290_v41 = vld [vmem:[%s16177_s3 + $0x50] sm:$0xff]  }
 0x1fa   : >> { %11620 = vmatprep.mubr.msk.bf16.mxu1 %vm393_vm0, %v2870_v53  ;;  %v3130_v53 = vshll.u32 %v2835_v16, 16 }
 0x201   : >> { %11621 = vmatmul.mubr.msk.bf16.vlgmr.msra.gmra.mrb[16].mxu1 %vm393_vm0, %v2872_v42  ;;  %v16285_v42 = vshrl.u32 %v13500_v20, 16 }
 0x202   : >> { %11649 = vmatpush3.bf16.msra.mxu1 %v14024_v13  ;;  %11624 = vmatprep.mubr.msk.bf16.mxu1 %vm393_vm0, %v2874_v57  ;;  %v2848_v13 = vld [vmem:[#allocation3 + $0x70] sm:$0x1f]  ;;  %v3135_v57 = vshrl.u32 %v12361_v40, 16  ;;  %v16284_v40 = vshll.u32 %v13442_v3, 16 }
 0x203   : >> { %11650 = vmatprep.subr.bf16.mxu1 %v12289_v17 }
 0x204   : >> { %v3137_v15 = vrot.slane %v3135_v57, 1 }
 0x206   : >> { %11651 = vmatpush3.bf16.msra.mxu1 %v12289_v17  ;;  %v3146_v17 = vrot.slane %v16283_v51, 1  ;;  %v3492_v51 = vrot.slane %v14026_v25, 2 }
 0x207   : >> { %11680 = vmatprep.subr.bf16.mxu1 %v12290_v41 }
 0x209   : >> { %11625 = vmatmul.mubr.msk.bf16.gmra.mrb[20].mxu1 %vm393_vm0, %v2876_v45  ;;  %v3155_v45 = vrot.slane %v16285_v42, 1 }
 0x20a   : >> { %11628 = vmatprep.mubr.msk.bf16.mxu1 %vm393_vm0, %v2595_v11  ;;  %v2893_v11 = vrot.slane %v2848_v13, 1  ;;  %v16286_v13 = vshll.u32 %v13500_v20, 16  ;;  %v12292_v20 = vld [vmem:[%s16177_s3 + $0x60] sm:$0xff]  }
 0x211   : >> { %11629 = vmatmul.mubr.msk.bf16.gmra.mrb[24].mxu1 %vm393_vm0, %v13709_v21  ;;  %v3127_v21 = vshrl.u32 %v2835_v16, 16  ;;  %v3149_v16 = vrot.slane %v16284_v40, 2 }
 0x212   : >> { %11632 = vmatprep.mubr.msk.bf16.mxu1 %vm393_vm0, %v13714_v22  ;;  %v2892_v22 = vsel %vm2582_vm14, %v2606_v2, %v2891_v0 }
 0x213   : >> { %v3150_v57 = vor.u32 %v3149_v16, %v3146_v17  ;;  %v3493_v17 = vsel %vm16289_vm7, %v13534_v4, %v3492_v51  ;;  %vm16302_vm7 = vmmov %vm16292_vm1 }
 0x219   : >> { %11633 = vmatmul.mubr.msk.bf16.gmra.mrb[0].mxu1 %vm393_vm0, %v13789_v7  ;;  %v2894_v7 = vsel %vm2582_vm14, %v2891_v0, %v2893_v11  ;;  %v3158_v0 = vrot.slane %v16286_v13, 2 }
 0x21a   : >> { %11636 = vmatprep.mubr.msk.bf16.mxu1 %vm393_vm0, %v13853_v35  ;;  %v3140_v35 = vrot.slane %v3138_v43, 2 }
 0x21b   : >> { %v3159_v43 = vor.u32 %v3158_v0, %v3155_v45 }
 0x21c   : >> { %v3141_v34 = vor.u32 %v3140_v35, %v3137_v15  ;;  %v3236_v15 = vrot.slane %v3234_v28, 1 }
 0x221   : >> { %11637 = vmatmul.mubr.msk.bf16.gmra.mrb[4].mxu1 %vm393_vm0, %v2605_v48  ;;  %v3129_v48 = vrot.slane %v3127_v21, 1  ;;  %v12291_v21 = vld [vmem:[%s16177_s3 + $0x58] sm:$0xff]  }
 0x222   : >> { %11640 = vmatprep.mubr.msk.bf16.mxu1 %vm393_vm0, %v2607_v9  ;;  %v3132_v9 = vrot.slane %v3130_v53, 2  ;;  %v3151_v53 = vsel %vm1800_vm15, %v3141_v34, %v3150_v57 }
 0x224   : >> { %v3133_v24 = vor.u32 %v3132_v9, %v3129_v48 }
 0x226   : >> { %v3142_v2 = vsel %vm1800_vm15, %v3133_v24, %v3141_v34 }
 0x229   : >> { %11641 = vmatmul.mubr.msk.bf16.gmra.mrb[8].mxu1 %vm393_vm0, %v2892_v22  ;;  %v3169_v22 = vsel %vm1800_vm15, %v3159_v43, %v13668_v61 }
 0x22a   : >> { %11644 = vmatprep.mubr.msk.bf16.mxu1 %vm393_vm0, %v2894_v7 }
 0x231   : >> { %11645 = vmatmul.mubr.msk.bf16.gmra.mrb[32].mxu1 %vm393_vm0, %v2893_v11  ;;  %v3160_v11 = vsel %vm1800_vm15, %v3150_v57, %v3159_v43 }
 0x232   : >> { %11652 = vmatprep.mubr.msk.bf16.mxu1 %vm393_vm0, %v3142_v2 }
 0x239   : >> { %11653 = vmatmul.mubr.msk.bf16.vlgmr.msra.gmra.mrb[16].mxu1 %vm393_vm0, %v3151_v53 }
 0x23a   : >> { %11681 = vmatpush3.bf16.msra.mxu1 %v12290_v41  ;;  %11656 = vmatprep.mubr.msk.bf16.mxu1 %vm393_vm0, %v3160_v11  ;;  %v3120_v41 = vld [vmem:[#allocation3 + $0x70] sm:$0x3f] }
 0x23b   : >> { %11682 = vmatprep.subr.bf16.mxu1 %v12291_v21  ;;  %v3243_v7 = vshrl.u32 %v3120_v41, 16  ;;  %v3246_v61 = vshll.u32 %v3120_v41, 16  ;;  %v3510_v13 = vrot.slane %v3120_v41, 2  ;;  %v12295_v41 = vld [vmem:[%s16177_s3 + $0x78] sm:$0xff]  }
 0x23e   : >> { %11683 = vmatpush3.bf16.msra.mxu1 %v12291_v21  ;;  %v14254_v21 = vld [vmem:[#allocation3 + $0x10] sm:$0xfc] }
 0x23f   : >> { %11712 = vmatprep.subr.bf16.mxu1 %v12292_v20  ;;  %v3770_v53 = vrot.slane %v14254_v21, 2 }
 0x241   : >> { %11657 = vmatmul.mubr.msk.bf16.gmra.mrb[20].mxu1 %vm393_vm0, %v3169_v22  ;;  %v3772_v11 = vsel %vm16293_vm5, %v3770_v53, %v13467_v29 }
 0x242   : >> { %11660 = vmatprep.mubr.msk.bf16.mxu1 %vm393_vm0, %v13703_v6  ;;  %v3239_v6 = vrot.slane %v3237_v50, 2  ;;  %v3476_v50 = vld [vmem:[#allocation3 + $0x8] sm:$0xfc] }
 0x243   : >> { %v3485_v34 = vrot.slane %v3476_v50, 2 }
 0x244   : >> { %v3240_v28 = vor.u32 %v3239_v6, %v3236_v15  ;;  %v14275_v6 = vld [vmem:[%s16177_s3 + $0x80] sm:$0xff]  }
 0x246   : >> { %v3241_v32 = vsel %vm1800_vm15, %v13995_v5, %v3240_v28  ;;  %v12293_v5 = vld [vmem:[%s16177_s3 + $0x68] sm:$0xff]  }
 0x249   : >> { %11661 = vmatmul.mubr.msk.bf16.gmra.mrb[24].mxu1 %vm393_vm0, %v13748_v54  ;;  %v3245_v54 = vrot.slane %v3243_v7, 1 }
 0x24a   : >> { %11664 = vmatprep.mubr.msk.bf16.mxu1 %vm393_vm0, %v13752_v46  ;;  %v3248_v46 = vrot.slane %v3246_v61, 2 }
 0x24c   : >> { %v3249_v9 = vor.u32 %v3248_v46, %v3245_v54 }
 0x251   : >> { %11665 = vmatmul.mubr.msk.bf16.gmra.mrb[0].mxu1 %vm393_vm0, %v13809_v60 }
 0x252   : >> { %11668 = vmatprep.mubr.msk.bf16.mxu1 %vm393_vm0, %v13886_v59 }
 0x258   : >> { %v14181_v35 = vpop.f32.mrb[108].mxu0 }
 0x259   : >> { %11669 = vmatmul.mubr.msk.bf16.gmra.mrb[4].mxu1 %vm393_vm0, %v13961_v8  ;;  %v14185_v60 = vpop.f32.mrb[109].mxu0  ;;  %v3250_v8 = vsel %vm1800_vm15, %v3240_v28, %v3249_v9  ;;  %v3777_v28 = vrot.slane %v13876_v52, 2 }
 0x25a   : >> { %11672 = vmatprep.mubr.msk.bf16.mxu1 %vm393_vm0, %v14007_v1  ;;  %v14189_v59 = vpop.f32.mrb[110].mxu0  ;;  %v16287_v1 = vrot.slane %v13436_v58, 2  ;;  %v12294_v58 = vld [vmem:[%s16177_s3 + $0x70] sm:$0xff]  }
 0x25b   : >> { %v14191_v48 = vpop.f32.mrb[111].mxu0 }
 0x25c   : >> { %v3487_v24 = vsel %vm16288_vm8, %v3485_v34, %v16287_v1  ;;  %vm16301_vm8 = vmmov %vm16292_vm1 }
 0x261   : >> { %11673 = vmatmul.mubr.msk.bf16.gmra.mrb[8].mxu1 %vm393_vm0, %v3241_v32 }
 0x262   : >> { %11676 = vmatprep.mubr.msk.bf16.mxu1 %vm393_vm0, %v3250_v8 }
 0x269   : >> { %11677 = vmatmul.mubr.msk.bf16.gmra.mrb[36].mxu1 %vm393_vm0, %v3249_v9  ;;  %v3779_v9 = vrot.slane %v13888_v36, 2 }
 0x26a   : >> { %11684 = vmatprep.mubr.msk.bf16.mxu1 %vm393_vm0, %v3487_v24  ;;  %v3781_v24 = vrot.slane %v13893_v37, 2 }
 0x26b   : >> { %v3780_v8 = vsel %vm16296_vm6, %v3777_v28, %v3779_v9 }
 0x271   : >> { %11685 = vmatmul.mubr.msk.bf16.vlgmr.msra.gmra.mrb[16].mxu1 %vm393_vm0, %v13479_v38  ;;  %v16290_v38 = vrot.slane %v13624_v33, 2 }
 0x272   : >> { %11713 = vmatpush3.bf16.msra.mxu1 %v12292_v20  ;;  %11688 = vmatprep.mubr.msk.bf16.mxu1 %vm393_vm0, %v13546_v26  ;;  %v14261_v20 = vld [vmem:[#allocation3 + $0x28] sm:$0xff] }
 0x273   : >> { %11714 = vmatprep.subr.bf16.mxu1 %v12293_v5  ;;  %v3495_v16 = vsel %vm16291_vm9, %v3492_v51, %v16290_v38  ;;  %v3775_v22 = vrot.slane %v14261_v20, 2  ;;  %v3782_v51 = vsel %vm16297_vm12, %v3779_v9, %v3781_v24  ;;  %v4029_v9 = vshrl.u32 %v14254_v21, 16 }
 0x274   : >> { %vm16304_vm9 = vsmask.f32 5376 }
 0x275   : >> { %v3776_v7 = vsel %vm16294_vm10, %v13534_v4, %v3775_v22  ;;  %v3778_v32 = vsel %vm16295_vm2, %v3775_v22, %v3777_v28  ;;  %v3750_v22 = vld [vmem:[#allocation3 + $0x78] sm:$0x3f] }
 0x276   : >> { %11715 = vmatpush3.bf16.msra.mxu1 %v12293_v5 }
 0x277   : >> { %11744 = vmatprep.subr.bf16.mxu1 %v12294_v58  ;;  %v14216_v40 = vpop.f32.mrb[112].mxu0 }
 0x278   : >> { %v14222_v2 = vpop.f32.mrb[113].mxu0 }
 0x279   : >> { %11689 = vmatmul.mubr.msk.bf16.gmra.mrb[20].mxu1 %vm393_vm0, %v3493_v17  ;;  %v14225_v42 = vpop.f32.mrb[114].mxu0 }
 0x27a   : >> { %11692 = vmatprep.mubr.msk.bf16.mxu1 %vm393_vm0, %v3495_v16  ;;  %v14227_v25 = vpop.f32.mrb[115].mxu0 }
 0x281   : >> { %11693 = vmatmul.mubr.msk.bf16.gmra.mrb[24].mxu1 %vm393_vm0, %v13762_v49 }
 0x282   : >> { %11696 = vmatprep.mubr.msk.bf16.mxu1 %vm393_vm0, %v13765_v14 }
 0x289   : >> { %11697 = vmatmul.mubr.msk.bf16.gmra.mrb[0].mxu1 %vm393_vm0, %v13795_v47  ;;  %v3511_v47 = vsel %vm16292_vm1, %v14043_v55, %v3510_v13  ;;  %vm16307_vm1 = vmmov %vm16304_vm9 }
 0x28a   : >> { %11700 = vmatprep.mubr.msk.bf16.mxu1 %vm393_vm0, %v13874_v10  ;;  %vm16308_vm5 = vmmov %vm16307_vm1 }
 0x28b   : >> { %vm16309_vm10 = vmmov %vm16307_vm1 }
 0x28c   : >> { %vm16310_vm2 = vmmov %vm16307_vm1 }
 0x28d   : >> { %vm16311_vm6 = vmmov %vm16307_vm1 }
 0x28e   : >> { %vm16312_vm12 = vmmov %vm16307_vm1 }
 0x291   : >> { %11701 = vmatmul.mubr.msk.bf16.gmra.mrb[4].mxu1 %vm393_vm0, %v13945_v56 }
 0x292   : >> { %11704 = vmatprep.mubr.msk.bf16.mxu1 %vm393_vm0, %v13985_v23 }
 0x294   : >> { %v11582_v33 = vpop.f32.mrb[12].mxu1 }
 0x295   : >> { %v2548_v45 = vpop.f32.mrb[13].mxu1 }
 0x296   : >> { %v11583_v0 = vpop.f32.mrb[14].mxu1 }
 0x297   : >> { %v2551_v49 = vpop.f32.mrb[15].mxu1 }
 0x298   : >> { %v14241_v57 = vpop.f32.mrb[116].mxu0 }
 0x299   : >> { %v14243_v14 = vpop.f32.mrb[117].mxu0  ;;  %11705 = vmatmul.mubr.msk.bf16.gmra.mrb[8].mxu1 %vm393_vm0, %v14053_v12 }
 0x29a   : >> { %v14249_v10 = vpop.f32.mrb[118].mxu0  ;;  %11708 = vmatprep.mubr.msk.bf16.mxu1 %vm393_vm0, %v3511_v47 }
 0x29b   : >> { %v14252_v43 = vpop.f32.mrb[119].mxu0 }
 0x2a1   : >> { %11709 = vmatmul.mubr.msk.bf16.gmra.mrb[40].mxu1 %vm393_vm0, %v3510_v13  ;;  %v16299_v13 = vld [vmem:[#allocation14_spill] sm:$0xff] }
 0x2a2   : >> { %11716 = vmatprep.mubr.msk.bf16.mxu1 %vm393_vm0, %v3772_v11 }
 0x2a9   : >> { %11717 = vmatmul.mubr.msk.bf16.vlgmr.msra.gmra.mrb[16].mxu1 %vm393_vm0, %v13546_v26  ;;  %v11550_v61 = vpop.f32.mrb[120].mxu0 }
 0x2aa   : >> { %11745 = vmatpush3.bf16.msra.mxu1 %v12294_v58  ;;  %11720 = vmatprep.mubr.msk.bf16.mxu1 %vm393_vm0, %v3776_v7  ;;  %v2557_v29 = vadd.f32 %v11582_v33, %v11550_v61  ;;  %v2363_v15 = vpop.f32.mrb[121].mxu0  ;;  %v3783_v58 = vrot.slane %v13898_v39, 2  ;;  %v3793_v7 = vrot.slane %v14055_v62, 2 }
 0x2ab   : >> { %11746 = vmatprep.subr.bf16.mxu1 %v12295_v41  ;;  %v2549_v54 = vadd.f32 %v2548_v45, %v2363_v15  ;;  %v11551_v46 = vpop.f32.mrb[122].mxu0 }
 0x2ac   : >> { %v2366_v26 = vpop.f32.mrb[123].mxu0  ;;  %v3784_v17 = vsel %vm16298_vm4, %v3781_v24, %v3783_v58  ;;  %v3786_v0 = vsel %vm16300_vm3, %v3783_v58, %v16299_v13  ;;  %v4055_v24 = vshrl.u32 %v14261_v20, 16  ;;  %v4058_v58 = vshll.u32 %v14261_v20, 16  ;;  %v12297_v20 = vld [vmem:[%s16177_s3 + $0x88] sm:$0xff]   ;;  %vm16314_vm4 = vmmov %vm16307_vm1 }
 0x2ad   : >> { %v2552_v4 = vadd.f32 %v2551_v49, %v2366_v26  ;;  %v4064_v13 = vshrl.u32 %v13876_v52, 16  ;;  %vm16315_vm3 = vmmov %vm16307_vm1 }
 0x2ae   : >> { %11747 = vmatpush3.bf16.msra.mxu1 %v12295_v41 }
 0x2af   : >> { %11776 = vmatprep.subr.bf16.mxu1 %v14275_v6 }
 0x2b1   : >> { %11721 = vmatmul.mubr.msk.bf16.gmra.mrb[20].mxu1 %vm393_vm0, %v3778_v32  ;;  %v14283_v50 = vpop.f32.mrb[96].mxu0  ;;  %v4032_v32 = vshll.u32 %v14254_v21, 16  ;;  %v16303_v21 = vld [vmem:[#allocation9_spill] sm:$0xff] }
 0x2b2   : >> { %11724 = vmatprep.mubr.msk.bf16.mxu1 %vm393_vm0, %v3780_v8  ;;  %v14286_v34 = vpop.f32.mrb[97].mxu0  ;;  %v4031_v8 = vrot.slane %v4029_v9, 2 }
 0x2b3   : >> { %v14288_v1 = vpop.f32.mrb[98].mxu0 }
 0x2b4   : >> { %v14291_v5 = vpop.f32.mrb[99].mxu0 }
 0x2b9   : >> { %11725 = vmatmul.mubr.msk.bf16.gmra.mrb[24].mxu1 %vm393_vm0, %v3782_v51  ;;  %v14297_v38 = vpop.f32.mrb[100].mxu0 }
 0x2ba   : >> { %11728 = vmatprep.mubr.msk.bf16.mxu1 %vm393_vm0, %v3784_v17  ;;  %v14300_v16 = vpop.f32.mrb[101].mxu0  ;;  %v4057_v17 = vrot.slane %v4055_v24, 2  ;;  %v4094_v24 = vshll.u32 %v13898_v39, 16 }
 0x2bb   : >> { %v14302_v33 = vpop.f32.mrb[102].mxu0 }
 0x2bc   : >> { %v14304_v45 = vpop.f32.mrb[103].mxu0 }
 0x2c1   : >> { %11729 = vmatmul.mubr.msk.bf16.gmra.mrb[0].mxu1 %vm393_vm0, %v3786_v0  ;;  %v14309_v49 = vpop.f32.mrb[104].mxu0  ;;  %v4067_v0 = vshll.u32 %v13876_v52, 16 }
 0x2c2   : >> { %11732 = vmatprep.mubr.msk.bf16.mxu1 %vm393_vm0, %v13945_v56  ;;  %v14313_v47 = vpop.f32.mrb[105].mxu0  ;;  %v3795_v56 = vrot.slane %v3750_v22, 2 }
 0x2c3   : >> { %v14315_v53 = vpop.f32.mrb[106].mxu0 }
 0x2c4   : >> { %v14317_v11 = vpop.f32.mrb[107].mxu0 }
 0x2c9   : >> { %11733 = vmatmul.mubr.msk.bf16.gmra.mrb[4].mxu1 %vm393_vm0, %v13985_v23 }
 0x2ca   : >> { %11736 = vmatprep.mubr.msk.bf16.mxu1 %vm393_vm0, %v14053_v12  ;;  %v3794_v12 = vsel %vm16301_vm8, %v14043_v55, %v3793_v7  ;;  %v4060_v55 = vrot.slane %v4058_v58, 3  ;;  %vm16317_vm8 = vcmask 1044480  }
 0x2cc   : >> { %v11614_v41 = vpop.f32.mrb[28].mxu1  ;;  %v4061_v22 = vor.u32 %v4060_v55, %v4057_v17  ;;  %v4096_v17 = vrot.slane %v4094_v24, 3 }
 0x2cd   : >> { %v14324_v61 = vadd.f32 %v11614_v41, %v2557_v29  ;;  %v2794_v15 = vpop.f32.mrb[29].mxu1  ;;  %v3796_v29 = vsel %vm16302_vm7, %v3793_v7, %v3795_v56  ;;  %v4073_v41 = vshrl.u32 %v13888_v36, 16  ;;  %v4076_v7 = vshll.u32 %v13888_v36, 16  ;;  %vm16327_vm7 = vmmov %vm16317_vm8 }
 0x2ce   : >> { %v14326_v46 = vadd.f32 %v2794_v15, %v2549_v54  ;;  %v11615_v28 = vpop.f32.mrb[30].mxu1  ;;  %v4034_v54 = vrot.slane %v4032_v32, 3  ;;  %v4066_v15 = vrot.slane %v4064_v13, 2  ;;  %v4082_v36 = vshrl.u32 %v13893_v37, 16 }
 0x2cf   : >> { %v2797_v26 = vpop.f32.mrb[31].mxu1  ;;  %v16305_v28 = vld [vmem:[#allocation12_spill] sm:$0xff]  ;;  %v4075_v32 = vrot.slane %v4073_v41, 2 }
 0x2d0   : >> { %v14330_v23 = vadd.f32 %v2797_v26, %v2552_v4  ;;  %v4035_v51 = vor.u32 %v4034_v54, %v4031_v8  ;;  %v16306_v26 = vld [vmem:[#allocation10_spill] sm:$0xff]  ;;  %v4091_v54 = vshrl.u32 %v13898_v39, 16  ;;  %v4022_v41 = vld [vmem:[#allocation3 + $0x78] sm:$0x7f] }
 0x2d1   : >> { %11737 = vmatmul.mubr.msk.bf16.gmra.mrb[8].mxu1 %vm393_vm0, %v3794_v12  ;;  %v4062_v9 = vsel %vm16307_vm1, %v16306_v26, %v4061_v22  ;;  %v4078_v12 = vrot.slane %v4076_v7, 3  ;;  %v4136_v7 = vshrl.u32 %v14055_v62, 16  ;;  %vm4753_vm1 = vcmask 519169  }
 0x2d2   : >> { %11740 = vmatprep.mubr.msk.bf16.mxu1 %vm393_vm0, %v3796_v29  ;;  %v4044_v4 = vsel %vm16304_vm9, %v4035_v51, %v16303_v21  ;;  %v4085_v29 = vshll.u32 %v13893_v37, 16  ;;  %v4084_v51 = vrot.slane %v4082_v36, 2  ;;  %vm4700_vm9 = vcmask 523264  }
 0x2d3   : >> { %v4079_v8 = vor.u32 %v4078_v12, %v4075_v32 }
 0x2d4   : >> { %v4087_v21 = vrot.slane %v4085_v29, 3 }
 0x2d6   : >> { %v4088_v55 = vor.u32 %v4087_v21, %v4084_v51 }
 0x2d8   : >> { %v4089_v13 = vsel %vm16310_vm2, %v4079_v8, %v4088_v55 }
 0x2d9   : >> { %11741 = vmatmul.mubr.msk.bf16.gmra.mrb[44].mxu1 %vm393_vm0, %v3795_v56  ;;  %v4069_v56 = vrot.slane %v4067_v0, 3 }
 0x2da   : >> { %11748 = vmatprep.mubr.msk.bf16.mxu1 %vm393_vm0, %v4044_v4  ;;  %v4093_v4 = vrot.slane %v4091_v54, 2 }
 0x2db   : >> { %v4070_v52 = vor.u32 %v4069_v56, %v4066_v15  ;;  %v4145_v15 = vshrl.u32 %v4022_v41, 16  ;;  %v4148_v56 = vshll.u32 %v4022_v41, 16 }
 0x2dc   : >> { %v4097_v37 = vor.u32 %v4096_v17, %v4093_v4  ;;  %v16321_v4 = vld [vmem:[#allocation16_spill] sm:$0xff]  ;;  %v16322_v17 = vld [vmem:[#allocation17_spill] sm:$0xff] }
 0x2dd   : >> { %v4071_v58 = vsel %vm16308_vm5, %v4061_v22, %v4070_v52  ;;  %v16313_v22 = vld [vmem:[#allocation21_spill] sm:$0xff]  ;;  %v4150_v32 = vrot.slane %v4148_v56, 3  ;;  %vm4758_vm5 = vcmask 517120  }
 0x2de   : >> { %v4098_v39 = vsel %vm16311_vm6, %v4088_v55, %v4097_v37  ;;  %v4107_v0 = vsel %vm16312_vm12, %v4097_v37, %v13953_v31  ;;  %v16324_v55 = vld [vmem:[#allocation19_spill] sm:$0xff]  ;;  %v16325_v37 = vld [vmem:[#allocation20_spill] sm:$0xff]  ;;  %vm16331_vm6 = vsmask.f32 1280 }
 0x2df   : >> { %vm14507_vm12 = vmand %vm4758_vm5, %vm16331_vm6  ;;  %vm16340_vm6 = vsmask.f32 7950 }
 0x2e1   : >> { %11749 = vmatmul.mubr.msk.bf16.vlgmr.msra.gmra.mrb[16].mxu1 %vm393_vm0, %v16305_v28  ;;  %v4138_v28 = vrot.slane %v4136_v7, 2 }
 0x2e2   : >> { %11777 = vmatpush3.bf16.msra.mxu1 %v14275_v6  ;;  %11752 = vmatprep.mubr.msk.bf16.mxu1 %vm393_vm0, %v4062_v9  ;;  %v4080_v6 = vsel %vm16309_vm10, %v4070_v52, %v4079_v8  ;;  %v4147_v9 = vrot.slane %v4145_v15, 2  ;;  %vm16328_vm10 = vsmask.f32 7942 }
 0x2e3   : >> { %11778 = vmatprep.subr.bf16.mxu1 %v12297_v20  ;;  %vm14498_vm2 = vmand %vm4753_vm1, %vm16328_vm10  ;;  %vm16337_vm1 = vsmask.f32 2304  ;;  %vm4825_vm10 = vcmask 519171  }
 0x2e4   : >> { %v4151_v29 = vor.u32 %v4150_v32, %v4147_v9 }
 0x2e6   : >> { %11779 = vmatpush3.bf16.msra.mxu1 %v12297_v20  ;;  %v4139_v20 = vshll.u32 %v14055_v62, 16 }
 0x2e8   : >> { %v4141_v26 = vrot.slane %v4139_v20, 3 }
 0x2e9   : >> { %11753 = vmatmul.mubr.msk.bf16.gmra.mrb[20].mxu1 %vm393_vm0, %v4071_v58 }
 0x2ea   : >> { %11756 = vmatprep.mubr.msk.bf16.mxu1 %vm393_vm0, %v4080_v6  ;;  %v4142_v12 = vor.u32 %v4141_v26, %v4138_v28  ;;  %v16320_v6 = vld [vmem:[#allocation15_spill] sm:$0xff]  ;;  %v16326_v28 = vrot.slane %v14055_v62, 3 }
 0x2ec   : >> { %v4152_v51 = vsel %vm16315_vm3, %v4142_v12, %v4151_v29  ;;  %vm4794_vm3 = vcmask 518144  }
 0x2ed   : >> { %vm14532_vm5 = vmand %vm4794_vm3, %vm16337_vm1  ;;  %vm16343_vm3 = vsmask.f32 3328 }
 0x2f1   : >> { %11757 = vmatmul.mubr.msk.bf16.gmra.mrb[24].mxu1 %vm393_vm0, %v4089_v13 }
 0x2f2   : >> { %11760 = vmatprep.mubr.msk.bf16.mxu1 %vm393_vm0, %v4098_v39 }
 0x2f9   : >> { %11761 = vmatmul.mubr.msk.bf16.gmra.mrb[0].mxu1 %vm393_vm0, %v4107_v0 }
 0x2fa   : >> { %11764 = vmatprep.mubr.msk.bf16.mxu1 %vm393_vm0, %v16313_v22  ;;  %v4412_v22 = vrot.slane %v4022_v41, 3 }
 0x2fc   : >> { %v4413_v26 = vsel %vm16327_vm7, %v16326_v28, %v4412_v22 }
 0x301   : >> { %11765 = vmatmul.mubr.msk.bf16.gmra.mrb[4].mxu1 %vm393_vm0, %v14017_v44  ;;  %v4143_v44 = vsel %vm16314_vm4, %v14065_v19, %v4142_v12  ;;  %v16319_v19 = vld [vmem:[#allocation13_spill] sm:$0xff]  ;;  %vm4789_vm4 = vcmask 519170  }
 0x302   : >> { %11768 = vmatprep.mubr.msk.bf16.mxu1 %vm393_vm0, %v14073_v27  ;;  %v4378_v27 = vld [vmem:[#allocation3 + $0x10] sm:$0xf8] }
 0x303   : >> { %v4387_v21 = vrot.slane %v4378_v27, 3  ;;  %v14434_v27 = vld [vmem:[%s16179_s5] sm:$0xff]  }
 0x304   : >> { %v11646_v31 = vpop.f32.mrb[32].mxu1 }
 0x305   : >> { %v3119_v52 = vadd.f32 %v11646_v31, %v14324_v61  ;;  %v3079_v36 = vpop.f32.mrb[33].mxu1  ;;  %v16316_v61 = vrot.slane %v13442_v3, 3  ;;  %v16323_v3 = vld [vmem:[#allocation18_spill] sm:$0xff] }
 0x306   : >> { %v3117_v8 = vadd.f32 %v3079_v36, %v14326_v46  ;;  %v11647_v54 = vpop.f32.mrb[34].mxu1 }
 0x307   : >> { %v3082_v24 = vpop.f32.mrb[35].mxu1  ;;  %v4389_v46 = vsel %vm16317_vm8, %v4387_v21, %v16316_v61  ;;  %vm16334_vm8 = vsmask.f32 7946 }
 0x308   : >> { %v3118_v58 = vadd.f32 %v3082_v24, %v14330_v23  ;;  %v16318_v23 = vld [vmem:[#allocation11_spill] sm:$0xff]  ;;  %v12298_v24 = vld [vmem:[%s16179_s5 + $0x20] sm:$0xff]   ;;  %vm14523_vm7 = vmand %vm4789_vm4, %vm16334_vm8  ;;  %vm16344_vm8 = vcmask 519168  }
 0x309   : >> { %11769 = vmatmul.mubr.msk.bf16.gmra.mrb[8].mxu1 %vm393_vm0, %v4143_v44  ;;  %11808 = vmatprep.subr.bf16.mxu0 %v12298_v24  ;;  %v12302_v44 = vld [vmem:[%s16179_s5 + $0x30] sm:$0xff]   ;;  %vm14552_vm4 = vmand %vm4825_vm10, %vm16340_vm6  ;;  %vm4864_vm10 = vcmask 516096  }
 0x30a   : >> { %11772 = vmatprep.mubr.msk.bf16.mxu1 %vm393_vm0, %v4152_v51  ;;  %11809 = vmatpush3.bf16.msra.mxu0 %v12298_v24  ;;  %v12303_v51 = vld [vmem:[%s16179_s5 + $0x38] sm:$0xff]   ;;  %vm14568_vm1 = vmand %vm16344_vm8, %vm16343_vm3  ;;  %vm16350_vm3 = vsmask.f32 256 }
 0x30b   : >> { %vm16347_vm6 = vmmov %vm16344_vm8 }
 0x30c   : >> { %vm4865_vm8 = vmand %vm4864_vm10, %vm16350_vm3  ;;  %vm16363_vm3 = vcmask 1044480  }
 0x311   : >> { %11773 = vmatmul.mubr.msk.bf16.gmra.mrb[48].mxu1 %vm393_vm0, %v4151_v29 }
 0x312   : >> { %11780 = vmatprep.mubr.msk.bf16.mxu1 %vm393_vm0, %v4389_v46 }
 0x319   : >> { %11781 = vmatmul.mubr.msk.bf16.vlgmr.msra.gmra.mrb[16].mxu1 %vm393_vm0, %v16318_v23 }
 0x31a   : >> { %11784 = vmatprep.mubr.msk.bf16.mxu1 %vm393_vm0, %v16319_v19 }
 0x321   : >> { %11785 = vmatmul.mubr.msk.bf16.gmra.mrb[20].mxu1 %vm393_vm0, %v16320_v6 }
 0x322   : >> { %11788 = vmatprep.mubr.msk.bf16.mxu1 %vm393_vm0, %v16321_v4 }
 0x329   : >> { %11789 = vmatmul.mubr.msk.bf16.gmra.mrb[24].mxu1 %vm393_vm0, %v16322_v17 }
 0x32a   : >> { %11792 = vmatprep.mubr.msk.bf16.mxu1 %vm393_vm0, %v16323_v3  ;;  %v14446_v3 = vld [vmem:[%s16178_s4] ss:$0 sm:$0xff] }
 0x331   : >> { %11793 = vmatmul.mubr.msk.bf16.gmra.mrb[0].mxu1 %vm393_vm0, %v16324_v55 }
 0x332   : >> { %11796 = vmatprep.mubr.msk.bf16.mxu1 %vm393_vm0, %v16325_v37 }
 0x339   : >> { %11797 = vmatmul.mubr.msk.bf16.gmra.mrb[4].mxu1 %vm393_vm0, %v14000_v30 }
 0x33a   : >> { %11800 = vmatprep.mubr.msk.bf16.mxu1 %vm393_vm0, %v14078_v18 }
 0x33c   : >> { %v11678_v13 = vpop.f32.mrb[36].mxu1 }
 0x33d   : >> { %v3475_v39 = vadd.f32 %v11678_v13, %v3119_v52  ;;  %v3435_v0 = vpop.f32.mrb[37].mxu1 }
 0x33e   : >> { %v3473_v7 = vadd.f32 %v3435_v0, %v3117_v8  ;;  %v11679_v20 = vpop.f32.mrb[38].mxu1 }
 0x33f   : >> { %v3438_v15 = vpop.f32.mrb[39].mxu1 }
 0x340   : >> { %v3474_v56 = vadd.f32 %v3438_v15, %v3118_v58  ;;  %v12299_v58 = vld [vmem:[%s16179_s5 + $0x28] sm:$0xff]  }
 0x341   : >> { %11801 = vmatmul.mubr.msk.bf16.gmra.mrb[8].mxu1 %vm393_vm0, %v14083_v63  ;;  %11810 = vmatprep.subr.bf16.mxu0 %v12299_v58 }
 0x342   : >> { %11804 = vmatprep.mubr.msk.bf16.mxu1 %vm393_vm0, %v4413_v26  ;;  %11811 = vmatpush3.bf16.msra.mxu0 %v12299_v58 }
 0x343   : >> { %11812 = vmatprep.subr.bf16.mxu0 %v12302_v44 }
 0x346   : >> { %11813 = vmatpush3.bf16.msra.mxu0 %v12302_v44 }
 0x347   : >> { %11814 = vmatprep.subr.bf16.mxu0 %v12303_v51 }
 0x349   : >> { %11805 = vmatmul.mubr.msk.bf16.gmra.mrb[52].mxu1 %vm393_vm0, %v4412_v22  ;;  %vm10144_vm0 = vcmask (%p424_p5), 7168  }
 0x34a   : >> { %11815 = vmatpush3.bf16.msra.mxu0 %v12303_v51 }
 0x34b   : >> { %11824 = vmatprep.subr.bf16.mxu0 %v14434_v27 }
 0x374   : >> { %v11710_v30 = vpop.f32.mrb[40].mxu1 }
 0x375   : >> { %v3736_v18 = vadd.f32 %v11710_v30, %v3475_v39  ;;  %v3696_v9 = vpop.f32.mrb[41].mxu1 }
 0x376   : >> { %v3734_v32 = vadd.f32 %v3696_v9, %v3473_v7  ;;  %v11711_v41 = vpop.f32.mrb[42].mxu1 }
 0x377   : >> { %v3699_v31 = vpop.f32.mrb[43].mxu1 }
 0x378   : >> { %v3735_v12 = vadd.f32 %v3699_v31, %v3474_v56 }
 0x3ac   : >> { %v11742_v52 = vpop.f32.mrb[44].mxu1 }
 0x3ad   : >> { %v4021_v36 = vadd.f32 %v11742_v52, %v3736_v18  ;;  %v3981_v29 = vpop.f32.mrb[45].mxu1 }
 0x3ae   : >> { %v4019_v8 = vadd.f32 %v3981_v29, %v3734_v32  ;;  %v11743_v63 = vpop.f32.mrb[46].mxu1 }
 0x3af   : >> { %v3984_v54 = vpop.f32.mrb[47].mxu1 }
 0x3b0   : >> { %v4020_v62 = vadd.f32 %v3984_v54, %v3735_v12 }
 0x3e4   : >> { %v11774_v21 = vpop.f32.mrb[48].mxu1 }
 0x3e5   : >> { %v14437_v61 = vadd.f32 %v11774_v21, %v4021_v36  ;;  %v4337_v46 = vpop.f32.mrb[49].mxu1 }
 0x3e6   : >> { %v14439_v23 = vadd.f32 %v4337_v46, %v4019_v8  ;;  %v11775_v19 = vpop.f32.mrb[50].mxu1 }
 0x3e7   : >> { %v4340_v6 = vpop.f32.mrb[51].mxu1 }
 0x3e8   : >> { %v14441_v4 = vadd.f32 %v4340_v6, %v4020_v62 }
 0x3ec   : >> { %v11782_v17 = vpop.f32.mrb[16].mxu1 }
 0x3ed   : >> { %v11956_v55 = vadd.f32 %v11782_v17, %v14283_v50  ;;  %v4502_v37 = vpop.f32.mrb[17].mxu1 }
 0x3ee   : >> { %v11957_v13 = vadd.f32 %v4502_v37, %v14286_v34  ;;  %v11783_v39 = vpop.f32.mrb[18].mxu1 }
 0x3ef   : >> { %v4648_v0 = vadd.f32 %v11956_v55, %v14446_v3  ;;  %v11958_v22 = vadd.f32 %v11783_v39, %v14288_v1  ;;  %v4505_v7 = vpop.f32.mrb[19].mxu1 }
 0x3f0   : >> { %v4646_v20 = vadd.f32 %v11957_v13, %v14446_v3  ;;  %v11959_v15 = vadd.f32 %v4505_v7, %v14291_v5 }
 0x3f1   : >> { %v4675_v56 = vmax.f32 %v4648_v0, 0.0  ;;  %v4649_v28 = vadd.f32 %v11958_v22, %v14446_v3 }
 0x3f2   : >> { %v4673_v26 = vmax.f32 %v4646_v20, 0.0  ;;  %v4647_v50 = vadd.f32 %v11959_v15, %v14446_v3 }
 0x3f3   : >> { %4703 = vst.msk [vmem:[#allocation4 + $0x10] sm:$0xff] %vm4700_vm9, %v4675_v56  ;;  %v4676_v34 = vmax.f32 %v4649_v28, 0.0 }
 0x3f4   : >> { %4701 = vst.msk [vmem:[#allocation4] sm:$0xff] %vm4700_vm9, %v4673_v26  ;;  %v4674_v30 = vmax.f32 %v4647_v50, 0.0  ;;  %v11786_v18 = vpop.f32.mrb[20].mxu1 }
 0x3f5   : >> { %4704 = vst.msk [vmem:[#allocation4 + $0x18] sm:$0xff] %vm4700_vm9, %v4676_v34  ;;  %v11960_v1 = vadd.f32 %v11786_v18, %v14297_v38  ;;  %v4518_v9 = vpop.f32.mrb[21].mxu1 }
 0x3f6   : >> { %4702 = vst.msk [vmem:[#allocation4 + $0x8] sm:$0xff] %vm4700_vm9, %v4674_v30  ;;  %v11961_v5 = vadd.f32 %v4518_v9, %v14300_v16  ;;  %v11787_v32 = vpop.f32.mrb[22].mxu1 }
 0x3f7   : >> { %v4652_v41 = vadd.f32 %v11960_v1, %v14446_v3  ;;  %v11962_v31 = vadd.f32 %v11787_v32, %v14302_v33  ;;  %v4521_v12 = vpop.f32.mrb[23].mxu1 }
 0x3f8   : >> { %v4650_v52 = vadd.f32 %v11961_v5, %v14446_v3  ;;  %v11963_v36 = vadd.f32 %v4521_v12, %v14304_v45 }
 0x3f9   : >> { %v4679_v29 = vmax.f32 %v4652_v41, 0.0  ;;  %v4653_v8 = vadd.f32 %v11962_v31, %v14446_v3 }
 0x3fa   : >> { %v4677_v63 = vmax.f32 %v4650_v52, 0.0  ;;  %v4651_v38 = vadd.f32 %v11963_v36, %v14446_v3 }
 0x3fb   : >> { %4707 = vst.msk [vmem:[#allocation4 + $0x30] sm:$0xff] %vm4700_vm9, %v4679_v29  ;;  %v4680_v54 = vmax.f32 %v4653_v8, 0.0 }
 0x3fc   : >> { %4705 = vst.msk [vmem:[#allocation4 + $0x20] sm:$0xff] %vm4700_vm9, %v4677_v63  ;;  %v4678_v16 = vmax.f32 %v4651_v38, 0.0  ;;  %v11790_v62 = vpop.f32.mrb[24].mxu1 }
 0x3fd   : >> { %4708 = vst.msk [vmem:[#allocation4 + $0x38] sm:$0xff] %vm4700_vm9, %v4680_v54  ;;  %v11964_v33 = vadd.f32 %v11790_v62, %v14309_v49  ;;  %v4534_v24 = vpop.f32.mrb[25].mxu1  ;;  %v4728_v6 = vld [vmem:[#allocation4] ss:$2 sm:$0xff]  ;;  %v4730_v17 = vld [vmem:[#allocation4 + $0x1] ss:$2 sm:$0xff] }
 0x3fe   : >> { %4706 = vst.msk [vmem:[#allocation4 + $0x28] sm:$0xff] %vm4700_vm9, %v4678_v16  ;;  %v11965_v45 = vadd.f32 %v4534_v24, %v14313_v47  ;;  %v11791_v58 = vpop.f32.mrb[26].mxu1  ;;  %v4735_v22 = vmax.f32 %v4728_v6, %v4730_v17  ;;  %v12306_v24 = vld [vmem:[%s16179_s5 + $0x8] sm:$0xff]  }
 0x3ff   : >> { %v4656_v44 = vadd.f32 %v11964_v33, %v14446_v3  ;;  %v11966_v51 = vadd.f32 %v11791_v58, %v14315_v53  ;;  %v4537_v21 = vpop.f32.mrb[27].mxu1 }
 0x400   : >> { %v4654_v46 = vadd.f32 %v11965_v45, %v14446_v3  ;;  %v11967_v19 = vadd.f32 %v4537_v21, %v14317_v11  ;;  %v4755_v21 = vld [vmem:[#allocation5 + $0x4] sm:$0xe] }
 0x401   : >> { %v4683_v55 = vmax.f32 %v4656_v44, 0.0  ;;  %v4657_v49 = vadd.f32 %v11966_v51, %v14446_v3 }
 0x402   : >> { %v4681_v37 = vmax.f32 %v4654_v46, 0.0  ;;  %v4655_v13 = vadd.f32 %v11967_v19, %v14446_v3 }
 0x403   : >> { %v4732_v39 = vld [vmem:[#allocation4 + $0x12] ss:$2 sm:$0xff]  ;;  %v4734_v47 = vld [vmem:[#allocation4 + $0x13] ss:$2 sm:$0xff]  ;;  %4711 = vst.msk [vmem:[#allocation4 + $0x50] sm:$0xff] %vm4700_vm9, %v4683_v55  ;;  %v4684_v0 = vmax.f32 %v4657_v49, 0.0 }
 0x404   : >> { %v4736_v53 = vmax.f32 %v4732_v39, %v4734_v47  ;;  %4709 = vst.msk [vmem:[#allocation4 + $0x40] sm:$0xff] %vm4700_vm9, %v4681_v37  ;;  %v4682_v7 = vmax.f32 %v4655_v13, 0.0  ;;  %v11794_v20 = vpop.f32.mrb[0].mxu1  ;;  %v4760_v13 = vld [vmem:[#allocation5 + $0x8] sm:$0x3] }
 0x405   : >> { %4712 = vst.msk [vmem:[#allocation4 + $0x58] sm:$0xff] %vm4700_vm9, %v4684_v0  ;;  %v11968_v11 = vadd.f32 %v11794_v20, %v14181_v35  ;;  %v4550_v15 = vpop.f32.mrb[1].mxu1  ;;  %v4764_v1 = vld [vmem:[#allocation4 + $0x24] ss:$2 sm:$0xff]  ;;  %v4766_v9 = vld [vmem:[#allocation4 + $0x25] ss:$2 sm:$0xff] }
 0x406   : >> { %v4737_v56 = vmax.f32 %v4735_v22, %v4736_v53  ;;  %4710 = vst.msk [vmem:[#allocation4 + $0x48] sm:$0xff] %vm4700_vm9, %v4682_v7  ;;  %v11969_v28 = vadd.f32 %v4550_v15, %v14185_v60  ;;  %v11795_v26 = vpop.f32.mrb[2].mxu1  ;;  %v4771_v36 = vmax.f32 %v4764_v1, %v4766_v9 }
 0x407   : >> { %v4660_v50 = vadd.f32 %v11968_v11, %v14446_v3  ;;  %v11970_v34 = vadd.f32 %v11795_v26, %v14189_v59  ;;  %v4553_v30 = vpop.f32.mrb[3].mxu1 }
 0x408   : >> { %v11107_v18 = vpack.c.bf16 %v4737_v56, %v4737_v56  ;;  %v4658_v5 = vadd.f32 %v11969_v28, %v14446_v3  ;;  %v11971_v32 = vadd.f32 %v4553_v30, %v14191_v48  ;;  %v4791_v28 = vld [vmem:[#allocation5 + $0x8] sm:$0xc] }
 0x409   : >> { %v4687_v35 = vmax.f32 %v4660_v50, 0.0  ;;  %v4661_v41 = vadd.f32 %v11970_v34, %v14446_v3 }
 0x40a   : >> { %v4743_v31 = vshrl.u32 %v11107_v18, 16  ;;  %v4746_v12 = vshll.u32 %v11107_v18, 16  ;;  %v4685_v52 = vmax.f32 %v4658_v5, 0.0  ;;  %v4659_v60 = vadd.f32 %v11971_v32, %v14446_v3 }
 0x40b   : >> { %v4768_v29 = vld [vmem:[#allocation4 + $0x36] ss:$2 sm:$0xff]  ;;  %v4770_v59 = vld [vmem:[#allocation4 + $0x37] ss:$2 sm:$0xff]  ;;  %4715 = vst.msk [vmem:[#allocation4 + $0x70] sm:$0xff] %vm4700_vm9, %v4687_v35  ;;  %v4688_v8 = vmax.f32 %v4661_v41, 0.0 }
 0x40c   : >> { %v4745_v63 = vrot.slane %v4743_v31, 6  ;;  %v4748_v38 = vrot.slane %v4746_v12, 7  ;;  %v4772_v54 = vmax.f32 %v4768_v29, %v4770_v59  ;;  %4713 = vst.msk [vmem:[#allocation4 + $0x60] sm:$0xff] %vm4700_vm9, %v4685_v52  ;;  %v4686_v48 = vmax.f32 %v4659_v60, 0.0  ;;  %v11798_v16 = vpop.f32.mrb[4].mxu1 }
 0x40d   : >> { %4716 = vst.msk [vmem:[#allocation4 + $0x78] sm:$0xff] %vm4700_vm9, %v4688_v8  ;;  %v11972_v62 = vadd.f32 %v11798_v16, %v14216_v40  ;;  %v4566_v33 = vpop.f32.mrb[5].mxu1  ;;  %v4800_v7 = vld [vmem:[#allocation4 + $0x48] ss:$2 sm:$0xff]  ;;  %v4802_v20 = vld [vmem:[#allocation4 + $0x49] ss:$2 sm:$0xff] }
 0x40e   : >> { %v4749_v45 = vor.u32 %v4748_v38, %v4745_v63  ;;  %v4773_v58 = vmax.f32 %v4771_v36, %v4772_v54  ;;  %4714 = vst.msk [vmem:[#allocation4 + $0x68] sm:$0xff] %vm4700_vm9, %v4686_v48  ;;  %v11973_v44 = vadd.f32 %v4566_v33, %v14222_v2  ;;  %v11799_v51 = vpop.f32.mrb[6].mxu1  ;;  %v4807_v5 = vmax.f32 %v4800_v7, %v4802_v20  ;;  %v4796_v60 = vld [vmem:[#allocation5 + $0xc] sm:$0x7] }
 0x40f   : >> { %v4664_v46 = vadd.f32 %v11972_v62, %v14446_v3  ;;  %v11974_v19 = vadd.f32 %v11799_v51, %v14225_v42  ;;  %v4569_v40 = vpop.f32.mrb[7].mxu1  ;;  %v4827_v62 = vld [vmem:[#allocation5 + $0xc] sm:$0x8] }
 0x410   : >> { %v4750_v17 = vrot.slane %v4749_v45, 4  ;;  %v11108_v55 = vpack.c.bf16 %v4773_v58, %v4773_v58  ;;  %v4662_v49 = vadd.f32 %v11973_v44, %v14446_v3  ;;  %v11975_v37 = vadd.f32 %v4569_v40, %v14227_v25 }
 0x411   : >> { %v4691_v2 = vmax.f32 %v4664_v46, 0.0  ;;  %v4665_v39 = vadd.f32 %v11974_v19, %v14446_v3  ;;  %v4756_v42 = vsel %vm14498_vm2, %v4749_v45, %v4755_v21  ;;  %v4933_v21 = vld [vmem:[#allocation5] sm:$0xf] }
 0x412   : >> { %v4779_v47 = vshrl.u32 %v11108_v55, 16  ;;  %v4782_v0 = vshll.u32 %v11108_v55, 16  ;;  %v4689_v22 = vmax.f32 %v4662_v49, 0.0  ;;  %v4663_v53 = vadd.f32 %v11975_v37, %v14446_v3  ;;  %4757 = vst [vmem:[#allocation5 + $0x4] sm:$0xe] %v4756_v42 }
 0x413   : >> { %4719 = vst.msk [vmem:[#allocation4 + $0x90] sm:$0xff] %vm4700_vm9, %v4691_v2  ;;  %v4692_v25 = vmax.f32 %v4665_v39, 0.0  ;;  %v4761_v11 = vsel %vm14507_vm12, %v4750_v17, %v4760_v13 }
 0x414   : >> { %v4781_v15 = vrot.slane %v4779_v47, 5  ;;  %v4784_v56 = vrot.slane %v4782_v0, 6  ;;  %4717 = vst.msk [vmem:[#allocation4 + $0x80] sm:$0xff] %vm4700_vm9, %v4689_v22  ;;  %v4690_v26 = vmax.f32 %v4663_v53, 0.0  ;;  %v11802_v50 = vpop.f32.mrb[8].mxu1 }
 0x415   : >> { %4762 = vst [vmem:[#allocation5 + $0x8] sm:$0x3] %v4761_v11  ;;  %v4804_v30 = vld [vmem:[#allocation4 + $0x5a] ss:$2 sm:$0xff]  ;;  %v4806_v18 = vld [vmem:[#allocation4 + $0x5b] ss:$2 sm:$0xff]  ;;  %v11976_v1 = vadd.f32 %v11802_v50, %v14241_v57 }
 0x416   : >> { %4720 = vst.msk [vmem:[#allocation4 + $0x98] sm:$0xff] %vm4700_vm9, %v4692_v25  ;;  %v4785_v9 = vor.u32 %v4784_v56, %v4781_v15  ;;  %v4808_v32 = vmax.f32 %v4804_v30, %v4806_v18  ;;  %4718 = vst.msk [vmem:[#allocation4 + $0x88] sm:$0xff] %vm4700_vm9, %v4690_v26  ;;  %v4582_v35 = vpop.f32.mrb[9].mxu1  ;;  %v4836_v33 = vld [vmem:[#allocation4 + $0x6c] ss:$2 sm:$0xff] }
 0x417   : >> { %v4668_v31 = vadd.f32 %v11976_v1, %v14446_v3  ;;  %v11977_v12 = vadd.f32 %v4582_v35, %v14243_v14  ;;  %v11803_v52 = vpop.f32.mrb[10].mxu1  ;;  %v4838_v45 = vld [vmem:[#allocation4 + $0x6d] ss:$2 sm:$0xff] }
 0x418   : >> { %v4786_v36 = vrot.slane %v4785_v9, 4  ;;  %v4792_v57 = vsel %vm14523_vm7, %v4785_v9, %v4791_v28  ;;  %v4809_v29 = vmax.f32 %v4807_v5, %v4808_v32  ;;  %v11978_v59 = vadd.f32 %v11803_v52, %v14249_v10  ;;  %v4585_v8 = vpop.f32.mrb[11].mxu1 }
 0x419   : >> { %4793 = vst [vmem:[#allocation5 + $0x8] sm:$0xc] %v4792_v57  ;;  %v4695_v63 = vmax.f32 %v4668_v31, 0.0  ;;  %v4666_v38 = vadd.f32 %v11977_v12, %v14446_v3  ;;  %v11979_v54 = vadd.f32 %v4585_v8, %v14252_v43  ;;  %v14548_v43 = vld [vmem:[#allocation5 + $0x4] sm:$0xf]  ;;  %v4843_v13 = vmax.f32 %v4836_v33, %v4838_v45 }
 0x41a   : >> { %v11109_v48 = vpack.c.bf16 %v4809_v29, %v4809_v29  ;;  %v4669_v14 = vadd.f32 %v11978_v59, %v14446_v3  ;;  %v4797_v16 = vsel %vm14532_vm5, %v4786_v36, %v4796_v60  ;;  %v14561_v0 = vcombine.low %v4933_v21, %v14548_v43  ;;  %v4861_v29 = vld [vmem:[#allocation5 + $0x14] sm:$0xf]  ;;  %v4866_v59 = vld [vmem:[#allocation5 + $0x18] sm:$0x1] }
 0x41b   : >> { %4723 = vst.msk [vmem:[#allocation4 + $0xb0] sm:$0xff] %vm4700_vm9, %v4695_v63  ;;  %v4693_v10 = vmax.f32 %v4666_v38, 0.0  ;;  %v4667_v58 = vadd.f32 %v11979_v54, %v14446_v3  ;;  %4798 = vst [vmem:[#allocation5 + $0xc] sm:$0x7] %v4797_v16 }
 0x41c   : >> { %v4815_v44 = vshll.u32 %v11109_v48, 16  ;;  %v4818_v51 = vshrl.u32 %v11109_v48, 16  ;;  %v4696_v17 = vmax.f32 %v4669_v14, 0.0  ;;  %v11806_v39 = vpop.f32.mrb[52].mxu1  ;;  %v4985_v18 = vshll.u32 %v14561_v0, 16 }
 0x41d   : >> { %v4840_v19 = vld [vmem:[#allocation4 + $0x7e] ss:$2 sm:$0xff]  ;;  %v4842_v40 = vld [vmem:[#allocation4 + $0x7f] ss:$2 sm:$0xff]  ;;  %4721 = vst.msk [vmem:[#allocation4 + $0xa0] sm:$0xff] %vm4700_vm9, %v4693_v10  ;;  %v4694_v55 = vmax.f32 %v4667_v58, 0.0  ;;  %v4638_v42 = vadd.f32 %v11806_v39, %v14437_v61 }
 0x41e   : >> { %v4817_v49 = vrot.slane %v4815_v44, 5  ;;  %v4820_v37 = vrot.slane %v4818_v51, 4  ;;  %v4844_v2 = vmax.f32 %v4840_v19, %v4842_v40  ;;  %4724 = vst.msk [vmem:[#allocation4 + $0xb8] sm:$0xff] %vm4700_vm9, %v4696_v17  ;;  %v4598_v47 = vpop.f32.mrb[53].mxu1  ;;  %v4832_v61 = vld [vmem:[#allocation5 + $0x10] sm:$0xf] }
 0x41f   : >> { %4722 = vst.msk [vmem:[#allocation4 + $0xa8] sm:$0xff] %vm4700_vm9, %v4694_v55  ;;  %v4636_v20 = vadd.f32 %v4598_v47, %v14439_v23  ;;  %v11807_v25 = vpop.f32.mrb[54].mxu1  ;;  %v4672_v15 = vadd.f32 %v14446_v3, %v4638_v42  ;;  %v4870_v9 = vld [vmem:[#allocation4 + $0x90] ss:$2 sm:$0xff]  ;;  %v4872_v5 = vld [vmem:[#allocation4 + $0x91] ss:$2 sm:$0xff] }
 0x420   : >> { %v4821_v22 = vor.u32 %v4820_v37, %v4817_v49  ;;  %v4828_v53 = vsel %vm14552_vm4, %v4817_v49, %v4827_v62  ;;  %v4845_v7 = vmax.f32 %v4843_v13, %v4844_v2  ;;  %v4601_v56 = vpop.f32.mrb[55].mxu1  ;;  %vm14582_vm4 = vmand %vm16347_vm6, %vm1881_vm11  ;;  %v4877_v57 = vmax.f32 %v4870_v9, %v4872_v5  ;;  %v4895_v49 = vld [vmem:[#allocation5 + $0x18] sm:$0xe]  ;;  %v4898_v47 = vld [vmem:[#allocation5 + $0x1c] sm:$0x3] }
 0x421   : >> { %4829 = vst [vmem:[#allocation5 + $0xc] sm:$0x8] %v4828_v53  ;;  %v4670_v50 = vadd.f32 %v14446_v3, %v4636_v20  ;;  %v4637_v30 = vadd.f32 %v4601_v56, %v14441_v4  ;;  %v4699_v23 = vmax.f32 %v4672_v15, 0.0  ;;  %v4987_v63 = vrot.slane %v4985_v18, 1  ;;  %v12308_v9 = vld [vmem:[%s16179_s5 + $0x10] sm:$0xff]   ;;  %v12311_v4 = vld [vmem:[%s16179_s5 + $0x40] sm:$0xff]  }
 0x422   : >> { %v4822_v28 = vrot.slane %v4821_v22, 4  ;;  %v11110_v26 = vpack.c.bf16 %v4845_v7, %v4845_v7  ;;  %v4983_v33 = vshrl.u32 %v14561_v0, 16  ;;  %v4930_v5 = vld [vmem:[#allocation5 + $0x20] sm:$0x7] }
 0x423   : >> { %v4697_v35 = vmax.f32 %v4670_v50, 0.0  ;;  %4727 = vst.msk [vmem:[#allocation4 + $0xd0] sm:$0xff] %vm4700_vm9, %v4699_v23  ;;  %v4671_v31 = vadd.f32 %v14446_v3, %v4637_v30 }
 0x424   : >> { %v4833_v1 = vsel %vm14568_vm1, %v4822_v28, %v4832_v61  ;;  %v4851_v32 = vshrl.u32 %v11110_v26, 16  ;;  %v4854_v52 = vshll.u32 %v11110_v26, 16  ;;  %v4988_v58 = vor.u32 %v4987_v63, %v4983_v33  ;;  %v12315_v33 = vld [vmem:[%s16179_s5 + $0x58] sm:$0xff]  }
 0x425   : >> { %4834 = vst [vmem:[#allocation5 + $0x10] sm:$0xf] %v4833_v1  ;;  %4725 = vst.msk [vmem:[#allocation4 + $0xc0] sm:$0xff] %vm4700_vm9, %v4697_v35  ;;  %v4698_v3 = vmax.f32 %v4671_v31, 0.0  ;;  %v4927_v1 = vld [vmem:[#allocation5 + $0x1c] sm:$0xc] }
 0x426   : >> { %v4853_v12 = vrot.slane %v4851_v32, 7  ;;  %v4874_v60 = vld [vmem:[#allocation4 + $0xa2] ss:$2 sm:$0xff]  ;;  %v4876_v36 = vld [vmem:[#allocation4 + $0xa3] ss:$2 sm:$0xff] }
 0x427   : >> { %v4878_v8 = vmax.f32 %v4874_v60, %v4876_v36  ;;  %4726 = vst.msk [vmem:[#allocation4 + $0xc8] sm:$0xff] %vm4700_vm9, %v4698_v3  ;;  %vm16359_vm1 = vsmask.f32 5376 }
 0x428   : >> { %v4856_v38 = vor.u32 %v4854_v52, %v4853_v12  ;;  %v4857_v54 = vrot.slane %v4853_v12, 4  ;;  %v14589_v48 = vld [vmem:[#allocation5 + $0x8] sm:$0xff]   ;;  %vm16360_vm10 = vmmov %vm16359_vm1 }
 0x429   : >> { %v4879_v14 = vmax.f32 %v4877_v57, %v4878_v8  ;;  %v4990_v45 = vshll.u32 %v14589_v48, 16  ;;  %v4994_v25 = vshrl.u32 %v14589_v48, 16  ;;  %vm16361_vm6 = vmmov %vm16359_vm1 }
 0x42a   : >> { %v4862_v16 = vsel %vm14582_vm4, %v4856_v38, %v4861_v29  ;;  %v4867_v62 = vsel %vm4865_vm8, %v4857_v54, %v4866_v59  ;;  %v12312_v38 = vld [vmem:[%s16179_s5 + $0x48] sm:$0xff]   ;;  %v5216_v54 = vld [vmem:[#allocation5] sm:$0xe]  ;;  %vm16362_vm4 = vmmov %vm16359_vm1 }
 0x42b   : >> { %4863 = vst [vmem:[#allocation5 + $0x14] sm:$0xf] %v4862_v16  ;;  %4868 = vst [vmem:[#allocation5 + $0x18] sm:$0x1] %v4867_v62  ;;  %v11111_v10 = vpack.c.bf16 %v4879_v14, %v4879_v14  ;;  %v4992_v44 = vrot.slane %v4990_v45, 1  ;;  %v12313_v14 = vld [vmem:[%s16179_s5 + $0x50] sm:$0xff]   ;;  %v10556_v16 = vcombine.low %v5216_v54, %v14548_v43 }
 0x42c   : >> { %v4902_v46 = vld [vmem:[#allocation4 + $0xb4] ss:$2 sm:$0xff]  ;;  %v4904_v19 = vld [vmem:[#allocation4 + $0xb5] ss:$2 sm:$0xff]  ;;  %vm16364_vm8 = vmmov %vm16363_vm3 }
 0x42d   : >> { %v4885_v51 = vshrl.u32 %v11111_v10, 16  ;;  %v4888_v21 = vshll.u32 %v11111_v10, 16  ;;  %v4993_v40 = vsel %vm1844_vm13, %v4988_v58, %v4992_v44  ;;  %v4909_v39 = vmax.f32 %v4902_v46, %v4904_v19  ;;  %v12316_v43 = vld [vmem:[%s16179_s5 + $0x60] sm:$0xff]   ;;  %v12317_v58 = vld [vmem:[%s16179_s5 + $0x68] sm:$0xff]   ;;  %v5347_v19 = vld [vmem:[#allocation5 + $0x4] sm:$0xe] }
 0x42e   : >> { %11816 = vmatprep.mubr.msk.bf16.mxu0 %vm4700_vm9, %v4993_v40  ;;  %v4906_v37 = vld [vmem:[#allocation4 + $0xc6] ss:$2 sm:$0xff]  ;;  %v4908_v13 = vld [vmem:[#allocation4 + $0xc7] ss:$2 sm:$0xff]  ;;  %v4996_v56 = vor.u32 %v4994_v25, %v4992_v44  ;;  %v5229_v62 = vrot.slane %v10556_v16, 1 }
 0x42f   : >> { %v4887_v17 = vrot.slane %v4885_v51, 6  ;;  %v4890_v55 = vrot.slane %v4888_v21, 7  ;;  %v4910_v42 = vmax.f32 %v4906_v37, %v4908_v13  ;;  %v14658_v51 = vld [vmem:[#allocation5 + $0x8] sm:$0xf]  ;;  %v14662_v46 = vld [vmem:[#allocation5 + $0xc] sm:$0xff]   ;;  %v12318_v40 = vld [vmem:[%s16179_s5 + $0x70] sm:$0xff]  }
 0x430   : >> { %v12321_v13 = vld [vmem:[%s16179_s5 + $0x78] sm:$0xff]   ;;  %v5531_v25 = vshll.u32 %v14662_v46, 16 }
 0x431   : >> { %v4891_v2 = vor.u32 %v4890_v55, %v4887_v17  ;;  %v4911_v20 = vmax.f32 %v4909_v39, %v4910_v42  ;;  %v10573_v17 = vcombine.low %v5347_v19, %v14658_v51  ;;  %v12336_v19 = vld [vmem:[%s16179_s5 + $0xc8] sm:$0xff]  }
 0x432   : >> { %v14598_v22 = vld [vmem:[#allocation5 + $0x10] sm:$0xff]  }
 0x433   : >> { %v4892_v53 = vrot.slane %v4891_v2, 4  ;;  %v4896_v7 = vsel %vm14498_vm2, %v4891_v2, %v4895_v49  ;;  %v4998_v11 = vshll.u32 %v14598_v22, 16  ;;  %v11112_v61 = vpack.c.bf16 %v4911_v20, %v4911_v20 }
 0x434   : >> { %4897 = vst [vmem:[#allocation5 + $0x18] sm:$0xe] %v4896_v7  ;;  %v5002_v34 = vshrl.u32 %v14598_v22, 16  ;;  %v5389_v49 = vrot.slane %v14662_v46, 1  ;;  %v5388_v37 = vrot.slane %v10573_v17, 1  ;;  %v5528_v20 = vshrl.u32 %v14662_v46, 16 }
 0x435   : >> { %v4899_v15 = vsel %vm14507_vm12, %v4892_v53, %v4898_v47  ;;  %v5000_v28 = vrot.slane %v4998_v11, 1  ;;  %v4917_v26 = vshrl.u32 %v11112_v61, 16  ;;  %v4920_v50 = vshll.u32 %v11112_v61, 16  ;;  %v12325_v11 = vld [vmem:[%s16179_s5 + $0x88] sm:$0xff]  }
 0x436   : >> { %4900 = vst [vmem:[#allocation5 + $0x1c] sm:$0x3] %v4899_v15  ;;  %v5390_v42 = vsel %vm2582_vm14, %v5388_v37, %v5389_v49  ;;  %v5520_v61 = vshrl.u32 %v10573_v17, 16  ;;  %v5523_v15 = vshll.u32 %v10573_v17, 16  ;;  %v14744_v17 = vld [vmem:[#allocation5 + $0xc] sm:$0xf] }
 0x437   : >> { %v5001_v30 = vsel %vm1844_vm13, %v4996_v56, %v5000_v28  ;;  %v4919_v23 = vrot.slane %v4917_v26, 5  ;;  %v4922_v18 = vrot.slane %v4920_v50, 6  ;;  %v5004_v41 = vor.u32 %v5002_v34, %v5000_v28  ;;  %v12327_v28 = vld [vmem:[#allocation5 + $0x24] ss:$0 sps:$4 sm:$0x11]  }
 0x438   : >> { %11817 = vmatmul.mubr.msk.bf16.vlgmr.msra.gmra.mrb[124].mxu0 %vm4700_vm9, %v5001_v30  ;;  %v5530_v50 = vrot.slane %v5528_v20, 1  ;;  %v12326_v30 = vld [vmem:[%s16179_s5 + $0x90] sm:$0xff]   ;;  %v5803_v37 = vld [vmem:[#allocation5 + $0x8] sm:$0xc] }
 0x439   : >> { %11825 = vmatpush3.bf16.msra.mxu0 %v14434_v27  ;;  %v4923_v6 = vor.u32 %v4922_v18, %v4919_v23  ;;  %v12310_v27 = vld [vmem:[%s16179_s5 + $0x18] sm:$0xff]   ;;  %v5522_v23 = vrot.slane %v5520_v61, 1  ;;  %v5525_v18 = vrot.slane %v5523_v15, 2 }
 0x43a   : >> { %11826 = vmatprep.subr.bf16.mxu0 %v12306_v24 }
 0x43b   : >> { %v4924_v32 = vrot.slane %v4923_v6, 4  ;;  %v4928_v35 = vsel %vm14523_vm7, %v4923_v6, %v4927_v1  ;;  %v14674_v39 = vld [vmem:[#allocation5 + $0x14] sm:$0xff]   ;;  %v5395_v1 = vrot.slane %v12327_v28, 1 }
 0x43c   : >> { %4929 = vst [vmem:[#allocation5 + $0x1c] sm:$0xc] %v4928_v35  ;;  %v5391_v53 = vrot.slane %v14674_v39, 1  ;;  %v5537_v6 = vshrl.u32 %v14674_v39, 16 }
 0x43d   : >> { %11827 = vmatpush3.bf16.msra.mxu0 %v12306_v24  ;;  %v4931_v31 = vsel %vm14532_vm5, %v4924_v32, %v4930_v5  ;;  %v5533_v24 = vrot.slane %v5531_v25, 2 }
 0x43e   : >> { %11828 = vmatprep.subr.bf16.mxu0 %v12308_v9  ;;  %4932 = vst [vmem:[#allocation5 + $0x20] sm:$0x7] %v4931_v31  ;;  %v5392_v56 = vsel %vm2582_vm14, %v5389_v49, %v5391_v53  ;;  %v5526_v31 = vor.u32 %v5525_v18, %v5522_v23  ;;  %v14748_v49 = vld [vmem:[#allocation5 + $0x10] sm:$0xff]   ;;  %v12346_v23 = vld [vmem:[#allocation5 + $0x28] ss:$0 sps:$4 sm:$0x33]  }
 0x43f   : >> { %v5534_v5 = vor.u32 %v5533_v24, %v5530_v50  ;;  %v5987_v28 = vshll.u32 %v14748_v49, 16 }
 0x441   : >> { %11829 = vmatpush3.bf16.msra.mxu0 %v12308_v9  ;;  %v5540_v9 = vshll.u32 %v14674_v39, 16 }
 0x442   : >> { %11830 = vmatprep.subr.bf16.mxu0 %v12310_v27 }
 0x443   : >> { %v12307_v12 = vld [vmem:[#allocation5 + $0x18] sm:$0xff]   ;;  %v5542_v34 = vrot.slane %v5540_v9, 2 }
 0x444   : >> { %v5006_v52 = vshll.u32 %v12307_v12, 16  ;;  %v5010_v57 = vshrl.u32 %v12307_v12, 16  ;;  %v5234_v10 = vrot.slane %v12307_v12, 1  ;;  %v12345_v9 = vld [vmem:[%s16179_s5 + $0xf0] sm:$0xff]  }
 0x445   : >> { %11831 = vmatpush3.bf16.msra.mxu0 %v12310_v27  ;;  %v12309_v60 = vld [vmem:[#allocation5 + $0x20] ss:$0 sps:$4 sm:$0x11]  }
 0x446   : >> { %11840 = vmatprep.subr.bf16.mxu0 %v12311_v4  ;;  %v5008_v36 = vrot.slane %v5006_v52, 1  ;;  %v5014_v29 = vshll.u32 %v12309_v60, 16  ;;  %v5236_v55 = vrot.slane %v12309_v60, 1  ;;  %v14678_v47 = vld [vmem:[#allocation5 + $0x1c] sm:$0xff]   ;;  %v5535_v60 = vsel %vm1800_vm15, %v5526_v31, %v5534_v5 }
 0x447   : >> { %v5393_v7 = vrot.slane %v14678_v47, 1  ;;  %v5546_v32 = vshrl.u32 %v14678_v47, 16  ;;  %v5549_v35 = vshll.u32 %v14678_v47, 16  ;;  %v12328_v27 = vld [vmem:[%s16179_s5 + $0x98] sm:$0xff]  }
 0x448   : >> { %v5009_v59 = vsel %vm1844_vm13, %v5004_v41, %v5008_v36  ;;  %v5012_v8 = vor.u32 %v5010_v57, %v5008_v36  ;;  %v5016_v3 = vrot.slane %v5014_v29, 1  ;;  %v5237_v2 = vsel %vm2582_vm14, %v5234_v10, %v5236_v55  ;;  %v14706_v52 = vld [vmem:[#allocation5 + $0x24] ss:$0 sps:$4 sm:$0x33]   ;;  %v12329_v57 = vld [vmem:[%s16179_s5 + $0xa0] sm:$0xff]  }
 0x449   : >> { %11820 = vmatprep.mubr.msk.bf16.mxu0 %vm4700_vm9, %v5009_v59  ;;  %v5394_v26 = vsel %vm2582_vm14, %v5391_v53, %v5393_v7  ;;  %v5548_v41 = vrot.slane %v5546_v32, 1  ;;  %v5551_v36 = vrot.slane %v5549_v35, 2  ;;  %v5555_v59 = vshrl.u32 %v14706_v52, 16  ;;  %v14765_v25 = vld [vmem:[#allocation5 + $0x20] sm:$0xff]  }
 0x44a   : >> { %v5017_v63 = vsel %vm1844_vm13, %v5012_v8, %v5016_v3  ;;  %v5558_v8 = vshll.u32 %v14706_v52, 16  ;;  %vm16351_vm13 = vcmask 1045504   ;;  %v5849_v15 = vrot.slane %v14765_v25, 2 }
 0x44b   : >> { %11821 = vmatmul.mubr.msk.bf16.gmra.mrb[128].mxu0 %vm4700_vm9, %v5017_v63  ;;  %v5552_v3 = vor.u32 %v5551_v36, %v5548_v41  ;;  %v12330_v63 = vld [vmem:[%s16179_s5 + $0xa8] sm:$0xff]   ;;  %v5557_v54 = vrot.slane %v5555_v59, 1  ;;  %vm16354_vm11 = vmmov %vm16351_vm13  ;;  %v5851_v35 = vrot.slane %v12346_v23, 2 }
 0x44c   : >> { %11832 = vmatprep.mubr.msk.bf16.mxu0 %vm4700_vm9, %v14561_v0  ;;  %v5230_v0 = vrot.slane %v14589_v48, 1  ;;  %vm16355_vm2 = vmmov %vm16354_vm11 }
 0x44d   : >> { %vm16356_vm12 = vmmov %vm16355_vm2 }
 0x44e   : >> { %v5231_v45 = vsel %vm2582_vm14, %v5229_v62, %v5230_v0  ;;  %v12331_v62 = vld [vmem:[%s16179_s5 + $0xb0] sm:$0xff]   ;;  %vm16357_vm7 = vmmov %vm16355_vm2 }
 0x44f   : >> { %vm16358_vm5 = vmmov %vm16355_vm2 }
 0x450   : >> { %v5852_v41 = vsel %vm16358_vm5, %v5849_v15, %v5851_v35 }
 0x453   : >> { %11833 = vmatmul.mubr.msk.bf16.vlgmr.msra.gmra.mrb[124].mxu0 %vm4700_vm9, %v14589_v48  ;;  %v5232_v48 = vrot.slane %v14598_v22, 1 }
 0x454   : >> { %11841 = vmatpush3.bf16.msra.mxu0 %v12311_v4  ;;  %11836 = vmatprep.mubr.msk.bf16.mxu0 %vm4700_vm9, %v14598_v22  ;;  %v12322_v22 = vld [vmem:[%s16179_s5 + $0x80] sm:$0xff]   ;;  %v5396_v4 = vsel %vm2582_vm14, %v5393_v7, %v5395_v1  ;;  %v14761_v7 = vld [vmem:[#allocation5 + $0x18] sm:$0xff]  }
 0x455   : >> { %11842 = vmatprep.subr.bf16.mxu0 %v12312_v38  ;;  %v5233_v44 = vsel %vm2582_vm14, %v5230_v0, %v5232_v48  ;;  %v5235_v21 = vsel %vm2582_vm14, %v5232_v48, %v5234_v10  ;;  %v5672_v0 = vld [vmem:[#allocation5 + $0x4] sm:$0xc]  ;;  %vm16353_vm14 = vmmov %vm16351_vm13  ;;  %v5847_v61 = vrot.slane %v14761_v7, 2  ;;  %v5993_v31 = vshrl.u32 %v14761_v7, 16 }
 0x456   : >> { %v12334_v10 = vld [vmem:[%s16179_s5 + $0xb8] sm:$0xff]  }
 0x457   : >> { %v5850_v18 = vsel %vm16357_vm7, %v5847_v61, %v5849_v15  ;;  %v5995_v36 = vrot.slane %v5993_v31, 2 }
 0x458   : >> { %11843 = vmatpush3.bf16.msra.mxu0 %v12312_v38 }
 0x459   : >> { %11844 = vmatprep.subr.bf16.mxu0 %v12313_v14 }
 0x45b   : >> { %11837 = vmatmul.mubr.msk.bf16.gmra.mrb[128].mxu0 %vm4700_vm9, %v12307_v12  ;;  %v5539_v12 = vrot.slane %v5537_v6, 1  ;;  %v5989_v6 = vrot.slane %v5987_v28, 3 }
 0x45c   : >> { %11845 = vmatpush3.bf16.msra.mxu0 %v12313_v14  ;;  %11848 = vmatprep.mubr.msk.bf16.mxu0 %vm4700_vm9, %v5231_v45  ;;  %v5560_v14 = vrot.slane %v5558_v8, 2 }
 0x45d   : >> { %11846 = vmatprep.subr.bf16.mxu0 %v12315_v33  ;;  %v5543_v29 = vor.u32 %v5542_v34, %v5539_v12  ;;  %v6002_v12 = vshrl.u32 %v14765_v25, 16  ;;  %v6005_v34 = vshll.u32 %v14765_v25, 16 }
 0x45e   : >> { %v5561_v45 = vor.u32 %v5560_v14, %v5557_v54 }
 0x45f   : >> { %v5544_v38 = vsel %vm1800_vm15, %v5534_v5, %v5543_v29  ;;  %v5553_v16 = vsel %vm1800_vm15, %v5543_v29, %v5552_v3  ;;  %v12351_v29 = vld [vmem:[#allocation5 + $0x28] ss:$0 sps:$4 sm:$0x77]   ;;  %v6004_v8 = vrot.slane %v6002_v12, 2 }
 0x460   : >> { %11847 = vmatpush3.bf16.msra.mxu0 %v12315_v33  ;;  %v10611_v33 = vcombine.low %v5672_v0, %v14658_v51  ;;  %v12335_v51 = vld [vmem:[%s16179_s5 + $0xc0] sm:$0xff]   ;;  %v6011_v54 = vshrl.u32 %v12351_v29, 16  ;;  %v6014_v14 = vshll.u32 %v12351_v29, 16  ;;  %v12349_v0 = vld [vmem:[%s16179_s5 + $0x108] sm:$0xff]  }
 0x461   : >> { %11856 = vmatprep.subr.bf16.mxu0 %v12316_v43 }
 0x462   : >> { %v5685_v48 = vrot.slane %v10611_v33, 2  ;;  %v6013_v33 = vrot.slane %v6011_v54, 2 }
 0x463   : >> { %11849 = vmatmul.mubr.msk.bf16.vlgmr.msra.gmra.mrb[124].mxu0 %vm4700_vm9, %v5233_v44 }
 0x464   : >> { %11857 = vmatpush3.bf16.msra.mxu0 %v12316_v43  ;;  %11852 = vmatprep.mubr.msk.bf16.mxu0 %vm4700_vm9, %v5235_v21  ;;  %v5686_v43 = vrot.slane %v14662_v46, 2  ;;  %v5688_v21 = vrot.slane %v14674_v39, 2  ;;  %v5690_v46 = vrot.slane %v14678_v47, 2  ;;  %v5692_v39 = vrot.slane %v14706_v52, 2 }
 0x465   : >> { %11858 = vmatprep.subr.bf16.mxu0 %v12317_v58 }
 0x466   : >> { %v5687_v44 = vsel %vm16351_vm13, %v5685_v48, %v5686_v43  ;;  %v5691_v55 = vsel %vm16353_vm14, %v5688_v21, %v5690_v46  ;;  %v5693_v53 = vsel %vm16354_vm11, %v5690_v46, %v5692_v39  ;;  %v6128_v48 = vld [vmem:[#allocation5 + $0x8] sm:$0x8]  ;;  %v12353_v46 = vld [vmem:[%s16179_s5 + $0x118] sm:$0xff]   ;;  %v10675_v39 = vld [vmem:[%s16180_s6] ss:$0 sm:$0xff] }
 0x468   : >> { %11859 = vmatpush3.bf16.msra.mxu0 %v12317_v58  ;;  %v5562_v58 = vsel %vm1800_vm15, %v5552_v3, %v5561_v45  ;;  %vm16352_vm15 = vmmov %vm16351_vm13  ;;  %v6007_v3 = vrot.slane %v6005_v34, 3  ;;  %v6016_v45 = vrot.slane %v6014_v14, 3 }
 0x469   : >> { %11860 = vmatprep.subr.bf16.mxu0 %v12318_v40  ;;  %vm16365_vm13 = vmmov %vm16363_vm3 }
 0x46b   : >> { %11853 = vmatmul.mubr.msk.bf16.gmra.mrb[128].mxu0 %vm4700_vm9, %v5237_v2  ;;  %v10628_v2 = vcombine.low %v5803_v37, %v14744_v17 }
 0x46c   : >> { %11861 = vmatpush3.bf16.msra.mxu0 %v12318_v40  ;;  %11864 = vmatprep.mubr.msk.bf16.mxu0 %vm4700_vm9, %v5390_v42  ;;  %v5689_v40 = vsel %vm16352_vm15, %v5686_v43, %v5688_v21  ;;  %v5845_v42 = vrot.slane %v14748_v49, 2  ;;  %vm16366_vm15 = vmmov %vm16363_vm3 }
 0x46d   : >> { %11862 = vmatprep.subr.bf16.mxu0 %v12321_v13  ;;  %v5844_v47 = vrot.slane %v10628_v2, 2  ;;  %v5976_v50 = vshrl.u32 %v10628_v2, 16  ;;  %v5979_v24 = vshll.u32 %v10628_v2, 16 }
 0x46f   : >> { %v5846_v20 = vsel %vm16355_vm2, %v5844_v47, %v5845_v42  ;;  %v5978_v5 = vrot.slane %v5976_v50, 2  ;;  %v5981_v32 = vrot.slane %v5979_v24, 3 }
 0x470   : >> { %11863 = vmatpush3.bf16.msra.mxu0 %v12321_v13  ;;  %v12337_v13 = vld [vmem:[%s16179_s5 + $0xd0] sm:$0xff]  }
 0x471   : >> { %11872 = vmatprep.subr.bf16.mxu0 %v12322_v22  ;;  %v5982_v52 = vor.u32 %v5981_v32, %v5978_v5 }
 0x473   : >> { %11865 = vmatmul.mubr.msk.bf16.vlgmr.msra.gmra.mrb[124].mxu0 %vm4700_vm9, %v5392_v56  ;;  %v5984_v56 = vshrl.u32 %v14748_v49, 16 }
 0x474   : >> { %11873 = vmatpush3.bf16.msra.mxu0 %v12322_v22  ;;  %11868 = vmatprep.mubr.msk.bf16.mxu0 %vm4700_vm9, %v5394_v26  ;;  %v12340_v22 = vld [vmem:[%s16179_s5 + $0xd8] sm:$0xff]   ;;  %v12344_v26 = vld [vmem:[%s16179_s5 + $0xe8] sm:$0xff]  }
 0x475   : >> { %11874 = vmatprep.subr.bf16.mxu0 %v12325_v11  ;;  %v5986_v1 = vrot.slane %v5984_v56, 2 }
 0x478   : >> { %11875 = vmatpush3.bf16.msra.mxu0 %v12325_v11  ;;  %v12341_v11 = vld [vmem:[%s16179_s5 + $0xe0] sm:$0xff]  }
 0x479   : >> { %11876 = vmatprep.subr.bf16.mxu0 %v12326_v30 }
 0x47b   : >> { %11869 = vmatmul.mubr.msk.bf16.gmra.mrb[128].mxu0 %vm4700_vm9, %v5396_v4  ;;  %v5990_v4 = vor.u32 %v5989_v6, %v5986_v1 }
 0x47c   : >> { %11877 = vmatpush3.bf16.msra.mxu0 %v12326_v30  ;;  %11880 = vmatprep.mubr.msk.bf16.mxu0 %vm4700_vm9, %v5535_v60  ;;  %v5848_v30 = vsel %vm16356_vm12, %v5845_v42, %v5847_v61  ;;  %v12347_v60 = vld [vmem:[%s16179_s5 + $0xf8] sm:$0xff]  }
 0x47d   : >> { %11878 = vmatprep.subr.bf16.mxu0 %v12328_v27  ;;  %v5991_v59 = vsel %vm16359_vm1, %v5982_v52, %v5990_v4 }
 0x480   : >> { %11879 = vmatpush3.bf16.msra.mxu0 %v12328_v27  ;;  %v5996_v27 = vshll.u32 %v14761_v7, 16 }
 0x481   : >> { %11888 = vmatprep.subr.bf16.mxu0 %v12329_v57 }
 0x483   : >> { %11881 = vmatmul.mubr.msk.bf16.vlgmr.msra.gmra.mrb[124].mxu0 %vm4700_vm9, %v5544_v38 }
 0x484   : >> { %11889 = vmatpush3.bf16.msra.mxu0 %v12329_v57  ;;  %11884 = vmatprep.mubr.msk.bf16.mxu0 %vm4700_vm9, %v5553_v16  ;;  %v5998_v57 = vrot.slane %v5996_v27, 3  ;;  %v6008_v16 = vor.u32 %v6007_v3, %v6004_v8 }
 0x485   : >> { %11890 = vmatprep.subr.bf16.mxu0 %v12330_v63 }
 0x486   : >> { %v5999_v38 = vor.u32 %v5998_v57, %v5995_v36 }
 0x488   : >> { %11891 = vmatpush3.bf16.msra.mxu0 %v12330_v63  ;;  %v12348_v63 = vld [vmem:[%s16179_s5 + $0x100] sm:$0xff]   ;;  %v6009_v43 = vsel %vm16361_vm6, %v5999_v38, %v6008_v16 }
 0x489   : >> { %11892 = vmatprep.subr.bf16.mxu0 %v12331_v62 }
 0x48b   : >> { %11885 = vmatmul.mubr.msk.bf16.gmra.mrb[128].mxu0 %vm4700_vm9, %v5562_v58  ;;  %v10666_v58 = vcombine.low %v6128_v48, %v14744_v17  ;;  %v6144_v17 = vrot.slane %v14761_v7, 3 }
 0x48c   : >> { %11893 = vmatpush3.bf16.msra.mxu0 %v12331_v62  ;;  %11896 = vmatprep.mubr.msk.bf16.mxu0 %vm4700_vm9, %v5687_v44  ;;  %v6000_v62 = vsel %vm16360_vm10, %v5990_v4, %v5999_v38  ;;  %v6017_v44 = vor.u32 %v6016_v45, %v6013_v33 }
 0x48d   : >> { %11894 = vmatprep.subr.bf16.mxu0 %v12334_v10  ;;  %v6141_v21 = vrot.slane %v10666_v58, 3 }
 0x490   : >> { %11895 = vmatpush3.bf16.msra.mxu0 %v12334_v10  ;;  %v12350_v10 = vld [vmem:[%s16179_s5 + $0x110] sm:$0xff]  }
 0x491   : >> { %11904 = vmatprep.subr.bf16.mxu0 %v12335_v51 }
 0x493   : >> { %11897 = vmatmul.mubr.msk.bf16.vlgmr.msra.gmra.mrb[124].mxu0 %vm4700_vm9, %v5689_v40 }
 0x494   : >> { %11905 = vmatpush3.bf16.msra.mxu0 %v12335_v51  ;;  %11900 = vmatprep.mubr.msk.bf16.mxu0 %vm4700_vm9, %v5691_v55  ;;  %v6142_v51 = vrot.slane %v14748_v49, 3  ;;  %v6146_v55 = vrot.slane %v14765_v25, 3 }
 0x495   : >> { %11906 = vmatprep.subr.bf16.mxu0 %v12336_v19 }
 0x496   : >> { %v6143_v40 = vsel %vm16363_vm3, %v6141_v21, %v6142_v51  ;;  %v6145_v49 = vsel %vm16364_vm8, %v6142_v51, %v6144_v17  ;;  %v6147_v37 = vsel %vm16365_vm13, %v6144_v17, %v6146_v55 }
 0x498   : >> { %11907 = vmatpush3.bf16.msra.mxu0 %v12336_v19  ;;  %v6018_v19 = vsel %vm16362_vm4, %v6008_v16, %v6017_v44 }
 0x499   : >> { %11908 = vmatprep.subr.bf16.mxu0 %v12337_v13 }
 0x49b   : >> { %11901 = vmatmul.mubr.msk.bf16.gmra.mrb[128].mxu0 %vm4700_vm9, %v5693_v53 }
 0x49c   : >> { %11909 = vmatpush3.bf16.msra.mxu0 %v12337_v13  ;;  %11912 = vmatprep.mubr.msk.bf16.mxu0 %vm4700_vm9, %v5846_v20  ;;  %v6148_v13 = vrot.slane %v12351_v29, 3 }
 0x49d   : >> { %11910 = vmatprep.subr.bf16.mxu0 %v12340_v22 }
 0x49e   : >> { %v6149_v2 = vsel %vm16366_vm15, %v6146_v55, %v6148_v13 }
 0x4a0   : >> { %11911 = vmatpush3.bf16.msra.mxu0 %v12340_v22 }
 0x4a1   : >> { %11920 = vmatprep.subr.bf16.mxu0 %v12341_v11 }
 0x4a3   : >> { %11913 = vmatmul.mubr.msk.bf16.vlgmr.msra.gmra.mrb[124].mxu0 %vm4700_vm9, %v5848_v30 }
 0x4a4   : >> { %11921 = vmatpush3.bf16.msra.mxu0 %v12341_v11  ;;  %11916 = vmatprep.mubr.msk.bf16.mxu0 %vm4700_vm9, %v5850_v18 }
 0x4a5   : >> { %11922 = vmatprep.subr.bf16.mxu0 %v12344_v26 }
 0x4a8   : >> { %11923 = vmatpush3.bf16.msra.mxu0 %v12344_v26 }
 0x4a9   : >> { %11924 = vmatprep.subr.bf16.mxu0 %v12345_v9 }
 0x4ab   : >> { %11917 = vmatmul.mubr.msk.bf16.gmra.mrb[128].mxu0 %vm4700_vm9, %v5852_v41 }
 0x4ac   : >> { %11925 = vmatpush3.bf16.msra.mxu0 %v12345_v9  ;;  %11928 = vmatprep.mubr.msk.bf16.mxu0 %vm4700_vm9, %v5991_v59 }
 0x4ad   : >> { %11926 = vmatprep.subr.bf16.mxu0 %v12347_v60 }
 0x4b0   : >> { %11927 = vmatpush3.bf16.msra.mxu0 %v12347_v60 }
 0x4b1   : >> { %11936 = vmatprep.subr.bf16.mxu0 %v12348_v63 }
 0x4b3   : >> { %11929 = vmatmul.mubr.msk.bf16.vlgmr.msra.gmra.mrb[124].mxu0 %vm4700_vm9, %v6000_v62 }
 0x4b4   : >> { %11937 = vmatpush3.bf16.msra.mxu0 %v12348_v63  ;;  %11932 = vmatprep.mubr.msk.bf16.mxu0 %vm4700_vm9, %v6009_v43 }
 0x4b5   : >> { %11938 = vmatprep.subr.bf16.mxu0 %v12349_v0 }
 0x4b8   : >> { %11939 = vmatpush3.bf16.msra.mxu0 %v12349_v0 }
 0x4b9   : >> { %11940 = vmatprep.subr.bf16.mxu0 %v12350_v10 }
 0x4bb   : >> { %11933 = vmatmul.mubr.msk.bf16.gmra.mrb[128].mxu0 %vm4700_vm9, %v6018_v19 }
 0x4bc   : >> { %11941 = vmatpush3.bf16.msra.mxu0 %v12350_v10  ;;  %11944 = vmatprep.mubr.msk.bf16.mxu0 %vm4700_vm9, %v6143_v40 }
 0x4bd   : >> { %11942 = vmatprep.subr.bf16.mxu0 %v12353_v46 }
 0x4c0   : >> { %11943 = vmatpush3.bf16.msra.mxu0 %v12353_v46 }
 0x4c3   : >> { %11945 = vmatmul.mubr.msk.bf16.vlgmr.msra.gmra.mrb[124].mxu0 %vm4700_vm9, %v6145_v49 }
 0x4c4   : >> { %11948 = vmatprep.mubr.msk.bf16.mxu0 %vm4700_vm9, %v6147_v37 }
 0x4cb   : >> { %11949 = vmatmul.mubr.msk.bf16.gmra.mrb[128].mxu0 %vm4700_vm9, %v6149_v2 }
 0x596   : >> { %v11946_v42 = vpop.f32.mrb[124].mxu0 }
 0x597   : >> { %v6268_v47 = vadd.f32 %v11946_v42, %v10675_v39  ;;  %v6220_v22 = vpop.f32.mrb[125].mxu0 }
 0x598   : >> { %v6266_v53 = vadd.f32 %v10675_v39, %v6220_v22  ;;  %v11947_v7 = vpop.f32.mrb[126].mxu0 }
 0x599   : >> { %v6276_v20 = vmax.f32 %v6268_v47, 0.0  ;;  %v6269_v25 = vadd.f32 %v11947_v7, %v10675_v39  ;;  %v6223_v11 = vpop.f32.mrb[127].mxu0 }
 0x59a   : >> { %v6274_v61 = vmax.f32 %v6266_v53, 0.0  ;;  %v6267_v15 = vadd.f32 %v10675_v39, %v6223_v11 }
 0x59b   : >> { %6284 = vst [vmem:[#allocation6 + $0x10] sm:$0xff] %v6276_v20  ;;  %v6277_v56 = vmax.f32 %v6269_v25, 0.0 }
 0x59c   : >> { %6282 = vst [vmem:[#allocation6] sm:$0xff] %v6274_v61  ;;  %v6275_v28 = vmax.f32 %v6267_v15, 0.0 }
 0x59d   : >> { %6285 = vst [vmem:[#allocation6 + $0x18] sm:$0xff] %v6277_v56 }
 0x59e   : >> { %6283 = vst [vmem:[#allocation6 + $0x8] sm:$0xff] %v6275_v28  ;;  %v11950_v26 = vpop.f32.mrb[128].mxu0 }
 0x59f   : >> { %v6272_v50 = vadd.f32 %v11950_v26, %v10675_v39  ;;  %v6236_v24 = vpop.f32.mrb[129].mxu0 }
 0x5a0   : >> { %v11951_v30 = vpop.f32.mrb[130].mxu0  ;;  %v6270_v3 = vadd.f32 %v10675_v39, %v6236_v24 }
 0x5a1   : >> { %v6280_v23 = vmax.f32 %v6272_v50, 0.0  ;;  %v6239_v18 = vpop.f32.mrb[131].mxu0  ;;  %v6273_v0 = vadd.f32 %v11951_v30, %v10675_v39 }
 0x5a2   : >> { %v6322_v1 = vld [vmem:[#allocation6 + $0x10] sm:$0x1]  ;;  %v6323_v6 = vld [vmem:[#allocation6 + $0x11] sm:$0x1]  ;;  %v6329_v9 = vld [vmem:[#allocation6 + $0x14] sm:$0x1]  ;;  %v6271_v62 = vadd.f32 %v10675_v39, %v6239_v18 }
 0x5a3   : >> { %6288 = vst [vmem:[#allocation6 + $0x30] sm:$0xff] %v6280_v23  ;;  %v6324_v5 = vmax.f32 %v6322_v1, %v6323_v6  ;;  %v6330_v32 = vld [vmem:[#allocation6 + $0x15] sm:$0x1]  ;;  %v6290_v35 = vld [vmem:[#allocation6] sm:$0x1]  ;;  %v6278_v40 = vmax.f32 %v6270_v3, 0.0 }
 0x5a4   : >> { %v6291_v31 = vld [vmem:[#allocation6 + $0x1] sm:$0x1]  ;;  %v6319_v27 = vld [vmem:[#allocation6 + $0x6] sm:$0x1]  ;;  %v6320_v4 = vld [vmem:[#allocation6 + $0x7] sm:$0x1]  ;;  %v6331_v36 = vmax.f32 %v6329_v9, %v6330_v32 }
 0x5a5   : >> { %v6332_v12 = vld [vmem:[#allocation6 + $0x1e] sm:$0x1]  ;;  %v6299_v34 = vld [vmem:[#allocation6 + $0x2] sm:$0x1]  ;;  %v6300_v52 = vld [vmem:[#allocation6 + $0x3] sm:$0x1]  ;;  %v6321_v60 = vmax.f32 %v6319_v27, %v6320_v4  ;;  %v6292_v63 = vmax.f32 %v6290_v35, %v6291_v31 }
 0x5a6   : >> { %v6333_v41 = vld [vmem:[#allocation6 + $0x1f] sm:$0x1]  ;;  %v6309_v57 = vld [vmem:[#allocation6 + $0x4] sm:$0x1]  ;;  %v6310_v29 = vld [vmem:[#allocation6 + $0x5] sm:$0x1]  ;;  %v6301_v33 = vmax.f32 %v6299_v34, %v6300_v52 }
 0x5a7   : >> { %v6334_v59 = vmax.f32 %v6332_v12, %v6333_v41  ;;  %v6293_v8 = vld [vmem:[#allocation6 + $0xa] sm:$0x1]  ;;  %v6325_v38 = vmax.f32 %v6321_v60, %v6324_v5  ;;  %v6294_v54 = vld [vmem:[#allocation6 + $0xb] sm:$0x1]  ;;  %v6302_v14 = vld [vmem:[#allocation6 + $0xc] sm:$0x1]  ;;  %v6311_v44 = vmax.f32 %v6309_v57, %v6310_v29 }
 0x5a8   : >> { %v6303_v16 = vld [vmem:[#allocation6 + $0xd] sm:$0x1]  ;;  %v6295_v43 = vmax.f32 %v6293_v8, %v6294_v54  ;;  %v6312_v10 = vld [vmem:[#allocation6 + $0xe] sm:$0x1]  ;;  %v6313_v58 = vld [vmem:[#allocation6 + $0xf] sm:$0x1] }
 0x5a9   : >> { %v6335_v45 = vmax.f32 %v6331_v36, %v6334_v59  ;;  %v6304_v48 = vmax.f32 %v6302_v14, %v6303_v16  ;;  %10678 = vst [vmem:[%s14830_s21 + $0x18] sm:$0x1] %v6325_v38  ;;  %v6314_v51 = vmax.f32 %v6312_v10, %v6313_v58  ;;  %v6281_v17 = vmax.f32 %v6273_v0, 0.0  ;;  %6286 = vst [vmem:[#allocation6 + $0x20] sm:$0xff] %v6278_v40  ;;  %v6339_v49 = vld [vmem:[#allocation6 + $0x16] sm:$0x1] }
 0x5aa   : >> { %v6296_v21 = vmax.f32 %v6292_v63, %v6295_v43  ;;  %v6279_v55 = vmax.f32 %v6271_v62, 0.0  ;;  %v6340_v37 = vld [vmem:[#allocation6 + $0x17] sm:$0x1]  ;;  %v6349_v13 = vld [vmem:[#allocation6 + $0x18] sm:$0x1] }
 0x5ab   : >> { %10679 = vst [vmem:[%s14830_s21 + $0x20] sm:$0x1] %v6335_v45  ;;  %v6305_v46 = vmax.f32 %v6301_v33, %v6304_v48  ;;  %v6315_v19 = vmax.f32 %v6311_v44, %v6314_v51  ;;  %6289 = vst [vmem:[#allocation6 + $0x38] sm:$0xff] %v6281_v17  ;;  %v6350_v2 = vld [vmem:[#allocation6 + $0x19] sm:$0x1]  ;;  %v6341_v56 = vmax.f32 %v6339_v49, %v6340_v37  ;;  %v16367_v33 = vmov (%p424_p5), 0  }
 0x5ac   : >> { %6298 = vst [vmem:[%s14830_s21] sm:$0x1] %v6296_v21  ;;  %6287 = vst [vmem:[#allocation6 + $0x28] sm:$0xff] %v6279_v55  ;;  %v6359_v39 = vld [vmem:[#allocation6 + $0x1a] sm:$0x1]  ;;  %v6360_v42 = vld [vmem:[#allocation6 + $0x1b] sm:$0x1]  ;;  %v6351_v30 = vmax.f32 %v6349_v13, %v6350_v2  ;;  %6669 = vmatprep.mubr.bf16.mxu0 (%p424_p5), %v16367_v33  ;;  %6710 = vmatprep.mubr.bf16.mxu1 (%p424_p5), %v16367_v33 }
 0x5ad   : >> { %10676 = vst [vmem:[%s14830_s21 + $0x8] sm:$0x1] %v6305_v46  ;;  %10677 = vst [vmem:[%s14830_s21 + $0x10] sm:$0x1] %v6315_v19  ;;  %v6372_v47 = vld [vmem:[#allocation6 + $0x32] sm:$0x1]  ;;  %v6361_v23 = vmax.f32 %v6359_v39, %v6360_v42 }
 0x5ae   : >> { %v6373_v22 = vld [vmem:[#allocation6 + $0x33] sm:$0x1]  ;;  %v6382_v53 = vld [vmem:[#allocation6 + $0x34] sm:$0x1]  ;;  %v6383_v7 = vld [vmem:[#allocation6 + $0x35] sm:$0x1] }
 0x5af   : >> { %v6392_v20 = vld [vmem:[#allocation6 + $0x36] sm:$0x1]  ;;  %v6393_v25 = vld [vmem:[#allocation6 + $0x37] sm:$0x1]  ;;  %v6374_v32 = vmax.f32 %v6372_v47, %v6373_v22  ;;  %v6384_v35 = vmax.f32 %v6382_v53, %v6383_v7  ;;  %v12365_v62 = vld [vmem:[%s16181_s7 + $0x104] ss:$16 sps:$4 sm:$0xff] (%p424_p5)  }
 0x5b0   : >> { %v6342_v11 = vld [vmem:[#allocation6 + $0x20] sm:$0x1]  ;;  %v6343_v61 = vld [vmem:[#allocation6 + $0x21] sm:$0x1]  ;;  %v6352_v15 = vld [vmem:[#allocation6 + $0x22] sm:$0x1]  ;;  %v6394_v8 = vmax.f32 %v6392_v20, %v6393_v25  ;;  %6637 = vmatprep.subr.bf16.mxu0 (%p424_p5), %v12365_v62 }
 0x5b1   : >> { %v6344_v28 = vmax.f32 %v6342_v11, %v6343_v61  ;;  %v6353_v26 = vld [vmem:[#allocation6 + $0x23] sm:$0x1]  ;;  %v6362_v50 = vld [vmem:[#allocation6 + $0x24] sm:$0x1]  ;;  %v6363_v24 = vld [vmem:[#allocation6 + $0x25] sm:$0x1] }
 0x5b2   : >> { %v6354_v18 = vmax.f32 %v6352_v15, %v6353_v26  ;;  %v6364_v1 = vmax.f32 %v6362_v50, %v6363_v24  ;;  %v6402_v6 = vld [vmem:[#allocation6 + $0x38] sm:$0x1]  ;;  %v6403_v9 = vld [vmem:[#allocation6 + $0x39] sm:$0x1]  ;;  %v12369_v43 = vld [vmem:[%s16181_s7 + $0x100] ss:$16 sps:$4 sm:$0xff] (%p424_p5)  }
 0x5b3   : >> { %v6369_v5 = vld [vmem:[#allocation6 + $0x28] sm:$0x1]  ;;  %v6345_v31 = vmax.f32 %v6341_v56, %v6344_v28  ;;  %v6404_v27 = vmax.f32 %v6402_v6, %v6403_v9  ;;  %v6370_v4 = vld [vmem:[#allocation6 + $0x29] sm:$0x1]  ;;  %v6379_v12 = vld [vmem:[#allocation6 + $0x2a] sm:$0x1]  ;;  %6638 = vmatpush1.bf16.msra.mxu0 (%p424_p5), %v12369_v43 }
 0x5b4   : >> { %v6380_v34 = vld [vmem:[#allocation6 + $0x2b] sm:$0x1]  ;;  %v6355_v52 = vmax.f32 %v6351_v30, %v6354_v18  ;;  %v6365_v60 = vmax.f32 %v6361_v23, %v6364_v1  ;;  %v6371_v41 = vmax.f32 %v6369_v5, %v6370_v4  ;;  %v6389_v57 = vld [vmem:[#allocation6 + $0x2c] sm:$0x1]  ;;  %v6390_v29 = vld [vmem:[#allocation6 + $0x2d] sm:$0x1] }
 0x5b5   : >> { %v6381_v36 = vmax.f32 %v6379_v12, %v6380_v34  ;;  %v6399_v59 = vld [vmem:[#allocation6 + $0x2e] sm:$0x1]  ;;  %10680 = vst [vmem:[%s14830_s21 + $0x28] sm:$0x1] %v6345_v31  ;;  %v6391_v3 = vmax.f32 %v6389_v57, %v6390_v29  ;;  %v6400_v63 = vld [vmem:[#allocation6 + $0x2f] sm:$0x1] }
 0x5b6   : >> { %10681 = vst [vmem:[%s14830_s21 + $0x30] sm:$0x1] %v6355_v52  ;;  %10682 = vst [vmem:[%s14830_s21 + $0x38] sm:$0x1] %v6365_v60  ;;  %v6375_v38 = vmax.f32 %v6371_v41, %v6374_v32  ;;  %v6401_v14 = vmax.f32 %v6399_v59, %v6400_v63  ;;  %426 = sbr.rel (!%p424_p5) target bundleno = 22 (0x16), region = 248 }
 0x5b7   : >> { %v6385_v54 = vmax.f32 %v6381_v36, %v6384_v35  ;;  %v6395_v16 = vmax.f32 %v6391_v3, %v6394_v8  ;;  %v12367_v45 = vld [vmem:[%s16181_s7 + $0x10c] ss:$16 sps:$4 sm:$0xff] (%p424_p5)   ;;  %v12370_v48 = vld [vmem:[%s16181_s7 + $0x108] ss:$16 sps:$4 sm:$0xff] (%p424_p5)   ;;  %v12371_v10 = vld [vmem:[%s16181_s7 + $0x124] ss:$16 sps:$4 sm:$0xff] (%p424_p5)  }
 0x5b8   : >> { %10683 = vst [vmem:[%s14830_s21 + $0x40] sm:$0x1] %v6375_v38  ;;  %v6405_v0 = vmax.f32 %v6401_v14, %v6404_v27  ;;  %6678 = vmatprep.subr.bf16.mxu1 (%p424_p5), %v12367_v45  ;;  %v12373_v58 = vld [vmem:[%s16181_s7 + $0x12c] ss:$16 sps:$4 sm:$0xff] (%p424_p5)   ;;  %v12375_v44 = vld [vmem:[%s16181_s7 + $0x120] ss:$16 sps:$4 sm:$0xff] (%p424_p5)   ;;  %6639 = vmatprep.subr.bf16.mxu0 (%p424_p5), %v12371_v10 }
 0x5b9   : >> { %10684 = vst [vmem:[%s14830_s21 + $0x48] sm:$0x1] %v6385_v54  ;;  %10685 = vst [vmem:[%s14830_s21 + $0x50] sm:$0x1] %v6395_v16  ;;  %6679 = vmatpush1.bf16.msra.mxu1 (%p424_p5), %v12370_v48  ;;  %v12376_v51 = vld [vmem:[%s16181_s7 + $0x128] ss:$16 sps:$4 sm:$0xff] (%p424_p5)   ;;  %6640 = vmatpush1.bf16.msra.mxu0 (%p424_p5), %v12375_v44 }
 0x5ba   : >> { %10686 = vst [vmem:[%s14830_s21 + $0x58] sm:$0x1] %v6405_v0  ;;  %6680 = vmatprep.subr.bf16.mxu1 (%p424_p5), %v12373_v58  ;;  %v12377_v21 = vld [vmem:[%s16181_s7 + $0x144] ss:$16 sps:$4 sm:$0xff] (%p424_p5)   ;;  %v12379_v46 = vld [vmem:[%s16181_s7 + $0x14c] ss:$16 sps:$4 sm:$0xff] (%p424_p5)  }
 0x5bb   : > { %v12381_v19 = vld [vmem:[%s16181_s7 + $0x140] ss:$16 sps:$4 sm:$0xff] (%p424_p5)   ;;  %v12382_v40 = vld [vmem:[%s16181_s7 + $0x148] ss:$16 sps:$4 sm:$0xff] (%p424_p5)   ;;  %v12383_v17 = vld [vmem:[%s16181_s7 + $0x164] ss:$16 sps:$4 sm:$0xff] (%p424_p5)   ;;  %6641 = vmatprep.subr.bf16.mxu0 (%p424_p5), %v12377_v21 }
 0x5bc   : > { %v12385_v55 = vld [vmem:[%s16181_s7 + $0x16c] ss:$16 sps:$4 sm:$0xff] (%p424_p5)   ;;  %v12387_v49 = vld [vmem:[%s16181_s7 + $0x160] ss:$16 sps:$4 sm:$0xff] (%p424_p5)   ;;  %v12388_v37 = vld [vmem:[%s16181_s7 + $0x168] ss:$16 sps:$4 sm:$0xff] (%p424_p5)  }
 0x5bd   : > { %6681 = vmatpush1.bf16.msra.mxu1 %v12376_v51  ;;  %6642 = vmatpush1.bf16.msra.mxu0 %v12381_v19  ;;  %v12389_v13 = vld [vmem:[%s16181_s7 + $0x184] ss:$16 sps:$4 sm:$0xff]   ;;  %v12391_v2 = vld [vmem:[%s16181_s7 + $0x18c] ss:$16 sps:$4 sm:$0xff]   ;;  %v12393_v39 = vld [vmem:[%s16181_s7 + $0x180] ss:$16 sps:$4 sm:$0xff]  }
 0x5be   : > { %6682 = vmatprep.subr.bf16.mxu1 %v12379_v46  ;;  %6643 = vmatprep.subr.bf16.mxu0 %v12383_v17  ;;  %v12394_v42 = vld [vmem:[%s16181_s7 + $0x188] ss:$16 sps:$4 sm:$0xff]   ;;  %v12395_v47 = vld [vmem:[%s16181_s7 + $0x1a4] ss:$16 sps:$4 sm:$0xff]   ;;  %v12397_v22 = vld [vmem:[%s16181_s7 + $0x1ac] ss:$16 sps:$4 sm:$0xff]  }
 0x5bf   : > { %v12399_v53 = vld [vmem:[%s16181_s7 + $0x1a0] ss:$16 sps:$4 sm:$0xff]   ;;  %v12400_v7 = vld [vmem:[%s16181_s7 + $0x1a8] ss:$16 sps:$4 sm:$0xff]   ;;  %v12401_v20 = vld [vmem:[%s16181_s7 + $0x1c4] ss:$16 sps:$4 sm:$0xff]  }
 0x5c0   : > { %v12403_v25 = vld [vmem:[%s16181_s7 + $0x1cc] ss:$16 sps:$4 sm:$0xff]   ;;  %v12405_v11 = vld [vmem:[%s16181_s7 + $0x1c0] ss:$16 sps:$4 sm:$0xff]   ;;  %v12406_v61 = vld [vmem:[%s16181_s7 + $0x1c8] ss:$16 sps:$4 sm:$0xff]  }
 0x5c1   : > { %6683 = vmatpush1.bf16.msra.mxu1 %v12382_v40  ;;  %6644 = vmatpush1.bf16.msra.mxu0 %v12387_v49  ;;  %v12407_v15 = vld [vmem:[%s16181_s7 + $0x1e4] ss:$16 sps:$4 sm:$0xff]   ;;  %v12409_v56 = vld [vmem:[%s16181_s7 + $0x1ec] ss:$16 sps:$4 sm:$0xff]   ;;  %v12411_v28 = vld [vmem:[%s16181_s7 + $0x1e0] ss:$16 sps:$4 sm:$0xff]  }
 0x5c2   : > { %6684 = vmatprep.subr.bf16.mxu1 %v12385_v55  ;;  %6645 = vmatprep.subr.bf16.mxu0 %v12389_v13  ;;  %v12412_v26 = vld [vmem:[%s16181_s7 + $0x1e8] ss:$16 sps:$4 sm:$0xff]   ;;  %v6443_v50 = vld [vmem:[#allocation7 + $0x8] sm:$0xff]  ;;  %v12415_v24 = vld [vmem:[%s16181_s7 + $0x4] ss:$16 sps:$4 sm:$0xff]  }
 0x5c3   : > { %v12418_v30 = vld [vmem:[%s16181_s7 + $0xc] ss:$16 sps:$4 sm:$0xff]   ;;  %v6444_v23 = vpack.c.bf16 %v6443_v50, %v6443_v50  ;;  %v12413_v18 = vld [vmem:[%s16181_s7] ss:$16 sps:$4 sm:$0xff]   ;;  %v12416_v1 = vld [vmem:[%s16181_s7 + $0x8] ss:$16 sps:$4 sm:$0xff]  }
 0x5c4   : > { %v12421_v6 = vld [vmem:[%s16181_s7 + $0x24] ss:$16 sps:$4 sm:$0xff]   ;;  %v12424_v9 = vld [vmem:[%s16181_s7 + $0x2c] ss:$16 sps:$4 sm:$0xff]   ;;  %v12419_v5 = vld [vmem:[%s16181_s7 + $0x20] ss:$16 sps:$4 sm:$0xff]  }
 0x5c5   : > { %6685 = vmatpush1.bf16.msra.mxu1 %v12388_v37  ;;  %6646 = vmatpush1.bf16.msra.mxu0 %v12393_v39  ;;  %v12422_v32 = vld [vmem:[%s16181_s7 + $0x28] ss:$16 sps:$4 sm:$0xff]   ;;  %v12427_v35 = vld [vmem:[%s16181_s7 + $0x44] ss:$16 sps:$4 sm:$0xff]   ;;  %v12430_v31 = vld [vmem:[%s16181_s7 + $0x4c] ss:$16 sps:$4 sm:$0xff]  }
 0x5c6   : > { %6686 = vmatprep.subr.bf16.mxu1 %v12391_v2  ;;  %6647 = vmatprep.subr.bf16.mxu0 %v12395_v47  ;;  %v12425_v27 = vld [vmem:[%s16181_s7 + $0x40] ss:$16 sps:$4 sm:$0xff]   ;;  %v12428_v4 = vld [vmem:[%s16181_s7 + $0x48] ss:$16 sps:$4 sm:$0xff]   ;;  %v12433_v12 = vld [vmem:[%s16181_s7 + $0x64] ss:$16 sps:$4 sm:$0xff]  }
 0x5c7   : > { %v12436_v34 = vld [vmem:[%s16181_s7 + $0x6c] ss:$16 sps:$4 sm:$0xff]   ;;  %v12431_v52 = vld [vmem:[%s16181_s7 + $0x60] ss:$16 sps:$4 sm:$0xff]   ;;  %v12434_v60 = vld [vmem:[%s16181_s7 + $0x68] ss:$16 sps:$4 sm:$0xff]  }
 0x5c8   : > { %v12439_v41 = vld [vmem:[%s16181_s7 + $0x84] ss:$16 sps:$4 sm:$0xff]   ;;  %v12442_v36 = vld [vmem:[%s16181_s7 + $0x8c] ss:$16 sps:$4 sm:$0xff]   ;;  %v12437_v57 = vld [vmem:[%s16181_s7 + $0x80] ss:$16 sps:$4 sm:$0xff]  }
 0x5c9   : > { %6687 = vmatpush1.bf16.msra.mxu1 %v12394_v42  ;;  %6648 = vmatpush1.bf16.msra.mxu0 %v12399_v53  ;;  %v12440_v29 = vld [vmem:[%s16181_s7 + $0x88] ss:$16 sps:$4 sm:$0xff]   ;;  %v12445_v59 = vld [vmem:[%s16181_s7 + $0xa4] ss:$16 sps:$4 sm:$0xff]   ;;  %v12448_v8 = vld [vmem:[%s16181_s7 + $0xac] ss:$16 sps:$4 sm:$0xff]  }
 0x5ca   : > { %6688 = vmatprep.subr.bf16.mxu1 %v12397_v22  ;;  %6649 = vmatprep.subr.bf16.mxu0 %v12401_v20  ;;  %v12443_v3 = vld [vmem:[%s16181_s7 + $0xa0] ss:$16 sps:$4 sm:$0xff]   ;;  %v12446_v63 = vld [vmem:[%s16181_s7 + $0xa8] ss:$16 sps:$4 sm:$0xff]   ;;  %v12451_v38 = vld [vmem:[%s16181_s7 + $0xc4] ss:$16 sps:$4 sm:$0xff]  }
 0x5cb   : > { %v12454_v54 = vld [vmem:[%s16181_s7 + $0xcc] ss:$16 sps:$4 sm:$0xff]   ;;  %v12449_v14 = vld [vmem:[%s16181_s7 + $0xc0] ss:$16 sps:$4 sm:$0xff]   ;;  %v12452_v16 = vld [vmem:[%s16181_s7 + $0xc8] ss:$16 sps:$4 sm:$0xff]  }
 0x5cc   : > { %v12457_v0 = vld [vmem:[%s16181_s7 + $0xe4] ss:$16 sps:$4 sm:$0xff]   ;;  %v12460_v62 = vld [vmem:[%s16181_s7 + $0xec] ss:$16 sps:$4 sm:$0xff]   ;;  %v12455_v45 = vld [vmem:[%s16181_s7 + $0xe0] ss:$16 sps:$4 sm:$0xff]  }
 0x5cd   : > { %6689 = vmatpush1.bf16.msra.mxu1 %v12400_v7  ;;  %6650 = vmatpush1.bf16.msra.mxu0 %v12405_v11  ;;  %v12458_v43 = vld [vmem:[%s16181_s7 + $0xe8] ss:$16 sps:$4 sm:$0xff]   ;;  %v12463_v10 = vld [vmem:[%s16181_s7 + $0x204] ss:$16 sps:$4 sm:$0xff]   ;;  %v12466_v58 = vld [vmem:[%s16181_s7 + $0x20c] ss:$16 sps:$4 sm:$0xff]  }
 0x5ce   : > { %6690 = vmatprep.subr.bf16.mxu1 %v12403_v25  ;;  %6651 = vmatprep.subr.bf16.mxu0 %v12407_v15  ;;  %v6409_v48 = vld [vmem:[#allocation7] sm:$0xff]  ;;  %v12461_v51 = vld [vmem:[%s16181_s7 + $0x200] ss:$16 sps:$4 sm:$0xff]   ;;  %v12472_v19 = vld [vmem:[%s16181_s7 + $0x22c] ss:$16 sps:$4 sm:$0xff]  }
 0x5cf   : > { %v6410_v44 = vpack.c.bf16 %v6409_v48, %v6409_v48  ;;  %v12464_v21 = vld [vmem:[%s16181_s7 + $0x208] ss:$16 sps:$4 sm:$0xff]   ;;  %v12469_v46 = vld [vmem:[%s16181_s7 + $0x224] ss:$16 sps:$4 sm:$0xff]   ;;  %v12467_v40 = vld [vmem:[%s16181_s7 + $0x220] ss:$16 sps:$4 sm:$0xff]  }
 0x5d0   : > { %v12470_v17 = vld [vmem:[%s16181_s7 + $0x228] ss:$16 sps:$4 sm:$0xff]   ;;  %v12475_v55 = vld [vmem:[%s16181_s7 + $0x244] ss:$16 sps:$4 sm:$0xff]   ;;  %v12478_v49 = vld [vmem:[%s16181_s7 + $0x24c] ss:$16 sps:$4 sm:$0xff]  }
 0x5d1   : > { %6691 = vmatpush1.bf16.msra.mxu1 %v12406_v61  ;;  %6652 = vmatpush1.bf16.msra.mxu0 %v12411_v28  ;;  %v12473_v37 = vld [vmem:[%s16181_s7 + $0x240] ss:$16 sps:$4 sm:$0xff]   ;;  %v12476_v13 = vld [vmem:[%s16181_s7 + $0x248] ss:$16 sps:$4 sm:$0xff]   ;;  %v12481_v2 = vld [vmem:[%s16181_s7 + $0x264] ss:$16 sps:$4 sm:$0xff]  }
 0x5d2   : > { %6692 = vmatprep.subr.bf16.mxu1 %v12409_v56  ;;  %6879 = vmatprep.subr.bf16.mxu0 %v12415_v24  ;;  %v12484_v39 = vld [vmem:[%s16181_s7 + $0x26c] ss:$16 sps:$4 sm:$0xff]   ;;  %v12479_v42 = vld [vmem:[%s16181_s7 + $0x260] ss:$16 sps:$4 sm:$0xff]   ;;  %v12482_v47 = vld [vmem:[%s16181_s7 + $0x268] ss:$16 sps:$4 sm:$0xff]  }
 0x5d3   : > { %v12487_v22 = vld [vmem:[%s16181_s7 + $0x284] ss:$16 sps:$4 sm:$0xff]   ;;  %v12490_v53 = vld [vmem:[%s16181_s7 + $0x28c] ss:$16 sps:$4 sm:$0xff]   ;;  %v12485_v7 = vld [vmem:[%s16181_s7 + $0x280] ss:$16 sps:$4 sm:$0xff]  }
 0x5d4   : > { %6670 = vmatmul.mubr.bf16.vlgmr.msra.gmra.mrb[0].mxu0 %v6444_v23  ;;  %v12488_v20 = vld [vmem:[%s16181_s7 + $0x288] ss:$16 sps:$4 sm:$0xff]   ;;  %v12493_v25 = vld [vmem:[%s16181_s7 + $0x2a4] ss:$16 sps:$4 sm:$0xff]   ;;  %v12496_v11 = vld [vmem:[%s16181_s7 + $0x2ac] ss:$16 sps:$4 sm:$0xff]  }
 0x5d5   : > { %6693 = vmatpush1.bf16.msra.mxu1 %v12412_v26  ;;  %6880 = vmatpush1.bf16.msra.mxu0 %v12413_v18  ;;  %v12491_v61 = vld [vmem:[%s16181_s7 + $0x2a0] ss:$16 sps:$4 sm:$0xff]   ;;  %v12494_v15 = vld [vmem:[%s16181_s7 + $0x2a8] ss:$16 sps:$4 sm:$0xff]   ;;  %v12499_v56 = vld [vmem:[%s16181_s7 + $0x2c4] ss:$16 sps:$4 sm:$0xff]  }
 0x5d6   : > { %6920 = vmatprep.subr.bf16.mxu1 %v12418_v30  ;;  %6881 = vmatprep.subr.bf16.mxu0 %v12421_v6  ;;  %v12502_v28 = vld [vmem:[%s16181_s7 + $0x2cc] ss:$16 sps:$4 sm:$0xff]   ;;  %v12497_v26 = vld [vmem:[%s16181_s7 + $0x2c0] ss:$16 sps:$4 sm:$0xff]   ;;  %v12500_v50 = vld [vmem:[%s16181_s7 + $0x2c8] ss:$16 sps:$4 sm:$0xff]  }
 0x5d7   : > { %6911 = vmatprep.mubr.bf16.mxu0 %v16367_v33  ;;  %v12505_v24 = vld [vmem:[%s16181_s7 + $0x2e4] ss:$16 sps:$4 sm:$0xff]   ;;  %v12508_v30 = vld [vmem:[%s16181_s7 + $0x2ec] ss:$16 sps:$4 sm:$0xff]   ;;  %v12506_v18 = vld [vmem:[%s16181_s7 + $0x2e8] ss:$16 sps:$4 sm:$0xff]  }
 0x5d8   : > { %6711 = vmatmul.mubr.bf16.vlgmr.msra.gmra.mrb[0].mxu1 %v6444_v23  ;;  %v12503_v23 = vld [vmem:[%s16181_s7 + $0x2e0] ss:$16 sps:$4 sm:$0xff]   ;;  %v12511_v6 = vld [vmem:[%s16181_s7 + $0x304] ss:$16 sps:$4 sm:$0xff]   ;;  %v12548_v48 = vld [vmem:[%s16181_s7 + $0x3c8] ss:$16 sps:$4 sm:$0xff]  }
 0x5d9   : > { %6921 = vmatpush1.bf16.msra.mxu1 %v12416_v1  ;;  %6952 = vmatprep.mubr.bf16.mxu1 %v16367_v33  ;;  %v6961_v1 = vld [vmem:[#allocation7 + $0x10] sm:$0xff] }
 0x5da   : > { %6922 = vmatprep.subr.bf16.mxu1 %v12424_v9  ;;  %6882 = vmatpush1.bf16.msra.mxu0 %v12419_v5  ;;  %v12514_v9 = vld [vmem:[%s16181_s7 + $0x30c] ss:$16 sps:$4 sm:$0xff]   ;;  %v6962_v5 = vpack.c.bf16 %v6961_v1, %v6961_v1  ;;  %v12596_v1 = vld [vmem:[%s16181_s7 + $0x4c8] ss:$16 sps:$4 sm:$0xff]  }
 0x5db   : > { %6883 = vmatprep.subr.bf16.mxu0 %v12427_v35  ;;  %v12512_v35 = vld [vmem:[%s16181_s7 + $0x308] ss:$16 sps:$4 sm:$0xff]  }
 0x5dd   : > { %6923 = vmatpush1.bf16.msra.mxu1 %v12422_v32  ;;  %v12509_v32 = vld [vmem:[%s16181_s7 + $0x300] ss:$16 sps:$4 sm:$0xff]  }
 0x5de   : > { %6924 = vmatprep.subr.bf16.mxu1 %v12430_v31  ;;  %6884 = vmatpush1.bf16.msra.mxu0 %v12425_v27  ;;  %v12517_v31 = vld [vmem:[%s16181_s7 + $0x324] ss:$16 sps:$4 sm:$0xff]   ;;  %v12520_v27 = vld [vmem:[%s16181_s7 + $0x32c] ss:$16 sps:$4 sm:$0xff]  }
 0x5df   : > { %6885 = vmatprep.subr.bf16.mxu0 %v12433_v12  ;;  %v12518_v12 = vld [vmem:[%s16181_s7 + $0x328] ss:$16 sps:$4 sm:$0xff]  }
 0x5e1   : > { %6925 = vmatpush1.bf16.msra.mxu1 %v12428_v4  ;;  %v12515_v4 = vld [vmem:[%s16181_s7 + $0x320] ss:$16 sps:$4 sm:$0xff]  }
 0x5e2   : > { %6926 = vmatprep.subr.bf16.mxu1 %v12436_v34  ;;  %6886 = vmatpush1.bf16.msra.mxu0 %v12431_v52  ;;  %v12523_v34 = vld [vmem:[%s16181_s7 + $0x344] ss:$16 sps:$4 sm:$0xff]   ;;  %v12526_v52 = vld [vmem:[%s16181_s7 + $0x34c] ss:$16 sps:$4 sm:$0xff]  }
 0x5e3   : > { %6887 = vmatprep.subr.bf16.mxu0 %v12439_v41  ;;  %v12524_v41 = vld [vmem:[%s16181_s7 + $0x348] ss:$16 sps:$4 sm:$0xff]  }
 0x5e5   : > { %6927 = vmatpush1.bf16.msra.mxu1 %v12434_v60  ;;  %v12521_v60 = vld [vmem:[%s16181_s7 + $0x340] ss:$16 sps:$4 sm:$0xff]  }
 0x5e6   : > { %6928 = vmatprep.subr.bf16.mxu1 %v12442_v36  ;;  %6888 = vmatpush1.bf16.msra.mxu0 %v12437_v57  ;;  %v12529_v36 = vld [vmem:[%s16181_s7 + $0x364] ss:$16 sps:$4 sm:$0xff]   ;;  %v12532_v57 = vld [vmem:[%s16181_s7 + $0x36c] ss:$16 sps:$4 sm:$0xff]  }
 0x5e7   : > { %6889 = vmatprep.subr.bf16.mxu0 %v12445_v59  ;;  %v12530_v59 = vld [vmem:[%s16181_s7 + $0x368] ss:$16 sps:$4 sm:$0xff]  }
 0x5e9   : > { %6929 = vmatpush1.bf16.msra.mxu1 %v12440_v29  ;;  %v12527_v29 = vld [vmem:[%s16181_s7 + $0x360] ss:$16 sps:$4 sm:$0xff]  }
 0x5ea   : > { %6930 = vmatprep.subr.bf16.mxu1 %v12448_v8  ;;  %6890 = vmatpush1.bf16.msra.mxu0 %v12443_v3  ;;  %v12535_v8 = vld [vmem:[%s16181_s7 + $0x384] ss:$16 sps:$4 sm:$0xff]   ;;  %v12538_v3 = vld [vmem:[%s16181_s7 + $0x38c] ss:$16 sps:$4 sm:$0xff]  }
 0x5eb   : > { %6891 = vmatprep.subr.bf16.mxu0 %v12451_v38  ;;  %v12536_v38 = vld [vmem:[%s16181_s7 + $0x388] ss:$16 sps:$4 sm:$0xff]  }
 0x5ed   : > { %6931 = vmatpush1.bf16.msra.mxu1 %v12446_v63  ;;  %v12533_v63 = vld [vmem:[%s16181_s7 + $0x380] ss:$16 sps:$4 sm:$0xff]  }
 0x5ee   : > { %6932 = vmatprep.subr.bf16.mxu1 %v12454_v54  ;;  %6892 = vmatpush1.bf16.msra.mxu0 %v12449_v14  ;;  %v12541_v54 = vld [vmem:[%s16181_s7 + $0x3a4] ss:$16 sps:$4 sm:$0xff]   ;;  %v12544_v14 = vld [vmem:[%s16181_s7 + $0x3ac] ss:$16 sps:$4 sm:$0xff]  }
 0x5ef   : > { %6893 = vmatprep.subr.bf16.mxu0 %v12457_v0  ;;  %v12542_v0 = vld [vmem:[%s16181_s7 + $0x3a8] ss:$16 sps:$4 sm:$0xff]  }
 0x5f1   : > { %6933 = vmatpush1.bf16.msra.mxu1 %v12452_v16  ;;  %v12539_v16 = vld [vmem:[%s16181_s7 + $0x3a0] ss:$16 sps:$4 sm:$0xff]  }
 0x5f2   : > { %6934 = vmatprep.subr.bf16.mxu1 %v12460_v62  ;;  %6894 = vmatpush1.bf16.msra.mxu0 %v12455_v45  ;;  %v12547_v62 = vld [vmem:[%s16181_s7 + $0x3c4] ss:$16 sps:$4 sm:$0xff]   ;;  %v12550_v45 = vld [vmem:[%s16181_s7 + $0x3cc] ss:$16 sps:$4 sm:$0xff]  }
 0x5f3   : > { %7155 = vmatprep.subr.bf16.mxu0 %v12463_v10  ;;  %v12553_v10 = vld [vmem:[%s16181_s7 + $0x3e4] ss:$16 sps:$4 sm:$0xff]  }
 0x5f5   : > { %6935 = vmatpush1.bf16.msra.mxu1 %v12458_v43  ;;  %6912 = vmatmul.mubr.bf16.vlgmr.msra.gmra.mrb[4].mxu0 %v6410_v44  ;;  %v12545_v43 = vld [vmem:[%s16181_s7 + $0x3c0] ss:$16 sps:$4 sm:$0xff]  }
 0x5f6   : > { %7196 = vmatprep.subr.bf16.mxu1 %v12466_v58  ;;  %7156 = vmatpush1.bf16.msra.mxu0 %v12461_v51  ;;  %v12556_v58 = vld [vmem:[%s16181_s7 + $0x3ec] ss:$16 sps:$4 sm:$0xff]   ;;  %v12554_v51 = vld [vmem:[%s16181_s7 + $0x3e8] ss:$16 sps:$4 sm:$0xff]  }
 0x5f7   : > { %7157 = vmatprep.subr.bf16.mxu0 %v12469_v46  ;;  %7187 = vmatprep.mubr.bf16.mxu0 %v16367_v33  ;;  %v12559_v46 = vld [vmem:[%s16181_s7 + $0x404] ss:$16 sps:$4 sm:$0xff]  }
 0x5f8   : > { %6953 = vmatmul.mubr.bf16.vlgmr.msra.gmra.mrb[4].mxu1 %v6410_v44  ;;  %v12551_v44 = vld [vmem:[%s16181_s7 + $0x3e0] ss:$16 sps:$4 sm:$0xff]  }
 0x5f9   : > { %7197 = vmatpush1.bf16.msra.mxu1 %v12464_v21  ;;  %7228 = vmatprep.mubr.bf16.mxu1 %v16367_v33  ;;  %v7241_v21 = vld [vmem:[#allocation7 + $0x18] sm:$0xff] }
 0x5fa   : > { %7198 = vmatprep.subr.bf16.mxu1 %v12472_v19  ;;  %7158 = vmatpush1.bf16.msra.mxu0 %v12467_v40  ;;  %v12562_v19 = vld [vmem:[%s16181_s7 + $0x40c] ss:$16 sps:$4 sm:$0xff]   ;;  %v7242_v40 = vpack.c.bf16 %v7241_v21, %v7241_v21  ;;  %v12644_v21 = vld [vmem:[%s16181_s7 + $0x5c8] ss:$16 sps:$4 sm:$0xff]  }
 0x5fb   : > { %7159 = vmatprep.subr.bf16.mxu0 %v12475_v55  ;;  %v12560_v55 = vld [vmem:[%s16181_s7 + $0x408] ss:$16 sps:$4 sm:$0xff]  }
 0x5fd   : > { %7199 = vmatpush1.bf16.msra.mxu1 %v12470_v17  ;;  %v12557_v17 = vld [vmem:[%s16181_s7 + $0x400] ss:$16 sps:$4 sm:$0xff]  }
 0x5fe   : > { %7200 = vmatprep.subr.bf16.mxu1 %v12478_v49  ;;  %7160 = vmatpush1.bf16.msra.mxu0 %v12473_v37  ;;  %v12565_v49 = vld [vmem:[%s16181_s7 + $0x424] ss:$16 sps:$4 sm:$0xff]   ;;  %v12568_v37 = vld [vmem:[%s16181_s7 + $0x42c] ss:$16 sps:$4 sm:$0xff]  }
 0x5ff   : > { %7161 = vmatprep.subr.bf16.mxu0 %v12481_v2  ;;  %v12566_v2 = vld [vmem:[%s16181_s7 + $0x428] ss:$16 sps:$4 sm:$0xff]  }
 0x601   : > { %7201 = vmatpush1.bf16.msra.mxu1 %v12476_v13  ;;  %v12563_v13 = vld [vmem:[%s16181_s7 + $0x420] ss:$16 sps:$4 sm:$0xff]  }
 0x602   : > { %7202 = vmatprep.subr.bf16.mxu1 %v12484_v39  ;;  %7162 = vmatpush1.bf16.msra.mxu0 %v12479_v42  ;;  %v12571_v39 = vld [vmem:[%s16181_s7 + $0x444] ss:$16 sps:$4 sm:$0xff]   ;;  %v12574_v42 = vld [vmem:[%s16181_s7 + $0x44c] ss:$16 sps:$4 sm:$0xff]  }
 0x603   : > { %7163 = vmatprep.subr.bf16.mxu0 %v12487_v22  ;;  %v12572_v22 = vld [vmem:[%s16181_s7 + $0x448] ss:$16 sps:$4 sm:$0xff]  }
 0x605   : > { %7203 = vmatpush1.bf16.msra.mxu1 %v12482_v47  ;;  %v12569_v47 = vld [vmem:[%s16181_s7 + $0x440] ss:$16 sps:$4 sm:$0xff]  }
 0x606   : > { %7204 = vmatprep.subr.bf16.mxu1 %v12490_v53  ;;  %7164 = vmatpush1.bf16.msra.mxu0 %v12485_v7  ;;  %v12577_v53 = vld [vmem:[%s16181_s7 + $0x464] ss:$16 sps:$4 sm:$0xff]   ;;  %v12580_v7 = vld [vmem:[%s16181_s7 + $0x46c] ss:$16 sps:$4 sm:$0xff]  }
 0x607   : > { %7165 = vmatprep.subr.bf16.mxu0 %v12493_v25  ;;  %v12578_v25 = vld [vmem:[%s16181_s7 + $0x468] ss:$16 sps:$4 sm:$0xff]  }
 0x609   : > { %7205 = vmatpush1.bf16.msra.mxu1 %v12488_v20  ;;  %v12575_v20 = vld [vmem:[%s16181_s7 + $0x460] ss:$16 sps:$4 sm:$0xff]  }
 0x60a   : > { %7206 = vmatprep.subr.bf16.mxu1 %v12496_v11  ;;  %7166 = vmatpush1.bf16.msra.mxu0 %v12491_v61  ;;  %v12583_v11 = vld [vmem:[%s16181_s7 + $0x484] ss:$16 sps:$4 sm:$0xff]   ;;  %v12586_v61 = vld [vmem:[%s16181_s7 + $0x48c] ss:$16 sps:$4 sm:$0xff]  }
 0x60b   : > { %7167 = vmatprep.subr.bf16.mxu0 %v12499_v56  ;;  %v12584_v56 = vld [vmem:[%s16181_s7 + $0x488] ss:$16 sps:$4 sm:$0xff]  }
 0x60d   : > { %7207 = vmatpush1.bf16.msra.mxu1 %v12494_v15  ;;  %v12581_v15 = vld [vmem:[%s16181_s7 + $0x480] ss:$16 sps:$4 sm:$0xff]  }
 0x60e   : > { %7208 = vmatprep.subr.bf16.mxu1 %v12502_v28  ;;  %7168 = vmatpush1.bf16.msra.mxu0 %v12497_v26  ;;  %v12589_v28 = vld [vmem:[%s16181_s7 + $0x4a4] ss:$16 sps:$4 sm:$0xff]   ;;  %v12592_v26 = vld [vmem:[%s16181_s7 + $0x4ac] ss:$16 sps:$4 sm:$0xff]  }
 0x60f   : > { %7169 = vmatprep.subr.bf16.mxu0 %v12505_v24  ;;  %v12590_v24 = vld [vmem:[%s16181_s7 + $0x4a8] ss:$16 sps:$4 sm:$0xff]  }
 0x611   : > { %7209 = vmatpush1.bf16.msra.mxu1 %v12500_v50  ;;  %v12587_v50 = vld [vmem:[%s16181_s7 + $0x4a0] ss:$16 sps:$4 sm:$0xff]  }
 0x612   : > { %7210 = vmatprep.subr.bf16.mxu1 %v12508_v30  ;;  %7170 = vmatpush1.bf16.msra.mxu0 %v12503_v23  ;;  %v12595_v30 = vld [vmem:[%s16181_s7 + $0x4c4] ss:$16 sps:$4 sm:$0xff]   ;;  %v12598_v23 = vld [vmem:[%s16181_s7 + $0x4cc] ss:$16 sps:$4 sm:$0xff]  }
 0x613   : > { %7435 = vmatprep.subr.bf16.mxu0 %v12511_v6  ;;  %v12601_v6 = vld [vmem:[%s16181_s7 + $0x4e4] ss:$16 sps:$4 sm:$0xff]  }
 0x615   : > { %7211 = vmatpush1.bf16.msra.mxu1 %v12506_v18  ;;  %7188 = vmatmul.mubr.bf16.vlgmr.msra.gmra.mrb[8].mxu0 %v6962_v5  ;;  %v12593_v18 = vld [vmem:[%s16181_s7 + $0x4c0] ss:$16 sps:$4 sm:$0xff]  }
 0x616   : > { %7476 = vmatprep.subr.bf16.mxu1 %v12514_v9  ;;  %7436 = vmatpush1.bf16.msra.mxu0 %v12509_v32  ;;  %v12604_v9 = vld [vmem:[%s16181_s7 + $0x4ec] ss:$16 sps:$4 sm:$0xff]   ;;  %v12602_v32 = vld [vmem:[%s16181_s7 + $0x4e8] ss:$16 sps:$4 sm:$0xff]  }
 0x617   : > { %7437 = vmatprep.subr.bf16.mxu0 %v12517_v31  ;;  %7467 = vmatprep.mubr.bf16.mxu0 %v16367_v33  ;;  %v12607_v31 = vld [vmem:[%s16181_s7 + $0x504] ss:$16 sps:$4 sm:$0xff]  }
 0x618   : > { %7229 = vmatmul.mubr.bf16.vlgmr.msra.gmra.mrb[8].mxu1 %v6962_v5  ;;  %v12599_v5 = vld [vmem:[%s16181_s7 + $0x4e0] ss:$16 sps:$4 sm:$0xff]  }
 0x619   : > { %7477 = vmatpush1.bf16.msra.mxu1 %v12512_v35  ;;  %7508 = vmatprep.mubr.bf16.mxu1 %v16367_v33  ;;  %v7521_v35 = vld [vmem:[#allocation7 + $0x20] sm:$0xff] }
 0x61a   : > { %7478 = vmatprep.subr.bf16.mxu1 %v12520_v27  ;;  %7438 = vmatpush1.bf16.msra.mxu0 %v12515_v4  ;;  %v12610_v27 = vld [vmem:[%s16181_s7 + $0x50c] ss:$16 sps:$4 sm:$0xff]   ;;  %v7522_v4 = vpack.c.bf16 %v7521_v35, %v7521_v35  ;;  %v12692_v35 = vld [vmem:[%s16181_s7 + $0x6c8] ss:$16 sps:$4 sm:$0xff]  }
 0x61b   : > { %7439 = vmatprep.subr.bf16.mxu0 %v12523_v34  ;;  %v12608_v34 = vld [vmem:[%s16181_s7 + $0x508] ss:$16 sps:$4 sm:$0xff]  }
 0x61d   : > { %7479 = vmatpush1.bf16.msra.mxu1 %v12518_v12  ;;  %v12605_v12 = vld [vmem:[%s16181_s7 + $0x500] ss:$16 sps:$4 sm:$0xff]  }
 0x61e   : > { %7480 = vmatprep.subr.bf16.mxu1 %v12526_v52  ;;  %7440 = vmatpush1.bf16.msra.mxu0 %v12521_v60  ;;  %v12613_v52 = vld [vmem:[%s16181_s7 + $0x524] ss:$16 sps:$4 sm:$0xff]   ;;  %v12616_v60 = vld [vmem:[%s16181_s7 + $0x52c] ss:$16 sps:$4 sm:$0xff]  }
 0x61f   : > { %7441 = vmatprep.subr.bf16.mxu0 %v12529_v36  ;;  %v12614_v36 = vld [vmem:[%s16181_s7 + $0x528] ss:$16 sps:$4 sm:$0xff]  }
 0x621   : > { %7481 = vmatpush1.bf16.msra.mxu1 %v12524_v41  ;;  %v12611_v41 = vld [vmem:[%s16181_s7 + $0x520] ss:$16 sps:$4 sm:$0xff]  }
 0x622   : > { %7482 = vmatprep.subr.bf16.mxu1 %v12532_v57  ;;  %7442 = vmatpush1.bf16.msra.mxu0 %v12527_v29  ;;  %v12619_v57 = vld [vmem:[%s16181_s7 + $0x544] ss:$16 sps:$4 sm:$0xff]   ;;  %v12622_v29 = vld [vmem:[%s16181_s7 + $0x54c] ss:$16 sps:$4 sm:$0xff]  }
 0x623   : > { %7443 = vmatprep.subr.bf16.mxu0 %v12535_v8  ;;  %v12620_v8 = vld [vmem:[%s16181_s7 + $0x548] ss:$16 sps:$4 sm:$0xff]  }
 0x625   : > { %7483 = vmatpush1.bf16.msra.mxu1 %v12530_v59  ;;  %v12617_v59 = vld [vmem:[%s16181_s7 + $0x540] ss:$16 sps:$4 sm:$0xff]  }
 0x626   : > { %7484 = vmatprep.subr.bf16.mxu1 %v12538_v3  ;;  %7444 = vmatpush1.bf16.msra.mxu0 %v12533_v63  ;;  %v12625_v3 = vld [vmem:[%s16181_s7 + $0x564] ss:$16 sps:$4 sm:$0xff]   ;;  %v12628_v63 = vld [vmem:[%s16181_s7 + $0x56c] ss:$16 sps:$4 sm:$0xff]  }
 0x627   : > { %7445 = vmatprep.subr.bf16.mxu0 %v12541_v54  ;;  %v12626_v54 = vld [vmem:[%s16181_s7 + $0x568] ss:$16 sps:$4 sm:$0xff]  }
 0x629   : > { %7485 = vmatpush1.bf16.msra.mxu1 %v12536_v38  ;;  %v12623_v38 = vld [vmem:[%s16181_s7 + $0x560] ss:$16 sps:$4 sm:$0xff]  }
 0x62a   : > { %7486 = vmatprep.subr.bf16.mxu1 %v12544_v14  ;;  %7446 = vmatpush1.bf16.msra.mxu0 %v12539_v16  ;;  %v12631_v14 = vld [vmem:[%s16181_s7 + $0x584] ss:$16 sps:$4 sm:$0xff]   ;;  %v12634_v16 = vld [vmem:[%s16181_s7 + $0x58c] ss:$16 sps:$4 sm:$0xff]  }
 0x62b   : > { %7447 = vmatprep.subr.bf16.mxu0 %v12547_v62  ;;  %v12632_v62 = vld [vmem:[%s16181_s7 + $0x588] ss:$16 sps:$4 sm:$0xff]  }
 0x62d   : > { %7487 = vmatpush1.bf16.msra.mxu1 %v12542_v0  ;;  %v12629_v0 = vld [vmem:[%s16181_s7 + $0x580] ss:$16 sps:$4 sm:$0xff]  }
 0x62e   : > { %7488 = vmatprep.subr.bf16.mxu1 %v12550_v45  ;;  %7448 = vmatpush1.bf16.msra.mxu0 %v12545_v43  ;;  %v12637_v45 = vld [vmem:[%s16181_s7 + $0x5a4] ss:$16 sps:$4 sm:$0xff]   ;;  %v12640_v43 = vld [vmem:[%s16181_s7 + $0x5ac] ss:$16 sps:$4 sm:$0xff]  }
 0x62f   : > { %7449 = vmatprep.subr.bf16.mxu0 %v12553_v10  ;;  %v12638_v10 = vld [vmem:[%s16181_s7 + $0x5a8] ss:$16 sps:$4 sm:$0xff]  }
 0x631   : > { %7489 = vmatpush1.bf16.msra.mxu1 %v12548_v48  ;;  %v12635_v48 = vld [vmem:[%s16181_s7 + $0x5a0] ss:$16 sps:$4 sm:$0xff]  }
 0x632   : > { %7490 = vmatprep.subr.bf16.mxu1 %v12556_v58  ;;  %7450 = vmatpush1.bf16.msra.mxu0 %v12551_v44  ;;  %v12643_v58 = vld [vmem:[%s16181_s7 + $0x5c4] ss:$16 sps:$4 sm:$0xff]   ;;  %v12646_v44 = vld [vmem:[%s16181_s7 + $0x5cc] ss:$16 sps:$4 sm:$0xff]  }
 0x633   : > { %7715 = vmatprep.subr.bf16.mxu0 %v12559_v46  ;;  %v12649_v46 = vld [vmem:[%s16181_s7 + $0x5e4] ss:$16 sps:$4 sm:$0xff]  }
 0x635   : > { %7491 = vmatpush1.bf16.msra.mxu1 %v12554_v51  ;;  %7468 = vmatmul.mubr.bf16.vlgmr.msra.gmra.mrb[12].mxu0 %v7242_v40  ;;  %v12641_v51 = vld [vmem:[%s16181_s7 + $0x5c0] ss:$16 sps:$4 sm:$0xff]  }
 0x636   : > { %7756 = vmatprep.subr.bf16.mxu1 %v12562_v19  ;;  %7716 = vmatpush1.bf16.msra.mxu0 %v12557_v17  ;;  %v12652_v19 = vld [vmem:[%s16181_s7 + $0x5ec] ss:$16 sps:$4 sm:$0xff]   ;;  %v12650_v17 = vld [vmem:[%s16181_s7 + $0x5e8] ss:$16 sps:$4 sm:$0xff]  }
 0x637   : > { %7717 = vmatprep.subr.bf16.mxu0 %v12565_v49  ;;  %7747 = vmatprep.mubr.bf16.mxu0 %v16367_v33  ;;  %v12655_v49 = vld [vmem:[%s16181_s7 + $0x604] ss:$16 sps:$4 sm:$0xff]  }
 0x638   : > { %7509 = vmatmul.mubr.bf16.vlgmr.msra.gmra.mrb[12].mxu1 %v7242_v40  ;;  %v12647_v40 = vld [vmem:[%s16181_s7 + $0x5e0] ss:$16 sps:$4 sm:$0xff]  }
 0x639   : > { %7757 = vmatpush1.bf16.msra.mxu1 %v12560_v55  ;;  %7788 = vmatprep.mubr.bf16.mxu1 %v16367_v33  ;;  %v7801_v55 = vld [vmem:[#allocation7 + $0x28] sm:$0xff] }
 0x63a   : > { %7758 = vmatprep.subr.bf16.mxu1 %v12568_v37  ;;  %7718 = vmatpush1.bf16.msra.mxu0 %v12563_v13  ;;  %v12658_v37 = vld [vmem:[%s16181_s7 + $0x60c] ss:$16 sps:$4 sm:$0xff]   ;;  %v7802_v13 = vpack.c.bf16 %v7801_v55, %v7801_v55 }
 0x63b   : > { %7719 = vmatprep.subr.bf16.mxu0 %v12571_v39  ;;  %v12656_v39 = vld [vmem:[%s16181_s7 + $0x608] ss:$16 sps:$4 sm:$0xff]  }
 0x63d   : > { %7759 = vmatpush1.bf16.msra.mxu1 %v12566_v2  ;;  %v12653_v2 = vld [vmem:[%s16181_s7 + $0x600] ss:$16 sps:$4 sm:$0xff]  }
 0x63e   : > { %7760 = vmatprep.subr.bf16.mxu1 %v12574_v42  ;;  %7720 = vmatpush1.bf16.msra.mxu0 %v12569_v47  ;;  %v12661_v42 = vld [vmem:[%s16181_s7 + $0x624] ss:$16 sps:$4 sm:$0xff]   ;;  %v12664_v47 = vld [vmem:[%s16181_s7 + $0x62c] ss:$16 sps:$4 sm:$0xff]  }
 0x63f   : > { %7721 = vmatprep.subr.bf16.mxu0 %v12577_v53  ;;  %v12662_v53 = vld [vmem:[%s16181_s7 + $0x628] ss:$16 sps:$4 sm:$0xff]  }
 0x641   : > { %7761 = vmatpush1.bf16.msra.mxu1 %v12572_v22  ;;  %v12659_v22 = vld [vmem:[%s16181_s7 + $0x620] ss:$16 sps:$4 sm:$0xff]  }
 0x642   : > { %7762 = vmatprep.subr.bf16.mxu1 %v12580_v7  ;;  %7722 = vmatpush1.bf16.msra.mxu0 %v12575_v20  ;;  %v12667_v7 = vld [vmem:[%s16181_s7 + $0x644] ss:$16 sps:$4 sm:$0xff]   ;;  %v12670_v20 = vld [vmem:[%s16181_s7 + $0x64c] ss:$16 sps:$4 sm:$0xff]  }
 0x643   : > { %7723 = vmatprep.subr.bf16.mxu0 %v12583_v11  ;;  %v12668_v11 = vld [vmem:[%s16181_s7 + $0x648] ss:$16 sps:$4 sm:$0xff]  }
 0x645   : > { %7763 = vmatpush1.bf16.msra.mxu1 %v12578_v25  ;;  %v12665_v25 = vld [vmem:[%s16181_s7 + $0x640] ss:$16 sps:$4 sm:$0xff]  }
 0x646   : > { %7764 = vmatprep.subr.bf16.mxu1 %v12586_v61  ;;  %7724 = vmatpush1.bf16.msra.mxu0 %v12581_v15  ;;  %v12673_v61 = vld [vmem:[%s16181_s7 + $0x664] ss:$16 sps:$4 sm:$0xff]   ;;  %v12676_v15 = vld [vmem:[%s16181_s7 + $0x66c] ss:$16 sps:$4 sm:$0xff]  }
 0x647   : > { %7725 = vmatprep.subr.bf16.mxu0 %v12589_v28  ;;  %v12674_v28 = vld [vmem:[%s16181_s7 + $0x668] ss:$16 sps:$4 sm:$0xff]  }
 0x649   : > { %7765 = vmatpush1.bf16.msra.mxu1 %v12584_v56  ;;  %v12671_v56 = vld [vmem:[%s16181_s7 + $0x660] ss:$16 sps:$4 sm:$0xff]  }
 0x64a   : > { %7766 = vmatprep.subr.bf16.mxu1 %v12592_v26  ;;  %7726 = vmatpush1.bf16.msra.mxu0 %v12587_v50  ;;  %v12679_v26 = vld [vmem:[%s16181_s7 + $0x684] ss:$16 sps:$4 sm:$0xff]   ;;  %v12682_v50 = vld [vmem:[%s16181_s7 + $0x68c] ss:$16 sps:$4 sm:$0xff]  }
 0x64b   : > { %7727 = vmatprep.subr.bf16.mxu0 %v12595_v30  ;;  %v12680_v30 = vld [vmem:[%s16181_s7 + $0x688] ss:$16 sps:$4 sm:$0xff]  }
 0x64d   : > { %7767 = vmatpush1.bf16.msra.mxu1 %v12590_v24  ;;  %v12677_v24 = vld [vmem:[%s16181_s7 + $0x680] ss:$16 sps:$4 sm:$0xff]  }
 0x64e   : > { %7768 = vmatprep.subr.bf16.mxu1 %v12598_v23  ;;  %7728 = vmatpush1.bf16.msra.mxu0 %v12593_v18  ;;  %v12685_v23 = vld [vmem:[%s16181_s7 + $0x6a4] ss:$16 sps:$4 sm:$0xff]   ;;  %v12688_v18 = vld [vmem:[%s16181_s7 + $0x6ac] ss:$16 sps:$4 sm:$0xff]  }
 0x64f   : > { %7729 = vmatprep.subr.bf16.mxu0 %v12601_v6  ;;  %v12686_v6 = vld [vmem:[%s16181_s7 + $0x6a8] ss:$16 sps:$4 sm:$0xff]  }
 0x651   : > { %7769 = vmatpush1.bf16.msra.mxu1 %v12596_v1  ;;  %v12683_v1 = vld [vmem:[%s16181_s7 + $0x6a0] ss:$16 sps:$4 sm:$0xff]  }
 0x652   : > { %7770 = vmatprep.subr.bf16.mxu1 %v12604_v9  ;;  %7730 = vmatpush1.bf16.msra.mxu0 %v12599_v5  ;;  %v12691_v9 = vld [vmem:[%s16181_s7 + $0x6c4] ss:$16 sps:$4 sm:$0xff]   ;;  %v12694_v5 = vld [vmem:[%s16181_s7 + $0x6cc] ss:$16 sps:$4 sm:$0xff]  }
 0x653   : > { %7995 = vmatprep.subr.bf16.mxu0 %v12607_v31  ;;  %v12697_v31 = vld [vmem:[%s16181_s7 + $0x6e4] ss:$16 sps:$4 sm:$0xff]  }
 0x655   : > { %7771 = vmatpush1.bf16.msra.mxu1 %v12602_v32  ;;  %7748 = vmatmul.mubr.bf16.vlgmr.msra.gmra.mrb[16].mxu0 %v7522_v4  ;;  %v12689_v32 = vld [vmem:[%s16181_s7 + $0x6c0] ss:$16 sps:$4 sm:$0xff]  }
 0x656   : > { %8036 = vmatprep.subr.bf16.mxu1 %v12610_v27  ;;  %7996 = vmatpush1.bf16.msra.mxu0 %v12605_v12  ;;  %v12700_v27 = vld [vmem:[%s16181_s7 + $0x6ec] ss:$16 sps:$4 sm:$0xff]   ;;  %v12698_v12 = vld [vmem:[%s16181_s7 + $0x6e8] ss:$16 sps:$4 sm:$0xff]  }
 0x657   : > { %7997 = vmatprep.subr.bf16.mxu0 %v12613_v52  ;;  %8027 = vmatprep.mubr.bf16.mxu0 %v16367_v33  ;;  %v12703_v52 = vld [vmem:[%s16181_s7 + $0x704] ss:$16 sps:$4 sm:$0xff]  }
 0x658   : > { %7789 = vmatmul.mubr.bf16.vlgmr.msra.gmra.mrb[16].mxu1 %v7522_v4  ;;  %v12695_v4 = vld [vmem:[%s16181_s7 + $0x6e0] ss:$16 sps:$4 sm:$0xff]  }
 0x659   : > { %8037 = vmatpush1.bf16.msra.mxu1 %v12608_v34  ;;  %8068 = vmatprep.mubr.bf16.mxu1 %v16367_v33  ;;  %v8081_v34 = vld [vmem:[#allocation7 + $0x30] sm:$0xff] }
 0x65a   : > { %8038 = vmatprep.subr.bf16.mxu1 %v12616_v60  ;;  %7998 = vmatpush1.bf16.msra.mxu0 %v12611_v41  ;;  %v12706_v60 = vld [vmem:[%s16181_s7 + $0x70c] ss:$16 sps:$4 sm:$0xff]   ;;  %v8082_v41 = vpack.c.bf16 %v8081_v34, %v8081_v34  ;;  %v12776_v34 = vld [vmem:[%s16181_s7 + $0x888] ss:$16 sps:$4 sm:$0xff]  }
 0x65b   : > { %7999 = vmatprep.subr.bf16.mxu0 %v12619_v57  ;;  %v12704_v57 = vld [vmem:[%s16181_s7 + $0x708] ss:$16 sps:$4 sm:$0xff]  }
 0x65d   : > { %8039 = vmatpush1.bf16.msra.mxu1 %v12614_v36  ;;  %v12701_v36 = vld [vmem:[%s16181_s7 + $0x700] ss:$16 sps:$4 sm:$0xff]  }
 0x65e   : > { %8040 = vmatprep.subr.bf16.mxu1 %v12622_v29  ;;  %8000 = vmatpush1.bf16.msra.mxu0 %v12617_v59  ;;  %v12709_v29 = vld [vmem:[%s16181_s7 + $0x724] ss:$16 sps:$4 sm:$0xff]   ;;  %v12712_v59 = vld [vmem:[%s16181_s7 + $0x72c] ss:$16 sps:$4 sm:$0xff]  }
 0x65f   : > { %8001 = vmatprep.subr.bf16.mxu0 %v12625_v3  ;;  %v12710_v3 = vld [vmem:[%s16181_s7 + $0x728] ss:$16 sps:$4 sm:$0xff]  }
 0x661   : > { %8041 = vmatpush1.bf16.msra.mxu1 %v12620_v8  ;;  %v12707_v8 = vld [vmem:[%s16181_s7 + $0x720] ss:$16 sps:$4 sm:$0xff]  }
 0x662   : > { %8042 = vmatprep.subr.bf16.mxu1 %v12628_v63  ;;  %8002 = vmatpush1.bf16.msra.mxu0 %v12623_v38  ;;  %v12715_v63 = vld [vmem:[%s16181_s7 + $0x744] ss:$16 sps:$4 sm:$0xff]   ;;  %v12718_v38 = vld [vmem:[%s16181_s7 + $0x74c] ss:$16 sps:$4 sm:$0xff]  }
 0x663   : > { %8003 = vmatprep.subr.bf16.mxu0 %v12631_v14  ;;  %v12716_v14 = vld [vmem:[%s16181_s7 + $0x748] ss:$16 sps:$4 sm:$0xff]  }
 0x665   : > { %8043 = vmatpush1.bf16.msra.mxu1 %v12626_v54  ;;  %v12713_v54 = vld [vmem:[%s16181_s7 + $0x740] ss:$16 sps:$4 sm:$0xff]  }
 0x666   : > { %8044 = vmatprep.subr.bf16.mxu1 %v12634_v16  ;;  %8004 = vmatpush1.bf16.msra.mxu0 %v12629_v0  ;;  %v12721_v16 = vld [vmem:[%s16181_s7 + $0x764] ss:$16 sps:$4 sm:$0xff]   ;;  %v12724_v0 = vld [vmem:[%s16181_s7 + $0x76c] ss:$16 sps:$4 sm:$0xff]  }
 0x667   : > { %8005 = vmatprep.subr.bf16.mxu0 %v12637_v45  ;;  %v12722_v45 = vld [vmem:[%s16181_s7 + $0x768] ss:$16 sps:$4 sm:$0xff]  }
 0x669   : > { %8045 = vmatpush1.bf16.msra.mxu1 %v12632_v62  ;;  %v12719_v62 = vld [vmem:[%s16181_s7 + $0x760] ss:$16 sps:$4 sm:$0xff]  }
 0x66a   : > { %8046 = vmatprep.subr.bf16.mxu1 %v12640_v43  ;;  %8006 = vmatpush1.bf16.msra.mxu0 %v12635_v48  ;;  %v12727_v43 = vld [vmem:[%s16181_s7 + $0x784] ss:$16 sps:$4 sm:$0xff]   ;;  %v12730_v48 = vld [vmem:[%s16181_s7 + $0x78c] ss:$16 sps:$4 sm:$0xff]  }
 0x66b   : > { %8007 = vmatprep.subr.bf16.mxu0 %v12643_v58  ;;  %v12728_v58 = vld [vmem:[%s16181_s7 + $0x788] ss:$16 sps:$4 sm:$0xff]  }
 0x66d   : > { %8047 = vmatpush1.bf16.msra.mxu1 %v12638_v10  ;;  %v12725_v10 = vld [vmem:[%s16181_s7 + $0x780] ss:$16 sps:$4 sm:$0xff]  }
 0x66e   : > { %8048 = vmatprep.subr.bf16.mxu1 %v12646_v44  ;;  %8008 = vmatpush1.bf16.msra.mxu0 %v12641_v51  ;;  %v12733_v44 = vld [vmem:[%s16181_s7 + $0x7a4] ss:$16 sps:$4 sm:$0xff]   ;;  %v12736_v51 = vld [vmem:[%s16181_s7 + $0x7ac] ss:$16 sps:$4 sm:$0xff]  }
 0x66f   : > { %8009 = vmatprep.subr.bf16.mxu0 %v12649_v46  ;;  %v12734_v46 = vld [vmem:[%s16181_s7 + $0x7a8] ss:$16 sps:$4 sm:$0xff]  }
 0x671   : > { %8049 = vmatpush1.bf16.msra.mxu1 %v12644_v21  ;;  %v12731_v21 = vld [vmem:[%s16181_s7 + $0x7a0] ss:$16 sps:$4 sm:$0xff]  }
 0x672   : > { %8050 = vmatprep.subr.bf16.mxu1 %v12652_v19  ;;  %8010 = vmatpush1.bf16.msra.mxu0 %v12647_v40  ;;  %v12739_v19 = vld [vmem:[%s16181_s7 + $0x7c4] ss:$16 sps:$4 sm:$0xff]   ;;  %v12742_v40 = vld [vmem:[%s16181_s7 + $0x7cc] ss:$16 sps:$4 sm:$0xff]  }
 0x673   : > { %8275 = vmatprep.subr.bf16.mxu0 %v12655_v49 }
 0x675   : > { %8051 = vmatpush1.bf16.msra.mxu1 %v12650_v17  ;;  %8028 = vmatmul.mubr.bf16.vlgmr.msra.gmra.mrb[20].mxu0 %v7802_v13 }
 0x676   : > { %8316 = vmatprep.subr.bf16.mxu1 %v12658_v37  ;;  %8276 = vmatpush1.bf16.msra.mxu0 %v12653_v2  ;;  %v12740_v2 = vld [vmem:[%s16181_s7 + $0x7c8] ss:$16 sps:$4 sm:$0xff]  }
 0x677   : > { %8277 = vmatprep.subr.bf16.mxu0 %v12661_v42  ;;  %8307 = vmatprep.mubr.bf16.mxu0 %v16367_v33 }
 0x678   : > { %8069 = vmatmul.mubr.bf16.vlgmr.msra.gmra.mrb[20].mxu1 %v7802_v13  ;;  %v12737_v13 = vld [vmem:[%s16181_s7 + $0x7c0] ss:$16 sps:$4 sm:$0xff]  }
 0x679   : > { %8317 = vmatpush1.bf16.msra.mxu1 %v12656_v39  ;;  %8348 = vmatprep.mubr.bf16.mxu1 %v16367_v33 }
 0x67a   : > { %8318 = vmatprep.subr.bf16.mxu1 %v12664_v47  ;;  %8278 = vmatpush1.bf16.msra.mxu0 %v12659_v22  ;;  %v12745_v47 = vld [vmem:[%s16181_s7 + $0x7e4] ss:$16 sps:$4 sm:$0xff]  }
 0x67b   : > { %8279 = vmatprep.subr.bf16.mxu0 %v12667_v7  ;;  %v12748_v7 = vld [vmem:[%s16181_s7 + $0x7ec] ss:$16 sps:$4 sm:$0xff]  }
 0x67d   : > { %8319 = vmatpush1.bf16.msra.mxu1 %v12662_v53 }
 0x67e   : > { %8320 = vmatprep.subr.bf16.mxu1 %v12670_v20  ;;  %8280 = vmatpush1.bf16.msra.mxu0 %v12665_v25  ;;  %v12743_v20 = vld [vmem:[%s16181_s7 + $0x7e0] ss:$16 sps:$4 sm:$0xff]   ;;  %v12746_v25 = vld [vmem:[%s16181_s7 + $0x7e8] ss:$16 sps:$4 sm:$0xff]  }
 0x67f   : > { %8281 = vmatprep.subr.bf16.mxu0 %v12673_v61  ;;  %v12751_v61 = vld [vmem:[%s16181_s7 + $0x804] ss:$16 sps:$4 sm:$0xff]  }
 0x681   : > { %8321 = vmatpush1.bf16.msra.mxu1 %v12668_v11  ;;  %v8361_v11 = vld [vmem:[#allocation7 + $0x38] sm:$0xff] }
 0x682   : > { %8322 = vmatprep.subr.bf16.mxu1 %v12676_v15  ;;  %8282 = vmatpush1.bf16.msra.mxu0 %v12671_v56  ;;  %v12754_v15 = vld [vmem:[%s16181_s7 + $0x80c] ss:$16 sps:$4 sm:$0xff]   ;;  %v8362_v56 = vpack.c.bf16 %v8361_v11, %v8361_v11  ;;  %v12818_v11 = vld [vmem:[%s16181_s7 + $0x968] ss:$16 sps:$4 sm:$0xff]  }
 0x683   : > { %8283 = vmatprep.subr.bf16.mxu0 %v12679_v26  ;;  %v12752_v26 = vld [vmem:[%s16181_s7 + $0x808] ss:$16 sps:$4 sm:$0xff]  }
 0x685   : > { %8323 = vmatpush1.bf16.msra.mxu1 %v12674_v28  ;;  %v12749_v28 = vld [vmem:[%s16181_s7 + $0x800] ss:$16 sps:$4 sm:$0xff]  }
 0x686   : > { %8324 = vmatprep.subr.bf16.mxu1 %v12682_v50  ;;  %8284 = vmatpush1.bf16.msra.mxu0 %v12677_v24  ;;  %v12757_v50 = vld [vmem:[%s16181_s7 + $0x824] ss:$16 sps:$4 sm:$0xff]   ;;  %v12760_v24 = vld [vmem:[%s16181_s7 + $0x82c] ss:$16 sps:$4 sm:$0xff]  }
 0x687   : > { %8285 = vmatprep.subr.bf16.mxu0 %v12685_v23  ;;  %v12758_v23 = vld [vmem:[%s16181_s7 + $0x828] ss:$16 sps:$4 sm:$0xff]  }
 0x689   : > { %8325 = vmatpush1.bf16.msra.mxu1 %v12680_v30  ;;  %v12755_v30 = vld [vmem:[%s16181_s7 + $0x820] ss:$16 sps:$4 sm:$0xff]  }
 0x68a   : > { %8326 = vmatprep.subr.bf16.mxu1 %v12688_v18  ;;  %8286 = vmatpush1.bf16.msra.mxu0 %v12683_v1  ;;  %v12763_v18 = vld [vmem:[%s16181_s7 + $0x844] ss:$16 sps:$4 sm:$0xff]   ;;  %v12766_v1 = vld [vmem:[%s16181_s7 + $0x84c] ss:$16 sps:$4 sm:$0xff]  }
 0x68b   : > { %8287 = vmatprep.subr.bf16.mxu0 %v12691_v9  ;;  %v12764_v9 = vld [vmem:[%s16181_s7 + $0x848] ss:$16 sps:$4 sm:$0xff]  }
 0x68d   : > { %8327 = vmatpush1.bf16.msra.mxu1 %v12686_v6  ;;  %v12761_v6 = vld [vmem:[%s16181_s7 + $0x840] ss:$16 sps:$4 sm:$0xff]  }
 0x68e   : > { %8328 = vmatprep.subr.bf16.mxu1 %v12694_v5  ;;  %8288 = vmatpush1.bf16.msra.mxu0 %v12689_v32  ;;  %v12769_v5 = vld [vmem:[%s16181_s7 + $0x864] ss:$16 sps:$4 sm:$0xff]   ;;  %v12772_v32 = vld [vmem:[%s16181_s7 + $0x86c] ss:$16 sps:$4 sm:$0xff]  }
 0x68f   : > { %8289 = vmatprep.subr.bf16.mxu0 %v12697_v31  ;;  %v12770_v31 = vld [vmem:[%s16181_s7 + $0x868] ss:$16 sps:$4 sm:$0xff]  }
 0x691   : > { %8329 = vmatpush1.bf16.msra.mxu1 %v12692_v35  ;;  %v12767_v35 = vld [vmem:[%s16181_s7 + $0x860] ss:$16 sps:$4 sm:$0xff]  }
 0x692   : > { %8330 = vmatprep.subr.bf16.mxu1 %v12700_v27  ;;  %8290 = vmatpush1.bf16.msra.mxu0 %v12695_v4  ;;  %v12775_v27 = vld [vmem:[%s16181_s7 + $0x884] ss:$16 sps:$4 sm:$0xff]   ;;  %v12778_v4 = vld [vmem:[%s16181_s7 + $0x88c] ss:$16 sps:$4 sm:$0xff]  }
 0x693   : > { %8555 = vmatprep.subr.bf16.mxu0 %v12703_v52  ;;  %v12781_v52 = vld [vmem:[%s16181_s7 + $0x8a4] ss:$16 sps:$4 sm:$0xff]  }
 0x695   : > { %8331 = vmatpush1.bf16.msra.mxu1 %v12698_v12  ;;  %8308 = vmatmul.mubr.bf16.vlgmr.msra.gmra.mrb[24].mxu0 %v8082_v41  ;;  %v12773_v12 = vld [vmem:[%s16181_s7 + $0x880] ss:$16 sps:$4 sm:$0xff]  }
 0x696   : > { %8596 = vmatprep.subr.bf16.mxu1 %v12706_v60  ;;  %8556 = vmatpush1.bf16.msra.mxu0 %v12701_v36  ;;  %v12784_v60 = vld [vmem:[%s16181_s7 + $0x8ac] ss:$16 sps:$4 sm:$0xff]   ;;  %v12782_v36 = vld [vmem:[%s16181_s7 + $0x8a8] ss:$16 sps:$4 sm:$0xff]  }
 0x697   : > { %8557 = vmatprep.subr.bf16.mxu0 %v12709_v29  ;;  %8587 = vmatprep.mubr.bf16.mxu0 %v16367_v33  ;;  %v12790_v29 = vld [vmem:[%s16181_s7 + $0x8cc] ss:$16 sps:$4 sm:$0xff]  }
 0x698   : > { %8349 = vmatmul.mubr.bf16.vlgmr.msra.gmra.mrb[24].mxu1 %v8082_v41  ;;  %v12779_v41 = vld [vmem:[%s16181_s7 + $0x8a0] ss:$16 sps:$4 sm:$0xff]  }
 0x699   : > { %8597 = vmatpush1.bf16.msra.mxu1 %v12704_v57  ;;  %8628 = vmatprep.mubr.bf16.mxu1 %v16367_v33  ;;  %v12787_v57 = vld [vmem:[%s16181_s7 + $0x8c4] ss:$16 sps:$4 sm:$0xff]  }
 0x69a   : > { %8598 = vmatprep.subr.bf16.mxu1 %v12712_v59  ;;  %8558 = vmatpush1.bf16.msra.mxu0 %v12707_v8 }
 0x69b   : > { %8559 = vmatprep.subr.bf16.mxu0 %v12715_v63  ;;  %v12788_v63 = vld [vmem:[%s16181_s7 + $0x8c8] ss:$16 sps:$4 sm:$0xff]  }
 0x69d   : > { %8599 = vmatpush1.bf16.msra.mxu1 %v12710_v3  ;;  %v12785_v3 = vld [vmem:[%s16181_s7 + $0x8c0] ss:$16 sps:$4 sm:$0xff]  }
 0x69e   : > { %8600 = vmatprep.subr.bf16.mxu1 %v12718_v38  ;;  %8560 = vmatpush1.bf16.msra.mxu0 %v12713_v54 }
 0x69f   : > { %8561 = vmatprep.subr.bf16.mxu0 %v12721_v16 }
 0x6a1   : > { %8601 = vmatpush1.bf16.msra.mxu1 %v12716_v14 }
 0x6a2   : > { %8602 = vmatprep.subr.bf16.mxu1 %v12724_v0  ;;  %8562 = vmatpush1.bf16.msra.mxu0 %v12719_v62  ;;  %v12793_v0 = vld [vmem:[%s16181_s7 + $0x8e4] ss:$16 sps:$4 sm:$0xff]   ;;  %v12796_v62 = vld [vmem:[%s16181_s7 + $0x8ec] ss:$16 sps:$4 sm:$0xff]  }
 0x6a3   : > { %8563 = vmatprep.subr.bf16.mxu0 %v12727_v43 }
 0x6a5   : > { %8603 = vmatpush1.bf16.msra.mxu1 %v12722_v45 }
 0x6a6   : > { %8604 = vmatprep.subr.bf16.mxu1 %v12730_v48  ;;  %8564 = vmatpush1.bf16.msra.mxu0 %v12725_v10 }
 0x6a7   : > { %8565 = vmatprep.subr.bf16.mxu0 %v12733_v44  ;;  %v15613_v17 = vpop.f32.mrb[0].mxu0 }
 0x6a8   : > { %v15617_v49 = vpop.f32.mrb[1].mxu0 }
 0x6a9   : > { %8605 = vmatpush1.bf16.msra.mxu1 %v12728_v58  ;;  %v6675_v39 = vpop.f32.mrb[2].mxu0 }
 0x6aa   : > { %8606 = vmatprep.subr.bf16.mxu1 %v12736_v51  ;;  %8566 = vmatpush1.bf16.msra.mxu0 %v12731_v21  ;;  %v6676_v22 = vpop.f32.mrb[3].mxu0  ;;  %v12791_v51 = vld [vmem:[%s16181_s7 + $0x8e0] ss:$16 sps:$4 sm:$0xff]   ;;  %v12794_v21 = vld [vmem:[%s16181_s7 + $0x8e8] ss:$16 sps:$4 sm:$0xff]  }
 0x6ab   : > { %v15615_v55 = vpop.f32.mrb[0].mxu1  ;;  %8567 = vmatprep.subr.bf16.mxu0 %v12739_v19  ;;  %v12799_v19 = vld [vmem:[%s16181_s7 + $0x904] ss:$16 sps:$4 sm:$0xff]   ;;  %v12806_v39 = vld [vmem:[%s16181_s7 + $0x928] ss:$16 sps:$4 sm:$0xff]  }
 0x6ac   : > { %v15619_v37 = vpop.f32.mrb[1].mxu1  ;;  %v12809_v22 = vld [vmem:[%s16181_s7 + $0x940] ss:$16 sps:$4 sm:$0xff]  }
 0x6ad   : > { %v6716_v42 = vpop.f32.mrb[2].mxu1  ;;  %8607 = vmatpush1.bf16.msra.mxu1 %v12734_v46  ;;  %v8641_v46 = vld [vmem:[#allocation7 + $0x40] sm:$0xff] }
 0x6ae   : > { %v6717_v53 = vpop.f32.mrb[3].mxu1  ;;  %8608 = vmatprep.subr.bf16.mxu1 %v12742_v40  ;;  %8568 = vmatpush1.bf16.msra.mxu0 %v12737_v13  ;;  %v12802_v40 = vld [vmem:[%s16181_s7 + $0x90c] ss:$16 sps:$4 sm:$0xff]   ;;  %v12811_v42 = vld [vmem:[%s16181_s7 + $0x944] ss:$16 sps:$4 sm:$0xff]  }
 0x6af   : > { %8569 = vmatprep.subr.bf16.mxu0 %v12745_v47  ;;  %v12808_v13 = vld [vmem:[%s16181_s7 + $0x92c] ss:$16 sps:$4 sm:$0xff]   ;;  %v12812_v53 = vld [vmem:[%s16181_s7 + $0x948] ss:$16 sps:$4 sm:$0xff]  }
 0x6b0   : > { %v12814_v47 = vld [vmem:[%s16181_s7 + $0x94c] ss:$16 sps:$4 sm:$0xff]  }
 0x6b1   : > { %8609 = vmatpush1.bf16.msra.mxu1 %v12740_v2  ;;  %v12803_v2 = vld [vmem:[%s16181_s7 + $0x920] ss:$16 sps:$4 sm:$0xff]  }
 0x6b2   : > { %8610 = vmatprep.subr.bf16.mxu1 %v12748_v7  ;;  %8570 = vmatpush1.bf16.msra.mxu0 %v12743_v20  ;;  %v12817_v7 = vld [vmem:[%s16181_s7 + $0x964] ss:$16 sps:$4 sm:$0xff]   ;;  %v12820_v20 = vld [vmem:[%s16181_s7 + $0x96c] ss:$16 sps:$4 sm:$0xff]  }
 0x6b3   : > { %8835 = vmatprep.subr.bf16.mxu0 %v12751_v61  ;;  %v12823_v61 = vld [vmem:[%s16181_s7 + $0x984] ss:$16 sps:$4 sm:$0xff]  }
 0x6b5   : > { %8611 = vmatpush1.bf16.msra.mxu1 %v12746_v25  ;;  %8588 = vmatmul.mubr.bf16.vlgmr.msra.gmra.mrb[28].mxu0 %v8362_v56  ;;  %v12815_v25 = vld [vmem:[%s16181_s7 + $0x960] ss:$16 sps:$4 sm:$0xff]  }
 0x6b6   : > { %8876 = vmatprep.subr.bf16.mxu1 %v12754_v15  ;;  %8836 = vmatpush1.bf16.msra.mxu0 %v12749_v28  ;;  %v12826_v15 = vld [vmem:[%s16181_s7 + $0x98c] ss:$16 sps:$4 sm:$0xff]   ;;  %v12824_v28 = vld [vmem:[%s16181_s7 + $0x988] ss:$16 sps:$4 sm:$0xff]  }
 0x6b7   : > { %8837 = vmatprep.subr.bf16.mxu0 %v12757_v50  ;;  %8867 = vmatprep.mubr.bf16.mxu0 %v16367_v33  ;;  %v12832_v50 = vld [vmem:[%s16181_s7 + $0x9ac] ss:$16 sps:$4 sm:$0xff]  }
 0x6b8   : > { %8629 = vmatmul.mubr.bf16.vlgmr.msra.gmra.mrb[28].mxu1 %v8362_v56  ;;  %v12821_v56 = vld [vmem:[%s16181_s7 + $0x980] ss:$16 sps:$4 sm:$0xff]  }
 0x6b9   : > { %8877 = vmatpush1.bf16.msra.mxu1 %v12752_v26  ;;  %8908 = vmatprep.mubr.bf16.mxu1 %v16367_v33  ;;  %v12829_v26 = vld [vmem:[%s16181_s7 + $0x9a4] ss:$16 sps:$4 sm:$0xff]  }
 0x6ba   : > { %8878 = vmatprep.subr.bf16.mxu1 %v12760_v24  ;;  %8838 = vmatpush1.bf16.msra.mxu0 %v12755_v30  ;;  %v12827_v24 = vld [vmem:[%s16181_s7 + $0x9a0] ss:$16 sps:$4 sm:$0xff]   ;;  %v12830_v30 = vld [vmem:[%s16181_s7 + $0x9a8] ss:$16 sps:$4 sm:$0xff]  }
 0x6bb   : > { %8839 = vmatprep.subr.bf16.mxu0 %v12763_v18  ;;  %v12838_v18 = vld [vmem:[%s16181_s7 + $0x9cc] ss:$16 sps:$4 sm:$0xff]  }
 0x6bd   : > { %8879 = vmatpush1.bf16.msra.mxu1 %v12758_v23  ;;  %v12835_v23 = vld [vmem:[%s16181_s7 + $0x9c4] ss:$16 sps:$4 sm:$0xff]  }
 0x6be   : > { %8880 = vmatprep.subr.bf16.mxu1 %v12766_v1  ;;  %8840 = vmatpush1.bf16.msra.mxu0 %v12761_v6 }
 0x6bf   : > { %8841 = vmatprep.subr.bf16.mxu0 %v12769_v5 }
 0x6c1   : > { %8881 = vmatpush1.bf16.msra.mxu1 %v12764_v9 }
 0x6c2   : > { %8882 = vmatprep.subr.bf16.mxu1 %v12772_v32  ;;  %8842 = vmatpush1.bf16.msra.mxu0 %v12767_v35 }
 0x6c3   : > { %8843 = vmatprep.subr.bf16.mxu0 %v12775_v27 }
 0x6c5   : > { %8883 = vmatpush1.bf16.msra.mxu1 %v12770_v31 }
 0x6c6   : > { %8884 = vmatprep.subr.bf16.mxu1 %v12778_v4  ;;  %8844 = vmatpush1.bf16.msra.mxu0 %v12773_v12 }
 0x6c7   : > { %8845 = vmatprep.subr.bf16.mxu0 %v12781_v52  ;;  %v12836_v52 = vld [vmem:[%s16181_s7 + $0x9c8] ss:$16 sps:$4 sm:$0xff]  }
 0x6c8   : > { %v6913_v59 = vpop.f32.mrb[4].mxu0 }
 0x6c9   : > { %8885 = vmatpush1.bf16.msra.mxu1 %v12776_v34  ;;  %v15726_v38 = vadd.f32 %v6913_v59, %v15613_v17  ;;  %v6915_v14 = vpop.f32.mrb[5].mxu0  ;;  %v8642_v17 = vpack.c.bf16 %v8641_v46, %v8641_v46  ;;  %v12833_v34 = vld [vmem:[%s16181_s7 + $0x9c0] ss:$16 sps:$4 sm:$0xff]   ;;  %v12842_v59 = vld [vmem:[%s16181_s7 + $0x9e8] ss:$16 sps:$4 sm:$0xff]  }
 0x6ca   : > { %8886 = vmatprep.subr.bf16.mxu1 %v12784_v60  ;;  %v15738_v45 = vadd.f32 %v6915_v14, %v15617_v49  ;;  %v6917_v48 = vpop.f32.mrb[6].mxu0  ;;  %8846 = vmatpush1.bf16.msra.mxu0 %v12779_v41  ;;  %v12800_v49 = vld [vmem:[%s16181_s7 + $0x908] ss:$16 sps:$4 sm:$0xff]  }
 0x6cb   : > { %v6954_v8 = vpop.f32.mrb[4].mxu1  ;;  %v6918_v58 = vpop.f32.mrb[7].mxu0  ;;  %8847 = vmatprep.subr.bf16.mxu0 %v12787_v57  ;;  %v12844_v57 = vld [vmem:[%s16181_s7 + $0x9ec] ss:$16 sps:$4 sm:$0xff]   ;;  %v12848_v14 = vld [vmem:[%s16181_s7 + $0xa08] ss:$16 sps:$4 sm:$0xff]  }
 0x6cc   : > { %v15729_v54 = vadd.f32 %v6954_v8, %v15615_v55  ;;  %v6956_v16 = vpop.f32.mrb[5].mxu1  ;;  %v12797_v55 = vld [vmem:[%s16181_s7 + $0x900] ss:$16 sps:$4 sm:$0xff]   ;;  %v12862_v48 = vld [vmem:[%s16181_s7 + $0xa4c] ss:$16 sps:$4 sm:$0xff]  }
 0x6cd   : > { %v15741_v43 = vadd.f32 %v6956_v16, %v15619_v37  ;;  %v6958_v10 = vpop.f32.mrb[6].mxu1  ;;  %8887 = vmatpush1.bf16.msra.mxu1 %v12782_v36  ;;  %v12805_v37 = vld [vmem:[%s16181_s7 + $0x924] ss:$16 sps:$4 sm:$0xff]   ;;  %v8921_v8 = vld [vmem:[#allocation7 + $0x48] sm:$0xff]  ;;  %v12860_v58 = vld [vmem:[%s16181_s7 + $0xa48] ss:$16 sps:$4 sm:$0xff]  }
 0x6ce   : > { %v6959_v44 = vpop.f32.mrb[7].mxu1  ;;  %8888 = vmatprep.subr.bf16.mxu1 %v12790_v29  ;;  %8848 = vmatpush1.bf16.msra.mxu0 %v12785_v3  ;;  %v12841_v36 = vld [vmem:[%s16181_s7 + $0x9e4] ss:$16 sps:$4 sm:$0xff]   ;;  %v12839_v29 = vld [vmem:[%s16181_s7 + $0x9e0] ss:$16 sps:$4 sm:$0xff]  }
 0x6cf   : > { %8849 = vmatprep.subr.bf16.mxu0 %v12793_v0  ;;  %v12847_v3 = vld [vmem:[%s16181_s7 + $0xa04] ss:$16 sps:$4 sm:$0xff]   ;;  %v12856_v0 = vld [vmem:[%s16181_s7 + $0xa2c] ss:$16 sps:$4 sm:$0xff]   ;;  %v12857_v10 = vld [vmem:[%s16181_s7 + $0xa40] ss:$16 sps:$4 sm:$0xff]  }
 0x6d0   : > { %v12853_v16 = vld [vmem:[%s16181_s7 + $0xa24] ss:$16 sps:$4 sm:$0xff]   ;;  %v12866_v46 = vld [vmem:[%s16181_s7 + $0xa68] ss:$16 sps:$4 sm:$0xff]  }
 0x6d1   : > { %8889 = vmatpush1.bf16.msra.mxu1 %v12788_v63  ;;  %v12850_v63 = vld [vmem:[%s16181_s7 + $0xa0c] ss:$16 sps:$4 sm:$0xff]   ;;  %v12865_v44 = vld [vmem:[%s16181_s7 + $0xa64] ss:$16 sps:$4 sm:$0xff]  }
 0x6d2   : > { %8890 = vmatprep.subr.bf16.mxu1 %v12796_v62  ;;  %8850 = vmatpush1.bf16.msra.mxu0 %v12791_v51  ;;  %v12851_v62 = vld [vmem:[%s16181_s7 + $0xa20] ss:$16 sps:$4 sm:$0xff]   ;;  %v12868_v51 = vld [vmem:[%s16181_s7 + $0xa6c] ss:$16 sps:$4 sm:$0xff]  }
 0x6d3   : > { %9115 = vmatprep.subr.bf16.mxu0 %v12799_v19  ;;  %v12871_v19 = vld [vmem:[%s16181_s7 + $0xa84] ss:$16 sps:$4 sm:$0xff]  }
 0x6d5   : > { %8891 = vmatpush1.bf16.msra.mxu1 %v12794_v21  ;;  %8868 = vmatmul.mubr.bf16.vlgmr.msra.gmra.mrb[32].mxu0 %v8642_v17  ;;  %v12863_v21 = vld [vmem:[%s16181_s7 + $0xa60] ss:$16 sps:$4 sm:$0xff]  }
 0x6d6   : > { %9156 = vmatprep.subr.bf16.mxu1 %v12802_v40  ;;  %9116 = vmatpush1.bf16.msra.mxu0 %v12797_v55  ;;  %v12874_v40 = vld [vmem:[%s16181_s7 + $0xa8c] ss:$16 sps:$4 sm:$0xff]   ;;  %v12872_v55 = vld [vmem:[%s16181_s7 + $0xa88] ss:$16 sps:$4 sm:$0xff]  }
 0x6d7   : > { %9117 = vmatprep.subr.bf16.mxu0 %v12805_v37  ;;  %9147 = vmatprep.mubr.bf16.mxu0 %v16367_v33  ;;  %v12880_v37 = vld [vmem:[%s16181_s7 + $0xaac] ss:$16 sps:$4 sm:$0xff]  }
 0x6d8   : > { %8909 = vmatmul.mubr.bf16.vlgmr.msra.gmra.mrb[32].mxu1 %v8642_v17  ;;  %v12869_v17 = vld [vmem:[%s16181_s7 + $0xa80] ss:$16 sps:$4 sm:$0xff]  }
 0x6d9   : > { %9157 = vmatpush1.bf16.msra.mxu1 %v12800_v49  ;;  %9188 = vmatprep.mubr.bf16.mxu1 %v16367_v33  ;;  %v12877_v49 = vld [vmem:[%s16181_s7 + $0xaa4] ss:$16 sps:$4 sm:$0xff]  }
 0x6da   : > { %9158 = vmatprep.subr.bf16.mxu1 %v12808_v13  ;;  %9118 = vmatpush1.bf16.msra.mxu0 %v12803_v2  ;;  %v12875_v13 = vld [vmem:[%s16181_s7 + $0xaa0] ss:$16 sps:$4 sm:$0xff]   ;;  %v12878_v2 = vld [vmem:[%s16181_s7 + $0xaa8] ss:$16 sps:$4 sm:$0xff]  }
 0x6db   : > { %9119 = vmatprep.subr.bf16.mxu0 %v12811_v42  ;;  %v12886_v42 = vld [vmem:[%s16181_s7 + $0xacc] ss:$16 sps:$4 sm:$0xff]  }
 0x6dd   : > { %9159 = vmatpush1.bf16.msra.mxu1 %v12806_v39  ;;  %v12883_v39 = vld [vmem:[%s16181_s7 + $0xac4] ss:$16 sps:$4 sm:$0xff]  }
 0x6de   : > { %9160 = vmatprep.subr.bf16.mxu1 %v12814_v47  ;;  %9120 = vmatpush1.bf16.msra.mxu0 %v12809_v22 }
 0x6df   : > { %9121 = vmatprep.subr.bf16.mxu0 %v12817_v7 }
 0x6e1   : > { %9161 = vmatpush1.bf16.msra.mxu1 %v12812_v53 }
 0x6e2   : > { %9162 = vmatprep.subr.bf16.mxu1 %v12820_v20  ;;  %9122 = vmatpush1.bf16.msra.mxu0 %v12815_v25 }
 0x6e3   : > { %9123 = vmatprep.subr.bf16.mxu0 %v12823_v61 }
 0x6e5   : > { %9163 = vmatpush1.bf16.msra.mxu1 %v12818_v11 }
 0x6e6   : > { %9164 = vmatprep.subr.bf16.mxu1 %v12826_v15  ;;  %9124 = vmatpush1.bf16.msra.mxu0 %v12821_v56 }
 0x6e7   : > { %9125 = vmatprep.subr.bf16.mxu0 %v12829_v26  ;;  %v12884_v26 = vld [vmem:[%s16181_s7 + $0xac8] ss:$16 sps:$4 sm:$0xff]  }
 0x6e8   : > { %v7189_v1 = vpop.f32.mrb[8].mxu0 }
 0x6e9   : > { %9165 = vmatpush1.bf16.msra.mxu1 %v12824_v28  ;;  %v15830_v9 = vadd.f32 %v7189_v1, %v15726_v38  ;;  %v7191_v32 = vpop.f32.mrb[9].mxu0  ;;  %v8922_v38 = vpack.c.bf16 %v8921_v8, %v8921_v8  ;;  %v12881_v28 = vld [vmem:[%s16181_s7 + $0xac0] ss:$16 sps:$4 sm:$0xff]   ;;  %v12890_v1 = vld [vmem:[%s16181_s7 + $0xae8] ss:$16 sps:$4 sm:$0xff]  }
 0x6ea   : > { %9166 = vmatprep.subr.bf16.mxu1 %v12832_v50  ;;  %v15836_v31 = vadd.f32 %v7191_v32, %v15738_v45  ;;  %v7193_v4 = vpop.f32.mrb[10].mxu0  ;;  %9126 = vmatpush1.bf16.msra.mxu0 %v12827_v24  ;;  %v12854_v45 = vld [vmem:[%s16181_s7 + $0xa28] ss:$16 sps:$4 sm:$0xff]   ;;  %v12919_v8 = vld [vmem:[%s16181_s7 + $0xb84] ss:$16 sps:$4 sm:$0xff]  }
 0x6eb   : > { %v7230_v6 = vpop.f32.mrb[8].mxu1  ;;  %v7194_v60 = vpop.f32.mrb[11].mxu0  ;;  %9127 = vmatprep.subr.bf16.mxu0 %v12835_v23  ;;  %v12892_v23 = vld [vmem:[%s16181_s7 + $0xaec] ss:$16 sps:$4 sm:$0xff]  }
 0x6ec   : > { %v15833_v5 = vadd.f32 %v7230_v6, %v15729_v54  ;;  %v7232_v35 = vpop.f32.mrb[9].mxu1  ;;  %v12845_v54 = vld [vmem:[%s16181_s7 + $0xa00] ss:$16 sps:$4 sm:$0xff]   ;;  %v9201_v6 = vld [vmem:[#allocation7 + $0x50] sm:$0xff]  ;;  %v12904_v4 = vld [vmem:[%s16181_s7 + $0xb2c] ss:$16 sps:$4 sm:$0xff]  }
 0x6ed   : > { %v15839_v27 = vadd.f32 %v7232_v35, %v15741_v43  ;;  %v7234_v12 = vpop.f32.mrb[10].mxu1  ;;  %9167 = vmatpush1.bf16.msra.mxu1 %v12830_v30  ;;  %v12859_v43 = vld [vmem:[%s16181_s7 + $0xa44] ss:$16 sps:$4 sm:$0xff]   ;;  %v9202_v32 = vpack.c.bf16 %v9201_v6, %v9201_v6  ;;  %v12893_v35 = vld [vmem:[%s16181_s7 + $0xb00] ss:$16 sps:$4 sm:$0xff]  }
 0x6ee   : > { %v7235_v41 = vpop.f32.mrb[11].mxu1  ;;  %9168 = vmatprep.subr.bf16.mxu1 %v12838_v18  ;;  %9128 = vmatpush1.bf16.msra.mxu0 %v12833_v34  ;;  %v12889_v30 = vld [vmem:[%s16181_s7 + $0xae4] ss:$16 sps:$4 sm:$0xff]   ;;  %v12887_v18 = vld [vmem:[%s16181_s7 + $0xae0] ss:$16 sps:$4 sm:$0xff]  }
 0x6ef   : > { %9129 = vmatprep.subr.bf16.mxu0 %v12841_v36  ;;  %v12899_v12 = vld [vmem:[%s16181_s7 + $0xb20] ss:$16 sps:$4 sm:$0xff]   ;;  %v12902_v34 = vld [vmem:[%s16181_s7 + $0xb28] ss:$16 sps:$4 sm:$0xff]   ;;  %v12910_v60 = vld [vmem:[%s16181_s7 + $0xb4c] ss:$16 sps:$4 sm:$0xff]  }
 0x6f0   : > { %v12905_v41 = vld [vmem:[%s16181_s7 + $0xb40] ss:$16 sps:$4 sm:$0xff]   ;;  %v12908_v36 = vld [vmem:[%s16181_s7 + $0xb48] ss:$16 sps:$4 sm:$0xff]  }
 0x6f1   : > { %9169 = vmatpush1.bf16.msra.mxu1 %v12836_v52  ;;  %v12907_v52 = vld [vmem:[%s16181_s7 + $0xb44] ss:$16 sps:$4 sm:$0xff]  }
 0x6f2   : > { %9170 = vmatprep.subr.bf16.mxu1 %v12844_v57  ;;  %9130 = vmatpush1.bf16.msra.mxu0 %v12839_v29  ;;  %v12913_v57 = vld [vmem:[%s16181_s7 + $0xb64] ss:$16 sps:$4 sm:$0xff]   ;;  %v12911_v29 = vld [vmem:[%s16181_s7 + $0xb60] ss:$16 sps:$4 sm:$0xff]  }
 0x6f3   : > { %9395 = vmatprep.subr.bf16.mxu0 %v12847_v3  ;;  %v12922_v3 = vld [vmem:[%s16181_s7 + $0xb8c] ss:$16 sps:$4 sm:$0xff]  }
 0x6f5   : > { %9171 = vmatpush1.bf16.msra.mxu1 %v12842_v59  ;;  %9148 = vmatmul.mubr.bf16.vlgmr.msra.gmra.mrb[36].mxu0 %v8922_v38  ;;  %v12914_v59 = vld [vmem:[%s16181_s7 + $0xb68] ss:$16 sps:$4 sm:$0xff]  }
 0x6f6   : > { %9436 = vmatprep.subr.bf16.mxu1 %v12850_v63  ;;  %9396 = vmatpush1.bf16.msra.mxu0 %v12845_v54  ;;  %v12917_v63 = vld [vmem:[%s16181_s7 + $0xb80] ss:$16 sps:$4 sm:$0xff]   ;;  %v12925_v54 = vld [vmem:[%s16181_s7 + $0xba4] ss:$16 sps:$4 sm:$0xff]  }
 0x6f7   : > { %9397 = vmatprep.subr.bf16.mxu0 %v12853_v16  ;;  %9427 = vmatprep.mubr.bf16.mxu0 %v16367_v33  ;;  %v12923_v16 = vld [vmem:[%s16181_s7 + $0xba0] ss:$16 sps:$4 sm:$0xff]  }
 0x6f8   : > { %9189 = vmatmul.mubr.bf16.vlgmr.msra.gmra.mrb[36].mxu1 %v8922_v38  ;;  %v12920_v38 = vld [vmem:[%s16181_s7 + $0xb88] ss:$16 sps:$4 sm:$0xff]  }
 0x6f9   : > { %9437 = vmatpush1.bf16.msra.mxu1 %v12848_v14  ;;  %9468 = vmatprep.mubr.bf16.mxu1 %v16367_v33  ;;  %v12928_v14 = vld [vmem:[%s16181_s7 + $0xbac] ss:$16 sps:$4 sm:$0xff]  }
 0x6fa   : > { %9438 = vmatprep.subr.bf16.mxu1 %v12856_v0  ;;  %9398 = vmatpush1.bf16.msra.mxu0 %v12851_v62  ;;  %v12926_v0 = vld [vmem:[%s16181_s7 + $0xba8] ss:$16 sps:$4 sm:$0xff]   ;;  %v12931_v62 = vld [vmem:[%s16181_s7 + $0xbc4] ss:$16 sps:$4 sm:$0xff]  }
 0x6fb   : > { %9399 = vmatprep.subr.bf16.mxu0 %v12859_v43 }
 0x6fd   : > { %9439 = vmatpush1.bf16.msra.mxu1 %v12854_v45  ;;  %v12934_v45 = vld [vmem:[%s16181_s7 + $0xbcc] ss:$16 sps:$4 sm:$0xff]  }
 0x6fe   : > { %9440 = vmatprep.subr.bf16.mxu1 %v12862_v48  ;;  %9400 = vmatpush1.bf16.msra.mxu0 %v12857_v10 }
 0x6ff   : > { %9401 = vmatprep.subr.bf16.mxu0 %v12865_v44 }
 0x701   : > { %9441 = vmatpush1.bf16.msra.mxu1 %v12860_v58 }
 0x702   : > { %9442 = vmatprep.subr.bf16.mxu1 %v12868_v51  ;;  %9402 = vmatpush1.bf16.msra.mxu0 %v12863_v21 }
 0x703   : > { %9403 = vmatprep.subr.bf16.mxu0 %v12871_v19 }
 0x705   : > { %9443 = vmatpush1.bf16.msra.mxu1 %v12866_v46 }
 0x706   : > { %9444 = vmatprep.subr.bf16.mxu1 %v12874_v40  ;;  %9404 = vmatpush1.bf16.msra.mxu0 %v12869_v17  ;;  %v12929_v17 = vld [vmem:[%s16181_s7 + $0xbc0] ss:$16 sps:$4 sm:$0xff]  }
 0x707   : > { %9405 = vmatprep.subr.bf16.mxu0 %v12877_v49 }
 0x708   : > { %v7469_v47 = vpop.f32.mrb[12].mxu0 }
 0x709   : > { %9445 = vmatpush1.bf16.msra.mxu1 %v12872_v55  ;;  %v15940_v53 = vadd.f32 %v7469_v47, %v15830_v9  ;;  %v7471_v20 = vpop.f32.mrb[13].mxu0  ;;  %v12895_v9 = vld [vmem:[%s16181_s7 + $0xb04] ss:$16 sps:$4 sm:$0xff]   ;;  %v12932_v55 = vld [vmem:[%s16181_s7 + $0xbc8] ss:$16 sps:$4 sm:$0xff]   ;;  %v9481_v47 = vld [vmem:[#allocation7 + $0x58] sm:$0xff] }
 0x70a   : > { %9446 = vmatprep.subr.bf16.mxu1 %v12880_v37  ;;  %v15946_v11 = vadd.f32 %v7471_v20, %v15836_v31  ;;  %v7473_v15 = vpop.f32.mrb[14].mxu0  ;;  %9406 = vmatpush1.bf16.msra.mxu0 %v12875_v13  ;;  %v12896_v31 = vld [vmem:[%s16181_s7 + $0xb08] ss:$16 sps:$4 sm:$0xff]   ;;  %v12937_v13 = vld [vmem:[%s16181_s7 + $0xbe4] ss:$16 sps:$4 sm:$0xff]  }
 0x70b   : > { %v7510_v22 = vpop.f32.mrb[12].mxu1  ;;  %v7474_v50 = vpop.f32.mrb[15].mxu0  ;;  %9407 = vmatprep.subr.bf16.mxu0 %v12883_v39  ;;  %v12935_v39 = vld [vmem:[%s16181_s7 + $0xbe0] ss:$16 sps:$4 sm:$0xff]  }
 0x70c   : > { %v15943_v7 = vadd.f32 %v7510_v22, %v15833_v5  ;;  %v7512_v25 = vpop.f32.mrb[13].mxu1  ;;  %v12898_v5 = vld [vmem:[%s16181_s7 + $0xb0c] ss:$16 sps:$4 sm:$0xff]   ;;  %v9482_v22 = vpack.c.bf16 %v9481_v47, %v9481_v47 }
 0x70d   : > { %v15949_v61 = vadd.f32 %v7512_v25, %v15839_v27  ;;  %v7514_v56 = vpop.f32.mrb[14].mxu1  ;;  %9447 = vmatpush1.bf16.msra.mxu1 %v12878_v2  ;;  %v12901_v27 = vld [vmem:[%s16181_s7 + $0xb24] ss:$16 sps:$4 sm:$0xff]   ;;  %v12940_v2 = vld [vmem:[%s16181_s7 + $0xbec] ss:$16 sps:$4 sm:$0xff]  }
 0x70e   : > { %v7515_v24 = vpop.f32.mrb[15].mxu1  ;;  %9448 = vmatprep.subr.bf16.mxu1 %v12886_v42  ;;  %9408 = vmatpush1.bf16.msra.mxu0 %v12881_v28  ;;  %v12938_v42 = vld [vmem:[%s16181_s7 + $0xbe8] ss:$16 sps:$4 sm:$0xff]  }
 0x70f   : > { %9409 = vmatprep.subr.bf16.mxu0 %v12889_v30 }
 0x711   : > { %9449 = vmatpush1.bf16.msra.mxu1 %v12884_v26 }
 0x712   : > { %9450 = vmatprep.subr.bf16.mxu1 %v12892_v23  ;;  %9410 = vmatpush1.bf16.msra.mxu0 %v12887_v18 }
 0x713   : > { %9675 = vmatprep.subr.bf16.mxu0 %v12895_v9 }
 0x715   : > { %9451 = vmatpush1.bf16.msra.mxu1 %v12890_v1  ;;  %9428 = vmatmul.mubr.bf16.vlgmr.msra.gmra.mrb[40].mxu0 %v9202_v32 }
 0x716   : > { %9716 = vmatprep.subr.bf16.mxu1 %v12898_v5  ;;  %9676 = vmatpush1.bf16.msra.mxu0 %v12893_v35 }
 0x717   : > { %9677 = vmatprep.subr.bf16.mxu0 %v12901_v27  ;;  %9707 = vmatprep.mubr.bf16.mxu0 %v16367_v33 }
 0x718   : > { %9469 = vmatmul.mubr.bf16.vlgmr.msra.gmra.mrb[40].mxu1 %v9202_v32 }
 0x719   : > { %9717 = vmatpush1.bf16.msra.mxu1 %v12896_v31  ;;  %9748 = vmatprep.mubr.bf16.mxu1 %v16367_v33  ;;  %v12916_v33 = vld [vmem:[%s16181_s7 + $0xb6c] ss:$16 sps:$4 sm:$0xff]  }
 0x71a   : > { %9718 = vmatprep.subr.bf16.mxu1 %v12904_v4  ;;  %9678 = vmatpush1.bf16.msra.mxu0 %v12899_v12  ;;  %v12941_v12 = vld [vmem:[%s16183_s9 + $0x40] sm:$0xff]  }
 0x71b   : > { %9679 = vmatprep.subr.bf16.mxu0 %v12907_v52  ;;  %v12943_v52 = vld [vmem:[%s16183_s9] sm:$0xff]  }
 0x71d   : > { %9719 = vmatpush1.bf16.msra.mxu1 %v12902_v34  ;;  %v12942_v34 = vld [vmem:[%s16183_s9 + $0xc0] sm:$0xff]  }
 0x71e   : > { %9720 = vmatprep.subr.bf16.mxu1 %v12910_v60  ;;  %9680 = vmatpush1.bf16.msra.mxu0 %v12905_v41  ;;  %v12944_v60 = vld [vmem:[%s16183_s9 + $0x80] sm:$0xff]   ;;  %v12945_v41 = vld [vmem:[%s16183_s9 + $0x48] sm:$0xff]  }
 0x71f   : > { %9681 = vmatprep.subr.bf16.mxu0 %v12913_v57  ;;  %v12947_v57 = vld [vmem:[%s16183_s9 + $0x8] sm:$0xff]  }
 0x721   : > { %9721 = vmatpush1.bf16.msra.mxu1 %v12908_v36  ;;  %v12946_v36 = vld [vmem:[%s16183_s9 + $0xc8] sm:$0xff]  }
 0x722   : > { %9722 = vmatprep.subr.bf16.mxu1 %v12916_v33  ;;  %9682 = vmatpush1.bf16.msra.mxu0 %v12911_v29  ;;  %v12948_v33 = vld [vmem:[%s16183_s9 + $0x88] sm:$0xff]   ;;  %v12949_v29 = vld [vmem:[%s16183_s9 + $0x50] sm:$0xff]  }
 0x723   : > { %9683 = vmatprep.subr.bf16.mxu0 %v12919_v8  ;;  %v12951_v8 = vld [vmem:[%s16183_s9 + $0x10] sm:$0xff]  }
 0x725   : > { %9723 = vmatpush1.bf16.msra.mxu1 %v12914_v59  ;;  %v12950_v59 = vld [vmem:[%s16183_s9 + $0xd0] sm:$0xff]  }
 0x726   : > { %9724 = vmatprep.subr.bf16.mxu1 %v12922_v3  ;;  %9684 = vmatpush1.bf16.msra.mxu0 %v12917_v63  ;;  %v12952_v3 = vld [vmem:[%s16183_s9 + $0x90] sm:$0xff]   ;;  %v12953_v63 = vld [vmem:[%s16183_s9 + $0x58] sm:$0xff]  }
 0x727   : > { %9685 = vmatprep.subr.bf16.mxu0 %v12925_v54  ;;  %v12955_v54 = vld [vmem:[%s16183_s9 + $0x18] sm:$0xff]  }
 0x728   : > { %v7749_v43 = vpop.f32.mrb[16].mxu0 }
 0x729   : > { %9725 = vmatpush1.bf16.msra.mxu1 %v12920_v38  ;;  %v7797_v10 = vadd.f32 %v7749_v43, %v15940_v53  ;;  %v7751_v44 = vpop.f32.mrb[17].mxu0  ;;  %v12954_v38 = vld [vmem:[%s16183_s9 + $0xd8] sm:$0xff]   ;;  %v12961_v43 = vld [vmem:[%s16183_s9 + $0x68] sm:$0xff]  }
 0x72a   : > { %9726 = vmatprep.subr.bf16.mxu1 %v12928_v14  ;;  %v7798_v21 = vadd.f32 %v7751_v44, %v15946_v11  ;;  %v7753_v19 = vpop.f32.mrb[18].mxu0  ;;  %9686 = vmatpush1.bf16.msra.mxu0 %v12923_v16  ;;  %v12956_v14 = vld [vmem:[%s16183_s9 + $0x98] sm:$0xff]   ;;  %v12957_v16 = vld [vmem:[%s16183_s9 + $0x60] sm:$0xff]  }
 0x72b   : > { %v7790_v48 = vpop.f32.mrb[16].mxu1  ;;  %v7754_v49 = vpop.f32.mrb[19].mxu0  ;;  %9687 = vmatprep.subr.bf16.mxu0 %v12931_v62  ;;  %v12959_v62 = vld [vmem:[%s16183_s9 + $0x20] sm:$0xff]  }
 0x72c   : > { %v7799_v58 = vadd.f32 %v7790_v48, %v15943_v7  ;;  %v7792_v51 = vpop.f32.mrb[17].mxu1  ;;  %v12962_v48 = vld [vmem:[%s16183_s9 + $0xe8] sm:$0xff]  }
 0x72d   : > { %v7800_v46 = vadd.f32 %v7792_v51, %v15949_v61  ;;  %v7794_v40 = vpop.f32.mrb[18].mxu1  ;;  %9727 = vmatpush1.bf16.msra.mxu1 %v12926_v0  ;;  %v12958_v0 = vld [vmem:[%s16183_s9 + $0xe0] sm:$0xff]  }
 0x72e   : > { %v7795_v37 = vpop.f32.mrb[19].mxu1  ;;  %9728 = vmatprep.subr.bf16.mxu1 %v12934_v45  ;;  %9688 = vmatpush1.bf16.msra.mxu0 %v12929_v17  ;;  %v12960_v45 = vld [vmem:[%s16183_s9 + $0xa0] sm:$0xff]   ;;  %v12965_v17 = vld [vmem:[%s16183_s9 + $0x70] sm:$0xff]  }
 0x72f   : > { %9689 = vmatprep.subr.bf16.mxu0 %v12937_v13 }
 0x731   : > { %9729 = vmatpush1.bf16.msra.mxu1 %v12932_v55  ;;  %v12966_v55 = vld [vmem:[%s16183_s9 + $0xf0] sm:$0xff]  }
 0x732   : > { %9730 = vmatprep.subr.bf16.mxu1 %v12940_v2  ;;  %9690 = vmatpush1.bf16.msra.mxu0 %v12935_v39  ;;  %v12967_v39 = vld [vmem:[%s16183_s9 + $0x30] sm:$0xff]  }
 0x733   : > { %11378 = vmatprep.subr.bf16.mxu0 %v12941_v12 }
 0x735   : > { %9731 = vmatpush1.bf16.msra.mxu1 %v12938_v42  ;;  %9708 = vmatmul.mubr.bf16.vlgmr.msra.gmra.mrb[44].mxu0 %v9482_v22  ;;  %v12968_v42 = vld [vmem:[%s16183_s9 + $0xb0] sm:$0xff]  }
 0x736   : > { %11400 = vmatprep.subr.bf16.mxu1 %v12942_v34  ;;  %11379 = vmatpush3.bf16.msra.mxu0 %v12943_v52 }
 0x737   : > { %11380 = vmatprep.subr.bf16.mxu0 %v12945_v41 }
 0x738   : > { %9749 = vmatmul.mubr.bf16.vlgmr.msra.gmra.mrb[44].mxu1 %v9482_v22 }
 0x739   : > { %11401 = vmatpush3.bf16.msra.mxu1 %v12944_v60 }
 0x73a   : > { %11402 = vmatprep.subr.bf16.mxu1 %v12946_v36  ;;  %11381 = vmatpush3.bf16.msra.mxu0 %v12947_v57 }
 0x73b   : > { %11382 = vmatprep.subr.bf16.mxu0 %v12949_v29 }
 0x73d   : > { %11403 = vmatpush3.bf16.msra.mxu1 %v12948_v33 }
 0x73e   : > { %11404 = vmatprep.subr.bf16.mxu1 %v12950_v59  ;;  %11383 = vmatpush3.bf16.msra.mxu0 %v12951_v8 }
 0x73f   : > { %11384 = vmatprep.subr.bf16.mxu0 %v12953_v63 }
 0x741   : > { %11405 = vmatpush3.bf16.msra.mxu1 %v12952_v3 }
 0x742   : > { %11406 = vmatprep.subr.bf16.mxu1 %v12954_v38  ;;  %11385 = vmatpush3.bf16.msra.mxu0 %v12955_v54 }
 0x743   : > { %11386 = vmatprep.subr.bf16.mxu0 %v12957_v16  ;;  %v9763_v16 = vlaneseq }
 0x745   : > { %11407 = vmatpush3.bf16.msra.mxu1 %v12956_v14 }
 0x746   : > { %11408 = vmatprep.subr.bf16.mxu1 %v12958_v0  ;;  %11387 = vmatpush3.bf16.msra.mxu0 %v12959_v62  ;;  %v9764_v0 = vshrl.u32 %v9763_v16, 7 }
 0x747   : > { %11388 = vmatprep.subr.bf16.mxu0 %v12961_v43  ;;  %v9761_v43 = vld [vmem:[%s16182_s8] sm:$0xf] }
 0x748   : > { %v8029_v53 = vpop.f32.mrb[20].mxu0  ;;  %v9765_v62 = vsub.s32 0, %v9764_v0 }
 0x749   : > { %v8077_v20 = vadd.f32 %v8029_v53, %v7797_v10  ;;  %v8031_v11 = vpop.f32.mrb[21].mxu0  ;;  %11409 = vmatpush3.bf16.msra.mxu1 %v12960_v45  ;;  %v12963_v10 = vld [vmem:[%s16183_s9 + $0x28] sm:$0xff]   ;;  %v12969_v53 = vld [vmem:[%s16183_s9 + $0x78] sm:$0xff]   ;;  %v9773_v45 = vsub.s32 2, %v9764_v0 }
 0x74a   : > { %v8078_v15 = vadd.f32 %v8031_v11, %v7798_v21  ;;  %v8033_v28 = vpop.f32.mrb[22].mxu0  ;;  %11410 = vmatprep.subr.bf16.mxu1 %v12962_v48  ;;  %11389 = vmatpush3.bf16.msra.mxu0 %v12963_v10  ;;  %v9769_v48 = vsub.s32 1, %v9764_v0  ;;  %v9777_v10 = vsub.s32 3, %v9764_v0 }
 0x74b   : > { %v8070_v7 = vpop.f32.mrb[20].mxu1  ;;  %v8034_v50 = vpop.f32.mrb[23].mxu0  ;;  %11390 = vmatprep.subr.bf16.mxu0 %v12965_v17 }
 0x74c   : > { %v8079_v25 = vadd.f32 %v8070_v7, %v7799_v58  ;;  %v8072_v61 = vpop.f32.mrb[21].mxu1  ;;  %v12964_v58 = vld [vmem:[%s16183_s9 + $0xa8] sm:$0xff]   ;;  %v12970_v7 = vld [vmem:[%s16183_s9 + $0xf8] sm:$0xff]  }
 0x74d   : > { %v8080_v56 = vadd.f32 %v8072_v61, %v7800_v46  ;;  %v8074_v26 = vpop.f32.mrb[22].mxu1  ;;  %11411 = vmatpush3.bf16.msra.mxu1 %v12964_v58  ;;  %v9766_v58 = vrot.slane %v9761_v43, %v9765_v62 }
 0x74e   : > { %v8075_v24 = vpop.f32.mrb[23].mxu1  ;;  %11412 = vmatprep.subr.bf16.mxu1 %v12966_v55  ;;  %11391 = vmatpush3.bf16.msra.mxu0 %v12967_v39 }
 0x74f   : > { %11392 = vmatprep.subr.bf16.mxu0 %v12969_v53 }
 0x751   : > { %11413 = vmatpush3.bf16.msra.mxu1 %v12968_v42 }
 0x752   : > { %11414 = vmatprep.subr.bf16.mxu1 %v12970_v7 }
 0x768   : > { %v8309_v30 = vpop.f32.mrb[24].mxu0 }
 0x769   : > { %v8357_v18 = vadd.f32 %v8309_v30, %v8077_v20  ;;  %v8311_v6 = vpop.f32.mrb[25].mxu0  ;;  %v12971_v20 = vld [vmem:[%s16183_s9 + $0x38] sm:$0xff]  }
 0x76a   : > { %v8358_v5 = vadd.f32 %v8311_v6, %v8078_v15  ;;  %v8313_v35 = vpop.f32.mrb[26].mxu0  ;;  %11393 = vmatpush3.bf16.msra.mxu0 %v12971_v20 }
 0x76b   : > { %v8350_v23 = vpop.f32.mrb[24].mxu1  ;;  %v8314_v27 = vpop.f32.mrb[27].mxu0 }
 0x76c   : > { %v8359_v1 = vadd.f32 %v8350_v23, %v8079_v25  ;;  %v8352_v9 = vpop.f32.mrb[25].mxu1  ;;  %v12972_v25 = vld [vmem:[%s16183_s9 + $0xb8] sm:$0xff]  }
 0x76d   : > { %v8360_v32 = vadd.f32 %v8352_v9, %v8080_v56  ;;  %v8354_v31 = vpop.f32.mrb[26].mxu1  ;;  %11415 = vmatpush3.bf16.msra.mxu1 %v12972_v25 }
 0x76e   : > { %v8355_v4 = vpop.f32.mrb[27].mxu1 }
 0x788   : > { %v8589_v44 = vpop.f32.mrb[28].mxu0 }
 0x789   : > { %v8637_v21 = vadd.f32 %v8589_v44, %v8357_v18  ;;  %v8591_v19 = vpop.f32.mrb[29].mxu0  ;;  %v9774_v44 = vrot.slane %v9761_v43, %v9773_v45 }
 0x78a   : > { %v8638_v49 = vadd.f32 %v8591_v19, %v8358_v5  ;;  %v8593_v13 = vpop.f32.mrb[30].mxu0  ;;  %v9778_v19 = vrot.slane %v9761_v43, %v9777_v10 }
 0x78b   : > { %v8630_v51 = vpop.f32.mrb[28].mxu1  ;;  %v8594_v47 = vpop.f32.mrb[31].mxu0 }
 0x78c   : > { %v8639_v46 = vadd.f32 %v8630_v51, %v8359_v1  ;;  %v8632_v40 = vpop.f32.mrb[29].mxu1 }
 0x78d   : > { %v8640_v37 = vadd.f32 %v8632_v40, %v8360_v32  ;;  %v8634_v2 = vpop.f32.mrb[30].mxu1 }
 0x78e   : > { %v8635_v22 = vpop.f32.mrb[31].mxu1 }
 0x7a8   : > { %v8869_v11 = vpop.f32.mrb[32].mxu0 }
 0x7a9   : > { %v8917_v15 = vadd.f32 %v8869_v11, %v8637_v21  ;;  %v8871_v28 = vpop.f32.mrb[33].mxu0 }
 0x7aa   : > { %v8918_v50 = vadd.f32 %v8871_v28, %v8638_v49  ;;  %v8873_v30 = vpop.f32.mrb[34].mxu0 }
 0x7ab   : > { %v8910_v61 = vpop.f32.mrb[32].mxu1  ;;  %v8874_v18 = vpop.f32.mrb[35].mxu0 }
 0x7ac   : > { %v8919_v56 = vadd.f32 %v8910_v61, %v8639_v46  ;;  %v8912_v26 = vpop.f32.mrb[33].mxu1  ;;  %v9770_v46 = vrot.slane %v9761_v43, %v9769_v48 }
 0x7ad   : > { %v8920_v24 = vadd.f32 %v8912_v26, %v8640_v37  ;;  %v8914_v23 = vpop.f32.mrb[34].mxu1 }
 0x7ae   : > { %v8915_v1 = vpop.f32.mrb[35].mxu1  ;;  %v11071_v23 = vld [vmem:[#allocation8] ss:$0 sm:$0xff] }
 0x7c8   : > { %v9149_v6 = vpop.f32.mrb[36].mxu0 }
 0x7c9   : > { %v9197_v5 = vadd.f32 %v9149_v6, %v8917_v15  ;;  %v9151_v35 = vpop.f32.mrb[37].mxu0 }
 0x7ca   : > { %v9198_v27 = vadd.f32 %v9151_v35, %v8918_v50  ;;  %v9153_v12 = vpop.f32.mrb[38].mxu0 }
 0x7cb   : > { %v9190_v9 = vpop.f32.mrb[36].mxu1  ;;  %v9154_v52 = vpop.f32.mrb[39].mxu0 }
 0x7cc   : > { %v9199_v32 = vadd.f32 %v9190_v9, %v8919_v56  ;;  %v9192_v31 = vpop.f32.mrb[37].mxu1 }
 0x7cd   : > { %v9200_v4 = vadd.f32 %v9192_v31, %v8920_v24  ;;  %v9194_v34 = vpop.f32.mrb[38].mxu1 }
 0x7ce   : > { %v9195_v60 = vpop.f32.mrb[39].mxu1 }
 0x7e8   : > { %v9429_v41 = vpop.f32.mrb[40].mxu0 }
 0x7e9   : > { %v9477_v57 = vadd.f32 %v9429_v41, %v9197_v5  ;;  %v9431_v29 = vpop.f32.mrb[41].mxu0 }
 0x7ea   : > { %v9478_v8 = vadd.f32 %v9431_v29, %v9198_v27  ;;  %v9433_v63 = vpop.f32.mrb[42].mxu0 }
 0x7eb   : > { %v9470_v36 = vpop.f32.mrb[40].mxu1  ;;  %v9434_v54 = vpop.f32.mrb[43].mxu0 }
 0x7ec   : > { %v9479_v33 = vadd.f32 %v9470_v36, %v9199_v32  ;;  %v9472_v59 = vpop.f32.mrb[41].mxu1 }
 0x7ed   : > { %v9480_v3 = vadd.f32 %v9472_v59, %v9200_v4  ;;  %v9474_v38 = vpop.f32.mrb[42].mxu1 }
 0x7ee   : > { %v9475_v14 = vpop.f32.mrb[43].mxu1 }
 0x808   : > { %v9709_v51 = vpop.f32.mrb[44].mxu0 }
 0x809   : > { %v9757_v40 = vadd.f32 %v9709_v51, %v9477_v57  ;;  %v9711_v55 = vpop.f32.mrb[45].mxu0 }
 0x80a   : > { %v9758_v37 = vadd.f32 %v9711_v55, %v9478_v8  ;;  %v9713_v2 = vpop.f32.mrb[46].mxu0 }
 0x80b   : > { %v9750_v21 = vpop.f32.mrb[44].mxu1  ;;  %v9783_v42 = vadd.f32 %v9766_v58, %v9757_v40  ;;  %v9714_v22 = vpop.f32.mrb[47].mxu0 }
 0x80c   : > { %v9759_v17 = vadd.f32 %v9750_v21, %v9479_v33  ;;  %v9752_v49 = vpop.f32.mrb[45].mxu1  ;;  %v9784_v7 = vadd.f32 %v9770_v46, %v9758_v37 }
 0x80d   : > { %v9760_v13 = vadd.f32 %v9752_v49, %v9480_v3  ;;  %v9754_v39 = vpop.f32.mrb[46].mxu1  ;;  %v9787_v25 = vmax.f32 %v9783_v42, 0.0 }
 0x80e   : > { %v9785_v47 = vadd.f32 %v9774_v44, %v9759_v17  ;;  %v9755_v53 = vpop.f32.mrb[47].mxu1  ;;  %v9788_v61 = vmax.f32 %v9784_v7, 0.0 }
 0x80f   : > { %v9786_v20 = vadd.f32 %v9778_v19, %v9760_v13  ;;  %v9791_v26 = vpack.c.bf16 %v9787_v25, %v9787_v25 }
 0x810   : > { %v9789_v11 = vmax.f32 %v9785_v47, 0.0  ;;  %v9792_v56 = vpack.c.bf16 %v9788_v61, %v9788_v61 }
 0x811   : > { %v9790_v15 = vmax.f32 %v9786_v20, 0.0 }
 0x812   : > { %v9793_v50 = vpack.c.bf16 %v9789_v11, %v9789_v11  ;;  %10090 = vmatprep.mubr.bf16.mxu0 %v9792_v56 }
 0x813   : > { %v9794_v28 = vpack.c.bf16 %v9790_v15, %v9790_v15  ;;  %10091 = vmatmul.mubr.bf16.vlgmr.msra.gmra.mrb[48].mxu0 %v9791_v26 }
 0x815   : > { %10130 = vmatprep.mubr.bf16.mxu1 %v9794_v28 }
 0x816   : > { %10131 = vmatmul.mubr.bf16.vlgmr.msra.gmra.mrb[48].mxu1 %v9793_v50 }
 0x8e6   : > { %v11394_v24 = vpop.f32.mrb[48].mxu0 }
 0x8e7   : > { %v11395_v18 = vpop.f32.mrb[49].mxu0 }
 0x8e8   : > { %v11396_v6 = vadd.f32 %v11395_v18, %v11394_v24  ;;  %v11397_v5 = vpop.f32.mrb[50].mxu0 }
 0x8e9   : > { %v11416_v30 = vpop.f32.mrb[48].mxu1  ;;  %v11398_v35 = vpop.f32.mrb[51].mxu0 }
 0x8ea   : > { %v11417_v1 = vpop.f32.mrb[49].mxu1  ;;  %v10093_v27 = vadd.f32 %v11396_v6, %v11071_v23 }
 0x8eb   : > { %v11418_v9 = vadd.f32 %v11417_v1, %v11416_v30  ;;  %v11419_v32 = vpop.f32.mrb[50].mxu1 }
 0x8ec   : > { %v11420_v31 = vpop.f32.mrb[51].mxu1 }
 0x8ed   : > { %v10133_v4 = vadd.f32 %v11418_v9, %v10093_v27 }
 0x8ef   : > { %v10138_v12 = vsub.f32 0.0, %v10133_v4 }
 0x8f1   : > { %v10139_v34 = vmul.f32 1.442695, %v10138_v12 }
 0x8f3   : > { %12973 = vpow2.f32 %v10139_v34 }
 0x8fd   : > { %v12974_v52 = vpop.eup %12973 }
 0x8fe   : > { %v10141_v60 = vadd.f32 1.0, %v12974_v52 }
 0x900   : > { %12975 = vrcp.f32 %v10141_v60 }
 0x90a   : > { %v12976_v41 = vpop.eup %12975 }
 0x90b   : > { %10145 = vst.msk [vmem:[%s13140_s27] sm:$0xff] %vm10144_vm0, %v12976_v41 }
 0x90c PF: > { %s23_s19 = sadd.s32 1, %s12987_s19  }
 0x90d   : > { %p20_p6 = scmp.ge.s32.totalorder %s23_s19, 4  }
 0x90f   :  { %22 = sbr.rel (!%p20_p6) target bundleno = 3 (0x3), region = 259 }

</bundles_post_ra>
